<compile_context>
chip_gen: v7x
topology: tpu7x:2x2x1
jax: 0.10.0
libtpu: 0.0.40
codegen_flags: <defaults>
</compile_context>

<pallas_src>
import functools

import jax
import jax.numpy as jnp
from jax.experimental import pallas as pl
from jax.experimental.pallas import tpu as pltpu

# ---- NeRF hyper-parameters (PyTorch module defaults) -----------------------
D = 8
W = 256
INPUT_CH = 3
INPUT_CH_VIEWS = 3
OUTPUT_CH = 4
SKIPS = (4,)
# use_viewdirs=False (module default); views_linears / feature / alpha / rgb
# branches are therefore not exercised by forward().
# TODO(synk): use_viewdirs=True branch not implemented (default config is False).


def nerf_kernel(pts_ref, w_in_ref, w_hid_ref, b_hid_ref, w_out_ref, b_out_ref,
                o_ref):
    """One batch-tile of the full NeRF MLP.

    pts_ref   : (TILE, 3)   f32   input_pts
    w_in_ref  : (3, 512)    bf16  [W0 | W_skip_pts] packed along lanes
    w_hid_ref : (7, 256, 256) bf16  [W1..W4, W_skip_h, W6, W7]
    b_hid_ref : (8, 256)    f32   biases of the 8 pts_linears
    w_out_ref : (256, 4)    bf16  output_linear weight
    b_out_ref : (1, 4)      f32   output_linear bias
    o_ref     : (TILE, 4)   f32
    """
    pts = pts_ref[...].astype(jnp.bfloat16)                    # (TILE, 3)

    # Fused K=3 matmul: one MXU push for layer-0 and the skip pts-term.
    pre = jnp.dot(pts, w_in_ref[...],
                  preferred_element_type=jnp.float32)           # (TILE, 512)
    skip_pre = pre[:, W:]                                       # pts @ W_skip_pts

    # layer 0: Linear(3, 256) + ReLU
    h = jnp.maximum(pre[:, :W] + b_hid_ref[0], 0.0)

    # layers 1..7 (skip connection at layer 5 input == layer index 4 output)
    for i in range(1, D):
        hw = jnp.dot(h.astype(jnp.bfloat16), w_hid_ref[i - 1],
                     preferred_element_type=jnp.float32)
        if (i - 1) in SKIPS:
            # h was cat([input_pts, h]) in the reference; split the matmul.
            hw = hw + skip_pre
        h = jnp.maximum(hw + b_hid_ref[i], 0.0)

    out = jnp.dot(h.astype(jnp.bfloat16), w_out_ref[...],
                  preferred_element_type=jnp.float32)
    o_ref[...] = (out + b_out_ref[...]).astype(o_ref.dtype)


@functools.partial(jax.jit, static_argnames=("tile",))
def nerf_forward(x, w_in, w_hid, b_hid, w_out, b_out, *, tile=512):
    n = x.shape[0]
    tile = min(tile, n)
    assert n % tile == 0, "batch must be a multiple of the tile size"
    pts = x[:, :INPUT_CH]                      # input_views unused
    grid = (n // tile,)

    flops = 2 * n * (INPUT_CH * 2 * W + (D - 1) * W * W + W * OUTPUT_CH)
    bytes_accessed = (n * INPUT_CH * 4 + n * OUTPUT_CH * 4          # pts + out
                      + (w_in.size + w_hid.size + w_out.size) * 2   # bf16
                      + (b_hid.size + b_out.size) * 4)              # f32

    return pl.pallas_call(
        nerf_kernel,
        out_shape=jax.ShapeDtypeStruct((n, OUTPUT_CH), jnp.float32),
        grid_spec=pltpu.PrefetchScalarGridSpec(
            num_scalar_prefetch=0,
            grid=grid,
            in_specs=[
                pl.BlockSpec((tile, INPUT_CH), lambda i: (i, 0)),
                pl.BlockSpec((INPUT_CH, 2 * W), lambda i: (0, 0)),
                pl.BlockSpec((D - 1, W, W), lambda i: (0, 0, 0)),
                pl.BlockSpec((D, W), lambda i: (0, 0)),
                pl.BlockSpec((W, OUTPUT_CH), lambda i: (0, 0)),
                pl.BlockSpec((1, OUTPUT_CH), lambda i: (0, 0)),
            ],
            out_specs=pl.BlockSpec((tile, OUTPUT_CH), lambda i: (i, 0)),
        ),
        compiler_params=pltpu.CompilerParams(
            dimension_semantics=("parallel",),
            vmem_limit_bytes=32 * 1024 * 1024),
        cost_estimate=pl.CostEstimate(
            flops=flops, transcendentals=0, bytes_accessed=bytes_accessed),
    )(pts, w_in, w_hid, b_hid, w_out, b_out)


def init_params(key):
    """Deterministic synthetic weights with PyTorch nn.Linear init/shapes
    (stored transposed: (in_features, out_features)); matmul weights in bf16."""
    keys = jax.random.split(key, D + 1)

    def lin(k, fan_in, fan_out):
        bound = float(1.0 / (fan_in ** 0.5))
        kw, kb = jax.random.split(k)
        w = jax.random.uniform(kw, (fan_in, fan_out), jnp.float32,
                               -bound, bound)
        b = jax.random.uniform(kb, (fan_out,), jnp.float32, -bound, bound)
        return w, b

    # pts_linears
    w0, b0 = lin(keys[0], INPUT_CH, W)
    ws, bs = [], [b0]
    skip_pts = None
    for i in range(1, D):
        if (i - 1) in SKIPS:
            # Linear(W + input_ch, W): split into pts-part and h-part.
            w_full, b = lin(keys[i], W + INPUT_CH, W)
            skip_pts = w_full[:INPUT_CH]            # (3, 256)
            ws.append(w_full[INPUT_CH:])            # (256, 256)
        else:
            w, b = lin(keys[i], W, W)
            ws.append(w)
        bs.append(b)
    wout, bout = lin(keys[D], W, OUTPUT_CH)

    w_in = jnp.concatenate([w0, skip_pts], axis=1).astype(jnp.bfloat16)  # (3, 512)
    w_hid = jnp.stack(ws).astype(jnp.bfloat16)                           # (7, 256, 256)
    b_hid = jnp.stack(bs)                                                # (8, 256) f32
    return (w_in, w_hid, b_hid, wout.astype(jnp.bfloat16),
            bout.reshape(1, OUTPUT_CH))


def nerf_reference(x, w_in, w_hid, b_hid, w_out, b_out):
    """Pure-JAX reference mirroring the PyTorch forward (use_viewdirs=False)
    with the same bf16-operand / f32-accumulation numerics as the kernel."""
    pts = x[:, :INPUT_CH].astype(jnp.bfloat16)
    pre = jnp.dot(pts, w_in, preferred_element_type=jnp.float32)
    h = jnp.maximum(pre[:, :W] + b_hid[0], 0.0)
    for i in range(1, D):
        hw = jnp.dot(h.astype(jnp.bfloat16), w_hid[i - 1],
                     preferred_element_type=jnp.float32)
        if (i - 1) in SKIPS:
            hw = hw + pre[:, W:]
        h = jnp.maximum(hw + b_hid[i], 0.0)
    out = jnp.dot(h.astype(jnp.bfloat16), w_out,
                  preferred_element_type=jnp.float32)
    return out + b_out


if __name__ == "__main__":
    key = jax.random.PRNGKey(0)
    k_x, k_p = jax.random.split(key)

    N = 1024  # rays; tile=512 -> grid of 2 (keeps both v7x TCs busy)
    x = jax.random.normal(k_x, (N, INPUT_CH + INPUT_CH_VIEWS), jnp.float32)
    params = init_params(k_p)

    out = nerf_forward(x, *params, tile=512)
    out = jax.block_until_ready(out)

    ref = nerf_reference(x, *params)
    assert out.shape == (N, OUTPUT_CH)
    err = float(jnp.max(jnp.abs(out - ref)))
    assert err < 1e-3, err

    print("KERNEL_OK")
</pallas_src>

<mosaic_0001>
module attributes {stable_mosaic.version = 11 : i64} {
  func.func @nerf_kernel(%arg0: i32, %arg1: memref<512x3xf32, #tpu.memory_space<vmem>>, %arg2: memref<3x512xbf16, #tpu.memory_space<vmem>>, %arg3: memref<7x256x256xbf16, #tpu.memory_space<vmem>>, %arg4: memref<8x256xf32, #tpu.memory_space<vmem>>, %arg5: memref<256x4xbf16, #tpu.memory_space<vmem>>, %arg6: memref<1x4xf32, #tpu.memory_space<vmem>>, %arg7: memref<512x4xf32, #tpu.memory_space<vmem>>) attributes {dimension_semantics = [#tpu.dimension_semantics<parallel>], iteration_bounds = array<i64: 2>, scalar_prefetch = 0 : i64, scratch_operands = 0 : i64, tpu.core_type = #tpu.core_type<tc>, window_params = [{transform_indices = @transform_0, window_bounds = array<i64: 512, 3>}, {pipeline_mode = #tpu.pipeline_mode<synchronous>, transform_indices = @transform_1, window_bounds = array<i64: 3, 512>}, {pipeline_mode = #tpu.pipeline_mode<synchronous>, transform_indices = @transform_2, window_bounds = array<i64: 7, 256, 256>}, {pipeline_mode = #tpu.pipeline_mode<synchronous>, transform_indices = @transform_3, window_bounds = array<i64: 8, 256>}, {pipeline_mode = #tpu.pipeline_mode<synchronous>, transform_indices = @transform_4, window_bounds = array<i64: 256, 4>}, {pipeline_mode = #tpu.pipeline_mode<synchronous>, transform_indices = @transform_5, window_bounds = array<i64: 1, 4>}, {transform_indices = @transform_6, window_bounds = array<i64: 512, 4>}]} {
    %c0 = arith.constant 0 : index
    %c0_0 = arith.constant 0 : index
    %0 = vector.load %arg1[%c0, %c0_0] : memref<512x3xf32, #tpu.memory_space<vmem>>, vector<512x3xf32>
    %1 = arith.truncf %0 : vector<512x3xf32> to vector<512x3xbf16>
    %c0_1 = arith.constant 0 : index
    %c0_2 = arith.constant 0 : index
    %2 = vector.load %arg2[%c0_1, %c0_2] : memref<3x512xbf16, #tpu.memory_space<vmem>>, vector<3x512xbf16>
    %cst = arith.constant dense<0.000000e+00> : vector<512x512xf32>
    %3 = tpu.matmul %1, %2, %cst {dimension_numbers = #tpu.dot_dimension_numbers<[1], [0], [0], [1], [0, 0, 1, 1], [], []>} : vector<512x3xbf16>, vector<3x512xbf16>, vector<512x512xf32> -> vector<512x512xf32>
    %4 = vector.extract_strided_slice %3 {offsets = [0, 256], sizes = [512, 256], strides = [1, 1]} : vector<512x512xf32> to vector<512x256xf32>
    %5 = vector.extract_strided_slice %3 {offsets = [0, 0], sizes = [512, 256], strides = [1, 1]} : vector<512x512xf32> to vector<512x256xf32>
    %c0_3 = arith.constant 0 : index
    %c0_4 = arith.constant 0 : index
    %6 = vector.load %arg4[%c0_3, %c0_4] : memref<8x256xf32, #tpu.memory_space<vmem>>, vector<1x256xf32>
    %7 = vector.shape_cast %6 : vector<1x256xf32> to vector<256xf32>
    %8 = vector.shape_cast %7 : vector<256xf32> to vector<1x256xf32>
    %9 = vector.broadcast %8 : vector<1x256xf32> to vector<512x256xf32>
    %10 = arith.addf %5, %9 : vector<512x256xf32>
    %cst_5 = arith.constant 0.000000e+00 : f32
    %11 = vector.broadcast %cst_5 : f32 to vector<512x256xf32>
    %12 = arith.maximumf %10, %11 : vector<512x256xf32>
    %13 = arith.truncf %12 : vector<512x256xf32> to vector<512x256xbf16>
    %c0_6 = arith.constant 0 : index
    %c0_7 = arith.constant 0 : index
    %c0_8 = arith.constant 0 : index
    %14 = vector.load %arg3[%c0_6, %c0_7, %c0_8] : memref<7x256x256xbf16, #tpu.memory_space<vmem>>, vector<1x256x256xbf16>
    %15 = vector.shape_cast %14 : vector<1x256x256xbf16> to vector<256x256xbf16>
    %cst_9 = arith.constant dense<0.000000e+00> : vector<512x256xf32>
    %16 = tpu.matmul %13, %15, %cst_9 {dimension_numbers = #tpu.dot_dimension_numbers<[1], [0], [0], [1], [0, 0, 1, 1], [], []>} : vector<512x256xbf16>, vector<256x256xbf16>, vector<512x256xf32> -> vector<512x256xf32>
    %c1 = arith.constant 1 : index
    %c0_10 = arith.constant 0 : index
    %17 = vector.load %arg4[%c1, %c0_10] : memref<8x256xf32, #tpu.memory_space<vmem>>, vector<1x256xf32>
    %18 = vector.shape_cast %17 : vector<1x256xf32> to vector<256xf32>
    %19 = vector.shape_cast %18 : vector<256xf32> to vector<1x256xf32>
    %20 = vector.broadcast %19 : vector<1x256xf32> to vector<512x256xf32>
    %21 = arith.addf %16, %20 : vector<512x256xf32>
    %cst_11 = arith.constant 0.000000e+00 : f32
    %22 = vector.broadcast %cst_11 : f32 to vector<512x256xf32>
    %23 = arith.maximumf %21, %22 : vector<512x256xf32>
    %24 = arith.truncf %23 : vector<512x256xf32> to vector<512x256xbf16>
    %c1_12 = arith.constant 1 : index
    %c0_13 = arith.constant 0 : index
    %c0_14 = arith.constant 0 : index
    %25 = vector.load %arg3[%c1_12, %c0_13, %c0_14] : memref<7x256x256xbf16, #tpu.memory_space<vmem>>, vector<1x256x256xbf16>
    %26 = vector.shape_cast %25 : vector<1x256x256xbf16> to vector<256x256xbf16>
    %cst_15 = arith.constant dense<0.000000e+00> : vector<512x256xf32>
    %27 = tpu.matmul %24, %26, %cst_15 {dimension_numbers = #tpu.dot_dimension_numbers<[1], [0], [0], [1], [0, 0, 1, 1], [], []>} : vector<512x256xbf16>, vector<256x256xbf16>, vector<512x256xf32> -> vector<512x256xf32>
    %c2 = arith.constant 2 : index
    %c0_16 = arith.constant 0 : index
    %28 = vector.load %arg4[%c2, %c0_16] : memref<8x256xf32, #tpu.memory_space<vmem>>, vector<1x256xf32>
    %29 = vector.shape_cast %28 : vector<1x256xf32> to vector<256xf32>
    %30 = vector.shape_cast %29 : vector<256xf32> to vector<1x256xf32>
    %31 = vector.broadcast %30 : vector<1x256xf32> to vector<512x256xf32>
    %32 = arith.addf %27, %31 : vector<512x256xf32>
    %cst_17 = arith.constant 0.000000e+00 : f32
    %33 = vector.broadcast %cst_17 : f32 to vector<512x256xf32>
    %34 = arith.maximumf %32, %33 : vector<512x256xf32>
    %35 = arith.truncf %34 : vector<512x256xf32> to vector<512x256xbf16>
    %c2_18 = arith.constant 2 : index
    %c0_19 = arith.constant 0 : index
    %c0_20 = arith.constant 0 : index
    %36 = vector.load %arg3[%c2_18, %c0_19, %c0_20] : memref<7x256x256xbf16, #tpu.memory_space<vmem>>, vector<1x256x256xbf16>
    %37 = vector.shape_cast %36 : vector<1x256x256xbf16> to vector<256x256xbf16>
    %cst_21 = arith.constant dense<0.000000e+00> : vector<512x256xf32>
    %38 = tpu.matmul %35, %37, %cst_21 {dimension_numbers = #tpu.dot_dimension_numbers<[1], [0], [0], [1], [0, 0, 1, 1], [], []>} : vector<512x256xbf16>, vector<256x256xbf16>, vector<512x256xf32> -> vector<512x256xf32>
    %c3 = arith.constant 3 : index
    %c0_22 = arith.constant 0 : index
    %39 = vector.load %arg4[%c3, %c0_22] : memref<8x256xf32, #tpu.memory_space<vmem>>, vector<1x256xf32>
    %40 = vector.shape_cast %39 : vector<1x256xf32> to vector<256xf32>
    %41 = vector.shape_cast %40 : vector<256xf32> to vector<1x256xf32>
    %42 = vector.broadcast %41 : vector<1x256xf32> to vector<512x256xf32>
    %43 = arith.addf %38, %42 : vector<512x256xf32>
    %cst_23 = arith.constant 0.000000e+00 : f32
    %44 = vector.broadcast %cst_23 : f32 to vector<512x256xf32>
    %45 = arith.maximumf %43, %44 : vector<512x256xf32>
    %46 = arith.truncf %45 : vector<512x256xf32> to vector<512x256xbf16>
    %c3_24 = arith.constant 3 : index
    %c0_25 = arith.constant 0 : index
    %c0_26 = arith.constant 0 : index
    %47 = vector.load %arg3[%c3_24, %c0_25, %c0_26] : memref<7x256x256xbf16, #tpu.memory_space<vmem>>, vector<1x256x256xbf16>
    %48 = vector.shape_cast %47 : vector<1x256x256xbf16> to vector<256x256xbf16>
    %cst_27 = arith.constant dense<0.000000e+00> : vector<512x256xf32>
    %49 = tpu.matmul %46, %48, %cst_27 {dimension_numbers = #tpu.dot_dimension_numbers<[1], [0], [0], [1], [0, 0, 1, 1], [], []>} : vector<512x256xbf16>, vector<256x256xbf16>, vector<512x256xf32> -> vector<512x256xf32>
    %c4 = arith.constant 4 : index
    %c0_28 = arith.constant 0 : index
    %50 = vector.load %arg4[%c4, %c0_28] : memref<8x256xf32, #tpu.memory_space<vmem>>, vector<1x256xf32>
    %51 = vector.shape_cast %50 : vector<1x256xf32> to vector<256xf32>
    %52 = vector.shape_cast %51 : vector<256xf32> to vector<1x256xf32>
    %53 = vector.broadcast %52 : vector<1x256xf32> to vector<512x256xf32>
    %54 = arith.addf %49, %53 : vector<512x256xf32>
    %cst_29 = arith.constant 0.000000e+00 : f32
    %55 = vector.broadcast %cst_29 : f32 to vector<512x256xf32>
    %56 = arith.maximumf %54, %55 : vector<512x256xf32>
    %57 = arith.truncf %56 : vector<512x256xf32> to vector<512x256xbf16>
    %c4_30 = arith.constant 4 : index
    %c0_31 = arith.constant 0 : index
    %c0_32 = arith.constant 0 : index
    %58 = vector.load %arg3[%c4_30, %c0_31, %c0_32] : memref<7x256x256xbf16, #tpu.memory_space<vmem>>, vector<1x256x256xbf16>
    %59 = vector.shape_cast %58 : vector<1x256x256xbf16> to vector<256x256xbf16>
    %cst_33 = arith.constant dense<0.000000e+00> : vector<512x256xf32>
    %60 = tpu.matmul %57, %59, %cst_33 {dimension_numbers = #tpu.dot_dimension_numbers<[1], [0], [0], [1], [0, 0, 1, 1], [], []>} : vector<512x256xbf16>, vector<256x256xbf16>, vector<512x256xf32> -> vector<512x256xf32>
    %61 = arith.addf %60, %4 : vector<512x256xf32>
    %c5 = arith.constant 5 : index
    %c0_34 = arith.constant 0 : index
    %62 = vector.load %arg4[%c5, %c0_34] : memref<8x256xf32, #tpu.memory_space<vmem>>, vector<1x256xf32>
    %63 = vector.shape_cast %62 : vector<1x256xf32> to vector<256xf32>
    %64 = vector.shape_cast %63 : vector<256xf32> to vector<1x256xf32>
    %65 = vector.broadcast %64 : vector<1x256xf32> to vector<512x256xf32>
    %66 = arith.addf %61, %65 : vector<512x256xf32>
    %cst_35 = arith.constant 0.000000e+00 : f32
    %67 = vector.broadcast %cst_35 : f32 to vector<512x256xf32>
    %68 = arith.maximumf %66, %67 : vector<512x256xf32>
    %69 = arith.truncf %68 : vector<512x256xf32> to vector<512x256xbf16>
    %c5_36 = arith.constant 5 : index
    %c0_37 = arith.constant 0 : index
    %c0_38 = arith.constant 0 : index
    %70 = vector.load %arg3[%c5_36, %c0_37, %c0_38] : memref<7x256x256xbf16, #tpu.memory_space<vmem>>, vector<1x256x256xbf16>
    %71 = vector.shape_cast %70 : vector<1x256x256xbf16> to vector<256x256xbf16>
    %cst_39 = arith.constant dense<0.000000e+00> : vector<512x256xf32>
    %72 = tpu.matmul %69, %71, %cst_39 {dimension_numbers = #tpu.dot_dimension_numbers<[1], [0], [0], [1], [0, 0, 1, 1], [], []>} : vector<512x256xbf16>, vector<256x256xbf16>, vector<512x256xf32> -> vector<512x256xf32>
    %c6 = arith.constant 6 : index
    %c0_40 = arith.constant 0 : index
    %73 = vector.load %arg4[%c6, %c0_40] : memref<8x256xf32, #tpu.memory_space<vmem>>, vector<1x256xf32>
    %74 = vector.shape_cast %73 : vector<1x256xf32> to vector<256xf32>
    %75 = vector.shape_cast %74 : vector<256xf32> to vector<1x256xf32>
    %76 = vector.broadcast %75 : vector<1x256xf32> to vector<512x256xf32>
    %77 = arith.addf %72, %76 : vector<512x256xf32>
    %cst_41 = arith.constant 0.000000e+00 : f32
    %78 = vector.broadcast %cst_41 : f32 to vector<512x256xf32>
    %79 = arith.maximumf %77, %78 : vector<512x256xf32>
    %80 = arith.truncf %79 : vector<512x256xf32> to vector<512x256xbf16>
    %c6_42 = arith.constant 6 : index
    %c0_43 = arith.constant 0 : index
    %c0_44 = arith.constant 0 : index
    %81 = vector.load %arg3[%c6_42, %c0_43, %c0_44] : memref<7x256x256xbf16, #tpu.memory_space<vmem>>, vector<1x256x256xbf16>
    %82 = vector.shape_cast %81 : vector<1x256x256xbf16> to vector<256x256xbf16>
    %cst_45 = arith.constant dense<0.000000e+00> : vector<512x256xf32>
    %83 = tpu.matmul %80, %82, %cst_45 {dimension_numbers = #tpu.dot_dimension_numbers<[1], [0], [0], [1], [0, 0, 1, 1], [], []>} : vector<512x256xbf16>, vector<256x256xbf16>, vector<512x256xf32> -> vector<512x256xf32>
    %c7 = arith.constant 7 : index
    %c0_46 = arith.constant 0 : index
    %84 = vector.load %arg4[%c7, %c0_46] : memref<8x256xf32, #tpu.memory_space<vmem>>, vector<1x256xf32>
    %85 = vector.shape_cast %84 : vector<1x256xf32> to vector<256xf32>
    %86 = vector.shape_cast %85 : vector<256xf32> to vector<1x256xf32>
    %87 = vector.broadcast %86 : vector<1x256xf32> to vector<512x256xf32>
    %88 = arith.addf %83, %87 : vector<512x256xf32>
    %cst_47 = arith.constant 0.000000e+00 : f32
    %89 = vector.broadcast %cst_47 : f32 to vector<512x256xf32>
    %90 = arith.maximumf %88, %89 : vector<512x256xf32>
    %91 = arith.truncf %90 : vector<512x256xf32> to vector<512x256xbf16>
    %c0_48 = arith.constant 0 : index
    %c0_49 = arith.constant 0 : index
    %92 = vector.load %arg5[%c0_48, %c0_49] : memref<256x4xbf16, #tpu.memory_space<vmem>>, vector<256x4xbf16>
    %cst_50 = arith.constant dense<0.000000e+00> : vector<512x4xf32>
    %93 = tpu.matmul %91, %92, %cst_50 {dimension_numbers = #tpu.dot_dimension_numbers<[1], [0], [0], [1], [0, 0, 1, 1], [], []>} : vector<512x256xbf16>, vector<256x4xbf16>, vector<512x4xf32> -> vector<512x4xf32>
    %c0_51 = arith.constant 0 : index
    %c0_52 = arith.constant 0 : index
    %94 = vector.load %arg6[%c0_51, %c0_52] : memref<1x4xf32, #tpu.memory_space<vmem>>, vector<1x4xf32>
    %95 = vector.broadcast %94 : vector<1x4xf32> to vector<512x4xf32>
    %96 = arith.addf %93, %95 : vector<512x4xf32>
    %c0_53 = arith.constant 0 : index
    %c0_54 = arith.constant 0 : index
    %97 = vector.load %arg7[%c0_53, %c0_54] : memref<512x4xf32, #tpu.memory_space<vmem>>, vector<512x4xf32>
    tpu.vector_store %arg7[%c0_53, %c0_54], %96 {strides = array<i32>} : memref<512x4xf32, #tpu.memory_space<vmem>>, vector<512x4xf32>,
    return
  }
  func.func @transform_0(%arg0: i32) -> (i32, i32) {
    %c0_i32 = arith.constant 0 : i32
    %c0_i32_0 = arith.constant 0 : i32
    return %arg0, %c0_i32 : i32, i32
  }
  func.func @transform_1(%arg0: i32) -> (i32, i32) {
    %c0_i32 = arith.constant 0 : i32
    %c0_i32_0 = arith.constant 0 : i32
    %c0_i32_1 = arith.constant 0 : i32
    return %c0_i32, %c0_i32_0 : i32, i32
  }
  func.func @transform_2(%arg0: i32) -> (i32, i32, i32) {
    %c0_i32 = arith.constant 0 : i32
    %c0_i32_0 = arith.constant 0 : i32
    %c0_i32_1 = arith.constant 0 : i32
    %c0_i32_2 = arith.constant 0 : i32
    return %c0_i32, %c0_i32_0, %c0_i32_1 : i32, i32, i32
  }
  func.func @transform_3(%arg0: i32) -> (i32, i32) {
    %c0_i32 = arith.constant 0 : i32
    %c0_i32_0 = arith.constant 0 : i32
    %c0_i32_1 = arith.constant 0 : i32
    return %c0_i32, %c0_i32_0 : i32, i32
  }
  func.func @transform_4(%arg0: i32) -> (i32, i32) {
    %c0_i32 = arith.constant 0 : i32
    %c0_i32_0 = arith.constant 0 : i32
    %c0_i32_1 = arith.constant 0 : i32
    return %c0_i32, %c0_i32_0 : i32, i32
  }
  func.func @transform_5(%arg0: i32) -> (i32, i32) {
    %c0_i32 = arith.constant 0 : i32
    %c0_i32_0 = arith.constant 0 : i32
    %c0_i32_1 = arith.constant 0 : i32
    return %c0_i32, %c0_i32_0 : i32, i32
  }
  func.func @transform_6(%arg0: i32) -> (i32, i32) {
    %c0_i32 = arith.constant 0 : i32
    %c0_i32_0 = arith.constant 0 : i32
    return %arg0, %c0_i32 : i32, i32
  }
}

</mosaic_0001>

<bundles_post_ra>
// kernel: nerf_forward.1
= control target key start
LH: loop header
LB: loop body
LE: loop exit
PB: predicated region body
PF: predicated region fallthrough
CT: control target
= control target key end

     0   :  { %11 = vsyncpa [#allocation3], 0  ;;  %s8389_s21 = smov 0   ;;  %s10673_s0 = inlined_call_operand.vmem [shape: f32[1024,3], index: 0, kind: input, shape index: {}]   ;;  %s10674_s1 = inlined_call_operand.vmem [shape: bf16[3,512], index: 1, kind: input, shape index: {}]   ;;  %s10675_s2 = inlined_call_operand.hbm [shape: bf16[7,256,256], index: 2, kind: input, shape index: {}]   ;;  %s10676_s3 = inlined_call_operand.vmem [shape: f32[8,256], index: 3, kind: input, shape index: {}]   ;;  %s10677_s4 = inlined_call_operand.vmem [shape: bf16[256,4], index: 4, kind: input, shape index: {}]   ;;  %s10678_s5 = inlined_call_operand.vmem [shape: f32[1,4], index: 5, kind: input, shape index: {}]   ;;  %s10679_s6 = inlined_call_operand.vmem [shape: f32[1024,4], index: 6, kind: output, shape index: {}]  }
   0x1 LB: > { %s7478_s22 = sadd.s32 4294967295, %s8346_s21   ;;  %p7480_p0 = scmp.ge.s32.totalorder %s8346_s21, 1  ;;  %s8346_s21 = sphi %s8389_s21, %s17_s21  }
   0x2   : > { %p179_p1 = scmp.lt.s32.totalorder %s8346_s21, 3  ;;  %s8348_s23 = smov [#allocation2]  }
   0x3   : > { %s194_s24 = sshll.u32 %s8348_s23, 4  ;;  %p8403_p3 = scmp.eq.s32.totalorder %s7478_s22, 0  ;;  %s195_s24 = int_to_ptr.vmem [resolvable:$true] %s194_s24 }
   0x4   : > { %p8397_p2 = pnand %p7480_p0, %p179_p1  ;;  %s8308_s30 = scalar_lea.hbm %s10675_s2, 28672 }
   0x5   : > { %s10684_s26 = scalar_select %p8403_p3, 1, 0 }
   0x6   : > { %s10683_s25 = scalar_select %p8397_p2, 1, 0 }
   0x7   : > { %p7935_p4 = pneg %p8397_p2  ;;  %p8309_p6 = scmp.ne.s32.totalorder %s10675_s2, %s8308_s30 }
   0x8   : > { %p8315_p10 = scmp.lt.u32.totalorder %s8308_s30, %s10675_s2 }
   0x9   : > { %p8411_p5 = pnand %p8403_p3, %p7935_p4 }
   0xb   : > { %p8310_p7 = pneg %p8411_p5 }
   0xd   : > { %p8311_p8 = pnand %p8310_p7, %p8309_p6 }
   0xf   : > { %p8312_p9 = pneg %p8311_p8 }
  0x11   : > { %p8317_p11 = pnand %p8315_p10, %p8312_p9 }
  0x13   : > { %8320 = shalt.err (!%p8317_p11)
}
  0x14   : > { %s8321_s11 = scalar_lea.vmem %s195_s24, 28672  ;;  %p8329_p1 = scmp.lt.s32.totalorder %s195_s24, %s195_s24 }
  0x15   : > { %p8322_p12 = scmp.ne.s32.totalorder %s195_s24, %s8321_s11  ;;  %p8330_p4 = scmp.lt.s32.totalorder %s8321_s11, %s8321_s11 }
  0x17   : > { %p8324_p13 = pnand %p8322_p12, %p8310_p7  ;;  %p8331_p3 = por %p8330_p4, %p8329_p1 }
  0x19   : > { %p8325_p0 = pneg %p8324_p13 }
  0x1b   : > { %p8332_p2 = pnand %p8331_p3, %p8325_p0 }
  0x1d   : > { %8335 = shalt.err (!%p8332_p2)
}
  0x1e   : > { %s8349_s12 = smov 128   ;;  %s8350_s13 = smov 8  }
  0x1f   : > { %7938 = dma.hbm_to_vmem [thread:$0]  (!%p8411_p5), %s10675_s2, 28672, %s195_s24, [#allocation3], %s8349_s12, %s8349_s12, %s8350_s13  }
  0x20   : > { %p10686_p6 = scmp.ne.s32.totalorder %s10683_s25, 0 }
  0x21   : > { %p10687_p8 = scmp.ne.s32.totalorder (!%p10686_p6), %s10684_s26, 0 }
  0x22   : > { %228 = sbr.rel (%p10686_p6) target bundleno = 2402 (0x962), region = 44 }
  0x29   : > { %8341 = dma.done.wait (%p10687_p8), [#allocation3], 28672  }
  0x2a   : > { %8343 = vsyncadd (%p10687_p8), [#allocation3], 4294938624  ;;  %v373_v0 = vlaneseq  ;;  %v8351_v1 = vmov 1983009808   ;;  %s7485_s16 = sshll.u32 %s7478_s22, 6  ;;  %v8352_v4 = vmov 0  }
  0x2b   : > { %v371_v2 = vunpack.c.l.s4 %v8351_v1  ;;  %531 = vmatprep.mubr.bf16.mxu0 %v8352_v4  ;;  %p259_p2 = scmp.lt.s32.totalorder %s7485_s16, 127  ;;  %884 = vmatprep.mubr.bf16.mxu1 %v8352_v4  ;;  %vm483_vm0 = vcmask 1040384   ;;  %vm484_vm1 = vcmask 1041408   ;;  %v8353_v7 = vmov 65535   ;;  %v8452_v9 = vld [vmem:[%s10674_s1] sm:$0xff] }
  0x2c   : > { %v8439_v3 = vshrl.u32 %v373_v0, 7  ;;  %v485_v8 = vsel %vm483_vm0, 4294967295, %v8353_v7  ;;  %v7957_v16 = vld [vmem:[#allocation2 + $0x4] ss:$8 sps:$4 sm:$0xff]   ;;  %vm386_vm2 = vcmask 23552   ;;  %vm7345_vm3 = vcmask 31744  }
  0x2d   : > { %v372_v5 = vunpack.c.0.s8 %v371_v2  ;;  %s10689_s16 = smov (!%p259_p2, %s7485_s16), 127  ;;  %v8463_v11 = vsel %vm484_vm1, %v485_v8, 0  ;;  %v7955_v19 = vld [vmem:[#allocation2] ss:$8 sps:$4 sm:$0xff]   ;;  %v7960_v20 = vld [vmem:[#allocation2 + $0x14] ss:$8 sps:$4 sm:$0xff]  }
  0x2e   : > { %s7486_s17 = sshll.u32 %s10689_s16, 3  ;;  %v7958_v23 = vld [vmem:[#allocation2 + $0x10] ss:$8 sps:$4 sm:$0xff]   ;;  %v7963_v24 = vld [vmem:[#allocation2 + $0x24] ss:$8 sps:$4 sm:$0xff]  }
  0x2f   : > { %v8446_v6 = vsub.s32 %v372_v5, %v8439_v3  ;;  %s8461_s23 = scalar_lea.vmem %s10673_s0, %s7486_s17  ;;  %v7961_v26 = vld [vmem:[#allocation2 + $0x20] ss:$8 sps:$4 sm:$0xff]   ;;  %v7966_v27 = vld [vmem:[#allocation2 + $0x34] ss:$8 sps:$4 sm:$0xff]   ;;  %v7964_v30 = vld [vmem:[#allocation2 + $0x30] ss:$8 sps:$4 sm:$0xff]   ;;  %s10460_s10 = scalar_lea.vmem %s10679_s6, %s7486_s17 }
  0x30   : > { %v271_v13 = vld [vmem:[%s8461_s23] sm:$0xff]  ;;  %v272_v14 = vld [vmem:[%s8461_s23 + $0x8] sm:$0xff]  ;;  %v273_v21 = vld [vmem:[%s8461_s23 + $0x10] sm:$0xff] }
  0x31   : > { %v376_v10 = vrot.slane %v8452_v9, %v8446_v6  ;;  %v8469_v18 = vpack.c.bf16 %v272_v14, %v271_v13  ;;  %v274_v22 = vld [vmem:[%s8461_s23 + $0x18] sm:$0xff]  ;;  %v275_v28 = vld [vmem:[%s8461_s23 + $0x20] sm:$0xff]  ;;  %v276_v29 = vld [vmem:[%s8461_s23 + $0x28] sm:$0xff] }
  0x32   : > { %v8476_v25 = vpack.c.bf16 %v274_v22, %v273_v21  ;;  %v7969_v31 = vld [vmem:[#allocation2 + $0x44] ss:$8 sps:$4 sm:$0xff]   ;;  %v8483_v32 = vpack.c.bf16 %v276_v29, %v275_v28  ;;  %v7967_v33 = vld [vmem:[#allocation2 + $0x40] ss:$8 sps:$4 sm:$0xff]   ;;  %v7972_v34 = vld [vmem:[#allocation2 + $0x54] ss:$8 sps:$4 sm:$0xff]  }
  0x33   : > { %v384_v12 = vcombine.high %v376_v10, %v376_v10  ;;  %v488_v17 = vand.u32 %v8463_v11, %v376_v10  ;;  %v277_v35 = vld [vmem:[%s8461_s23 + $0x30] sm:$0xff]  ;;  %v278_v36 = vld [vmem:[%s8461_s23 + $0x38] sm:$0xff]  ;;  %v7975_v38 = vld [vmem:[#allocation2 + $0x64] ss:$8 sps:$4 sm:$0xff]  }
  0x34   : > { %v7970_v37 = vld [vmem:[#allocation2 + $0x50] ss:$8 sps:$4 sm:$0xff]   ;;  %v7973_v39 = vld [vmem:[#allocation2 + $0x60] ss:$8 sps:$4 sm:$0xff]   ;;  %v8490_v40 = vpack.c.bf16 %v278_v36, %v277_v35  ;;  %v7978_v41 = vld [vmem:[#allocation2 + $0x74] ss:$8 sps:$4 sm:$0xff]  }
  0x35   : > { %v491_v15 = vand.u32 %v8463_v11, %v384_v12  ;;  %v279_v42 = vld [vmem:[%s8461_s23 + $0x40] sm:$0xff]  ;;  %v280_v43 = vld [vmem:[%s8461_s23 + $0x48] sm:$0xff]  ;;  %v7976_v44 = vld [vmem:[#allocation2 + $0x70] ss:$8 sps:$4 sm:$0xff]  }
  0x36   : > { %v7981_v45 = vld [vmem:[#allocation2 + $0x84] ss:$8 sps:$4 sm:$0xff]   ;;  %v7979_v46 = vld [vmem:[#allocation2 + $0x80] ss:$8 sps:$4 sm:$0xff]   ;;  %v8497_v47 = vpack.c.bf16 %v280_v43, %v279_v42  ;;  %v7984_v48 = vld [vmem:[#allocation2 + $0x94] ss:$8 sps:$4 sm:$0xff]  }
  0x37   : > { %499 = vmatprep.subr.bf16.mxu0 %v491_v15  ;;  %v281_v49 = vld [vmem:[%s8461_s23 + $0x50] sm:$0xff]  ;;  %v282_v50 = vld [vmem:[%s8461_s23 + $0x58] sm:$0xff]  ;;  %v7987_v52 = vld [vmem:[#allocation2 + $0xa4] ss:$8 sps:$4 sm:$0xff]  }
  0x38   : > { %500 = vmatpush1.bf16.msra.mxu0 %v488_v17  ;;  %v7982_v51 = vld [vmem:[#allocation2 + $0x90] ss:$8 sps:$4 sm:$0xff]   ;;  %v7985_v53 = vld [vmem:[#allocation2 + $0xa0] ss:$8 sps:$4 sm:$0xff]   ;;  %v8504_v54 = vpack.c.bf16 %v282_v50, %v281_v49  ;;  %v7990_v59 = vld [vmem:[#allocation2 + $0xb4] ss:$8 sps:$4 sm:$0xff]  }
  0x39   : > { %1742 = vmatprep.subr.bf16.mxu0 %v7957_v16  ;;  %v283_v55 = vld [vmem:[%s8461_s23 + $0x60] sm:$0xff]  ;;  %v284_v56 = vld [vmem:[%s8461_s23 + $0x68] sm:$0xff]  ;;  %v7988_v58 = vld [vmem:[#allocation2 + $0xb0] ss:$8 sps:$4 sm:$0xff]  }
  0x3a   : > { %v8511_v57 = vpack.c.bf16 %v284_v56, %v283_v55  ;;  %v285_v60 = vld [vmem:[%s8461_s23 + $0x70] sm:$0xff]  ;;  %v286_v61 = vld [vmem:[%s8461_s23 + $0x78] sm:$0xff]  ;;  %v287_v63 = vld [vmem:[%s8461_s23 + $0x80] sm:$0xff] }
  0x3b   : > { %7489 = vmatmul.mubr.msk.bf16.vlgmr.msra.gmra.mrb[0].mxu0 %vm386_vm2, %v8469_v18  ;;  %v8518_v62 = vpack.c.bf16 %v286_v61, %v285_v60  ;;  %v288_v0 = vld [vmem:[%s8461_s23 + $0x88] sm:$0xff]  ;;  %v289_v7 = vld [vmem:[%s8461_s23 + $0x90] sm:$0xff]  ;;  %v290_v8 = vld [vmem:[%s8461_s23 + $0x98] sm:$0xff] }
  0x3c   : > { %1743 = vmatpush1.bf16.msra.mxu0 %v7955_v19  ;;  %541 = vmatprep.mubr.bf16.mxu0 %v8352_v4  ;;  %v8525_v1 = vpack.c.bf16 %v288_v0, %v287_v63  ;;  %v7991_v2 = vld [vmem:[#allocation2 + $0xc0] ss:$8 sps:$4 sm:$0xff]   ;;  %v7993_v5 = vld [vmem:[#allocation2 + $0xc4] ss:$8 sps:$4 sm:$0xff]   ;;  %v8532_v10 = vpack.c.bf16 %v290_v8, %v289_v7  ;;  %v293_v15 = vld [vmem:[%s8461_s23 + $0xb0] sm:$0xff] }
  0x3d   : > { %1744 = vmatprep.subr.bf16.mxu0 %v7960_v20  ;;  %v291_v12 = vld [vmem:[%s8461_s23 + $0xa0] sm:$0xff]  ;;  %v292_v13 = vld [vmem:[%s8461_s23 + $0xa8] sm:$0xff]  ;;  %v294_v16 = vld [vmem:[%s8461_s23 + $0xb8] sm:$0xff]  ;;  %v369_v20 = vcombine.high %v8452_v9, %v8452_v9 }
  0x3e   : > { %v8539_v14 = vpack.c.bf16 %v292_v13, %v291_v12  ;;  %v7994_v17 = vld [vmem:[#allocation2 + $0xd0] ss:$8 sps:$4 sm:$0xff]   ;;  %v7996_v19 = vld [vmem:[#allocation2 + $0xd4] ss:$8 sps:$4 sm:$0xff]   ;;  %v8548_v21 = vpack.c.bf16 %v294_v16, %v293_v15  ;;  %v300_v35 = vld [vmem:[%s8461_s23 + $0xe8] sm:$0xff] }
  0x3f   : > { %v383_v22 = vrot.slane %v369_v20, %v8446_v6  ;;  %v297_v6 = vld [vmem:[%s8461_s23 + $0xd0] sm:$0xff]  ;;  %v298_v29 = vld [vmem:[%s8461_s23 + $0xd8] sm:$0xff]  ;;  %v8012_v49 = vld [vmem:[#allocation2 + $0x124] ss:$8 sps:$4 sm:$0xff]  }
  0x40   : > { %1745 = vmatpush1.bf16.msra.mxu0 %v7958_v23  ;;  %v8009_v42 = vld [vmem:[#allocation2 + $0xf4] ss:$8 sps:$4 sm:$0xff]   ;;  %v8013_v55 = vld [vmem:[#allocation2 + $0x130] ss:$8 sps:$4 sm:$0xff]   ;;  %v8016_v63 = vld [vmem:[#allocation2 + $0x140] ss:$8 sps:$4 sm:$0xff]  }
  0x41   : > { %1746 = vmatprep.subr.bf16.mxu0 %v7963_v24  ;;  %v385_v23 = vcombine.high %v383_v22, %v383_v22  ;;  %v295_v24 = vld [vmem:[%s8461_s23 + $0xc0] sm:$0xff]  ;;  %v494_v28 = vand.u32 %v8463_v11, %v383_v22  ;;  %v8015_v56 = vld [vmem:[#allocation2 + $0x134] ss:$8 sps:$4 sm:$0xff]   ;;  %v8019_v12 = vld [vmem:[#allocation2 + $0x150] ss:$8 sps:$4 sm:$0xff]  }
  0x42   : > { %v313_v61 = vld [vmem:[%s8461_s23 + $0x150] sm:$0xff]  ;;  %v8018_v0 = vld [vmem:[#allocation2 + $0x144] ss:$8 sps:$4 sm:$0xff]   ;;  %v322_v20 = vld [vmem:[%s8461_s23 + $0x198] sm:$0xff] }
  0x43   : > { %7490 = vmatmul.mubr.msk.bf16.gmra.mrb[4].mxu0 %vm386_vm2, %v8476_v25  ;;  %v317_v8 = vld [vmem:[%s8461_s23 + $0x170] sm:$0xff]  ;;  %v320_v16 = vld [vmem:[%s8461_s23 + $0x188] sm:$0xff] }
  0x44   : > { %551 = vmatprep.mubr.bf16.mxu0 %v8352_v4  ;;  %1747 = vmatpush1.bf16.msra.mxu0 %v7961_v26  ;;  %v296_v26 = vld [vmem:[%s8461_s23 + $0xc8] sm:$0xff]  ;;  %v8021_v13 = vld [vmem:[#allocation2 + $0x154] ss:$8 sps:$4 sm:$0xff]  }
  0x45   : > { %1748 = vmatprep.subr.bf16.mxu0 %v7966_v27  ;;  %v497_v27 = vand.u32 %v8463_v11, %v385_v23  ;;  %v8558_v9 = vpack.c.bf16 %v296_v26, %v295_v24  ;;  %v8000_v11 = vld [vmem:[#allocation2 + $0x104] ss:$8 sps:$4 sm:$0xff]  }
  0x46   : > { %v8024_v22 = vld [vmem:[#allocation2 + $0x164] ss:$8 sps:$4 sm:$0xff]  }
  0x47   : > { %852 = vmatprep.subr.bf16.mxu1 %v497_v27  ;;  %v323_v24 = vld [vmem:[%s8461_s23 + $0x1a0] sm:$0xff]  ;;  %v324_v26 = vld [vmem:[%s8461_s23 + $0x1a8] sm:$0xff]  ;;  %v8699_v27 = vsub.s32 0, %v8439_v3 }
  0x48   : > { %1749 = vmatpush1.bf16.msra.mxu0 %v7964_v30  ;;  %853 = vmatpush1.bf16.msra.mxu1 %v494_v28  ;;  %v7998_v30 = vld [vmem:[#allocation2 + $0x100] ss:$8 sps:$4 sm:$0xff]   ;;  %v8701_v28 = vpack.c.bf16 %v324_v26, %v323_v24 }
  0x49   : > { %1750 = vmatprep.subr.bf16.mxu0 %v7969_v31  ;;  %v8001_v31 = vld [vmem:[#allocation2 + $0xe0] ss:$8 sps:$4 sm:$0xff]   ;;  %2493 = vmatprep.subr.bf16.mxu1 %v8000_v11 }
  0x4b   : > { %7491 = vmatmul.mubr.msk.bf16.gmra.mrb[8].mxu0 %vm386_vm2, %v8483_v32  ;;  %7521 = vmatmul.mubr.msk.bf16.vlgmr.msra.gmra.mrb[0].mxu1 %vm386_vm2, %v8469_v18  ;;  %v299_v18 = vld [vmem:[%s8461_s23 + $0xe0] sm:$0xff] }
  0x4c   : > { %561 = vmatprep.mubr.bf16.mxu0 %v8352_v4  ;;  %1751 = vmatpush1.bf16.msra.mxu0 %v7967_v33  ;;  %v8003_v33 = vld [vmem:[#allocation2 + $0xe4] ss:$8 sps:$4 sm:$0xff]   ;;  %v8578_v36 = vpack.c.bf16 %v300_v35, %v299_v18 }
  0x4d   : > { %1752 = vmatprep.subr.bf16.mxu0 %v7972_v34  ;;  %894 = vmatprep.mubr.bf16.mxu1 %v8352_v4  ;;  %v8568_v34 = vpack.c.bf16 %v298_v29, %v297_v6  ;;  %v8707_v6 = vsub.s32 1, %v8439_v3  ;;  %v8025_v3 = vld [vmem:[#allocation2 + $0x170] ss:$8 sps:$4 sm:$0xff]  }
  0x4e   : > { %2494 = vmatpush1.bf16.msra.mxu1 %v7998_v30  ;;  %v325_v30 = vld [vmem:[%s8461_s23 + $0x1b0] sm:$0xff] }
  0x50   : > { %1753 = vmatpush1.bf16.msra.mxu0 %v7970_v37  ;;  %v302_v37 = vld [vmem:[%s8461_s23 + $0xf8] sm:$0xff] }
  0x51   : > { %1754 = vmatprep.subr.bf16.mxu0 %v7975_v38  ;;  %v8004_v38 = vld [vmem:[#allocation2 + $0x110] ss:$8 sps:$4 sm:$0xff]  }
  0x53   : > { %7492 = vmatmul.mubr.msk.bf16.gmra.mrb[12].mxu0 %vm386_vm2, %v8490_v40  ;;  %7522 = vmatmul.mubr.msk.bf16.gmra.mrb[4].mxu1 %vm386_vm2, %v8476_v25  ;;  %v301_v25 = vld [vmem:[%s8461_s23 + $0xf0] sm:$0xff] }
  0x54   : > { %571 = vmatprep.mubr.bf16.mxu0 %v8352_v4  ;;  %1755 = vmatpush1.bf16.msra.mxu0 %v7973_v39  ;;  %v8006_v39 = vld [vmem:[#allocation2 + $0x114] ss:$8 sps:$4 sm:$0xff]   ;;  %v8588_v43 = vpack.c.bf16 %v302_v37, %v301_v25 }
  0x55   : > { %1756 = vmatprep.subr.bf16.mxu0 %v7978_v41  ;;  %904 = vmatprep.mubr.bf16.mxu1 %v8352_v4  ;;  %v8007_v41 = vld [vmem:[#allocation2 + $0xf0] ss:$8 sps:$4 sm:$0xff]  }
  0x56   : > { %2495 = vmatprep.subr.bf16.mxu1 %v8006_v39 }
  0x57   : > { %2496 = vmatpush1.bf16.msra.mxu1 %v8004_v38 }
  0x58   : > { %1757 = vmatpush1.bf16.msra.mxu0 %v7976_v44  ;;  %v304_v44 = vld [vmem:[%s8461_s23 + $0x108] sm:$0xff]  ;;  %2497 = vmatprep.subr.bf16.mxu1 %v8012_v49 }
  0x59   : > { %1758 = vmatprep.subr.bf16.mxu0 %v7981_v45 }
  0x5b   : > { %7493 = vmatmul.mubr.msk.bf16.gmra.mrb[16].mxu0 %vm386_vm2, %v8497_v47  ;;  %7523 = vmatmul.mubr.msk.bf16.gmra.mrb[8].mxu1 %vm386_vm2, %v8483_v32  ;;  %v303_v32 = vld [vmem:[%s8461_s23 + $0x100] sm:$0xff] }
  0x5c   : > { %581 = vmatprep.mubr.bf16.mxu0 %v8352_v4  ;;  %1759 = vmatpush1.bf16.msra.mxu0 %v7979_v46  ;;  %v8598_v45 = vpack.c.bf16 %v304_v44, %v303_v32  ;;  %v306_v46 = vld [vmem:[%s8461_s23 + $0x118] sm:$0xff] }
  0x5d   : > { %1760 = vmatprep.subr.bf16.mxu0 %v7984_v48  ;;  %914 = vmatprep.mubr.bf16.mxu1 %v8352_v4  ;;  %v8010_v48 = vld [vmem:[#allocation2 + $0x120] ss:$8 sps:$4 sm:$0xff]  }
  0x5e   : > { %2498 = vmatpush1.bf16.msra.mxu1 %v8010_v48  ;;  %v328_v48 = vld [vmem:[%s8461_s23 + $0x1c8] sm:$0xff] }
  0x5f   : > { %2499 = vmatprep.subr.bf16.mxu1 %v8015_v56 }
  0x60   : > { %1761 = vmatpush1.bf16.msra.mxu0 %v7982_v51  ;;  %v308_v51 = vld [vmem:[%s8461_s23 + $0x128] sm:$0xff] }
  0x61   : > { %1762 = vmatprep.subr.bf16.mxu0 %v7987_v52 }
  0x62   : > { %2500 = vmatpush1.bf16.msra.mxu1 %v8013_v55 }
  0x63   : > { %7494 = vmatmul.mubr.msk.bf16.gmra.mrb[20].mxu0 %vm386_vm2, %v8504_v54  ;;  %7524 = vmatmul.mubr.msk.bf16.gmra.mrb[12].mxu1 %vm386_vm2, %v8490_v40  ;;  %v305_v40 = vld [vmem:[%s8461_s23 + $0x110] sm:$0xff] }
  0x64   : > { %591 = vmatprep.mubr.bf16.mxu0 %v8352_v4  ;;  %1763 = vmatpush1.bf16.msra.mxu0 %v7985_v53  ;;  %v8608_v50 = vpack.c.bf16 %v306_v46, %v305_v40  ;;  %v309_v53 = vld [vmem:[%s8461_s23 + $0x130] sm:$0xff]  ;;  %v327_v46 = vld [vmem:[%s8461_s23 + $0x1c0] sm:$0xff] }
  0x65   : > { %1764 = vmatprep.subr.bf16.mxu0 %v7990_v59  ;;  %924 = vmatprep.mubr.bf16.mxu1 %v8352_v4  ;;  %v312_v59 = vld [vmem:[%s8461_s23 + $0x148] sm:$0xff] }
  0x66   : > { %2501 = vmatprep.subr.bf16.mxu1 %v8018_v0  ;;  %v329_v0 = vld [vmem:[%s8461_s23 + $0x1d0] sm:$0xff] }
  0x67   : > { %2502 = vmatpush1.bf16.msra.mxu1 %v8016_v63 }
  0x68   : > { %1765 = vmatpush1.bf16.msra.mxu0 %v7988_v58  ;;  %2503 = vmatprep.subr.bf16.mxu1 %v8021_v13 }
  0x69   : > { %1766 = vmatprep.subr.bf16.mxu0 %v7993_v5  ;;  %v316_v5 = vld [vmem:[%s8461_s23 + $0x168] sm:$0xff] }
  0x6b   : > { %7495 = vmatmul.mubr.msk.bf16.gmra.mrb[24].mxu0 %vm386_vm2, %v8511_v57  ;;  %7525 = vmatmul.mubr.msk.bf16.gmra.mrb[16].mxu1 %vm386_vm2, %v8497_v47  ;;  %v307_v47 = vld [vmem:[%s8461_s23 + $0x120] sm:$0xff] }
  0x6c   : > { %601 = vmatprep.mubr.bf16.mxu0 %v8352_v4  ;;  %1767 = vmatpush1.bf16.msra.mxu0 %v7991_v2  ;;  %v8618_v52 = vpack.c.bf16 %v308_v51, %v307_v47 }
  0x6d   : > { %1768 = vmatprep.subr.bf16.mxu0 %v7996_v19  ;;  %934 = vmatprep.mubr.bf16.mxu1 %v8352_v4  ;;  %v321_v19 = vld [vmem:[%s8461_s23 + $0x190] sm:$0xff] }
  0x6e   : > { %2504 = vmatpush1.bf16.msra.mxu1 %v8019_v12  ;;  %v8688_v23 = vpack.c.bf16 %v322_v20, %v321_v19  ;;  %v8030_v12 = vld [vmem:[#allocation2 + $0x184] ss:$8 sps:$4 sm:$0xff]  }
  0x6f   : > { %2505 = vmatprep.subr.bf16.mxu1 %v8024_v22 }
  0x70   : > { %1769 = vmatpush1.bf16.msra.mxu0 %v7994_v17 }
  0x71   : > { %1770 = vmatprep.subr.bf16.mxu0 %v8003_v33  ;;  %v8027_v33 = vld [vmem:[#allocation2 + $0x174] ss:$8 sps:$4 sm:$0xff]  }
  0x73   : > { %7496 = vmatmul.mubr.msk.bf16.gmra.mrb[28].mxu0 %vm386_vm2, %v8518_v62  ;;  %7526 = vmatmul.mubr.msk.bf16.gmra.mrb[20].mxu1 %vm386_vm2, %v8504_v54  ;;  %v310_v54 = vld [vmem:[%s8461_s23 + $0x138] sm:$0xff] }
  0x74   : > { %611 = vmatprep.mubr.bf16.mxu0 %v8352_v4  ;;  %1771 = vmatpush1.bf16.msra.mxu0 %v8001_v31  ;;  %v8628_v58 = vpack.c.bf16 %v310_v54, %v309_v53  ;;  %v326_v31 = vld [vmem:[%s8461_s23 + $0x1b8] sm:$0xff]  ;;  %v8742_v54 = vpack.c.bf16 %v328_v48, %v327_v46 }
  0x75   : > { %1772 = vmatprep.subr.bf16.mxu0 %v8009_v42  ;;  %944 = vmatprep.mubr.bf16.mxu1 %v8352_v4 }
  0x78   : > { %1773 = vmatpush1.bf16.msra.mxu0 %v8007_v41 }
  0x7b   : > { %7497 = vmatmul.mubr.msk.bf16.gmra.mrb[32].mxu0 %vm386_vm2, %v8525_v1  ;;  %7527 = vmatmul.mubr.msk.bf16.gmra.mrb[24].mxu1 %vm386_vm2, %v8511_v57  ;;  %v311_v57 = vld [vmem:[%s8461_s23 + $0x140] sm:$0xff] }
  0x7c   : > { %621 = vmatprep.mubr.bf16.mxu0 %v8352_v4  ;;  %954 = vmatprep.mubr.bf16.mxu1 %v8352_v4  ;;  %v8638_v60 = vpack.c.bf16 %v312_v59, %v311_v57 }
  0x83   : > { %7498 = vmatmul.mubr.msk.bf16.gmra.mrb[36].mxu0 %vm386_vm2, %v8532_v10  ;;  %7528 = vmatmul.mubr.msk.bf16.gmra.mrb[28].mxu1 %vm386_vm2, %v8518_v62  ;;  %v314_v62 = vld [vmem:[%s8461_s23 + $0x158] sm:$0xff] }
  0x84   : > { %631 = vmatprep.mubr.bf16.mxu0 %v8352_v4  ;;  %964 = vmatprep.mubr.bf16.mxu1 %v8352_v4  ;;  %v8648_v2 = vpack.c.bf16 %v314_v62, %v313_v61 }
  0x8b   : > { %7499 = vmatmul.mubr.msk.bf16.gmra.mrb[40].mxu0 %vm386_vm2, %v8539_v14  ;;  %7529 = vmatmul.mubr.msk.bf16.gmra.mrb[32].mxu1 %vm386_vm2, %v8525_v1  ;;  %v315_v1 = vld [vmem:[%s8461_s23 + $0x160] sm:$0xff] }
  0x8c   : > { %641 = vmatprep.mubr.bf16.mxu0 %v8352_v4  ;;  %974 = vmatprep.mubr.bf16.mxu1 %v8352_v4  ;;  %v8658_v7 = vpack.c.bf16 %v316_v5, %v315_v1  ;;  %v330_v1 = vld [vmem:[%s8461_s23 + $0x1d8] sm:$0xff] }
  0x8d   : > { %v8760_v20 = vpack.c.bf16 %v330_v1, %v329_v0 }
  0x93   : > { %7500 = vmatmul.mubr.msk.bf16.gmra.mrb[44].mxu0 %vm386_vm2, %v8548_v21  ;;  %7530 = vmatmul.mubr.msk.bf16.gmra.mrb[36].mxu1 %vm386_vm2, %v8532_v10  ;;  %v318_v10 = vld [vmem:[%s8461_s23 + $0x178] sm:$0xff] }
  0x94   : > { %651 = vmatprep.mubr.bf16.mxu0 %v8352_v4  ;;  %984 = vmatprep.mubr.bf16.mxu1 %v8352_v4  ;;  %v8668_v15 = vpack.c.bf16 %v318_v10, %v317_v8  ;;  %v8028_v10 = vld [vmem:[#allocation2 + $0x180] ss:$8 sps:$4 sm:$0xff]  }
  0x9b   : > { %7501 = vmatmul.mubr.msk.bf16.gmra.mrb[48].mxu0 %vm386_vm2, %v8558_v9  ;;  %7531 = vmatmul.mubr.msk.bf16.gmra.mrb[40].mxu1 %vm386_vm2, %v8539_v14  ;;  %v319_v14 = vld [vmem:[%s8461_s23 + $0x180] sm:$0xff] }
  0x9c   : > { %661 = vmatprep.mubr.bf16.mxu0 %v8352_v4  ;;  %994 = vmatprep.mubr.bf16.mxu1 %v8352_v4  ;;  %v8678_v17 = vpack.c.bf16 %v320_v16, %v319_v14 }
  0xa3   : > { %7502 = vmatmul.mubr.msk.bf16.gmra.mrb[52].mxu0 %vm386_vm2, %v8568_v34  ;;  %7532 = vmatmul.mubr.msk.bf16.gmra.mrb[44].mxu1 %vm386_vm2, %v8548_v21  ;;  %v8022_v21 = vld [vmem:[#allocation2 + $0x160] ss:$8 sps:$4 sm:$0xff]  }
  0xa4   : > { %671 = vmatprep.mubr.bf16.mxu0 %v8352_v4  ;;  %1004 = vmatprep.mubr.bf16.mxu1 %v8352_v4 }
  0xa5   : > { %2506 = vmatpush1.bf16.msra.mxu1 %v8022_v21 }
  0xa6   : > { %2507 = vmatprep.subr.bf16.mxu1 %v8027_v33 }
  0xa9   : > { %2508 = vmatpush1.bf16.msra.mxu1 %v8025_v3 }
  0xaa   : > { %2509 = vmatprep.subr.bf16.mxu1 %v8030_v12 }
  0xab   : > { %7503 = vmatmul.mubr.msk.bf16.gmra.mrb[56].mxu0 %vm386_vm2, %v8578_v36  ;;  %7533 = vmatmul.mubr.msk.bf16.gmra.mrb[48].mxu1 %vm386_vm2, %v8558_v9  ;;  %v1205_v9 = vld [vmem:[%s10676_s3] ss:$8 sm:$0x3] }
  0xac   : > { %681 = vmatprep.mubr.bf16.mxu0 %v8352_v4  ;;  %1014 = vmatprep.mubr.bf16.mxu1 %v8352_v4  ;;  %v8713_v29 = vrot.slane %v1205_v9, %v8699_v27  ;;  %v8719_v11 = vrot.slane %v1205_v9, %v8707_v6 }
  0xad   : > { %2510 = vmatpush1.bf16.msra.mxu1 %v8028_v10 }
  0xb3   : > { %7504 = vmatmul.mubr.msk.bf16.gmra.mrb[60].mxu0 %vm386_vm2, %v8588_v43  ;;  %7534 = vmatmul.mubr.msk.bf16.gmra.mrb[52].mxu1 %vm386_vm2, %v8568_v34 }
  0xb4   : > { %691 = vmatprep.mubr.bf16.mxu0 %v8352_v4  ;;  %1024 = vmatprep.mubr.bf16.mxu1 %v8352_v4 }
  0xbb   : > { %7505 = vmatmul.mubr.msk.bf16.gmra.mrb[64].mxu0 %vm386_vm2, %v8598_v45  ;;  %7535 = vmatmul.mubr.msk.bf16.gmra.mrb[56].mxu1 %vm386_vm2, %v8578_v36  ;;  %v8724_v36 = vpack.c.bf16 %v326_v31, %v325_v30 }
  0xbc   : > { %701 = vmatprep.mubr.bf16.mxu0 %v8352_v4  ;;  %1034 = vmatprep.mubr.bf16.mxu1 %v8352_v4 }
  0xc3   : > { %7506 = vmatmul.mubr.msk.bf16.gmra.mrb[68].mxu0 %vm386_vm2, %v8608_v50  ;;  %7536 = vmatmul.mubr.msk.bf16.gmra.mrb[60].mxu1 %vm386_vm2, %v8588_v43 }
  0xc4   : > { %711 = vmatprep.mubr.bf16.mxu0 %v8352_v4  ;;  %1044 = vmatprep.mubr.bf16.mxu1 %v8352_v4 }
  0xcb   : > { %7507 = vmatmul.mubr.msk.bf16.gmra.mrb[72].mxu0 %vm386_vm2, %v8618_v52  ;;  %7537 = vmatmul.mubr.msk.bf16.gmra.mrb[64].mxu1 %vm386_vm2, %v8598_v45 }
  0xcc   : > { %721 = vmatprep.mubr.bf16.mxu0 %v8352_v4  ;;  %1054 = vmatprep.mubr.bf16.mxu1 %v8352_v4 }
  0xd3   : > { %7508 = vmatmul.mubr.msk.bf16.gmra.mrb[76].mxu0 %vm386_vm2, %v8628_v58  ;;  %7538 = vmatmul.mubr.msk.bf16.gmra.mrb[68].mxu1 %vm386_vm2, %v8608_v50 }
  0xd4   : > { %731 = vmatprep.mubr.bf16.mxu0 %v8352_v4  ;;  %1064 = vmatprep.mubr.bf16.mxu1 %v8352_v4 }
  0xdb   : > { %7509 = vmatmul.mubr.msk.bf16.gmra.mrb[80].mxu0 %vm386_vm2, %v8638_v60  ;;  %7539 = vmatmul.mubr.msk.bf16.gmra.mrb[72].mxu1 %vm386_vm2, %v8618_v52 }
  0xdc   : > { %741 = vmatprep.mubr.bf16.mxu0 %v8352_v4  ;;  %1074 = vmatprep.mubr.bf16.mxu1 %v8352_v4 }
  0xe3   : > { %7510 = vmatmul.mubr.msk.bf16.gmra.mrb[84].mxu0 %vm386_vm2, %v8648_v2  ;;  %7540 = vmatmul.mubr.msk.bf16.gmra.mrb[76].mxu1 %vm386_vm2, %v8628_v58 }
  0xe4   : > { %751 = vmatprep.mubr.bf16.mxu0 %v8352_v4  ;;  %1084 = vmatprep.mubr.bf16.mxu1 %v8352_v4 }
  0xeb   : > { %7511 = vmatmul.mubr.msk.bf16.gmra.mrb[88].mxu0 %vm386_vm2, %v8658_v7  ;;  %7541 = vmatmul.mubr.msk.bf16.gmra.mrb[80].mxu1 %vm386_vm2, %v8638_v60 }
  0xec   : > { %761 = vmatprep.mubr.bf16.mxu0 %v8352_v4  ;;  %1094 = vmatprep.mubr.bf16.mxu1 %v8352_v4 }
  0xf3   : > { %7512 = vmatmul.mubr.msk.bf16.gmra.mrb[92].mxu0 %vm386_vm2, %v8668_v15  ;;  %7542 = vmatmul.mubr.msk.bf16.gmra.mrb[84].mxu1 %vm386_vm2, %v8648_v2 }
  0xf4   : > { %771 = vmatprep.mubr.bf16.mxu0 %v8352_v4  ;;  %1104 = vmatprep.mubr.bf16.mxu1 %v8352_v4 }
  0xfb   : > { %7513 = vmatmul.mubr.msk.bf16.gmra.mrb[96].mxu0 %vm386_vm2, %v8678_v17  ;;  %7543 = vmatmul.mubr.msk.bf16.gmra.mrb[88].mxu1 %vm386_vm2, %v8658_v7 }
  0xfc   : > { %781 = vmatprep.mubr.bf16.mxu0 %v8352_v4  ;;  %1114 = vmatprep.mubr.bf16.mxu1 %v8352_v4 }
 0x103   : > { %7514 = vmatmul.mubr.msk.bf16.gmra.mrb[100].mxu0 %vm386_vm2, %v8688_v23  ;;  %7544 = vmatmul.mubr.msk.bf16.gmra.mrb[92].mxu1 %vm386_vm2, %v8668_v15 }
 0x104   : > { %791 = vmatprep.mubr.bf16.mxu0 %v8352_v4  ;;  %1124 = vmatprep.mubr.bf16.mxu1 %v8352_v4 }
 0x10b   : > { %7515 = vmatmul.mubr.msk.bf16.gmra.mrb[104].mxu0 %vm386_vm2, %v8701_v28  ;;  %7545 = vmatmul.mubr.msk.bf16.gmra.mrb[96].mxu1 %vm386_vm2, %v8678_v17 }
 0x10c   : > { %801 = vmatprep.mubr.bf16.mxu0 %v8352_v4  ;;  %1134 = vmatprep.mubr.bf16.mxu1 %v8352_v4 }
 0x10e   : > { %v533_v34 = vpop.f32.mrb[0].mxu0 }
 0x10f   : > { %v1217_v18 = vadd.f32 %v8713_v29, %v533_v34  ;;  %v535_v35 = vpop.f32.mrb[1].mxu0  ;;  %v331_v34 = vld [vmem:[%s8461_s23 + $0x1e0] sm:$0xff] }
 0x110   : > { %v1218_v25 = vadd.f32 %v8719_v11, %v535_v35  ;;  %v537_v37 = vpop.f32.mrb[2].mxu0 }
 0x111   : > { %v1219_v38 = vadd.f32 %v8713_v29, %v537_v37  ;;  %v539_v39 = vpop.f32.mrb[3].mxu0  ;;  %v1345_v42 = vmax.f32 %v1217_v18, 0.0  ;;  %v332_v18 = vld [vmem:[%s8461_s23 + $0x1e8] sm:$0xff] }
 0x112   : > { %v1220_v41 = vadd.f32 %v8719_v11, %v539_v39  ;;  %v1346_v44 = vmax.f32 %v1218_v25, 0.0  ;;  %v8778_v39 = vpack.c.bf16 %v332_v18, %v331_v34 }
 0x113   : > { %v1347_v32 = vmax.f32 %v1219_v38, 0.0  ;;  %7516 = vmatmul.mubr.msk.bf16.gmra.mrb[108].mxu0 %vm386_vm2, %v8724_v36  ;;  %7546 = vmatmul.mubr.msk.bf16.gmra.mrb[100].mxu1 %vm386_vm2, %v8688_v23 }
 0x114   : > { %v1348_v40 = vmax.f32 %v1220_v41, 0.0  ;;  %811 = vmatprep.mubr.bf16.mxu0 %v8352_v4  ;;  %1144 = vmatprep.mubr.bf16.mxu1 %v8352_v4 }
 0x115   : > { %v8737_v49 = vpack.c.bf16 %v1347_v32, %v1345_v42 }
 0x116   : > { %v543_v47 = vpop.f32.mrb[4].mxu0  ;;  %v8739_v43 = vpack.c.bf16 %v1348_v40, %v1346_v44 }
 0x117   : > { %v1221_v51 = vadd.f32 %v8713_v29, %v543_v47  ;;  %v545_v53 = vpop.f32.mrb[5].mxu0  ;;  %v333_v47 = vld [vmem:[%s8461_s23 + $0x1f0] sm:$0xff] }
 0x118   : > { %v1222_v55 = vadd.f32 %v8719_v11, %v545_v53  ;;  %v547_v56 = vpop.f32.mrb[6].mxu0 }
 0x119   : > { %v1223_v57 = vadd.f32 %v8713_v29, %v547_v56  ;;  %v549_v59 = vpop.f32.mrb[7].mxu0  ;;  %v1349_v62 = vmax.f32 %v1221_v51, 0.0  ;;  %v334_v51 = vld [vmem:[%s8461_s23 + $0x1f8] sm:$0xff] }
 0x11a   : > { %v1224_v61 = vadd.f32 %v8719_v11, %v549_v59  ;;  %v1350_v5 = vmax.f32 %v1222_v55, 0.0  ;;  %v8031_v56 = vld [vmem:[#allocation2 + $0x190] ss:$8 sps:$4 sm:$0xff]   ;;  %v8796_v0 = vpack.c.bf16 %v334_v51, %v333_v47 }
 0x11b   : > { %v1351_v63 = vmax.f32 %v1223_v57, 0.0  ;;  %7517 = vmatmul.mubr.msk.bf16.gmra.mrb[112].mxu0 %vm386_vm2, %v8742_v54  ;;  %v8033_v57 = vld [vmem:[#allocation2 + $0x194] ss:$8 sps:$4 sm:$0xff]   ;;  %7547 = vmatmul.mubr.msk.bf16.gmra.mrb[104].mxu1 %vm386_vm2, %v8701_v28 }
 0x11c   : > { %v1352_v8 = vmax.f32 %v1224_v61, 0.0  ;;  %821 = vmatprep.mubr.bf16.mxu0 %v8352_v4  ;;  %2511 = vmatprep.subr.bf16.mxu1 %v8033_v57 }
 0x11d   : > { %v8755_v13 = vpack.c.bf16 %v1351_v63, %v1349_v62  ;;  %2512 = vmatpush1.bf16.msra.mxu1 %v8031_v56  ;;  %1154 = vmatprep.mubr.bf16.mxu1 %v8352_v4 }
 0x11e   : > { %v553_v45 = vpop.f32.mrb[8].mxu0  ;;  %v8757_v14 = vpack.c.bf16 %v1352_v8, %v1350_v5 }
 0x11f   : > { %v1225_v16 = vadd.f32 %v8713_v29, %v553_v45  ;;  %v555_v19 = vpop.f32.mrb[9].mxu0 }
 0x120   : > { %v1226_v21 = vadd.f32 %v8719_v11, %v555_v19  ;;  %v557_v22 = vpop.f32.mrb[10].mxu0 }
 0x121   : > { %v1227_v24 = vadd.f32 %v8713_v29, %v557_v22  ;;  %v559_v26 = vpop.f32.mrb[11].mxu0  ;;  %v1353_v30 = vmax.f32 %v1225_v16, 0.0 }
 0x122   : > { %v1228_v9 = vadd.f32 %v8719_v11, %v559_v26  ;;  %v1354_v3 = vmax.f32 %v1226_v21, 0.0 }
 0x123   : > { %v1355_v31 = vmax.f32 %v1227_v24, 0.0  ;;  %7518 = vmatmul.mubr.msk.bf16.gmra.mrb[116].mxu0 %vm386_vm2, %v8760_v20  ;;  %7548 = vmatmul.mubr.msk.bf16.gmra.mrb[108].mxu1 %vm386_vm2, %v8724_v36 }
 0x124   : > { %v1356_v33 = vmax.f32 %v1228_v9, 0.0  ;;  %831 = vmatprep.mubr.bf16.mxu0 %v8352_v4  ;;  %1164 = vmatprep.mubr.bf16.mxu1 %v8352_v4 }
 0x125   : > { %v8773_v35 = vpack.c.bf16 %v1355_v31, %v1353_v30 }
 0x126   : > { %v563_v25 = vpop.f32.mrb[12].mxu0  ;;  %v8775_v50 = vpack.c.bf16 %v1356_v33, %v1354_v3 }
 0x127   : > { %v1229_v37 = vadd.f32 %v8713_v29, %v563_v25  ;;  %v565_v38 = vpop.f32.mrb[13].mxu0 }
 0x128   : > { %v1230_v41 = vadd.f32 %v8719_v11, %v565_v38  ;;  %v567_v42 = vpop.f32.mrb[14].mxu0  ;;  %v8034_v38 = vld [vmem:[#allocation2 + $0x1a0] ss:$8 sps:$4 sm:$0xff]  }
 0x129   : > { %v1231_v32 = vadd.f32 %v8713_v29, %v567_v42  ;;  %v569_v44 = vpop.f32.mrb[15].mxu0  ;;  %v1357_v46 = vmax.f32 %v1229_v37, 0.0 }
 0x12a   : > { %v1232_v40 = vadd.f32 %v8719_v11, %v569_v44  ;;  %v1358_v53 = vmax.f32 %v1230_v41, 0.0  ;;  %v8036_v41 = vld [vmem:[#allocation2 + $0x1a4] ss:$8 sps:$4 sm:$0xff]  }
 0x12b   : > { %v1359_v48 = vmax.f32 %v1231_v32, 0.0  ;;  %7519 = vmatmul.mubr.msk.bf16.gmra.mrb[120].mxu0 %vm386_vm2, %v8778_v39  ;;  %2513 = vmatprep.subr.bf16.mxu1 %v8036_v41 }
 0x12c   : > { %v1360_v55 = vmax.f32 %v1232_v40, 0.0  ;;  %841 = vmatprep.mubr.bf16.mxu0 %v8352_v4  ;;  %2514 = vmatpush1.bf16.msra.mxu1 %v8034_v38 }
 0x12d   : > { %v8791_v59 = vpack.c.bf16 %v1359_v48, %v1357_v46  ;;  %7549 = vmatmul.mubr.msk.bf16.gmra.mrb[112].mxu1 %vm386_vm2, %v8742_v54 }
 0x12e   : > { %v573_v52 = vpop.f32.mrb[16].mxu0  ;;  %v8793_v61 = vpack.c.bf16 %v1360_v55, %v1358_v53  ;;  %1174 = vmatprep.mubr.bf16.mxu1 %v8352_v4 }
 0x12f   : > { %v1233_v62 = vadd.f32 %v8713_v29, %v573_v52  ;;  %v575_v63 = vpop.f32.mrb[17].mxu0 }
 0x130   : > { %v1234_v1 = vadd.f32 %v8719_v11, %v575_v63  ;;  %v577_v5 = vpop.f32.mrb[18].mxu0 }
 0x131   : > { %v1235_v8 = vadd.f32 %v8713_v29, %v577_v5  ;;  %v579_v10 = vpop.f32.mrb[19].mxu0  ;;  %v1361_v45 = vmax.f32 %v1233_v62, 0.0 }
 0x132   : > { %v1236_v12 = vadd.f32 %v8719_v11, %v579_v10  ;;  %v1362_v19 = vmax.f32 %v1234_v1, 0.0 }
 0x133   : > { %v1363_v16 = vmax.f32 %v1235_v8, 0.0  ;;  %7520 = vmatmul.mubr.msk.bf16.gmra.mrb[124].mxu0 %vm386_vm2, %v8796_v0 }
 0x134   : > { %v1364_v21 = vmax.f32 %v1236_v12, 0.0  ;;  %1774 = vmatprep.mubr.bf16.mxu0 %v8739_v43 }
 0x135   : > { %v8807_v22 = vpack.c.bf16 %v1363_v16, %v1361_v45  ;;  %7550 = vmatmul.mubr.msk.bf16.gmra.mrb[116].mxu1 %vm386_vm2, %v8760_v20 }
 0x136   : > { %v583_v24 = vpop.f32.mrb[20].mxu0  ;;  %v8809_v26 = vpack.c.bf16 %v1364_v21, %v1362_v19  ;;  %v8037_v19 = vld [vmem:[#allocation2 + $0x1b0] ss:$8 sps:$4 sm:$0xff]   ;;  %v8039_v21 = vld [vmem:[#allocation2 + $0x1b4] ss:$8 sps:$4 sm:$0xff]   ;;  %1184 = vmatprep.mubr.bf16.mxu1 %v8352_v4 }
 0x137   : > { %v1237_v58 = vadd.f32 %v8713_v29, %v583_v24  ;;  %v585_v9 = vpop.f32.mrb[21].mxu0  ;;  %2515 = vmatprep.subr.bf16.mxu1 %v8039_v21 }
 0x138   : > { %v1238_v30 = vadd.f32 %v8719_v11, %v585_v9  ;;  %v587_v31 = vpop.f32.mrb[22].mxu0  ;;  %2516 = vmatpush1.bf16.msra.mxu1 %v8037_v19 }
 0x139   : > { %v1239_v3 = vadd.f32 %v8713_v29, %v587_v31  ;;  %v589_v33 = vpop.f32.mrb[23].mxu0  ;;  %v1365_v43 = vmax.f32 %v1237_v58, 0.0 }
 0x13a   : > { %v1240_v34 = vadd.f32 %v8719_v11, %v589_v33  ;;  %v1366_v25 = vmax.f32 %v1238_v30, 0.0 }
 0x13b   : > { %v1367_v18 = vmax.f32 %v1239_v3, 0.0  ;;  %1775 = vmatmul.mubr.bf16.vlgmr.msra.gmra.mrb[128].mxu0 %v8737_v49 }
 0x13c   : > { %v1368_v37 = vmax.f32 %v1240_v34, 0.0  ;;  %1784 = vmatprep.mubr.bf16.mxu0 %v8757_v14 }
 0x13d   : > { %v8820_v42 = vpack.c.bf16 %v1367_v18, %v1365_v43  ;;  %7551 = vmatmul.mubr.msk.bf16.gmra.mrb[120].mxu1 %vm386_vm2, %v8778_v39 }
 0x13e   : > { %v593_v32 = vpop.f32.mrb[24].mxu0  ;;  %v8822_v44 = vpack.c.bf16 %v1368_v37, %v1366_v25  ;;  %1194 = vmatprep.mubr.bf16.mxu1 %v8352_v4 }
 0x13f   : > { %v1241_v60 = vadd.f32 %v8713_v29, %v593_v32  ;;  %v595_v40 = vpop.f32.mrb[25].mxu0 }
 0x140   : > { %v1242_v46 = vadd.f32 %v8719_v11, %v595_v40  ;;  %v597_v48 = vpop.f32.mrb[26].mxu0 }
 0x141   : > { %v1243_v49 = vadd.f32 %v8713_v29, %v597_v48  ;;  %v599_v47 = vpop.f32.mrb[27].mxu0  ;;  %v1369_v51 = vmax.f32 %v1241_v60, 0.0 }
 0x142   : > { %v1244_v14 = vadd.f32 %v8719_v11, %v599_v47  ;;  %v1370_v55 = vmax.f32 %v1242_v46, 0.0 }
 0x143   : > { %v1371_v53 = vmax.f32 %v1243_v49, 0.0  ;;  %1785 = vmatmul.mubr.bf16.gmra.mrb[132].mxu0 %v8755_v13 }
 0x144   : > { %v1372_v56 = vmax.f32 %v1244_v14, 0.0  ;;  %1794 = vmatprep.mubr.bf16.mxu0 %v8775_v50 }
 0x145   : > { %v8833_v57 = vpack.c.bf16 %v1371_v53, %v1369_v51  ;;  %v8040_v51 = vld [vmem:[#allocation2 + $0x1c0] ss:$8 sps:$4 sm:$0xff]   ;;  %v8042_v53 = vld [vmem:[#allocation2 + $0x1c4] ss:$8 sps:$4 sm:$0xff]   ;;  %7552 = vmatmul.mubr.msk.bf16.gmra.mrb[124].mxu1 %vm386_vm2, %v8796_v0 }
 0x146   : > { %v603_v52 = vpop.f32.mrb[28].mxu0  ;;  %v8835_v62 = vpack.c.bf16 %v1372_v56, %v1370_v55  ;;  %2517 = vmatprep.subr.bf16.mxu1 %v8042_v53 }
 0x147   : > { %v1245_v63 = vadd.f32 %v8713_v29, %v603_v52  ;;  %v605_v2 = vpop.f32.mrb[29].mxu0  ;;  %2518 = vmatpush1.bf16.msra.mxu1 %v8040_v51 }
 0x148   : > { %v1246_v1 = vadd.f32 %v8719_v11, %v605_v2  ;;  %v607_v5 = vpop.f32.mrb[30].mxu0 }
 0x149   : > { %v1247_v8 = vadd.f32 %v8713_v29, %v607_v5  ;;  %v609_v10 = vpop.f32.mrb[31].mxu0  ;;  %v1373_v50 = vmax.f32 %v1245_v63, 0.0 }
 0x14a   : > { %v1248_v13 = vadd.f32 %v8719_v11, %v609_v10  ;;  %v1374_v45 = vmax.f32 %v1246_v1, 0.0 }
 0x14b   : > { %v1375_v12 = vmax.f32 %v1247_v8, 0.0  ;;  %1795 = vmatmul.mubr.bf16.gmra.mrb[136].mxu0 %v8773_v35 }
 0x14c   : > { %v1376_v16 = vmax.f32 %v1248_v13, 0.0  ;;  %1804 = vmatprep.mubr.bf16.mxu0 %v8793_v61 }
 0x14d   : > { %v8846_v24 = vpack.c.bf16 %v1375_v12, %v1373_v50 }
 0x14e   : > { %v613_v58 = vpop.f32.mrb[32].mxu0  ;;  %v8848_v9 = vpack.c.bf16 %v1376_v16, %v1374_v45 }
 0x14f   : > { %v1249_v7 = vadd.f32 %v8713_v29, %v613_v58  ;;  %v615_v30 = vpop.f32.mrb[33].mxu0 }
 0x150   : > { %v1250_v31 = vadd.f32 %v8719_v11, %v615_v30  ;;  %v617_v3 = vpop.f32.mrb[34].mxu0 }
 0x151   : > { %v1251_v35 = vadd.f32 %v8713_v29, %v617_v3  ;;  %v619_v33 = vpop.f32.mrb[35].mxu0  ;;  %v1377_v34 = vmax.f32 %v1249_v7, 0.0 }
 0x152   : > { %v1252_v61 = vadd.f32 %v8719_v11, %v619_v33  ;;  %v1378_v18 = vmax.f32 %v1250_v31, 0.0  ;;  %v8043_v33 = vld [vmem:[#allocation2 + $0x1d0] ss:$8 sps:$4 sm:$0xff]  }
 0x153   : > { %v1379_v43 = vmax.f32 %v1251_v35, 0.0  ;;  %1805 = vmatmul.mubr.bf16.gmra.mrb[140].mxu0 %v8791_v59 }
 0x154   : > { %v1380_v25 = vmax.f32 %v1252_v61, 0.0  ;;  %1814 = vmatprep.mubr.bf16.mxu0 %v8809_v26  ;;  %v8045_v61 = vld [vmem:[#allocation2 + $0x1d4] ss:$8 sps:$4 sm:$0xff]  }
 0x155   : > { %v8859_v37 = vpack.c.bf16 %v1379_v43, %v1377_v34  ;;  %2519 = vmatprep.subr.bf16.mxu1 %v8045_v61 }
 0x156   : > { %v623_v38 = vpop.f32.mrb[36].mxu0  ;;  %v8861_v41 = vpack.c.bf16 %v1380_v25, %v1378_v18  ;;  %2520 = vmatpush1.bf16.msra.mxu1 %v8043_v33 }
 0x157   : > { %v1253_v32 = vadd.f32 %v8713_v29, %v623_v38  ;;  %v625_v15 = vpop.f32.mrb[37].mxu0 }
 0x158   : > { %v1254_v60 = vadd.f32 %v8719_v11, %v625_v15  ;;  %v627_v40 = vpop.f32.mrb[38].mxu0 }
 0x159   : > { %v1255_v46 = vadd.f32 %v8713_v29, %v627_v40  ;;  %v629_v48 = vpop.f32.mrb[39].mxu0  ;;  %v1381_v26 = vmax.f32 %v1253_v32, 0.0 }
 0x15a   : > { %v1256_v59 = vadd.f32 %v8719_v11, %v629_v48  ;;  %v1382_v47 = vmax.f32 %v1254_v60, 0.0 }
 0x15b   : > { %v1383_v49 = vmax.f32 %v1255_v46, 0.0  ;;  %1815 = vmatmul.mubr.bf16.gmra.mrb[144].mxu0 %v8807_v22 }
 0x15c   : > { %v1384_v14 = vmax.f32 %v1256_v59, 0.0  ;;  %1824 = vmatprep.mubr.bf16.mxu0 %v8822_v44 }
 0x15d   : > { %v8872_v55 = vpack.c.bf16 %v1383_v49, %v1381_v26 }
 0x15e   : > { %v633_v56 = vpop.f32.mrb[40].mxu0  ;;  %v8874_v52 = vpack.c.bf16 %v1384_v14, %v1382_v47 }
 0x15f   : > { %v1257_v17 = vadd.f32 %v8713_v29, %v633_v56  ;;  %v635_v63 = vpop.f32.mrb[41].mxu0 }
 0x160   : > { %v1258_v2 = vadd.f32 %v8719_v11, %v635_v63  ;;  %v637_v1 = vpop.f32.mrb[42].mxu0 }
 0x161   : > { %v1259_v22 = vadd.f32 %v8713_v29, %v637_v1  ;;  %v639_v5 = vpop.f32.mrb[43].mxu0  ;;  %v1385_v8 = vmax.f32 %v1257_v17, 0.0  ;;  %v8048_v17 = vld [vmem:[#allocation2 + $0x204] ss:$8 sps:$4 sm:$0xff]  }
 0x162   : > { %v1260_v44 = vadd.f32 %v8719_v11, %v639_v5  ;;  %v1386_v13 = vmax.f32 %v1258_v2, 0.0  ;;  %3244 = vmatprep.subr.bf16.mxu0 %v8048_v17  ;;  %v8049_v5 = vld [vmem:[#allocation2 + $0x1e0] ss:$8 sps:$4 sm:$0xff]  }
 0x163   : > { %v1387_v10 = vmax.f32 %v1259_v22, 0.0  ;;  %1825 = vmatmul.mubr.bf16.gmra.mrb[148].mxu0 %v8820_v42 }
 0x164   : > { %v1388_v50 = vmax.f32 %v1260_v44, 0.0  ;;  %1834 = vmatprep.mubr.bf16.mxu0 %v8835_v62  ;;  %v8051_v44 = vld [vmem:[#allocation2 + $0x1e4] ss:$8 sps:$4 sm:$0xff]  }
 0x165   : > { %v8885_v12 = vpack.c.bf16 %v1387_v10, %v1385_v8  ;;  %2521 = vmatprep.subr.bf16.mxu1 %v8051_v44  ;;  %v8058_v44 = vld [vmem:[#allocation2 + $0x220] ss:$8 sps:$4 sm:$0xff]  }
 0x166   : > { %v643_v45 = vpop.f32.mrb[44].mxu0  ;;  %v8887_v16 = vpack.c.bf16 %v1388_v50, %v1386_v13  ;;  %2522 = vmatpush1.bf16.msra.mxu1 %v8049_v5 }
 0x167   : > { %v1261_v19 = vadd.f32 %v8713_v29, %v643_v45  ;;  %v645_v23 = vpop.f32.mrb[45].mxu0 }
 0x168   : > { %v1262_v21 = vadd.f32 %v8719_v11, %v645_v23  ;;  %v647_v58 = vpop.f32.mrb[46].mxu0 }
 0x169   : > { %v1263_v7 = vadd.f32 %v8713_v29, %v647_v58  ;;  %v649_v30 = vpop.f32.mrb[47].mxu0  ;;  %v1389_v62 = vmax.f32 %v1261_v19, 0.0 }
 0x16a   : > { %v1264_v42 = vadd.f32 %v8719_v11, %v649_v30  ;;  %v1390_v3 = vmax.f32 %v1262_v21, 0.0 }
 0x16b   : > { %v1391_v31 = vmax.f32 %v1263_v7, 0.0  ;;  %1835 = vmatmul.mubr.bf16.gmra.mrb[152].mxu0 %v8833_v57 }
 0x16c   : > { %v1392_v35 = vmax.f32 %v1264_v42, 0.0  ;;  %1844 = vmatprep.mubr.bf16.mxu0 %v8848_v9 }
 0x16d   : > { %v8898_v34 = vpack.c.bf16 %v1391_v31, %v1389_v62 }
 0x16e   : > { %v653_v43 = vpop.f32.mrb[48].mxu0  ;;  %v8900_v18 = vpack.c.bf16 %v1392_v35, %v1390_v3 }
 0x16f   : > { %v1265_v28 = vadd.f32 %v8713_v29, %v653_v43  ;;  %v655_v25 = vpop.f32.mrb[49].mxu0 }
 0x170   : > { %v1266_v38 = vadd.f32 %v8719_v11, %v655_v25  ;;  %v657_v32 = vpop.f32.mrb[50].mxu0 }
 0x171   : > { %v1267_v57 = vadd.f32 %v8713_v29, %v657_v32  ;;  %v659_v15 = vpop.f32.mrb[51].mxu0  ;;  %v1393_v60 = vmax.f32 %v1265_v28, 0.0  ;;  %v8054_v28 = vld [vmem:[#allocation2 + $0x214] ss:$8 sps:$4 sm:$0xff]  }
 0x172   : > { %v1268_v9 = vadd.f32 %v8719_v11, %v659_v15  ;;  %v1394_v46 = vmax.f32 %v1266_v38, 0.0  ;;  %v8055_v15 = vld [vmem:[#allocation2 + $0x1f0] ss:$8 sps:$4 sm:$0xff]  }
 0x173   : > { %v1395_v40 = vmax.f32 %v1267_v57, 0.0  ;;  %1845 = vmatmul.mubr.bf16.gmra.mrb[156].mxu0 %v8846_v24 }
 0x174   : > { %v1396_v48 = vmax.f32 %v1268_v9, 0.0  ;;  %1854 = vmatprep.mubr.bf16.mxu0 %v8861_v41  ;;  %v8046_v41 = vld [vmem:[#allocation2 + $0x200] ss:$8 sps:$4 sm:$0xff]   ;;  %v8057_v9 = vld [vmem:[#allocation2 + $0x1f4] ss:$8 sps:$4 sm:$0xff]  }
 0x175   : > { %v8911_v59 = vpack.c.bf16 %v1395_v40, %v1393_v60  ;;  %3245 = vmatpush1.bf16.msra.mxu0 %v8046_v41  ;;  %2523 = vmatprep.subr.bf16.mxu1 %v8057_v9 }
 0x176   : > { %v663_v26 = vpop.f32.mrb[52].mxu0  ;;  %v8913_v49 = vpack.c.bf16 %v1396_v48, %v1394_v46  ;;  %3246 = vmatprep.subr.bf16.mxu0 %v8054_v28  ;;  %2524 = vmatpush1.bf16.msra.mxu1 %v8055_v15  ;;  %v8063_v15 = vld [vmem:[#allocation2 + $0x234] ss:$8 sps:$4 sm:$0xff]  }
 0x177   : > { %v1269_v47 = vadd.f32 %v8713_v29, %v663_v26  ;;  %v665_v36 = vpop.f32.mrb[53].mxu0 }
 0x178   : > { %v1270_v14 = vadd.f32 %v8719_v11, %v665_v36  ;;  %v667_v51 = vpop.f32.mrb[54].mxu0 }
 0x179   : > { %v1271_v53 = vadd.f32 %v8713_v29, %v667_v51  ;;  %v669_v56 = vpop.f32.mrb[55].mxu0  ;;  %v1397_v63 = vmax.f32 %v1269_v47, 0.0 }
 0x17a   : > { %v1272_v24 = vadd.f32 %v8719_v11, %v669_v56  ;;  %v1398_v1 = vmax.f32 %v1270_v14, 0.0 }
 0x17b   : > { %v1399_v2 = vmax.f32 %v1271_v53, 0.0  ;;  %1855 = vmatmul.mubr.bf16.gmra.mrb[160].mxu0 %v8859_v37 }
 0x17c   : > { %v1400_v22 = vmax.f32 %v1272_v24, 0.0  ;;  %1864 = vmatprep.mubr.bf16.mxu0 %v8874_v52 }
 0x17d   : > { %v8924_v8 = vpack.c.bf16 %v1399_v2, %v1397_v63 }
 0x17e   : > { %v673_v54 = vpop.f32.mrb[56].mxu0  ;;  %v8926_v10 = vpack.c.bf16 %v1400_v22, %v1398_v1 }
 0x17f   : > { %v1273_v13 = vadd.f32 %v8713_v29, %v673_v54  ;;  %v675_v50 = vpop.f32.mrb[57].mxu0  ;;  %v8060_v54 = vld [vmem:[#allocation2 + $0x224] ss:$8 sps:$4 sm:$0xff]  }
 0x180   : > { %v1274_v37 = vadd.f32 %v8719_v11, %v675_v50  ;;  %v677_v45 = vpop.f32.mrb[58].mxu0 }
 0x181   : > { %v1275_v19 = vadd.f32 %v8713_v29, %v677_v45  ;;  %v679_v52 = vpop.f32.mrb[59].mxu0  ;;  %v1401_v21 = vmax.f32 %v1273_v13, 0.0 }
 0x182   : > { %v1276_v23 = vadd.f32 %v8719_v11, %v679_v52  ;;  %v1402_v7 = vmax.f32 %v1274_v37, 0.0 }
 0x183   : > { %v1403_v58 = vmax.f32 %v1275_v19, 0.0  ;;  %1865 = vmatmul.mubr.bf16.gmra.mrb[164].mxu0 %v8872_v55 }
 0x184   : > { %v1404_v30 = vmax.f32 %v1276_v23, 0.0  ;;  %1874 = vmatprep.mubr.bf16.mxu0 %v8887_v16  ;;  %v8052_v16 = vld [vmem:[#allocation2 + $0x210] ss:$8 sps:$4 sm:$0xff]  }
 0x185   : > { %v8937_v42 = vpack.c.bf16 %v1403_v58, %v1401_v21  ;;  %3247 = vmatpush1.bf16.msra.mxu0 %v8052_v16 }
 0x186   : > { %v683_v62 = vpop.f32.mrb[60].mxu0  ;;  %v8939_v31 = vpack.c.bf16 %v1404_v30, %v1402_v7  ;;  %3248 = vmatprep.subr.bf16.mxu0 %v8060_v54 }
 0x187   : > { %v1277_v3 = vadd.f32 %v8713_v29, %v683_v62  ;;  %v685_v20 = vpop.f32.mrb[61].mxu0 }
 0x188   : > { %v1278_v35 = vadd.f32 %v8719_v11, %v685_v20  ;;  %v687_v33 = vpop.f32.mrb[62].mxu0 }
 0x189   : > { %v1279_v61 = vadd.f32 %v8713_v29, %v687_v33  ;;  %v689_v43 = vpop.f32.mrb[63].mxu0  ;;  %v1405_v25 = vmax.f32 %v1277_v3, 0.0  ;;  %3249 = vmatpush1.bf16.msra.mxu0 %v8058_v44 }
 0x18a   : > { %v1280_v55 = vadd.f32 %v8719_v11, %v689_v43  ;;  %v1406_v32 = vmax.f32 %v1278_v35, 0.0  ;;  %3250 = vmatprep.subr.bf16.mxu0 %v8063_v15 }
 0x18b   : > { %v1407_v38 = vmax.f32 %v1279_v61, 0.0  ;;  %1875 = vmatmul.mubr.bf16.gmra.mrb[168].mxu0 %v8885_v12 }
 0x18c   : > { %v1408_v57 = vmax.f32 %v1280_v55, 0.0  ;;  %1884 = vmatprep.mubr.bf16.mxu0 %v8900_v18 }
 0x18d   : > { %v8950_v60 = vpack.c.bf16 %v1407_v38, %v1405_v25 }
 0x18e   : > { %v693_v39 = vpop.f32.mrb[64].mxu0  ;;  %v8952_v40 = vpack.c.bf16 %v1408_v57, %v1406_v32  ;;  %v8061_v57 = vld [vmem:[#allocation2 + $0x230] ss:$8 sps:$4 sm:$0xff]  }
 0x18f   : > { %v1281_v46 = vadd.f32 %v8713_v29, %v693_v39  ;;  %v695_v48 = vpop.f32.mrb[65].mxu0  ;;  %3251 = vmatpush1.bf16.msra.mxu0 %v8061_v57 }
 0x190   : > { %v1282_v12 = vadd.f32 %v8719_v11, %v695_v48  ;;  %v697_v26 = vpop.f32.mrb[66].mxu0 }
 0x191   : > { %v1283_v47 = vadd.f32 %v8713_v29, %v697_v26  ;;  %v699_v18 = vpop.f32.mrb[67].mxu0  ;;  %v1409_v14 = vmax.f32 %v1281_v46, 0.0 }
 0x192   : > { %v1284_v36 = vadd.f32 %v8719_v11, %v699_v18  ;;  %v1410_v53 = vmax.f32 %v1282_v12, 0.0 }
 0x193   : > { %v1411_v51 = vmax.f32 %v1283_v47, 0.0  ;;  %1885 = vmatmul.mubr.bf16.gmra.mrb[172].mxu0 %v8898_v34 }
 0x194   : > { %v1412_v56 = vmax.f32 %v1284_v36, 0.0  ;;  %1894 = vmatprep.mubr.bf16.mxu0 %v8913_v49 }
 0x195   : > { %v8962_v24 = vpack.c.bf16 %v1411_v51, %v1409_v14 }
 0x196   : > { %v703_v41 = vpop.f32.mrb[68].mxu0  ;;  %v8964_v17 = vpack.c.bf16 %v1412_v56, %v1410_v53 }
 0x197   : > { %v1285_v63 = vadd.f32 %v8713_v29, %v703_v41  ;;  %v705_v2 = vpop.f32.mrb[69].mxu0 }
 0x198   : > { %v1286_v0 = vadd.f32 %v8719_v11, %v705_v2  ;;  %v707_v1 = vpop.f32.mrb[70].mxu0 }
 0x199   : > { %v1287_v22 = vadd.f32 %v8713_v29, %v707_v1  ;;  %v709_v5 = vpop.f32.mrb[71].mxu0  ;;  %v1413_v13 = vmax.f32 %v1285_v63, 0.0 }
 0x19a   : > { %v1288_v34 = vadd.f32 %v8719_v11, %v709_v5  ;;  %v1414_v50 = vmax.f32 %v1286_v0, 0.0 }
 0x19b   : > { %v1415_v49 = vmax.f32 %v1287_v22, 0.0  ;;  %1895 = vmatmul.mubr.bf16.gmra.mrb[176].mxu0 %v8911_v59 }
 0x19c   : > { %v1416_v37 = vmax.f32 %v1288_v34, 0.0  ;;  %1904 = vmatprep.mubr.bf16.mxu0 %v8926_v10 }
 0x19d   : > { %v8972_v45 = vpack.c.bf16 %v1415_v49, %v1413_v13  ;;  %v8064_v49 = vld [vmem:[#allocation2 + $0x240] ss:$8 sps:$4 sm:$0xff]  }
 0x19e   : > { %v713_v19 = vpop.f32.mrb[72].mxu0  ;;  %v8974_v52 = vpack.c.bf16 %v1416_v37, %v1414_v50  ;;  %v8066_v50 = vld [vmem:[#allocation2 + $0x244] ss:$8 sps:$4 sm:$0xff]  }
 0x19f   : > { %v1289_v23 = vadd.f32 %v8713_v29, %v713_v19  ;;  %v715_v21 = vpop.f32.mrb[73].mxu0  ;;  %3252 = vmatprep.subr.bf16.mxu0 %v8066_v50 }
 0x1a0   : > { %v1290_v58 = vadd.f32 %v8719_v11, %v715_v21  ;;  %v717_v7 = vpop.f32.mrb[74].mxu0  ;;  %3253 = vmatpush1.bf16.msra.mxu0 %v8064_v49 }
 0x1a1   : > { %v1291_v30 = vadd.f32 %v8713_v29, %v717_v7  ;;  %v719_v59 = vpop.f32.mrb[75].mxu0  ;;  %v1417_v3 = vmax.f32 %v1289_v23, 0.0 }
 0x1a2   : > { %v1292_v62 = vadd.f32 %v8719_v11, %v719_v59  ;;  %v1418_v20 = vmax.f32 %v1290_v58, 0.0 }
 0x1a3   : > { %v1419_v10 = vmax.f32 %v1291_v30, 0.0  ;;  %1905 = vmatmul.mubr.bf16.gmra.mrb[180].mxu0 %v8924_v8 }
 0x1a4   : > { %v1420_v35 = vmax.f32 %v1292_v62, 0.0  ;;  %1914 = vmatprep.mubr.bf16.mxu0 %v8939_v31 }
 0x1a5   : > { %v8982_v33 = vpack.c.bf16 %v1419_v10, %v1417_v3 }
 0x1a6   : > { %v723_v61 = vpop.f32.mrb[76].mxu0  ;;  %v8984_v43 = vpack.c.bf16 %v1420_v35, %v1418_v20 }
 0x1a7   : > { %v1293_v55 = vadd.f32 %v8713_v29, %v723_v61  ;;  %v725_v16 = vpop.f32.mrb[77].mxu0 }
 0x1a8   : > { %v1294_v28 = vadd.f32 %v8719_v11, %v725_v16  ;;  %v727_v25 = vpop.f32.mrb[78].mxu0 }
 0x1a9   : > { %v1295_v38 = vadd.f32 %v8713_v29, %v727_v25  ;;  %v729_v32 = vpop.f32.mrb[79].mxu0  ;;  %v1421_v9 = vmax.f32 %v1293_v55, 0.0 }
 0x1aa   : > { %v1296_v8 = vadd.f32 %v8719_v11, %v729_v32  ;;  %v1422_v39 = vmax.f32 %v1294_v28, 0.0 }
 0x1ab   : > { %v1423_v31 = vmax.f32 %v1295_v38, 0.0  ;;  %1915 = vmatmul.mubr.bf16.gmra.mrb[184].mxu0 %v8937_v42 }
 0x1ac   : > { %v1424_v46 = vmax.f32 %v1296_v8, 0.0  ;;  %1924 = vmatprep.mubr.bf16.mxu0 %v8952_v40 }
 0x1ad   : > { %v8992_v48 = vpack.c.bf16 %v1423_v31, %v1421_v9  ;;  %v8067_v31 = vld [vmem:[#allocation2 + $0x250] ss:$8 sps:$4 sm:$0xff]  }
 0x1ae   : > { %v733_v12 = vpop.f32.mrb[80].mxu0  ;;  %v8994_v26 = vpack.c.bf16 %v1424_v46, %v1422_v39  ;;  %v8069_v39 = vld [vmem:[#allocation2 + $0x254] ss:$8 sps:$4 sm:$0xff]  }
 0x1af   : > { %v1297_v47 = vadd.f32 %v8713_v29, %v733_v12  ;;  %v735_v18 = vpop.f32.mrb[81].mxu0  ;;  %3254 = vmatprep.subr.bf16.mxu0 %v8069_v39 }
 0x1b0   : > { %v1298_v36 = vadd.f32 %v8719_v11, %v735_v18  ;;  %v737_v14 = vpop.f32.mrb[82].mxu0  ;;  %3255 = vmatpush1.bf16.msra.mxu0 %v8067_v31 }
 0x1b1   : > { %v1299_v51 = vadd.f32 %v8713_v29, %v737_v14  ;;  %v739_v42 = vpop.f32.mrb[83].mxu0  ;;  %v1425_v56 = vmax.f32 %v1297_v47, 0.0 }
 0x1b2   : > { %v1300_v53 = vadd.f32 %v8719_v11, %v739_v42  ;;  %v1426_v41 = vmax.f32 %v1298_v36, 0.0 }
 0x1b3   : > { %v1427_v40 = vmax.f32 %v1299_v51, 0.0  ;;  %1925 = vmatmul.mubr.bf16.gmra.mrb[188].mxu0 %v8950_v60 }
 0x1b4   : > { %v1428_v63 = vmax.f32 %v1300_v53, 0.0  ;;  %1934 = vmatprep.mubr.bf16.mxu0 %v8964_v17 }
 0x1b5   : > { %v9002_v2 = vpack.c.bf16 %v1427_v40, %v1425_v56 }
 0x1b6   : > { %v743_v0 = vpop.f32.mrb[84].mxu0  ;;  %v9004_v1 = vpack.c.bf16 %v1428_v63, %v1426_v41 }
 0x1b7   : > { %v1301_v22 = vadd.f32 %v8713_v29, %v743_v0  ;;  %v745_v5 = vpop.f32.mrb[85].mxu0 }
 0x1b8   : > { %v1302_v34 = vadd.f32 %v8719_v11, %v745_v5  ;;  %v747_v44 = vpop.f32.mrb[86].mxu0 }
 0x1b9   : > { %v1303_v54 = vadd.f32 %v8713_v29, %v747_v44  ;;  %v749_v13 = vpop.f32.mrb[87].mxu0  ;;  %v1429_v37 = vmax.f32 %v1301_v22, 0.0 }
 0x1ba   : > { %v1304_v60 = vadd.f32 %v8719_v11, %v749_v13  ;;  %v1430_v19 = vmax.f32 %v1302_v34, 0.0 }
 0x1bb   : > { %v1431_v17 = vmax.f32 %v1303_v54, 0.0  ;;  %1935 = vmatmul.mubr.bf16.gmra.mrb[192].mxu0 %v8962_v24 }
 0x1bc   : > { %v1432_v23 = vmax.f32 %v1304_v60, 0.0  ;;  %1944 = vmatprep.mubr.bf16.mxu0 %v8974_v52 }
 0x1bd   : > { %v9012_v21 = vpack.c.bf16 %v1431_v17, %v1429_v37  ;;  %v8070_v17 = vld [vmem:[#allocation2 + $0x260] ss:$8 sps:$4 sm:$0xff]  }
 0x1be   : > { %v753_v58 = vpop.f32.mrb[88].mxu0  ;;  %v9014_v7 = vpack.c.bf16 %v1432_v23, %v1430_v19  ;;  %v8072_v19 = vld [vmem:[#allocation2 + $0x264] ss:$8 sps:$4 sm:$0xff]  }
 0x1bf   : > { %v1305_v30 = vadd.f32 %v8713_v29, %v753_v58  ;;  %v755_v59 = vpop.f32.mrb[89].mxu0  ;;  %3256 = vmatprep.subr.bf16.mxu0 %v8072_v19 }
 0x1c0   : > { %v1306_v62 = vadd.f32 %v8719_v11, %v755_v59  ;;  %v757_v3 = vpop.f32.mrb[90].mxu0  ;;  %3257 = vmatpush1.bf16.msra.mxu0 %v8070_v17 }
 0x1c1   : > { %v1307_v10 = vadd.f32 %v8713_v29, %v757_v3  ;;  %v759_v24 = vpop.f32.mrb[91].mxu0  ;;  %v1433_v35 = vmax.f32 %v1305_v30, 0.0 }
 0x1c2   : > { %v1308_v20 = vadd.f32 %v8719_v11, %v759_v24  ;;  %v1434_v61 = vmax.f32 %v1306_v62, 0.0 }
 0x1c3   : > { %v1435_v52 = vmax.f32 %v1307_v10, 0.0  ;;  %1945 = vmatmul.mubr.bf16.gmra.mrb[196].mxu0 %v8972_v45 }
 0x1c4   : > { %v1436_v55 = vmax.f32 %v1308_v20, 0.0  ;;  %1954 = vmatprep.mubr.bf16.mxu0 %v8984_v43 }
 0x1c5   : > { %v9022_v16 = vpack.c.bf16 %v1435_v52, %v1433_v35 }
 0x1c6   : > { %v763_v28 = vpop.f32.mrb[92].mxu0  ;;  %v9024_v25 = vpack.c.bf16 %v1436_v55, %v1434_v61 }
 0x1c7   : > { %v1309_v38 = vadd.f32 %v8713_v29, %v763_v28  ;;  %v765_v32 = vpop.f32.mrb[93].mxu0 }
 0x1c8   : > { %v1310_v8 = vadd.f32 %v8719_v11, %v765_v32  ;;  %v767_v57 = vpop.f32.mrb[94].mxu0 }
 0x1c9   : > { %v1311_v15 = vadd.f32 %v8713_v29, %v767_v57  ;;  %v769_v9 = vpop.f32.mrb[95].mxu0  ;;  %v1437_v46 = vmax.f32 %v1309_v38, 0.0 }
 0x1ca   : > { %v1312_v45 = vadd.f32 %v8719_v11, %v769_v9  ;;  %v1438_v12 = vmax.f32 %v1310_v8, 0.0 }
 0x1cb   : > { %v1439_v43 = vmax.f32 %v1311_v15, 0.0  ;;  %1955 = vmatmul.mubr.bf16.gmra.mrb[200].mxu0 %v8982_v33 }
 0x1cc   : > { %v1440_v47 = vmax.f32 %v1312_v45, 0.0  ;;  %1964 = vmatprep.mubr.bf16.mxu0 %v8994_v26 }
 0x1cd   : > { %v9032_v18 = vpack.c.bf16 %v1439_v43, %v1437_v46  ;;  %v8073_v43 = vld [vmem:[#allocation2 + $0x270] ss:$8 sps:$4 sm:$0xff]  }
 0x1ce   : > { %v773_v36 = vpop.f32.mrb[96].mxu0  ;;  %v9034_v14 = vpack.c.bf16 %v1440_v47, %v1438_v12  ;;  %v8075_v12 = vld [vmem:[#allocation2 + $0x274] ss:$8 sps:$4 sm:$0xff]  }
 0x1cf   : > { %v1313_v51 = vadd.f32 %v8713_v29, %v773_v36  ;;  %v775_v42 = vpop.f32.mrb[97].mxu0  ;;  %3258 = vmatprep.subr.bf16.mxu0 %v8075_v12 }
 0x1d0   : > { %v1314_v53 = vadd.f32 %v8719_v11, %v775_v42  ;;  %v777_v56 = vpop.f32.mrb[98].mxu0  ;;  %3259 = vmatpush1.bf16.msra.mxu0 %v8073_v43 }
 0x1d1   : > { %v1315_v40 = vadd.f32 %v8713_v29, %v777_v56  ;;  %v779_v33 = vpop.f32.mrb[99].mxu0  ;;  %v1441_v63 = vmax.f32 %v1313_v51, 0.0 }
 0x1d2   : > { %v1316_v41 = vadd.f32 %v8719_v11, %v779_v33  ;;  %v1442_v0 = vmax.f32 %v1314_v53, 0.0 }
 0x1d3   : > { %v1443_v26 = vmax.f32 %v1315_v40, 0.0  ;;  %1965 = vmatmul.mubr.bf16.gmra.mrb[204].mxu0 %v8992_v48 }
 0x1d4   : > { %v1444_v22 = vmax.f32 %v1316_v41, 0.0  ;;  %1974 = vmatprep.mubr.bf16.mxu0 %v9004_v1 }
 0x1d5   : > { %v9042_v5 = vpack.c.bf16 %v1443_v26, %v1441_v63 }
 0x1d6   : > { %v783_v34 = vpop.f32.mrb[100].mxu0  ;;  %v9044_v44 = vpack.c.bf16 %v1444_v22, %v1442_v0 }
 0x1d7   : > { %v1317_v54 = vadd.f32 %v8713_v29, %v783_v34  ;;  %v785_v13 = vpop.f32.mrb[101].mxu0 }
 0x1d8   : > { %v1318_v60 = vadd.f32 %v8719_v11, %v785_v13  ;;  %v787_v49 = vpop.f32.mrb[102].mxu0 }
 0x1d9   : > { %v1319_v50 = vadd.f32 %v8713_v29, %v787_v49  ;;  %v789_v37 = vpop.f32.mrb[103].mxu0  ;;  %v1445_v23 = vmax.f32 %v1317_v54, 0.0 }
 0x1da   : > { %v1320_v48 = vadd.f32 %v8719_v11, %v789_v37  ;;  %v1446_v58 = vmax.f32 %v1318_v60, 0.0 }
 0x1db   : > { %v1447_v1 = vmax.f32 %v1319_v50, 0.0  ;;  %1975 = vmatmul.mubr.bf16.gmra.mrb[208].mxu0 %v9002_v2 }
 0x1dc   : > { %v1448_v30 = vmax.f32 %v1320_v48, 0.0  ;;  %1984 = vmatprep.mubr.bf16.mxu0 %v9014_v7 }
 0x1dd   : > { %v9052_v59 = vpack.c.bf16 %v1447_v1, %v1445_v23  ;;  %v8076_v1 = vld [vmem:[#allocation2 + $0x280] ss:$8 sps:$4 sm:$0xff]  }
 0x1de   : > { %v793_v62 = vpop.f32.mrb[104].mxu0  ;;  %v9054_v3 = vpack.c.bf16 %v1448_v30, %v1446_v58  ;;  %v8078_v58 = vld [vmem:[#allocation2 + $0x284] ss:$8 sps:$4 sm:$0xff]  }
 0x1df   : > { %v1321_v10 = vadd.f32 %v8713_v29, %v793_v62  ;;  %v795_v24 = vpop.f32.mrb[105].mxu0  ;;  %3260 = vmatprep.subr.bf16.mxu0 %v8078_v58 }
 0x1e0   : > { %v1322_v20 = vadd.f32 %v8719_v11, %v795_v24  ;;  %v797_v35 = vpop.f32.mrb[106].mxu0  ;;  %3261 = vmatpush1.bf16.msra.mxu0 %v8076_v1 }
 0x1e1   : > { %v1323_v52 = vadd.f32 %v8713_v29, %v797_v35  ;;  %v799_v2 = vpop.f32.mrb[107].mxu0  ;;  %v1449_v55 = vmax.f32 %v1321_v10, 0.0 }
 0x1e2   : > { %v1324_v61 = vadd.f32 %v8719_v11, %v799_v2  ;;  %v1450_v28 = vmax.f32 %v1322_v20, 0.0 }
 0x1e3   : > { %v1451_v7 = vmax.f32 %v1323_v52, 0.0  ;;  %1985 = vmatmul.mubr.bf16.gmra.mrb[212].mxu0 %v9012_v21 }
 0x1e4   : > { %v1452_v38 = vmax.f32 %v1324_v61, 0.0  ;;  %1994 = vmatprep.mubr.bf16.mxu0 %v9024_v25 }
 0x1e5   : > { %v9062_v32 = vpack.c.bf16 %v1451_v7, %v1449_v55 }
 0x1e6   : > { %v803_v8 = vpop.f32.mrb[108].mxu0  ;;  %v9064_v57 = vpack.c.bf16 %v1452_v38, %v1450_v28 }
 0x1e7   : > { %v1325_v15 = vadd.f32 %v8713_v29, %v803_v8  ;;  %v805_v9 = vpop.f32.mrb[109].mxu0 }
 0x1e8   : > { %v1326_v45 = vadd.f32 %v8719_v11, %v805_v9  ;;  %v807_v31 = vpop.f32.mrb[110].mxu0 }
 0x1e9   : > { %v1327_v39 = vadd.f32 %v8713_v29, %v807_v31  ;;  %v809_v46 = vpop.f32.mrb[111].mxu0  ;;  %v1453_v47 = vmax.f32 %v1325_v15, 0.0 }
 0x1ea   : > { %v1328_v21 = vadd.f32 %v8719_v11, %v809_v46  ;;  %v1454_v36 = vmax.f32 %v1326_v45, 0.0 }
 0x1eb   : > { %v1455_v25 = vmax.f32 %v1327_v39, 0.0  ;;  %1995 = vmatmul.mubr.bf16.gmra.mrb[216].mxu0 %v9022_v16 }
 0x1ec   : > { %v1456_v51 = vmax.f32 %v1328_v21, 0.0  ;;  %2004 = vmatprep.mubr.bf16.mxu0 %v9034_v14  ;;  %v7553_v21 = vld [vmem:[%s10676_s3 + $0x1] ss:$8 sm:$0x3] }
 0x1ed   : > { %v9072_v42 = vpack.c.bf16 %v1455_v25, %v1453_v47  ;;  %v8079_v25 = vld [vmem:[#allocation2 + $0x290] ss:$8 sps:$4 sm:$0xff]  }
 0x1ee   : > { %v813_v53 = vpop.f32.mrb[112].mxu0  ;;  %v9074_v56 = vpack.c.bf16 %v1456_v51, %v1454_v36  ;;  %v8081_v36 = vld [vmem:[#allocation2 + $0x294] ss:$8 sps:$4 sm:$0xff]   ;;  %v9114_v51 = vrot.slane %v7553_v21, %v8699_v27 }
 0x1ef   : > { %v1329_v40 = vadd.f32 %v8713_v29, %v813_v53  ;;  %v815_v33 = vpop.f32.mrb[113].mxu0  ;;  %3262 = vmatprep.subr.bf16.mxu0 %v8081_v36 }
 0x1f0   : > { %v1330_v41 = vadd.f32 %v8719_v11, %v815_v33  ;;  %v817_v63 = vpop.f32.mrb[114].mxu0  ;;  %v9118_v33 = vrot.slane %v7553_v21, %v8707_v6  ;;  %3263 = vmatpush1.bf16.msra.mxu0 %v8079_v25 }
 0x1f1   : > { %v1331_v26 = vadd.f32 %v8713_v29, %v817_v63  ;;  %v819_v16 = vpop.f32.mrb[115].mxu0  ;;  %v1457_v22 = vmax.f32 %v1329_v40, 0.0 }
 0x1f2   : > { %v1332_v0 = vadd.f32 %v8719_v11, %v819_v16  ;;  %v1458_v34 = vmax.f32 %v1330_v41, 0.0 }
 0x1f3   : > { %v1459_v14 = vmax.f32 %v1331_v26, 0.0  ;;  %2005 = vmatmul.mubr.bf16.gmra.mrb[220].mxu0 %v9032_v18 }
 0x1f4   : > { %v1460_v54 = vmax.f32 %v1332_v0, 0.0  ;;  %2014 = vmatprep.mubr.bf16.mxu0 %v9044_v44 }
 0x1f5   : > { %v9082_v13 = vpack.c.bf16 %v1459_v14, %v1457_v22 }
 0x1f6   : > { %v823_v60 = vpop.f32.mrb[116].mxu0  ;;  %v9084_v49 = vpack.c.bf16 %v1460_v54, %v1458_v34 }
 0x1f7   : > { %v1333_v50 = vadd.f32 %v8713_v29, %v823_v60  ;;  %v825_v37 = vpop.f32.mrb[117].mxu0 }
 0x1f8   : > { %v1334_v48 = vadd.f32 %v8719_v11, %v825_v37  ;;  %v827_v17 = vpop.f32.mrb[118].mxu0 }
 0x1f9   : > { %v1335_v19 = vadd.f32 %v8713_v29, %v827_v17  ;;  %v829_v23 = vpop.f32.mrb[119].mxu0  ;;  %v1461_v30 = vmax.f32 %v1333_v50, 0.0 }
 0x1fa   : > { %v1336_v18 = vadd.f32 %v8719_v11, %v829_v23  ;;  %v1462_v62 = vmax.f32 %v1334_v48, 0.0 }
 0x1fb   : > { %v1463_v44 = vmax.f32 %v1335_v19, 0.0  ;;  %2015 = vmatmul.mubr.bf16.gmra.mrb[224].mxu0 %v9042_v5 }
 0x1fc   : > { %v1464_v10 = vmax.f32 %v1336_v18, 0.0  ;;  %2024 = vmatprep.mubr.bf16.mxu0 %v9054_v3 }
 0x1fd   : > { %v9092_v24 = vpack.c.bf16 %v1463_v44, %v1461_v30 }
 0x1fe   : > { %v833_v20 = vpop.f32.mrb[120].mxu0  ;;  %v9094_v35 = vpack.c.bf16 %v1464_v10, %v1462_v62  ;;  %v8082_v62 = vld [vmem:[#allocation2 + $0x2a0] ss:$8 sps:$4 sm:$0xff]   ;;  %v8084_v10 = vld [vmem:[#allocation2 + $0x2a4] ss:$8 sps:$4 sm:$0xff]  }
 0x1ff   : > { %v1337_v52 = vadd.f32 %v8713_v29, %v833_v20  ;;  %v835_v2 = vpop.f32.mrb[121].mxu0  ;;  %3264 = vmatprep.subr.bf16.mxu0 %v8084_v10 }
 0x200   : > { %v1338_v61 = vadd.f32 %v8719_v11, %v835_v2  ;;  %v837_v55 = vpop.f32.mrb[122].mxu0  ;;  %3265 = vmatpush1.bf16.msra.mxu0 %v8082_v62 }
 0x201   : > { %v1339_v7 = vadd.f32 %v8713_v29, %v837_v55  ;;  %v839_v5 = vpop.f32.mrb[123].mxu0  ;;  %v1465_v38 = vmax.f32 %v1337_v52, 0.0 }
 0x202   : > { %v1340_v28 = vadd.f32 %v8719_v11, %v839_v5  ;;  %v1466_v8 = vmax.f32 %v1338_v61, 0.0 }
 0x203   : > { %v1467_v3 = vmax.f32 %v1339_v7, 0.0  ;;  %2025 = vmatmul.mubr.bf16.gmra.mrb[228].mxu0 %v9052_v59 }
 0x204   : > { %v1468_v15 = vmax.f32 %v1340_v28, 0.0  ;;  %2034 = vmatprep.mubr.bf16.mxu0 %v9064_v57 }
 0x205   : > { %v9102_v9 = vpack.c.bf16 %v1467_v3, %v1465_v38 }
 0x206   : > { %v843_v45 = vpop.f32.mrb[124].mxu0  ;;  %v9104_v31 = vpack.c.bf16 %v1468_v15, %v1466_v8 }
 0x207   : > { %v1341_v39 = vadd.f32 %v8713_v29, %v843_v45  ;;  %v845_v46 = vpop.f32.mrb[125].mxu0 }
 0x208   : > { %v1342_v43 = vadd.f32 %v8719_v11, %v845_v46  ;;  %v847_v12 = vpop.f32.mrb[126].mxu0 }
 0x209   : > { %v1343_v59 = vadd.f32 %v8713_v29, %v847_v12  ;;  %v849_v47 = vpop.f32.mrb[127].mxu0  ;;  %v1469_v53 = vmax.f32 %v1341_v39, 0.0 }
 0x20a   : > { %v1344_v57 = vadd.f32 %v8719_v11, %v849_v47  ;;  %v1470_v41 = vmax.f32 %v1342_v43, 0.0 }
 0x20b   : > { %v1471_v40 = vmax.f32 %v1343_v59, 0.0  ;;  %2035 = vmatmul.mubr.bf16.gmra.mrb[232].mxu0 %v9062_v32 }
 0x20c   : > { %v1472_v63 = vmax.f32 %v1344_v57, 0.0  ;;  %2044 = vmatprep.mubr.bf16.mxu0 %v9074_v56 }
 0x20d   : > { %v9121_v29 = vpack.c.bf16 %v1471_v40, %v1469_v53  ;;  %v8085_v40 = vld [vmem:[#allocation2 + $0x2b0] ss:$8 sps:$4 sm:$0xff]  }
 0x20e   : > { %v1776_v11 = vpop.f32.mrb[128].mxu0  ;;  %v9123_v26 = vpack.c.bf16 %v1472_v63, %v1470_v41  ;;  %v8087_v41 = vld [vmem:[#allocation2 + $0x2b4] ss:$8 sps:$4 sm:$0xff]  }
 0x20f   : > { %v1777_v16 = vadd.f32 %v1776_v11, %v9114_v51  ;;  %v1778_v0 = vpop.f32.mrb[129].mxu0  ;;  %3266 = vmatprep.subr.bf16.mxu0 %v8087_v41  ;;  %v8091_v41 = vld [vmem:[#allocation2 + $0x2d0] ss:$8 sps:$4 sm:$0xff]  }
 0x210   : > { %v1779_v22 = vadd.f32 %v1778_v0, %v9118_v33  ;;  %v1780_v32 = vpop.f32.mrb[130].mxu0  ;;  %3267 = vmatpush1.bf16.msra.mxu0 %v8085_v40 }
 0x211   : > { %v1781_v14 = vadd.f32 %v1780_v32, %v9114_v51  ;;  %v1782_v34 = vpop.f32.mrb[131].mxu0  ;;  %v2095_v60 = vmax.f32 %v1777_v16, 0.0 }
 0x212   : > { %v1783_v54 = vadd.f32 %v1782_v34, %v9118_v33  ;;  %v2096_v50 = vmax.f32 %v1779_v22, 0.0 }
 0x213   : > { %v2097_v56 = vmax.f32 %v1781_v14, 0.0  ;;  %2045 = vmatmul.mubr.bf16.gmra.mrb[236].mxu0 %v9072_v42 }
 0x214   : > { %v2098_v37 = vmax.f32 %v1783_v54, 0.0  ;;  %2054 = vmatprep.mubr.bf16.mxu0 %v9084_v49 }
 0x215   : > { %v2223_v48 = vpack.c.bf16 %v2097_v56, %v2095_v60 }
 0x216   : > { %v1786_v17 = vpop.f32.mrb[132].mxu0  ;;  %v2224_v19 = vpack.c.bf16 %v2098_v37, %v2096_v50 }
 0x217   : > { %v1787_v23 = vadd.f32 %v1786_v17, %v9114_v51  ;;  %v1788_v18 = vpop.f32.mrb[133].mxu0 }
 0x218   : > { %v1789_v1 = vadd.f32 %v1788_v18, %v9118_v33  ;;  %v1790_v58 = vpop.f32.mrb[134].mxu0  ;;  %2525 = vmatprep.mubr.bf16.mxu1 %v2224_v19 }
 0x219   : > { %v1791_v30 = vadd.f32 %v1790_v58, %v9114_v51  ;;  %v1792_v44 = vpop.f32.mrb[135].mxu0  ;;  %2526 = vmatmul.mubr.bf16.vlgmr.msra.gmra.mrb[128].mxu1 %v2223_v48  ;;  %v2099_v20 = vmax.f32 %v1787_v23, 0.0 }
 0x21a   : > { %v1793_v42 = vadd.f32 %v1792_v44, %v9118_v33  ;;  %v2100_v52 = vmax.f32 %v1789_v1, 0.0 }
 0x21b   : > { %v2101_v49 = vmax.f32 %v1791_v30, 0.0  ;;  %2055 = vmatmul.mubr.bf16.gmra.mrb[240].mxu0 %v9082_v13 }
 0x21c   : > { %v2102_v2 = vmax.f32 %v1793_v42, 0.0  ;;  %2064 = vmatprep.mubr.bf16.mxu0 %v9094_v35 }
 0x21d   : > { %v2225_v61 = vpack.c.bf16 %v2101_v49, %v2099_v20  ;;  %v8088_v20 = vld [vmem:[#allocation2 + $0x2c0] ss:$8 sps:$4 sm:$0xff]  }
 0x21e   : > { %v1796_v55 = vpop.f32.mrb[136].mxu0  ;;  %v2226_v7 = vpack.c.bf16 %v2102_v2, %v2100_v52 }
 0x21f   : > { %v1797_v5 = vadd.f32 %v1796_v55, %v9114_v51  ;;  %v1798_v28 = vpop.f32.mrb[137].mxu0 }
 0x220   : > { %v1799_v38 = vadd.f32 %v1798_v28, %v9118_v33  ;;  %v1800_v3 = vpop.f32.mrb[138].mxu0  ;;  %2535 = vmatprep.mubr.bf16.mxu1 %v2226_v7 }
 0x221   : > { %v1801_v8 = vadd.f32 %v1800_v3, %v9114_v51  ;;  %v1802_v15 = vpop.f32.mrb[139].mxu0  ;;  %2536 = vmatmul.mubr.bf16.gmra.mrb[132].mxu1 %v2225_v61  ;;  %v2103_v45 = vmax.f32 %v1797_v5, 0.0 }
 0x222   : > { %v1803_v13 = vadd.f32 %v1802_v15, %v9118_v33  ;;  %v2104_v39 = vmax.f32 %v1799_v38, 0.0 }
 0x223   : > { %v2105_v35 = vmax.f32 %v1801_v8, 0.0  ;;  %2065 = vmatmul.mubr.bf16.gmra.mrb[244].mxu0 %v9092_v24 }
 0x224   : > { %v2106_v46 = vmax.f32 %v1803_v13, 0.0  ;;  %2074 = vmatprep.mubr.bf16.mxu0 %v9104_v31 }
 0x225   : > { %v2227_v21 = vpack.c.bf16 %v2105_v35, %v2103_v45 }
 0x226   : > { %v1806_v43 = vpop.f32.mrb[140].mxu0  ;;  %v2228_v12 = vpack.c.bf16 %v2106_v46, %v2104_v39 }
 0x227   : > { %v1807_v59 = vadd.f32 %v1806_v43, %v9114_v51  ;;  %v1808_v47 = vpop.f32.mrb[141].mxu0 }
 0x228   : > { %v1809_v57 = vadd.f32 %v1808_v47, %v9118_v33  ;;  %v1810_v25 = vpop.f32.mrb[142].mxu0  ;;  %2545 = vmatprep.mubr.bf16.mxu1 %v2228_v12 }
 0x229   : > { %v1811_v36 = vadd.f32 %v1810_v25, %v9114_v51  ;;  %v1812_v53 = vpop.f32.mrb[143].mxu0  ;;  %2546 = vmatmul.mubr.bf16.gmra.mrb[136].mxu1 %v2227_v21  ;;  %v2107_v63 = vmax.f32 %v1807_v59, 0.0 }
 0x22a   : > { %v1813_v24 = vadd.f32 %v1812_v53, %v9118_v33  ;;  %v2108_v11 = vmax.f32 %v1809_v57, 0.0 }
 0x22b   : > { %v2109_v31 = vmax.f32 %v1811_v36, 0.0  ;;  %2075 = vmatmul.mubr.bf16.gmra.mrb[248].mxu0 %v9102_v9 }
 0x22c   : > { %v2110_v16 = vmax.f32 %v1813_v24, 0.0  ;;  %2084 = vmatprep.mubr.bf16.mxu0 %v9123_v26 }
 0x22d   : > { %v2229_v0 = vpack.c.bf16 %v2109_v31, %v2107_v63  ;;  %v8093_v63 = vld [vmem:[#allocation2 + $0x2d4] ss:$8 sps:$4 sm:$0xff]  }
 0x22e   : > { %v1816_v22 = vpop.f32.mrb[144].mxu0  ;;  %v2230_v32 = vpack.c.bf16 %v2110_v16, %v2108_v11 }
 0x22f   : > { %v1817_v14 = vadd.f32 %v1816_v22, %v9114_v51  ;;  %v1818_v34 = vpop.f32.mrb[145].mxu0 }
 0x230   : > { %v1819_v54 = vadd.f32 %v1818_v34, %v9118_v33  ;;  %v1820_v60 = vpop.f32.mrb[146].mxu0  ;;  %2555 = vmatprep.mubr.bf16.mxu1 %v2230_v32 }
 0x231   : > { %v1821_v56 = vadd.f32 %v1820_v60, %v9114_v51  ;;  %v1822_v50 = vpop.f32.mrb[147].mxu0  ;;  %2556 = vmatmul.mubr.bf16.gmra.mrb[140].mxu1 %v2229_v0  ;;  %v2111_v37 = vmax.f32 %v1817_v14, 0.0 }
 0x232   : > { %v1823_v9 = vadd.f32 %v1822_v50, %v9118_v33  ;;  %v2112_v48 = vmax.f32 %v1819_v54, 0.0 }
 0x233   : > { %v2113_v26 = vmax.f32 %v1821_v56, 0.0  ;;  %2085 = vmatmul.mubr.bf16.gmra.mrb[252].mxu0 %v9121_v29  ;;  %v8090_v29 = vld [vmem:[#allocation2 + $0x2c4] ss:$8 sps:$4 sm:$0xff]  }
 0x234   : > { %v2114_v17 = vmax.f32 %v1823_v9, 0.0  ;;  %3268 = vmatprep.subr.bf16.mxu0 %v8090_v29 }
 0x235   : > { %v2231_v19 = vpack.c.bf16 %v2113_v26, %v2111_v37  ;;  %3269 = vmatpush1.bf16.msra.mxu0 %v8088_v20 }
 0x236   : > { %v1826_v23 = vpop.f32.mrb[148].mxu0  ;;  %v2232_v18 = vpack.c.bf16 %v2114_v17, %v2112_v48  ;;  %3270 = vmatprep.subr.bf16.mxu0 %v8093_v63 }
 0x237   : > { %v1827_v1 = vadd.f32 %v1826_v23, %v9114_v51  ;;  %v1828_v58 = vpop.f32.mrb[149].mxu0  ;;  %v8094_v23 = vld [vmem:[#allocation2 + $0x300] ss:$8 sps:$4 sm:$0xff]  }
 0x238   : > { %v1829_v30 = vadd.f32 %v1828_v58, %v9118_v33  ;;  %v1830_v44 = vpop.f32.mrb[150].mxu0  ;;  %2565 = vmatprep.mubr.bf16.mxu1 %v2232_v18  ;;  %v8096_v18 = vld [vmem:[#allocation2 + $0x304] ss:$8 sps:$4 sm:$0xff]  }
 0x239   : > { %v1831_v42 = vadd.f32 %v1830_v44, %v9114_v51  ;;  %v1832_v62 = vpop.f32.mrb[151].mxu0  ;;  %2566 = vmatmul.mubr.bf16.gmra.mrb[144].mxu1 %v2231_v19  ;;  %v2115_v49 = vmax.f32 %v1827_v1, 0.0  ;;  %3271 = vmatpush1.bf16.msra.mxu0 %v8091_v41 }
 0x23a   : > { %v1833_v10 = vadd.f32 %v1832_v62, %v9118_v33  ;;  %v2116_v2 = vmax.f32 %v1829_v30, 0.0  ;;  %3995 = vmatprep.subr.bf16.mxu1 %v8096_v18 }
 0x23b   : > { %v2117_v52 = vmax.f32 %v1831_v42, 0.0  ;;  %3996 = vmatpush1.bf16.msra.mxu1 %v8094_v23 }
 0x23c   : > { %v2118_v61 = vmax.f32 %v1833_v10, 0.0 }
 0x23d   : > { %v2233_v55 = vpack.c.bf16 %v2117_v52, %v2115_v49  ;;  %v8097_v52 = vld [vmem:[#allocation2 + $0x2e0] ss:$8 sps:$4 sm:$0xff]  }
 0x23e   : > { %v1836_v7 = vpop.f32.mrb[152].mxu0  ;;  %v2234_v5 = vpack.c.bf16 %v2118_v61, %v2116_v2  ;;  %v8099_v2 = vld [vmem:[#allocation2 + $0x2e4] ss:$8 sps:$4 sm:$0xff]  }
 0x23f   : > { %v1837_v28 = vadd.f32 %v1836_v7, %v9114_v51  ;;  %v1838_v38 = vpop.f32.mrb[153].mxu0  ;;  %3272 = vmatprep.subr.bf16.mxu0 %v8099_v2  ;;  %v8108_v2 = vld [vmem:[#allocation2 + $0x324] ss:$8 sps:$4 sm:$0xff]  }
 0x240   : > { %v1839_v3 = vadd.f32 %v1838_v38, %v9118_v33  ;;  %v1840_v8 = vpop.f32.mrb[154].mxu0  ;;  %2575 = vmatprep.mubr.bf16.mxu1 %v2234_v5  ;;  %3273 = vmatpush1.bf16.msra.mxu0 %v8097_v52  ;;  %v8106_v52 = vld [vmem:[#allocation2 + $0x320] ss:$8 sps:$4 sm:$0xff]  }
 0x241   : > { %v1841_v15 = vadd.f32 %v1840_v8, %v9114_v51  ;;  %v1842_v13 = vpop.f32.mrb[155].mxu0  ;;  %2576 = vmatmul.mubr.bf16.gmra.mrb[148].mxu1 %v2233_v55  ;;  %v2119_v35 = vmax.f32 %v1837_v28, 0.0 }
 0x242   : > { %v1843_v45 = vadd.f32 %v1842_v13, %v9118_v33  ;;  %v2120_v46 = vmax.f32 %v1839_v3, 0.0 }
 0x243   : > { %v2121_v39 = vmax.f32 %v1841_v15, 0.0 }
 0x244   : > { %v2122_v21 = vmax.f32 %v1843_v45, 0.0 }
 0x245   : > { %v2235_v43 = vpack.c.bf16 %v2121_v39, %v2119_v35 }
 0x246   : > { %v1846_v12 = vpop.f32.mrb[156].mxu0  ;;  %v2236_v59 = vpack.c.bf16 %v2122_v21, %v2120_v46 }
 0x247   : > { %v1847_v47 = vadd.f32 %v1846_v12, %v9114_v51  ;;  %v1848_v57 = vpop.f32.mrb[157].mxu0 }
 0x248   : > { %v1849_v25 = vadd.f32 %v1848_v57, %v9118_v33  ;;  %v1850_v36 = vpop.f32.mrb[158].mxu0  ;;  %2585 = vmatprep.mubr.bf16.mxu1 %v2236_v59  ;;  %v8102_v57 = vld [vmem:[#allocation2 + $0x314] ss:$8 sps:$4 sm:$0xff]  }
 0x249   : > { %v1851_v53 = vadd.f32 %v1850_v36, %v9114_v51  ;;  %v1852_v24 = vpop.f32.mrb[159].mxu0  ;;  %2586 = vmatmul.mubr.bf16.gmra.mrb[152].mxu1 %v2235_v43  ;;  %v2123_v31 = vmax.f32 %v1847_v47, 0.0  ;;  %v8100_v47 = vld [vmem:[#allocation2 + $0x310] ss:$8 sps:$4 sm:$0xff]   ;;  %3997 = vmatprep.subr.bf16.mxu1 %v8102_v57 }
 0x24a   : > { %v1853_v40 = vadd.f32 %v1852_v24, %v9118_v33  ;;  %v2124_v16 = vmax.f32 %v1849_v25, 0.0  ;;  %3998 = vmatpush1.bf16.msra.mxu1 %v8100_v47 }
 0x24b   : > { %v2125_v11 = vmax.f32 %v1851_v53, 0.0  ;;  %3999 = vmatprep.subr.bf16.mxu1 %v8108_v2  ;;  %v8112_v2 = vld [vmem:[#allocation2 + $0x340] ss:$8 sps:$4 sm:$0xff]  }
 0x24c   : > { %v2126_v0 = vmax.f32 %v1853_v40, 0.0 }
 0x24d   : > { %v2237_v22 = vpack.c.bf16 %v2125_v11, %v2123_v31 }
 0x24e   : > { %v1856_v32 = vpop.f32.mrb[160].mxu0  ;;  %v2238_v14 = vpack.c.bf16 %v2126_v0, %v2124_v16  ;;  %v8103_v0 = vld [vmem:[#allocation2 + $0x2f0] ss:$8 sps:$4 sm:$0xff]   ;;  %4000 = vmatpush1.bf16.msra.mxu1 %v8106_v52 }
 0x24f   : > { %v1857_v34 = vadd.f32 %v1856_v32, %v9114_v51  ;;  %v1858_v54 = vpop.f32.mrb[161].mxu0 }
 0x250   : > { %v1859_v60 = vadd.f32 %v1858_v54, %v9118_v33  ;;  %v1860_v56 = vpop.f32.mrb[162].mxu0  ;;  %2595 = vmatprep.mubr.bf16.mxu1 %v2238_v14 }
 0x251   : > { %v1861_v50 = vadd.f32 %v1860_v56, %v9114_v51  ;;  %v1862_v9 = vpop.f32.mrb[163].mxu0  ;;  %2596 = vmatmul.mubr.bf16.gmra.mrb[156].mxu1 %v2237_v22  ;;  %v2127_v26 = vmax.f32 %v1857_v34, 0.0  ;;  %v8105_v22 = vld [vmem:[#allocation2 + $0x2f4] ss:$8 sps:$4 sm:$0xff]  }
 0x252   : > { %v1863_v37 = vadd.f32 %v1862_v9, %v9118_v33  ;;  %v2128_v17 = vmax.f32 %v1859_v60, 0.0  ;;  %3274 = vmatprep.subr.bf16.mxu0 %v8105_v22 }
 0x253   : > { %v2129_v48 = vmax.f32 %v1861_v50, 0.0  ;;  %3275 = vmatpush1.bf16.msra.mxu0 %v8103_v0 }
 0x254   : > { %v2130_v19 = vmax.f32 %v1863_v37, 0.0 }
 0x255   : > { %v2239_v1 = vpack.c.bf16 %v2129_v48, %v2127_v26 }
 0x256   : > { %v1866_v58 = vpop.f32.mrb[164].mxu0  ;;  %v2240_v30 = vpack.c.bf16 %v2130_v19, %v2128_v17 }
 0x257   : > { %v1867_v44 = vadd.f32 %v1866_v58, %v9114_v51  ;;  %v1868_v42 = vpop.f32.mrb[165].mxu0 }
 0x258   : > { %v1869_v62 = vadd.f32 %v1868_v42, %v9118_v33  ;;  %v1870_v10 = vpop.f32.mrb[166].mxu0  ;;  %2605 = vmatprep.mubr.bf16.mxu1 %v2240_v30 }
 0x259   : > { %v1871_v20 = vadd.f32 %v1870_v10, %v9114_v51  ;;  %v1872_v29 = vpop.f32.mrb[167].mxu0  ;;  %2606 = vmatmul.mubr.bf16.gmra.mrb[160].mxu1 %v2239_v1  ;;  %v2131_v61 = vmax.f32 %v1867_v44, 0.0 }
 0x25a   : > { %v1873_v49 = vadd.f32 %v1872_v29, %v9118_v33  ;;  %v2132_v7 = vmax.f32 %v1869_v62, 0.0 }
 0x25b   : > { %v2133_v55 = vmax.f32 %v1871_v20, 0.0 }
 0x25c   : > { %v2134_v5 = vmax.f32 %v1873_v49, 0.0 }
 0x25d   : > { %v2241_v28 = vpack.c.bf16 %v2133_v55, %v2131_v61 }
 0x25e   : > { %v1876_v38 = vpop.f32.mrb[168].mxu0  ;;  %v2242_v3 = vpack.c.bf16 %v2134_v5, %v2132_v7 }
 0x25f   : > { %v1877_v8 = vadd.f32 %v1876_v38, %v9114_v51  ;;  %v1878_v15 = vpop.f32.mrb[169].mxu0 }
 0x260   : > { %v1879_v13 = vadd.f32 %v1878_v15, %v9118_v33  ;;  %v1880_v45 = vpop.f32.mrb[170].mxu0  ;;  %2615 = vmatprep.mubr.bf16.mxu1 %v2242_v3 }
 0x261   : > { %v1881_v35 = vadd.f32 %v1880_v45, %v9114_v51  ;;  %v1882_v39 = vpop.f32.mrb[171].mxu0  ;;  %2616 = vmatmul.mubr.bf16.gmra.mrb[164].mxu1 %v2241_v28  ;;  %v2135_v21 = vmax.f32 %v1877_v8, 0.0 }
 0x262   : > { %v1883_v46 = vadd.f32 %v1882_v39, %v9118_v33  ;;  %v2136_v12 = vmax.f32 %v1879_v13, 0.0 }
 0x263   : > { %v2137_v43 = vmax.f32 %v1881_v35, 0.0 }
 0x264   : > { %v2138_v59 = vmax.f32 %v1883_v46, 0.0 }
 0x265   : > { %v2243_v25 = vpack.c.bf16 %v2137_v43, %v2135_v21 }
 0x266   : > { %v1886_v36 = vpop.f32.mrb[172].mxu0  ;;  %v2244_v53 = vpack.c.bf16 %v2138_v59, %v2136_v12 }
 0x267   : > { %v1887_v24 = vadd.f32 %v1886_v36, %v9114_v51  ;;  %v1888_v40 = vpop.f32.mrb[173].mxu0 }
 0x268   : > { %v1889_v41 = vadd.f32 %v1888_v40, %v9118_v33  ;;  %v1890_v63 = vpop.f32.mrb[174].mxu0  ;;  %2625 = vmatprep.mubr.bf16.mxu1 %v2244_v53 }
 0x269   : > { %v1891_v31 = vadd.f32 %v1890_v63, %v9114_v51  ;;  %v1892_v11 = vpop.f32.mrb[175].mxu0  ;;  %2626 = vmatmul.mubr.bf16.gmra.mrb[168].mxu1 %v2243_v25  ;;  %v2139_v32 = vmax.f32 %v1887_v24, 0.0 }
 0x26a   : > { %v1893_v16 = vadd.f32 %v1892_v11, %v9118_v33  ;;  %v2140_v34 = vmax.f32 %v1889_v41, 0.0  ;;  %v8109_v11 = vld [vmem:[#allocation2 + $0x330] ss:$8 sps:$4 sm:$0xff]  }
 0x26b   : > { %v2141_v14 = vmax.f32 %v1891_v31, 0.0 }
 0x26c   : > { %v2142_v54 = vmax.f32 %v1893_v16, 0.0  ;;  %v8111_v16 = vld [vmem:[#allocation2 + $0x334] ss:$8 sps:$4 sm:$0xff]  }
 0x26d   : > { %v2245_v60 = vpack.c.bf16 %v2141_v14, %v2139_v32  ;;  %4001 = vmatprep.subr.bf16.mxu1 %v8111_v16  ;;  %v8115_v16 = vld [vmem:[#allocation2 + $0x350] ss:$8 sps:$4 sm:$0xff]  }
 0x26e   : > { %v1896_v56 = vpop.f32.mrb[176].mxu0  ;;  %v2246_v50 = vpack.c.bf16 %v2142_v54, %v2140_v34  ;;  %4002 = vmatpush1.bf16.msra.mxu1 %v8109_v11 }
 0x26f   : > { %v1897_v9 = vadd.f32 %v1896_v56, %v9114_v51  ;;  %v1898_v37 = vpop.f32.mrb[177].mxu0 }
 0x270   : > { %v1899_v26 = vadd.f32 %v1898_v37, %v9118_v33  ;;  %v1900_v48 = vpop.f32.mrb[178].mxu0  ;;  %2635 = vmatprep.mubr.bf16.mxu1 %v2246_v50 }
 0x271   : > { %v1901_v17 = vadd.f32 %v1900_v48, %v9114_v51  ;;  %v1902_v19 = vpop.f32.mrb[179].mxu0  ;;  %2636 = vmatmul.mubr.bf16.gmra.mrb[172].mxu1 %v2245_v60  ;;  %v2143_v18 = vmax.f32 %v1897_v9, 0.0 }
 0x272   : > { %v1903_v23 = vadd.f32 %v1902_v19, %v9118_v33  ;;  %v2144_v58 = vmax.f32 %v1899_v26, 0.0 }
 0x273   : > { %v2145_v1 = vmax.f32 %v1901_v17, 0.0 }
 0x274   : > { %v2146_v30 = vmax.f32 %v1903_v23, 0.0 }
 0x275   : > { %v2247_v44 = vpack.c.bf16 %v2145_v1, %v2143_v18 }
 0x276   : > { %v1906_v42 = vpop.f32.mrb[180].mxu0  ;;  %v2248_v62 = vpack.c.bf16 %v2146_v30, %v2144_v58 }
 0x277   : > { %v1907_v10 = vadd.f32 %v1906_v42, %v9114_v51  ;;  %v1908_v20 = vpop.f32.mrb[181].mxu0 }
 0x278   : > { %v1909_v29 = vadd.f32 %v1908_v20, %v9118_v33  ;;  %v1910_v49 = vpop.f32.mrb[182].mxu0  ;;  %2645 = vmatprep.mubr.bf16.mxu1 %v2248_v62 }
 0x279   : > { %v1911_v61 = vadd.f32 %v1910_v49, %v9114_v51  ;;  %v1912_v55 = vpop.f32.mrb[183].mxu0  ;;  %2646 = vmatmul.mubr.bf16.gmra.mrb[176].mxu1 %v2247_v44  ;;  %v2147_v5 = vmax.f32 %v1907_v10, 0.0 }
 0x27a   : > { %v1913_v7 = vadd.f32 %v1912_v55, %v9118_v33  ;;  %v2148_v38 = vmax.f32 %v1909_v29, 0.0 }
 0x27b   : > { %v2149_v28 = vmax.f32 %v1911_v61, 0.0  ;;  %v8114_v61 = vld [vmem:[#allocation2 + $0x344] ss:$8 sps:$4 sm:$0xff]  }
 0x27c   : > { %v2150_v3 = vmax.f32 %v1913_v7, 0.0  ;;  %4003 = vmatprep.subr.bf16.mxu1 %v8114_v61  ;;  %v8118_v61 = vld [vmem:[#allocation2 + $0x360] ss:$8 sps:$4 sm:$0xff]  }
 0x27d   : > { %v2249_v8 = vpack.c.bf16 %v2149_v28, %v2147_v5  ;;  %4004 = vmatpush1.bf16.msra.mxu1 %v8112_v2 }
 0x27e   : > { %v1916_v15 = vpop.f32.mrb[184].mxu0  ;;  %v2250_v13 = vpack.c.bf16 %v2150_v3, %v2148_v38 }
 0x27f   : > { %v1917_v45 = vadd.f32 %v1916_v15, %v9114_v51  ;;  %v1918_v35 = vpop.f32.mrb[185].mxu0 }
 0x280   : > { %v1919_v39 = vadd.f32 %v1918_v35, %v9118_v33  ;;  %v1920_v46 = vpop.f32.mrb[186].mxu0  ;;  %2655 = vmatprep.mubr.bf16.mxu1 %v2250_v13 }
 0x281   : > { %v1921_v21 = vadd.f32 %v1920_v46, %v9114_v51  ;;  %v1922_v43 = vpop.f32.mrb[187].mxu0  ;;  %2656 = vmatmul.mubr.bf16.gmra.mrb[180].mxu1 %v2249_v8  ;;  %v2151_v59 = vmax.f32 %v1917_v45, 0.0 }
 0x282   : > { %v1923_v12 = vadd.f32 %v1922_v43, %v9118_v33  ;;  %v2152_v57 = vmax.f32 %v1919_v39, 0.0 }
 0x283   : > { %v2153_v47 = vmax.f32 %v1921_v21, 0.0 }
 0x284   : > { %v2154_v25 = vmax.f32 %v1923_v12, 0.0 }
 0x285   : > { %v2251_v36 = vpack.c.bf16 %v2153_v47, %v2151_v59 }
 0x286   : > { %v1926_v53 = vpop.f32.mrb[188].mxu0  ;;  %v2252_v24 = vpack.c.bf16 %v2154_v25, %v2152_v57 }
 0x287   : > { %v1927_v40 = vadd.f32 %v1926_v53, %v9114_v51  ;;  %v1928_v41 = vpop.f32.mrb[189].mxu0 }
 0x288   : > { %v1929_v63 = vadd.f32 %v1928_v41, %v9118_v33  ;;  %v1930_v31 = vpop.f32.mrb[190].mxu0  ;;  %2665 = vmatprep.mubr.bf16.mxu1 %v2252_v24 }
 0x289   : > { %v1931_v0 = vadd.f32 %v1930_v31, %v9114_v51  ;;  %v1932_v22 = vpop.f32.mrb[191].mxu0  ;;  %2666 = vmatmul.mubr.bf16.gmra.mrb[184].mxu1 %v2251_v36  ;;  %v2155_v14 = vmax.f32 %v1927_v40, 0.0 }
 0x28a   : > { %v1933_v32 = vadd.f32 %v1932_v22, %v9118_v33  ;;  %v2156_v54 = vmax.f32 %v1929_v63, 0.0 }
 0x28b   : > { %v2157_v34 = vmax.f32 %v1931_v0, 0.0  ;;  %v8117_v0 = vld [vmem:[#allocation2 + $0x354] ss:$8 sps:$4 sm:$0xff]  }
 0x28c   : > { %v2158_v60 = vmax.f32 %v1933_v32, 0.0  ;;  %4005 = vmatprep.subr.bf16.mxu1 %v8117_v0  ;;  %v8121_v0 = vld [vmem:[#allocation2 + $0x370] ss:$8 sps:$4 sm:$0xff]  }
 0x28d   : > { %v2253_v56 = vpack.c.bf16 %v2157_v34, %v2155_v14  ;;  %4006 = vmatpush1.bf16.msra.mxu1 %v8115_v16 }
 0x28e   : > { %v1936_v50 = vpop.f32.mrb[192].mxu0  ;;  %v2254_v9 = vpack.c.bf16 %v2158_v60, %v2156_v54 }
 0x28f   : > { %v1937_v37 = vadd.f32 %v1936_v50, %v9114_v51  ;;  %v1938_v26 = vpop.f32.mrb[193].mxu0 }
 0x290   : > { %v1939_v48 = vadd.f32 %v1938_v26, %v9118_v33  ;;  %v1940_v17 = vpop.f32.mrb[194].mxu0  ;;  %2675 = vmatprep.mubr.bf16.mxu1 %v2254_v9 }
 0x291   : > { %v1941_v19 = vadd.f32 %v1940_v17, %v9114_v51  ;;  %v1942_v23 = vpop.f32.mrb[195].mxu0  ;;  %2676 = vmatmul.mubr.bf16.gmra.mrb[188].mxu1 %v2253_v56  ;;  %v2159_v1 = vmax.f32 %v1937_v37, 0.0 }
 0x292   : > { %v1943_v18 = vadd.f32 %v1942_v23, %v9118_v33  ;;  %v2160_v30 = vmax.f32 %v1939_v48, 0.0 }
 0x293   : > { %v2161_v58 = vmax.f32 %v1941_v19, 0.0 }
 0x294   : > { %v2162_v44 = vmax.f32 %v1943_v18, 0.0 }
 0x295   : > { %v2255_v42 = vpack.c.bf16 %v2161_v58, %v2159_v1 }
 0x296   : > { %v1946_v62 = vpop.f32.mrb[196].mxu0  ;;  %v2256_v10 = vpack.c.bf16 %v2162_v44, %v2160_v30 }
 0x297   : > { %v1947_v20 = vadd.f32 %v1946_v62, %v9114_v51  ;;  %v1948_v29 = vpop.f32.mrb[197].mxu0 }
 0x298   : > { %v1949_v49 = vadd.f32 %v1948_v29, %v9118_v33  ;;  %v1950_v52 = vpop.f32.mrb[198].mxu0  ;;  %2685 = vmatprep.mubr.bf16.mxu1 %v2256_v10 }
 0x299   : > { %v1951_v55 = vadd.f32 %v1950_v52, %v9114_v51  ;;  %v1952_v7 = vpop.f32.mrb[199].mxu0  ;;  %2686 = vmatmul.mubr.bf16.gmra.mrb[192].mxu1 %v2255_v42  ;;  %v2163_v28 = vmax.f32 %v1947_v20, 0.0 }
 0x29a   : > { %v1953_v5 = vadd.f32 %v1952_v7, %v9118_v33  ;;  %v2164_v3 = vmax.f32 %v1949_v49, 0.0 }
 0x29b   : > { %v2165_v38 = vmax.f32 %v1951_v55, 0.0  ;;  %v8120_v55 = vld [vmem:[#allocation2 + $0x364] ss:$8 sps:$4 sm:$0xff]  }
 0x29c   : > { %v2166_v8 = vmax.f32 %v1953_v5, 0.0  ;;  %4007 = vmatprep.subr.bf16.mxu1 %v8120_v55  ;;  %v8124_v55 = vld [vmem:[#allocation2 + $0x380] ss:$8 sps:$4 sm:$0xff]  }
 0x29d   : > { %v2257_v15 = vpack.c.bf16 %v2165_v38, %v2163_v28  ;;  %4008 = vmatpush1.bf16.msra.mxu1 %v8118_v61 }
 0x29e   : > { %v1956_v13 = vpop.f32.mrb[200].mxu0  ;;  %v2258_v45 = vpack.c.bf16 %v2166_v8, %v2164_v3 }
 0x29f   : > { %v1957_v35 = vadd.f32 %v1956_v13, %v9114_v51  ;;  %v1958_v39 = vpop.f32.mrb[201].mxu0 }
 0x2a0   : > { %v1959_v46 = vadd.f32 %v1958_v39, %v9118_v33  ;;  %v1960_v21 = vpop.f32.mrb[202].mxu0  ;;  %2695 = vmatprep.mubr.bf16.mxu1 %v2258_v45 }
 0x2a1   : > { %v1961_v43 = vadd.f32 %v1960_v21, %v9114_v51  ;;  %v1962_v12 = vpop.f32.mrb[203].mxu0  ;;  %2696 = vmatmul.mubr.bf16.gmra.mrb[196].mxu1 %v2257_v15  ;;  %v2167_v47 = vmax.f32 %v1957_v35, 0.0 }
 0x2a2   : > { %v1963_v59 = vadd.f32 %v1962_v12, %v9118_v33  ;;  %v2168_v25 = vmax.f32 %v1959_v46, 0.0 }
 0x2a3   : > { %v2169_v57 = vmax.f32 %v1961_v43, 0.0 }
 0x2a4   : > { %v2170_v36 = vmax.f32 %v1963_v59, 0.0 }
 0x2a5   : > { %v2259_v53 = vpack.c.bf16 %v2169_v57, %v2167_v47 }
 0x2a6   : > { %v1966_v24 = vpop.f32.mrb[204].mxu0  ;;  %v2260_v40 = vpack.c.bf16 %v2170_v36, %v2168_v25 }
 0x2a7   : > { %v1967_v41 = vadd.f32 %v1966_v24, %v9114_v51  ;;  %v1968_v63 = vpop.f32.mrb[205].mxu0 }
 0x2a8   : > { %v1969_v31 = vadd.f32 %v1968_v63, %v9118_v33  ;;  %v1970_v11 = vpop.f32.mrb[206].mxu0  ;;  %2705 = vmatprep.mubr.bf16.mxu1 %v2260_v40 }
 0x2a9   : > { %v1971_v22 = vadd.f32 %v1970_v11, %v9114_v51  ;;  %v1972_v32 = vpop.f32.mrb[207].mxu0  ;;  %2706 = vmatmul.mubr.bf16.gmra.mrb[200].mxu1 %v2259_v53  ;;  %v2171_v34 = vmax.f32 %v1967_v41, 0.0 }
 0x2aa   : > { %v1973_v14 = vadd.f32 %v1972_v32, %v9118_v33  ;;  %v2172_v60 = vmax.f32 %v1969_v31, 0.0 }
 0x2ab   : > { %v2173_v54 = vmax.f32 %v1971_v22, 0.0  ;;  %v8123_v22 = vld [vmem:[#allocation2 + $0x374] ss:$8 sps:$4 sm:$0xff]  }
 0x2ac   : > { %v2174_v56 = vmax.f32 %v1973_v14, 0.0  ;;  %4009 = vmatprep.subr.bf16.mxu1 %v8123_v22 }
 0x2ad   : > { %v2261_v50 = vpack.c.bf16 %v2173_v54, %v2171_v34  ;;  %4010 = vmatpush1.bf16.msra.mxu1 %v8121_v0 }
 0x2ae   : > { %v1976_v9 = vpop.f32.mrb[208].mxu0  ;;  %v2262_v37 = vpack.c.bf16 %v2174_v56, %v2172_v60 }
 0x2af   : > { %v1977_v26 = vadd.f32 %v1976_v9, %v9114_v51  ;;  %v1978_v48 = vpop.f32.mrb[209].mxu0 }
 0x2b0   : > { %v1979_v17 = vadd.f32 %v1978_v48, %v9118_v33  ;;  %v1980_v19 = vpop.f32.mrb[210].mxu0  ;;  %2715 = vmatprep.mubr.bf16.mxu1 %v2262_v37 }
 0x2b1   : > { %v1981_v23 = vadd.f32 %v1980_v19, %v9114_v51  ;;  %v1982_v18 = vpop.f32.mrb[211].mxu0  ;;  %2716 = vmatmul.mubr.bf16.gmra.mrb[204].mxu1 %v2261_v50  ;;  %v2175_v58 = vmax.f32 %v1977_v26, 0.0 }
 0x2b2   : > { %v1983_v1 = vadd.f32 %v1982_v18, %v9118_v33  ;;  %v2176_v44 = vmax.f32 %v1979_v17, 0.0 }
 0x2b3   : > { %v2177_v30 = vmax.f32 %v1981_v23, 0.0 }
 0x2b4   : > { %v2178_v42 = vmax.f32 %v1983_v1, 0.0 }
 0x2b5   : > { %v2263_v62 = vpack.c.bf16 %v2177_v30, %v2175_v58 }
 0x2b6   : > { %v1986_v10 = vpop.f32.mrb[212].mxu0  ;;  %v2264_v20 = vpack.c.bf16 %v2178_v42, %v2176_v44 }
 0x2b7   : > { %v1987_v29 = vadd.f32 %v1986_v10, %v9114_v51  ;;  %v1988_v49 = vpop.f32.mrb[213].mxu0 }
 0x2b8   : > { %v1989_v52 = vadd.f32 %v1988_v49, %v9118_v33  ;;  %v1990_v2 = vpop.f32.mrb[214].mxu0  ;;  %2725 = vmatprep.mubr.bf16.mxu1 %v2264_v20 }
 0x2b9   : > { %v1991_v7 = vadd.f32 %v1990_v2, %v9114_v51  ;;  %v1992_v5 = vpop.f32.mrb[215].mxu0  ;;  %2726 = vmatmul.mubr.bf16.gmra.mrb[208].mxu1 %v2263_v62  ;;  %v2179_v38 = vmax.f32 %v1987_v29, 0.0 }
 0x2ba   : > { %v1993_v28 = vadd.f32 %v1992_v5, %v9118_v33  ;;  %v2180_v8 = vmax.f32 %v1989_v52, 0.0 }
 0x2bb   : > { %v2181_v3 = vmax.f32 %v1991_v7, 0.0  ;;  %v8126_v7 = vld [vmem:[#allocation2 + $0x384] ss:$8 sps:$4 sm:$0xff]  }
 0x2bc   : > { %v2182_v15 = vmax.f32 %v1993_v28, 0.0  ;;  %4011 = vmatprep.subr.bf16.mxu1 %v8126_v7 }
 0x2bd   : > { %v2265_v13 = vpack.c.bf16 %v2181_v3, %v2179_v38  ;;  %4012 = vmatpush1.bf16.msra.mxu1 %v8124_v55 }
 0x2be   : > { %v1996_v45 = vpop.f32.mrb[216].mxu0  ;;  %v2266_v35 = vpack.c.bf16 %v2182_v15, %v2180_v8 }
 0x2bf   : > { %v1997_v39 = vadd.f32 %v1996_v45, %v9114_v51  ;;  %v1998_v46 = vpop.f32.mrb[217].mxu0 }
 0x2c0   : > { %v1999_v21 = vadd.f32 %v1998_v46, %v9118_v33  ;;  %v2000_v43 = vpop.f32.mrb[218].mxu0  ;;  %2735 = vmatprep.mubr.bf16.mxu1 %v2266_v35 }
 0x2c1   : > { %v2001_v12 = vadd.f32 %v2000_v43, %v9114_v51  ;;  %v2002_v59 = vpop.f32.mrb[219].mxu0  ;;  %2736 = vmatmul.mubr.bf16.gmra.mrb[212].mxu1 %v2265_v13  ;;  %v2183_v57 = vmax.f32 %v1997_v39, 0.0 }
 0x2c2   : > { %v2003_v47 = vadd.f32 %v2002_v59, %v9118_v33  ;;  %v2184_v36 = vmax.f32 %v1999_v21, 0.0 }
 0x2c3   : > { %v2185_v25 = vmax.f32 %v2001_v12, 0.0 }
 0x2c4   : > { %v2186_v53 = vmax.f32 %v2003_v47, 0.0 }
 0x2c5   : > { %v2267_v24 = vpack.c.bf16 %v2185_v25, %v2183_v57 }
 0x2c6   : > { %v2006_v40 = vpop.f32.mrb[220].mxu0  ;;  %v2268_v41 = vpack.c.bf16 %v2186_v53, %v2184_v36 }
 0x2c7   : > { %v2007_v63 = vadd.f32 %v2006_v40, %v9114_v51  ;;  %v2008_v31 = vpop.f32.mrb[221].mxu0 }
 0x2c8   : > { %v2009_v11 = vadd.f32 %v2008_v31, %v9118_v33  ;;  %v2010_v16 = vpop.f32.mrb[222].mxu0  ;;  %2745 = vmatprep.mubr.bf16.mxu1 %v2268_v41  ;;  %v7586_v41 = vld [vmem:[%s10676_s3 + $0x2] ss:$8 sm:$0x3] }
 0x2c9   : > { %v2011_v32 = vadd.f32 %v2010_v16, %v9114_v51  ;;  %v2012_v14 = vpop.f32.mrb[223].mxu0  ;;  %2746 = vmatmul.mubr.bf16.gmra.mrb[216].mxu1 %v2267_v24  ;;  %v2187_v54 = vmax.f32 %v2007_v63, 0.0 }
 0x2ca   : > { %v2013_v34 = vadd.f32 %v2012_v14, %v9118_v33  ;;  %v2188_v56 = vmax.f32 %v2009_v11, 0.0  ;;  %v8129_v14 = vld [vmem:[#allocation2 + $0x394] ss:$8 sps:$4 sm:$0xff]  }
 0x2cb   : > { %v2189_v60 = vmax.f32 %v2011_v32, 0.0  ;;  %v8127_v32 = vld [vmem:[#allocation2 + $0x390] ss:$8 sps:$4 sm:$0xff]   ;;  %4013 = vmatprep.subr.bf16.mxu1 %v8129_v14 }
 0x2cc   : > { %v2190_v50 = vmax.f32 %v2013_v34, 0.0  ;;  %v9248_v34 = vrot.slane %v7586_v41, %v8699_v27  ;;  %4014 = vmatpush1.bf16.msra.mxu1 %v8127_v32 }
 0x2cd   : > { %v2269_v9 = vpack.c.bf16 %v2189_v60, %v2187_v54 }
 0x2ce   : > { %v2016_v37 = vpop.f32.mrb[224].mxu0  ;;  %v2270_v26 = vpack.c.bf16 %v2190_v50, %v2188_v56  ;;  %v9252_v56 = vrot.slane %v7586_v41, %v8707_v6 }
 0x2cf   : > { %v2017_v48 = vadd.f32 %v2016_v37, %v9114_v51  ;;  %v2018_v17 = vpop.f32.mrb[225].mxu0 }
 0x2d0   : > { %v2019_v19 = vadd.f32 %v2018_v17, %v9118_v33  ;;  %v2020_v23 = vpop.f32.mrb[226].mxu0  ;;  %2755 = vmatprep.mubr.bf16.mxu1 %v2270_v26 }
 0x2d1   : > { %v2021_v18 = vadd.f32 %v2020_v23, %v9114_v51  ;;  %v2022_v1 = vpop.f32.mrb[227].mxu0  ;;  %2756 = vmatmul.mubr.bf16.gmra.mrb[220].mxu1 %v2269_v9  ;;  %v2191_v30 = vmax.f32 %v2017_v48, 0.0 }
 0x2d2   : > { %v2023_v58 = vadd.f32 %v2022_v1, %v9118_v33  ;;  %v2192_v42 = vmax.f32 %v2019_v19, 0.0 }
 0x2d3   : > { %v2193_v44 = vmax.f32 %v2021_v18, 0.0 }
 0x2d4   : > { %v2194_v62 = vmax.f32 %v2023_v58, 0.0 }
 0x2d5   : > { %v2271_v10 = vpack.c.bf16 %v2193_v44, %v2191_v30 }
 0x2d6   : > { %v2026_v20 = vpop.f32.mrb[228].mxu0  ;;  %v2272_v29 = vpack.c.bf16 %v2194_v62, %v2192_v42 }
 0x2d7   : > { %v2027_v49 = vadd.f32 %v2026_v20, %v9114_v51  ;;  %v2028_v52 = vpop.f32.mrb[229].mxu0 }
 0x2d8   : > { %v2029_v2 = vadd.f32 %v2028_v52, %v9118_v33  ;;  %v2030_v61 = vpop.f32.mrb[230].mxu0  ;;  %2765 = vmatprep.mubr.bf16.mxu1 %v2272_v29 }
 0x2d9   : > { %v2031_v5 = vadd.f32 %v2030_v61, %v9114_v51  ;;  %v2032_v28 = vpop.f32.mrb[231].mxu0  ;;  %2766 = vmatmul.mubr.bf16.gmra.mrb[224].mxu1 %v2271_v10  ;;  %v2195_v3 = vmax.f32 %v2027_v49, 0.0 }
 0x2da   : > { %v2033_v38 = vadd.f32 %v2032_v28, %v9118_v33  ;;  %v2196_v15 = vmax.f32 %v2029_v2, 0.0 }
 0x2db   : > { %v2197_v8 = vmax.f32 %v2031_v5, 0.0 }
 0x2dc   : > { %v2198_v13 = vmax.f32 %v2033_v38, 0.0 }
 0x2dd   : > { %v2273_v45 = vpack.c.bf16 %v2197_v8, %v2195_v3 }
 0x2de   : > { %v2036_v35 = vpop.f32.mrb[232].mxu0  ;;  %v2274_v39 = vpack.c.bf16 %v2198_v13, %v2196_v15 }
 0x2df   : > { %v2037_v46 = vadd.f32 %v2036_v35, %v9114_v51  ;;  %v2038_v21 = vpop.f32.mrb[233].mxu0 }
 0x2e0   : > { %v2039_v43 = vadd.f32 %v2038_v21, %v9118_v33  ;;  %v2040_v12 = vpop.f32.mrb[234].mxu0  ;;  %2775 = vmatprep.mubr.bf16.mxu1 %v2274_v39 }
 0x2e1   : > { %v2041_v59 = vadd.f32 %v2040_v12, %v9114_v51  ;;  %v2042_v47 = vpop.f32.mrb[235].mxu0  ;;  %2776 = vmatmul.mubr.bf16.gmra.mrb[228].mxu1 %v2273_v45  ;;  %v2199_v25 = vmax.f32 %v2037_v46, 0.0 }
 0x2e2   : > { %v2043_v57 = vadd.f32 %v2042_v47, %v9118_v33  ;;  %v2200_v53 = vmax.f32 %v2039_v43, 0.0 }
 0x2e3   : > { %v2201_v36 = vmax.f32 %v2041_v59, 0.0 }
 0x2e4   : > { %v2202_v24 = vmax.f32 %v2043_v57, 0.0 }
 0x2e5   : > { %v2275_v40 = vpack.c.bf16 %v2201_v36, %v2199_v25 }
 0x2e6   : > { %v2046_v63 = vpop.f32.mrb[236].mxu0  ;;  %v2276_v31 = vpack.c.bf16 %v2202_v24, %v2200_v53 }
 0x2e7   : > { %v2047_v11 = vadd.f32 %v2046_v63, %v9114_v51  ;;  %v2048_v16 = vpop.f32.mrb[237].mxu0 }
 0x2e8   : > { %v2049_v0 = vadd.f32 %v2048_v16, %v9118_v33  ;;  %v2050_v22 = vpop.f32.mrb[238].mxu0  ;;  %2785 = vmatprep.mubr.bf16.mxu1 %v2276_v31  ;;  %v8130_v31 = vld [vmem:[#allocation2 + $0x3a0] ss:$8 sps:$4 sm:$0xff]  }
 0x2e9   : > { %v2051_v54 = vadd.f32 %v2050_v22, %v9114_v51  ;;  %v2052_v60 = vpop.f32.mrb[239].mxu0  ;;  %2786 = vmatmul.mubr.bf16.gmra.mrb[232].mxu1 %v2275_v40  ;;  %v2203_v9 = vmax.f32 %v2047_v11, 0.0  ;;  %v8132_v11 = vld [vmem:[#allocation2 + $0x3a4] ss:$8 sps:$4 sm:$0xff]  }
 0x2ea   : > { %v2053_v50 = vadd.f32 %v2052_v60, %v9118_v33  ;;  %v2204_v26 = vmax.f32 %v2049_v0, 0.0  ;;  %4015 = vmatprep.subr.bf16.mxu1 %v8132_v11  ;;  %v8133_v11 = vld [vmem:[#allocation2 + $0x3b0] ss:$8 sps:$4 sm:$0xff]  }
 0x2eb   : > { %v2205_v37 = vmax.f32 %v2051_v54, 0.0  ;;  %4016 = vmatpush1.bf16.msra.mxu1 %v8130_v31 }
 0x2ec   : > { %v2206_v48 = vmax.f32 %v2053_v50, 0.0  ;;  %v2527_v17 = vpop.f32.mrb[128].mxu1 }
 0x2ed   : > { %v2528_v19 = vadd.f32 %v2527_v17, %v9248_v34  ;;  %v2529_v23 = vpop.f32.mrb[129].mxu1  ;;  %v2277_v18 = vpack.c.bf16 %v2205_v37, %v2203_v9 }
 0x2ee   : > { %v2530_v1 = vadd.f32 %v2529_v23, %v9252_v56  ;;  %v2056_v58 = vpop.f32.mrb[240].mxu0  ;;  %v2531_v30 = vpop.f32.mrb[130].mxu1  ;;  %v2278_v44 = vpack.c.bf16 %v2206_v48, %v2204_v26 }
 0x2ef   : > { %v2057_v42 = vadd.f32 %v2056_v58, %v9114_v51  ;;  %v2532_v62 = vadd.f32 %v2531_v30, %v9248_v34  ;;  %v2058_v10 = vpop.f32.mrb[241].mxu0  ;;  %v2533_v20 = vpop.f32.mrb[131].mxu1  ;;  %v2846_v2 = vmax.f32 %v2528_v19, 0.0 }
 0x2f0   : > { %v2059_v29 = vadd.f32 %v2058_v10, %v9118_v33  ;;  %v2534_v49 = vadd.f32 %v2533_v20, %v9252_v56  ;;  %v2060_v52 = vpop.f32.mrb[242].mxu0  ;;  %2795 = vmatprep.mubr.bf16.mxu1 %v2278_v44  ;;  %v2847_v5 = vmax.f32 %v2530_v1, 0.0 }
 0x2f1   : > { %v2848_v61 = vmax.f32 %v2532_v62, 0.0  ;;  %v2061_v55 = vadd.f32 %v2060_v52, %v9114_v51  ;;  %v2062_v7 = vpop.f32.mrb[243].mxu0  ;;  %2796 = vmatmul.mubr.bf16.gmra.mrb[236].mxu1 %v2277_v18  ;;  %v2207_v3 = vmax.f32 %v2057_v42, 0.0 }
 0x2f2   : > { %v2849_v28 = vmax.f32 %v2534_v49, 0.0  ;;  %v2063_v38 = vadd.f32 %v2062_v7, %v9118_v33  ;;  %v2208_v13 = vmax.f32 %v2059_v29, 0.0 }
 0x2f3   : > { %v2974_v8 = vpack.c.bf16 %v2848_v61, %v2846_v2  ;;  %v2209_v15 = vmax.f32 %v2061_v55, 0.0 }
 0x2f4   : > { %v2210_v45 = vmax.f32 %v2063_v38, 0.0  ;;  %v2537_v35 = vpop.f32.mrb[132].mxu1  ;;  %v2975_v39 = vpack.c.bf16 %v2849_v28, %v2847_v5 }
 0x2f5   : > { %v2538_v46 = vadd.f32 %v2537_v35, %v9248_v34  ;;  %v2539_v21 = vpop.f32.mrb[133].mxu1  ;;  %v2279_v43 = vpack.c.bf16 %v2209_v15, %v2207_v3 }
 0x2f6   : > { %v2540_v12 = vadd.f32 %v2539_v21, %v9252_v56  ;;  %v2066_v59 = vpop.f32.mrb[244].mxu0  ;;  %v2541_v47 = vpop.f32.mrb[134].mxu1  ;;  %3276 = vmatprep.mubr.bf16.mxu0 %v2975_v39  ;;  %v2280_v57 = vpack.c.bf16 %v2210_v45, %v2208_v13 }
 0x2f7   : > { %v2067_v25 = vadd.f32 %v2066_v59, %v9114_v51  ;;  %v2542_v36 = vadd.f32 %v2541_v47, %v9248_v34  ;;  %v2068_v53 = vpop.f32.mrb[245].mxu0  ;;  %v2543_v24 = vpop.f32.mrb[135].mxu1  ;;  %3277 = vmatmul.mubr.bf16.vlgmr.msra.gmra.mrb[0].mxu0 %v2974_v8  ;;  %v2850_v16 = vmax.f32 %v2538_v46, 0.0 }
 0x2f8   : > { %v2069_v40 = vadd.f32 %v2068_v53, %v9118_v33  ;;  %v2544_v41 = vadd.f32 %v2543_v24, %v9252_v56  ;;  %v2070_v63 = vpop.f32.mrb[246].mxu0  ;;  %2805 = vmatprep.mubr.bf16.mxu1 %v2280_v57  ;;  %v2851_v14 = vmax.f32 %v2540_v12, 0.0 }
 0x2f9   : > { %v2852_v0 = vmax.f32 %v2542_v36, 0.0  ;;  %v2071_v22 = vadd.f32 %v2070_v63, %v9114_v51  ;;  %v2072_v32 = vpop.f32.mrb[247].mxu0  ;;  %2806 = vmatmul.mubr.bf16.gmra.mrb[240].mxu1 %v2279_v43  ;;  %v2211_v50 = vmax.f32 %v2067_v25, 0.0 }
 0x2fa   : > { %v2853_v54 = vmax.f32 %v2544_v41, 0.0  ;;  %v2073_v60 = vadd.f32 %v2072_v32, %v9118_v33  ;;  %v2212_v26 = vmax.f32 %v2069_v40, 0.0 }
 0x2fb   : > { %v2976_v9 = vpack.c.bf16 %v2852_v0, %v2850_v16  ;;  %v2213_v37 = vmax.f32 %v2071_v22, 0.0  ;;  %v8135_v16 = vld [vmem:[#allocation2 + $0x3b4] ss:$8 sps:$4 sm:$0xff]  }
 0x2fc   : > { %v2214_v48 = vmax.f32 %v2073_v60, 0.0  ;;  %v2547_v17 = vpop.f32.mrb[136].mxu1  ;;  %v2977_v19 = vpack.c.bf16 %v2853_v54, %v2851_v14  ;;  %4017 = vmatprep.subr.bf16.mxu1 %v8135_v16 }
 0x2fd   : > { %v2548_v23 = vadd.f32 %v2547_v17, %v9248_v34  ;;  %v2549_v18 = vpop.f32.mrb[137].mxu1  ;;  %v2281_v1 = vpack.c.bf16 %v2213_v37, %v2211_v50  ;;  %4018 = vmatpush1.bf16.msra.mxu1 %v8133_v11 }
 0x2fe   : > { %v2550_v58 = vadd.f32 %v2549_v18, %v9252_v56  ;;  %v2076_v30 = vpop.f32.mrb[248].mxu0  ;;  %v2551_v44 = vpop.f32.mrb[138].mxu1  ;;  %3286 = vmatprep.mubr.bf16.mxu0 %v2977_v19  ;;  %v2282_v42 = vpack.c.bf16 %v2214_v48, %v2212_v26 }
 0x2ff   : > { %v2077_v62 = vadd.f32 %v2076_v30, %v9114_v51  ;;  %v2552_v10 = vadd.f32 %v2551_v44, %v9248_v34  ;;  %v2078_v20 = vpop.f32.mrb[249].mxu0  ;;  %v2553_v29 = vpop.f32.mrb[139].mxu1  ;;  %3287 = vmatmul.mubr.bf16.gmra.mrb[4].mxu0 %v2976_v9  ;;  %v2854_v61 = vmax.f32 %v2548_v23, 0.0 }
 0x300   : > { %v2079_v49 = vadd.f32 %v2078_v20, %v9118_v33  ;;  %v2554_v52 = vadd.f32 %v2553_v29, %v9252_v56  ;;  %v2080_v2 = vpop.f32.mrb[250].mxu0  ;;  %2815 = vmatprep.mubr.bf16.mxu1 %v2282_v42  ;;  %v2855_v28 = vmax.f32 %v2550_v58, 0.0 }
 0x301   : > { %v2856_v55 = vmax.f32 %v2552_v10, 0.0  ;;  %v2081_v7 = vadd.f32 %v2080_v2, %v9114_v51  ;;  %v2082_v5 = vpop.f32.mrb[251].mxu0  ;;  %2816 = vmatmul.mubr.bf16.gmra.mrb[244].mxu1 %v2281_v1  ;;  %v2215_v8 = vmax.f32 %v2077_v62, 0.0 }
 0x302   : > { %v2857_v38 = vmax.f32 %v2554_v52, 0.0  ;;  %v2083_v3 = vadd.f32 %v2082_v5, %v9118_v33  ;;  %v2216_v45 = vmax.f32 %v2079_v49, 0.0 }
 0x303   : > { %v2978_v15 = vpack.c.bf16 %v2856_v55, %v2854_v61  ;;  %v2217_v13 = vmax.f32 %v2081_v7, 0.0 }
 0x304   : > { %v2218_v35 = vmax.f32 %v2083_v3, 0.0  ;;  %v2557_v39 = vpop.f32.mrb[140].mxu1  ;;  %v2979_v46 = vpack.c.bf16 %v2857_v38, %v2855_v28 }
 0x305   : > { %v2558_v21 = vadd.f32 %v2557_v39, %v9248_v34  ;;  %v2559_v43 = vpop.f32.mrb[141].mxu1  ;;  %v2283_v12 = vpack.c.bf16 %v2217_v13, %v2215_v8  ;;  %v8138_v13 = vld [vmem:[#allocation2 + $0x3c4] ss:$8 sps:$4 sm:$0xff]  }
 0x306   : > { %v2560_v59 = vadd.f32 %v2559_v43, %v9252_v56  ;;  %v2086_v47 = vpop.f32.mrb[252].mxu0  ;;  %v2561_v57 = vpop.f32.mrb[142].mxu1  ;;  %3296 = vmatprep.mubr.bf16.mxu0 %v2979_v46  ;;  %v2284_v25 = vpack.c.bf16 %v2218_v35, %v2216_v45  ;;  %4019 = vmatprep.subr.bf16.mxu1 %v8138_v13  ;;  %v8142_v13 = vld [vmem:[#allocation2 + $0x3e0] ss:$8 sps:$4 sm:$0xff]  }
 0x307   : > { %v2087_v36 = vadd.f32 %v2086_v47, %v9114_v51  ;;  %v2562_v53 = vadd.f32 %v2561_v57, %v9248_v34  ;;  %v2088_v24 = vpop.f32.mrb[253].mxu0  ;;  %v2563_v40 = vpop.f32.mrb[143].mxu1  ;;  %3297 = vmatmul.mubr.bf16.gmra.mrb[8].mxu0 %v2978_v15  ;;  %v2858_v0 = vmax.f32 %v2558_v21, 0.0  ;;  %v8136_v15 = vld [vmem:[#allocation2 + $0x3c0] ss:$8 sps:$4 sm:$0xff]  }
 0x308   : > { %v2089_v41 = vadd.f32 %v2088_v24, %v9118_v33  ;;  %v2564_v63 = vadd.f32 %v2563_v40, %v9252_v56  ;;  %v2090_v31 = vpop.f32.mrb[254].mxu0  ;;  %2825 = vmatprep.mubr.bf16.mxu1 %v2284_v25  ;;  %v2859_v54 = vmax.f32 %v2560_v59, 0.0  ;;  %4020 = vmatpush1.bf16.msra.mxu1 %v8136_v15 }
 0x309   : > { %v2860_v22 = vmax.f32 %v2562_v53, 0.0  ;;  %v2091_v32 = vadd.f32 %v2090_v31, %v9114_v51  ;;  %v2092_v14 = vpop.f32.mrb[255].mxu0  ;;  %2826 = vmatmul.mubr.bf16.gmra.mrb[248].mxu1 %v2283_v12  ;;  %v2219_v9 = vmax.f32 %v2087_v36, 0.0 }
 0x30a   : > { %v2861_v60 = vmax.f32 %v2564_v63, 0.0  ;;  %v2093_v50 = vadd.f32 %v2092_v14, %v9118_v33  ;;  %v2220_v48 = vmax.f32 %v2089_v41, 0.0 }
 0x30b   : > { %v2980_v37 = vpack.c.bf16 %v2860_v22, %v2858_v0  ;;  %v2221_v26 = vmax.f32 %v2091_v32, 0.0 }
 0x30c   : > { %v2222_v17 = vmax.f32 %v2093_v50, 0.0  ;;  %v2567_v19 = vpop.f32.mrb[144].mxu1  ;;  %v2981_v23 = vpack.c.bf16 %v2861_v60, %v2859_v54 }
 0x30d   : > { %v2568_v18 = vadd.f32 %v2567_v19, %v9248_v34  ;;  %v2569_v1 = vpop.f32.mrb[145].mxu1  ;;  %v2285_v58 = vpack.c.bf16 %v2221_v26, %v2219_v9  ;;  %v8141_v26 = vld [vmem:[#allocation2 + $0x3d4] ss:$8 sps:$4 sm:$0xff]  }
 0x30e   : > { %v2570_v51 = vadd.f32 %v2569_v1, %v9252_v56  ;;  %v2571_v30 = vpop.f32.mrb[146].mxu1  ;;  %3306 = vmatprep.mubr.bf16.mxu0 %v2981_v23  ;;  %v2286_v44 = vpack.c.bf16 %v2222_v17, %v2220_v48  ;;  %4021 = vmatprep.subr.bf16.mxu1 %v8141_v26  ;;  %v8145_v26 = vld [vmem:[#allocation2 + $0x3f0] ss:$8 sps:$4 sm:$0xff]  }
 0x30f   : > { %v2572_v33 = vadd.f32 %v2571_v30, %v9248_v34  ;;  %v2573_v42 = vpop.f32.mrb[147].mxu1  ;;  %3307 = vmatmul.mubr.bf16.gmra.mrb[12].mxu0 %v2980_v37  ;;  %v2862_v10 = vmax.f32 %v2568_v18, 0.0  ;;  %v8139_v37 = vld [vmem:[#allocation2 + $0x3d0] ss:$8 sps:$4 sm:$0xff]  }
 0x310   : > { %v2574_v62 = vadd.f32 %v2573_v42, %v9252_v56  ;;  %2835 = vmatprep.mubr.bf16.mxu1 %v2286_v44  ;;  %v2863_v29 = vmax.f32 %v2570_v51, 0.0  ;;  %4022 = vmatpush1.bf16.msra.mxu1 %v8139_v37 }
 0x311   : > { %v2864_v20 = vmax.f32 %v2572_v33, 0.0  ;;  %2836 = vmatmul.mubr.bf16.gmra.mrb[252].mxu1 %v2285_v58 }
 0x312   : > { %v2865_v49 = vmax.f32 %v2574_v62, 0.0 }
 0x313   : > { %v2982_v52 = vpack.c.bf16 %v2864_v20, %v2862_v10 }
 0x314   : > { %v2577_v2 = vpop.f32.mrb[148].mxu1  ;;  %v2983_v61 = vpack.c.bf16 %v2865_v49, %v2863_v29 }
 0x315   : > { %v2578_v55 = vadd.f32 %v2577_v2, %v9248_v34  ;;  %v2579_v7 = vpop.f32.mrb[149].mxu1 }
 0x316   : > { %v2580_v5 = vadd.f32 %v2579_v7, %v9252_v56  ;;  %v2581_v28 = vpop.f32.mrb[150].mxu1  ;;  %3316 = vmatprep.mubr.bf16.mxu0 %v2983_v61 }
 0x317   : > { %v2582_v38 = vadd.f32 %v2581_v28, %v9248_v34  ;;  %v2583_v3 = vpop.f32.mrb[151].mxu1  ;;  %3317 = vmatmul.mubr.bf16.gmra.mrb[16].mxu0 %v2982_v52  ;;  %v2866_v45 = vmax.f32 %v2578_v55, 0.0 }
 0x318   : > { %v2584_v8 = vadd.f32 %v2583_v3, %v9252_v56  ;;  %v2867_v39 = vmax.f32 %v2580_v5, 0.0 }
 0x319   : > { %v2868_v35 = vmax.f32 %v2582_v38, 0.0 }
 0x31a   : > { %v2869_v46 = vmax.f32 %v2584_v8, 0.0 }
 0x31b   : > { %v2984_v21 = vpack.c.bf16 %v2868_v35, %v2866_v45  ;;  %v8144_v45 = vld [vmem:[#allocation2 + $0x3e4] ss:$8 sps:$4 sm:$0xff]  }
 0x31c   : > { %v2587_v43 = vpop.f32.mrb[152].mxu1  ;;  %v2985_v12 = vpack.c.bf16 %v2869_v46, %v2867_v39  ;;  %4023 = vmatprep.subr.bf16.mxu1 %v8144_v45 }
 0x31d   : > { %v2588_v59 = vadd.f32 %v2587_v43, %v9248_v34  ;;  %v2589_v47 = vpop.f32.mrb[153].mxu1  ;;  %4024 = vmatpush1.bf16.msra.mxu1 %v8142_v13 }
 0x31e   : > { %v2590_v57 = vadd.f32 %v2589_v47, %v9252_v56  ;;  %v2591_v25 = vpop.f32.mrb[154].mxu1  ;;  %3326 = vmatprep.mubr.bf16.mxu0 %v2985_v12 }
 0x31f   : > { %v2592_v36 = vadd.f32 %v2591_v25, %v9248_v34  ;;  %v2593_v53 = vpop.f32.mrb[155].mxu1  ;;  %3327 = vmatmul.mubr.bf16.gmra.mrb[20].mxu0 %v2984_v21  ;;  %v2870_v40 = vmax.f32 %v2588_v59, 0.0 }
 0x320   : > { %v2594_v24 = vadd.f32 %v2593_v53, %v9252_v56  ;;  %v2871_v63 = vmax.f32 %v2590_v57, 0.0 }
 0x321   : > { %v2872_v41 = vmax.f32 %v2592_v36, 0.0 }
 0x322   : > { %v2873_v31 = vmax.f32 %v2594_v24, 0.0 }
 0x323   : > { %v2986_v11 = vpack.c.bf16 %v2872_v41, %v2870_v40 }
 0x324   : > { %v2597_v16 = vpop.f32.mrb[156].mxu1  ;;  %v2987_v0 = vpack.c.bf16 %v2873_v31, %v2871_v63 }
 0x325   : > { %v2598_v22 = vadd.f32 %v2597_v16, %v9248_v34  ;;  %v2599_v32 = vpop.f32.mrb[157].mxu1 }
 0x326   : > { %v2600_v14 = vadd.f32 %v2599_v32, %v9252_v56  ;;  %v2601_v54 = vpop.f32.mrb[158].mxu1  ;;  %3336 = vmatprep.mubr.bf16.mxu0 %v2987_v0 }
 0x327   : > { %v2602_v60 = vadd.f32 %v2601_v54, %v9248_v34  ;;  %v2603_v50 = vpop.f32.mrb[159].mxu1  ;;  %3337 = vmatmul.mubr.bf16.gmra.mrb[24].mxu0 %v2986_v11  ;;  %v2874_v48 = vmax.f32 %v2598_v22, 0.0 }
 0x328   : > { %v2604_v9 = vadd.f32 %v2603_v50, %v9252_v56  ;;  %v2875_v19 = vmax.f32 %v2600_v14, 0.0 }
 0x329   : > { %v2876_v17 = vmax.f32 %v2602_v60, 0.0 }
 0x32a   : > { %v2877_v23 = vmax.f32 %v2604_v9, 0.0 }
 0x32b   : > { %v2988_v18 = vpack.c.bf16 %v2876_v17, %v2874_v48  ;;  %v8147_v48 = vld [vmem:[#allocation2 + $0x3f4] ss:$8 sps:$4 sm:$0xff]  }
 0x32c   : > { %v2607_v1 = vpop.f32.mrb[160].mxu1  ;;  %v2989_v58 = vpack.c.bf16 %v2877_v23, %v2875_v19  ;;  %4025 = vmatprep.subr.bf16.mxu1 %v8147_v48 }
 0x32d   : > { %v2608_v51 = vadd.f32 %v2607_v1, %v9248_v34  ;;  %v2609_v30 = vpop.f32.mrb[161].mxu1  ;;  %4026 = vmatpush1.bf16.msra.mxu1 %v8145_v26 }
 0x32e   : > { %v2610_v44 = vadd.f32 %v2609_v30, %v9252_v56  ;;  %v2611_v33 = vpop.f32.mrb[162].mxu1  ;;  %3346 = vmatprep.mubr.bf16.mxu0 %v2989_v58 }
 0x32f   : > { %v2612_v42 = vadd.f32 %v2611_v33, %v9248_v34  ;;  %v2613_v62 = vpop.f32.mrb[163].mxu1  ;;  %3347 = vmatmul.mubr.bf16.gmra.mrb[28].mxu0 %v2988_v18  ;;  %v2878_v20 = vmax.f32 %v2608_v51, 0.0 }
 0x330   : > { %v2614_v10 = vadd.f32 %v2613_v62, %v9252_v56  ;;  %v2879_v49 = vmax.f32 %v2610_v44, 0.0 }
 0x331   : > { %v2880_v29 = vmax.f32 %v2612_v42, 0.0 }
 0x332   : > { %v2881_v52 = vmax.f32 %v2614_v10, 0.0 }
 0x333   : > { %v2990_v2 = vpack.c.bf16 %v2880_v29, %v2878_v20 }
 0x334   : > { %v2617_v61 = vpop.f32.mrb[164].mxu1  ;;  %v2991_v55 = vpack.c.bf16 %v2881_v52, %v2879_v49 }
 0x335   : > { %v2618_v7 = vadd.f32 %v2617_v61, %v9248_v34  ;;  %v2619_v5 = vpop.f32.mrb[165].mxu1 }
 0x336   : > { %v2620_v28 = vadd.f32 %v2619_v5, %v9252_v56  ;;  %v2621_v38 = vpop.f32.mrb[166].mxu1  ;;  %3356 = vmatprep.mubr.bf16.mxu0 %v2991_v55 }
 0x337   : > { %v2622_v3 = vadd.f32 %v2621_v38, %v9248_v34  ;;  %v2623_v8 = vpop.f32.mrb[167].mxu1  ;;  %3357 = vmatmul.mubr.bf16.gmra.mrb[32].mxu0 %v2990_v2  ;;  %v2882_v35 = vmax.f32 %v2618_v7, 0.0 }
 0x338   : > { %v2624_v15 = vadd.f32 %v2623_v8, %v9252_v56  ;;  %v2883_v46 = vmax.f32 %v2620_v28, 0.0 }
 0x339   : > { %v2884_v39 = vmax.f32 %v2622_v3, 0.0 }
 0x33a   : > { %v2885_v21 = vmax.f32 %v2624_v15, 0.0 }
 0x33b   : > { %v2992_v43 = vpack.c.bf16 %v2884_v39, %v2882_v35  ;;  %v8150_v39 = vld [vmem:[#allocation2 + $0x404] ss:$8 sps:$4 sm:$0xff]  }
 0x33c   : > { %v2627_v12 = vpop.f32.mrb[168].mxu1  ;;  %v2993_v59 = vpack.c.bf16 %v2885_v21, %v2883_v46  ;;  %4733 = vmatprep.subr.bf16.mxu1 %v8150_v39 }
 0x33d   : > { %v2628_v47 = vadd.f32 %v2627_v12, %v9248_v34  ;;  %v2629_v57 = vpop.f32.mrb[169].mxu1 }
 0x33e   : > { %v2630_v25 = vadd.f32 %v2629_v57, %v9252_v56  ;;  %v2631_v36 = vpop.f32.mrb[170].mxu1  ;;  %3366 = vmatprep.mubr.bf16.mxu0 %v2993_v59 }
 0x33f   : > { %v2632_v53 = vadd.f32 %v2631_v36, %v9248_v34  ;;  %v2633_v24 = vpop.f32.mrb[171].mxu1  ;;  %3367 = vmatmul.mubr.bf16.gmra.mrb[36].mxu0 %v2992_v43  ;;  %v2886_v41 = vmax.f32 %v2628_v47, 0.0 }
 0x340   : > { %v2634_v40 = vadd.f32 %v2633_v24, %v9252_v56  ;;  %v2887_v31 = vmax.f32 %v2630_v25, 0.0 }
 0x341   : > { %v2888_v63 = vmax.f32 %v2632_v53, 0.0 }
 0x342   : > { %v2889_v11 = vmax.f32 %v2634_v40, 0.0 }
 0x343   : > { %v2994_v16 = vpack.c.bf16 %v2888_v63, %v2886_v41 }
 0x344   : > { %v2637_v0 = vpop.f32.mrb[172].mxu1  ;;  %v2995_v22 = vpack.c.bf16 %v2889_v11, %v2887_v31 }
 0x345   : > { %v2638_v32 = vadd.f32 %v2637_v0, %v9248_v34  ;;  %v2639_v14 = vpop.f32.mrb[173].mxu1 }
 0x346   : > { %v2640_v54 = vadd.f32 %v2639_v14, %v9252_v56  ;;  %v2641_v60 = vpop.f32.mrb[174].mxu1  ;;  %3376 = vmatprep.mubr.bf16.mxu0 %v2995_v22 }
 0x347   : > { %v2642_v50 = vadd.f32 %v2641_v60, %v9248_v34  ;;  %v2643_v9 = vpop.f32.mrb[175].mxu1  ;;  %3377 = vmatmul.mubr.bf16.gmra.mrb[40].mxu0 %v2994_v16  ;;  %v2890_v17 = vmax.f32 %v2638_v32, 0.0 }
 0x348   : > { %v2644_v37 = vadd.f32 %v2643_v9, %v9252_v56  ;;  %v2891_v23 = vmax.f32 %v2640_v54, 0.0 }
 0x349   : > { %v2892_v19 = vmax.f32 %v2642_v50, 0.0 }
 0x34a   : > { %v2893_v18 = vmax.f32 %v2644_v37, 0.0 }
 0x34b   : > { %v2996_v1 = vpack.c.bf16 %v2892_v19, %v2890_v17 }
 0x34c   : > { %v2647_v58 = vpop.f32.mrb[176].mxu1  ;;  %v2997_v51 = vpack.c.bf16 %v2893_v18, %v2891_v23 }
 0x34d   : > { %v2648_v30 = vadd.f32 %v2647_v58, %v9248_v34  ;;  %v2649_v44 = vpop.f32.mrb[177].mxu1 }
 0x34e   : > { %v2650_v33 = vadd.f32 %v2649_v44, %v9252_v56  ;;  %v2651_v42 = vpop.f32.mrb[178].mxu1  ;;  %3386 = vmatprep.mubr.bf16.mxu0 %v2997_v51 }
 0x34f   : > { %v2652_v62 = vadd.f32 %v2651_v42, %v9248_v34  ;;  %v2653_v10 = vpop.f32.mrb[179].mxu1  ;;  %3387 = vmatmul.mubr.bf16.gmra.mrb[44].mxu0 %v2996_v1  ;;  %v2894_v29 = vmax.f32 %v2648_v30, 0.0 }
 0x350   : > { %v2654_v20 = vadd.f32 %v2653_v10, %v9252_v56  ;;  %v2895_v52 = vmax.f32 %v2650_v33, 0.0 }
 0x351   : > { %v2896_v49 = vmax.f32 %v2652_v62, 0.0 }
 0x352   : > { %v2897_v2 = vmax.f32 %v2654_v20, 0.0 }
 0x353   : > { %v2998_v61 = vpack.c.bf16 %v2896_v49, %v2894_v29 }
 0x354   : > { %v2657_v55 = vpop.f32.mrb[180].mxu1  ;;  %v2999_v7 = vpack.c.bf16 %v2897_v2, %v2895_v52 }
 0x355   : > { %v2658_v5 = vadd.f32 %v2657_v55, %v9248_v34  ;;  %v2659_v28 = vpop.f32.mrb[181].mxu1 }
 0x356   : > { %v2660_v38 = vadd.f32 %v2659_v28, %v9252_v56  ;;  %v2661_v3 = vpop.f32.mrb[182].mxu1  ;;  %3396 = vmatprep.mubr.bf16.mxu0 %v2999_v7 }
 0x357   : > { %v2662_v8 = vadd.f32 %v2661_v3, %v9248_v34  ;;  %v2663_v15 = vpop.f32.mrb[183].mxu1  ;;  %3397 = vmatmul.mubr.bf16.gmra.mrb[48].mxu0 %v2998_v61  ;;  %v2898_v45 = vmax.f32 %v2658_v5, 0.0 }
 0x358   : > { %v2664_v13 = vadd.f32 %v2663_v15, %v9252_v56  ;;  %v2899_v46 = vmax.f32 %v2660_v38, 0.0 }
 0x359   : > { %v2900_v35 = vmax.f32 %v2662_v8, 0.0 }
 0x35a   : > { %v2901_v21 = vmax.f32 %v2664_v13, 0.0 }
 0x35b   : > { %v3000_v43 = vpack.c.bf16 %v2900_v35, %v2898_v45 }
 0x35c   : > { %v2667_v12 = vpop.f32.mrb[184].mxu1  ;;  %v3001_v59 = vpack.c.bf16 %v2901_v21, %v2899_v46 }
 0x35d   : > { %v2668_v47 = vadd.f32 %v2667_v12, %v9248_v34  ;;  %v2669_v57 = vpop.f32.mrb[185].mxu1 }
 0x35e   : > { %v2670_v25 = vadd.f32 %v2669_v57, %v9252_v56  ;;  %v2671_v36 = vpop.f32.mrb[186].mxu1  ;;  %3406 = vmatprep.mubr.bf16.mxu0 %v3001_v59 }
 0x35f   : > { %v2672_v53 = vadd.f32 %v2671_v36, %v9248_v34  ;;  %v2673_v24 = vpop.f32.mrb[187].mxu1  ;;  %3407 = vmatmul.mubr.bf16.gmra.mrb[52].mxu0 %v3000_v43  ;;  %v2902_v41 = vmax.f32 %v2668_v47, 0.0 }
 0x360   : > { %v2674_v40 = vadd.f32 %v2673_v24, %v9252_v56  ;;  %v2903_v31 = vmax.f32 %v2670_v25, 0.0 }
 0x361   : > { %v2904_v63 = vmax.f32 %v2672_v53, 0.0 }
 0x362   : > { %v2905_v11 = vmax.f32 %v2674_v40, 0.0 }
 0x363   : > { %v3002_v16 = vpack.c.bf16 %v2904_v63, %v2902_v41 }
 0x364   : > { %v2677_v0 = vpop.f32.mrb[188].mxu1  ;;  %v3003_v22 = vpack.c.bf16 %v2905_v11, %v2903_v31 }
 0x365   : > { %v2678_v32 = vadd.f32 %v2677_v0, %v9248_v34  ;;  %v2679_v14 = vpop.f32.mrb[189].mxu1 }
 0x366   : > { %v2680_v54 = vadd.f32 %v2679_v14, %v9252_v56  ;;  %v2681_v60 = vpop.f32.mrb[190].mxu1  ;;  %3416 = vmatprep.mubr.bf16.mxu0 %v3003_v22 }
 0x367   : > { %v2682_v50 = vadd.f32 %v2681_v60, %v9248_v34  ;;  %v2683_v9 = vpop.f32.mrb[191].mxu1  ;;  %3417 = vmatmul.mubr.bf16.gmra.mrb[56].mxu0 %v3002_v16  ;;  %v2906_v26 = vmax.f32 %v2678_v32, 0.0 }
 0x368   : > { %v2684_v37 = vadd.f32 %v2683_v9, %v9252_v56  ;;  %v2907_v17 = vmax.f32 %v2680_v54, 0.0 }
 0x369   : > { %v2908_v48 = vmax.f32 %v2682_v50, 0.0 }
 0x36a   : > { %v2909_v19 = vmax.f32 %v2684_v37, 0.0 }
 0x36b   : > { %v3004_v23 = vpack.c.bf16 %v2908_v48, %v2906_v26 }
 0x36c   : > { %v2687_v18 = vpop.f32.mrb[192].mxu1  ;;  %v3005_v1 = vpack.c.bf16 %v2909_v19, %v2907_v17 }
 0x36d   : > { %v2688_v58 = vadd.f32 %v2687_v18, %v9248_v34  ;;  %v2689_v51 = vpop.f32.mrb[193].mxu1 }
 0x36e   : > { %v2690_v30 = vadd.f32 %v2689_v51, %v9252_v56  ;;  %v2691_v44 = vpop.f32.mrb[194].mxu1  ;;  %3426 = vmatprep.mubr.bf16.mxu0 %v3005_v1 }
 0x36f   : > { %v2692_v33 = vadd.f32 %v2691_v44, %v9248_v34  ;;  %v2693_v42 = vpop.f32.mrb[195].mxu1  ;;  %3427 = vmatmul.mubr.bf16.gmra.mrb[60].mxu0 %v3004_v23  ;;  %v2910_v10 = vmax.f32 %v2688_v58, 0.0 }
 0x370   : > { %v2694_v62 = vadd.f32 %v2693_v42, %v9252_v56  ;;  %v2911_v29 = vmax.f32 %v2690_v30, 0.0 }
 0x371   : > { %v2912_v20 = vmax.f32 %v2692_v33, 0.0 }
 0x372   : > { %v2913_v49 = vmax.f32 %v2694_v62, 0.0 }
 0x373   : > { %v3006_v52 = vpack.c.bf16 %v2912_v20, %v2910_v10 }
 0x374   : > { %v2697_v2 = vpop.f32.mrb[196].mxu1  ;;  %v3007_v61 = vpack.c.bf16 %v2913_v49, %v2911_v29 }
 0x375   : > { %v2698_v55 = vadd.f32 %v2697_v2, %v9248_v34  ;;  %v2699_v7 = vpop.f32.mrb[197].mxu1 }
 0x376   : > { %v2700_v5 = vadd.f32 %v2699_v7, %v9252_v56  ;;  %v2701_v28 = vpop.f32.mrb[198].mxu1  ;;  %3436 = vmatprep.mubr.bf16.mxu0 %v3007_v61 }
 0x377   : > { %v2702_v38 = vadd.f32 %v2701_v28, %v9248_v34  ;;  %v2703_v3 = vpop.f32.mrb[199].mxu1  ;;  %3437 = vmatmul.mubr.bf16.gmra.mrb[64].mxu0 %v3006_v52  ;;  %v2914_v15 = vmax.f32 %v2698_v55, 0.0 }
 0x378   : > { %v2704_v8 = vadd.f32 %v2703_v3, %v9252_v56  ;;  %v2915_v45 = vmax.f32 %v2700_v5, 0.0 }
 0x379   : > { %v2916_v13 = vmax.f32 %v2702_v38, 0.0 }
 0x37a   : > { %v2917_v35 = vmax.f32 %v2704_v8, 0.0 }
 0x37b   : > { %v3008_v39 = vpack.c.bf16 %v2916_v13, %v2914_v15 }
 0x37c   : > { %v2707_v46 = vpop.f32.mrb[200].mxu1  ;;  %v3009_v21 = vpack.c.bf16 %v2917_v35, %v2915_v45 }
 0x37d   : > { %v2708_v43 = vadd.f32 %v2707_v46, %v9248_v34  ;;  %v2709_v12 = vpop.f32.mrb[201].mxu1 }
 0x37e   : > { %v2710_v59 = vadd.f32 %v2709_v12, %v9252_v56  ;;  %v2711_v47 = vpop.f32.mrb[202].mxu1  ;;  %3446 = vmatprep.mubr.bf16.mxu0 %v3009_v21 }
 0x37f   : > { %v2712_v57 = vadd.f32 %v2711_v47, %v9248_v34  ;;  %v2713_v25 = vpop.f32.mrb[203].mxu1  ;;  %3447 = vmatmul.mubr.bf16.gmra.mrb[68].mxu0 %v3008_v39  ;;  %v2918_v53 = vmax.f32 %v2708_v43, 0.0 }
 0x380   : > { %v2714_v36 = vadd.f32 %v2713_v25, %v9252_v56  ;;  %v2919_v40 = vmax.f32 %v2710_v59, 0.0 }
 0x381   : > { %v2920_v24 = vmax.f32 %v2712_v57, 0.0 }
 0x382   : > { %v2921_v41 = vmax.f32 %v2714_v36, 0.0 }
 0x383   : > { %v3010_v63 = vpack.c.bf16 %v2920_v24, %v2918_v53 }
 0x384   : > { %v2717_v31 = vpop.f32.mrb[204].mxu1  ;;  %v3011_v11 = vpack.c.bf16 %v2921_v41, %v2919_v40 }
 0x385   : > { %v2718_v16 = vadd.f32 %v2717_v31, %v9248_v34  ;;  %v2719_v0 = vpop.f32.mrb[205].mxu1 }
 0x386   : > { %v2720_v22 = vadd.f32 %v2719_v0, %v9252_v56  ;;  %v2721_v32 = vpop.f32.mrb[206].mxu1  ;;  %3456 = vmatprep.mubr.bf16.mxu0 %v3011_v11 }
 0x387   : > { %v2722_v14 = vadd.f32 %v2721_v32, %v9248_v34  ;;  %v2723_v54 = vpop.f32.mrb[207].mxu1  ;;  %3457 = vmatmul.mubr.bf16.gmra.mrb[72].mxu0 %v3010_v63  ;;  %v2922_v50 = vmax.f32 %v2718_v16, 0.0 }
 0x388   : > { %v2724_v60 = vadd.f32 %v2723_v54, %v9252_v56  ;;  %v2923_v37 = vmax.f32 %v2720_v22, 0.0 }
 0x389   : > { %v2924_v9 = vmax.f32 %v2722_v14, 0.0 }
 0x38a   : > { %v2925_v26 = vmax.f32 %v2724_v60, 0.0 }
 0x38b   : > { %v3012_v48 = vpack.c.bf16 %v2924_v9, %v2922_v50 }
 0x38c   : > { %v2727_v17 = vpop.f32.mrb[208].mxu1  ;;  %v3013_v19 = vpack.c.bf16 %v2925_v26, %v2923_v37 }
 0x38d   : > { %v2728_v23 = vadd.f32 %v2727_v17, %v9248_v34  ;;  %v2729_v18 = vpop.f32.mrb[209].mxu1 }
 0x38e   : > { %v2730_v1 = vadd.f32 %v2729_v18, %v9252_v56  ;;  %v2731_v58 = vpop.f32.mrb[210].mxu1  ;;  %3466 = vmatprep.mubr.bf16.mxu0 %v3013_v19 }
 0x38f   : > { %v2732_v51 = vadd.f32 %v2731_v58, %v9248_v34  ;;  %v2733_v30 = vpop.f32.mrb[211].mxu1  ;;  %3467 = vmatmul.mubr.bf16.gmra.mrb[76].mxu0 %v3012_v48  ;;  %v2926_v33 = vmax.f32 %v2728_v23, 0.0 }
 0x390   : > { %v2734_v44 = vadd.f32 %v2733_v30, %v9252_v56  ;;  %v2927_v62 = vmax.f32 %v2730_v1, 0.0 }
 0x391   : > { %v2928_v42 = vmax.f32 %v2732_v51, 0.0 }
 0x392   : > { %v2929_v10 = vmax.f32 %v2734_v44, 0.0 }
 0x393   : > { %v3014_v20 = vpack.c.bf16 %v2928_v42, %v2926_v33 }
 0x394   : > { %v2737_v29 = vpop.f32.mrb[212].mxu1  ;;  %v3015_v49 = vpack.c.bf16 %v2929_v10, %v2927_v62 }
 0x395   : > { %v2738_v52 = vadd.f32 %v2737_v29, %v9248_v34  ;;  %v2739_v2 = vpop.f32.mrb[213].mxu1 }
 0x396   : > { %v2740_v61 = vadd.f32 %v2739_v2, %v9252_v56  ;;  %v2741_v55 = vpop.f32.mrb[214].mxu1  ;;  %3476 = vmatprep.mubr.bf16.mxu0 %v3015_v49 }
 0x397   : > { %v2742_v7 = vadd.f32 %v2741_v55, %v9248_v34  ;;  %v2743_v5 = vpop.f32.mrb[215].mxu1  ;;  %3477 = vmatmul.mubr.bf16.gmra.mrb[80].mxu0 %v3014_v20  ;;  %v2930_v38 = vmax.f32 %v2738_v52, 0.0 }
 0x398   : > { %v2744_v28 = vadd.f32 %v2743_v5, %v9252_v56  ;;  %v2931_v8 = vmax.f32 %v2740_v61, 0.0 }
 0x399   : > { %v2932_v3 = vmax.f32 %v2742_v7, 0.0 }
 0x39a   : > { %v2933_v15 = vmax.f32 %v2744_v28, 0.0 }
 0x39b   : > { %v3016_v13 = vpack.c.bf16 %v2932_v3, %v2930_v38 }
 0x39c   : > { %v2747_v45 = vpop.f32.mrb[216].mxu1  ;;  %v3017_v35 = vpack.c.bf16 %v2933_v15, %v2931_v8 }
 0x39d   : > { %v2748_v39 = vadd.f32 %v2747_v45, %v9248_v34  ;;  %v2749_v46 = vpop.f32.mrb[217].mxu1 }
 0x39e   : > { %v2750_v21 = vadd.f32 %v2749_v46, %v9252_v56  ;;  %v2751_v43 = vpop.f32.mrb[218].mxu1  ;;  %3486 = vmatprep.mubr.bf16.mxu0 %v3017_v35 }
 0x39f   : > { %v2752_v12 = vadd.f32 %v2751_v43, %v9248_v34  ;;  %v2753_v59 = vpop.f32.mrb[219].mxu1  ;;  %3487 = vmatmul.mubr.bf16.gmra.mrb[84].mxu0 %v3016_v13  ;;  %v2934_v57 = vmax.f32 %v2748_v39, 0.0 }
 0x3a0   : > { %v2754_v47 = vadd.f32 %v2753_v59, %v9252_v56  ;;  %v2935_v36 = vmax.f32 %v2750_v21, 0.0 }
 0x3a1   : > { %v2936_v25 = vmax.f32 %v2752_v12, 0.0 }
 0x3a2   : > { %v2937_v53 = vmax.f32 %v2754_v47, 0.0 }
 0x3a3   : > { %v3018_v24 = vpack.c.bf16 %v2936_v25, %v2934_v57 }
 0x3a4   : > { %v2757_v40 = vpop.f32.mrb[220].mxu1  ;;  %v3019_v41 = vpack.c.bf16 %v2937_v53, %v2935_v36  ;;  %v7619_v36 = vld [vmem:[%s10676_s3 + $0x3] ss:$8 sm:$0x3] }
 0x3a5   : > { %v2758_v63 = vadd.f32 %v2757_v40, %v9248_v34  ;;  %v2759_v31 = vpop.f32.mrb[221].mxu1 }
 0x3a6   : > { %v2760_v11 = vadd.f32 %v2759_v31, %v9252_v56  ;;  %v2761_v16 = vpop.f32.mrb[222].mxu1  ;;  %3496 = vmatprep.mubr.bf16.mxu0 %v3019_v41 }
 0x3a7   : > { %v2762_v0 = vadd.f32 %v2761_v16, %v9248_v34  ;;  %v2763_v22 = vpop.f32.mrb[223].mxu1  ;;  %3497 = vmatmul.mubr.bf16.gmra.mrb[88].mxu0 %v3018_v24  ;;  %v2938_v14 = vmax.f32 %v2758_v63, 0.0 }
 0x3a8   : > { %v2764_v32 = vadd.f32 %v2763_v22, %v9252_v56  ;;  %v2939_v60 = vmax.f32 %v2760_v11, 0.0  ;;  %v9385_v11 = vrot.slane %v7619_v36, %v8699_v27  ;;  %v9389_v22 = vrot.slane %v7619_v36, %v8707_v6 }
 0x3a9   : > { %v2940_v54 = vmax.f32 %v2762_v0, 0.0 }
 0x3aa   : > { %v2941_v50 = vmax.f32 %v2764_v32, 0.0 }
 0x3ab   : > { %v3020_v9 = vpack.c.bf16 %v2940_v54, %v2938_v14 }
 0x3ac   : > { %v2767_v37 = vpop.f32.mrb[224].mxu1  ;;  %v3021_v26 = vpack.c.bf16 %v2941_v50, %v2939_v60 }
 0x3ad   : > { %v2768_v48 = vadd.f32 %v2767_v37, %v9248_v34  ;;  %v2769_v17 = vpop.f32.mrb[225].mxu1 }
 0x3ae   : > { %v2770_v19 = vadd.f32 %v2769_v17, %v9252_v56  ;;  %v2771_v23 = vpop.f32.mrb[226].mxu1  ;;  %3506 = vmatprep.mubr.bf16.mxu0 %v3021_v26 }
 0x3af   : > { %v2772_v18 = vadd.f32 %v2771_v23, %v9248_v34  ;;  %v2773_v1 = vpop.f32.mrb[227].mxu1  ;;  %3507 = vmatmul.mubr.bf16.gmra.mrb[92].mxu0 %v3020_v9  ;;  %v2942_v51 = vmax.f32 %v2768_v48, 0.0 }
 0x3b0   : > { %v2774_v58 = vadd.f32 %v2773_v1, %v9252_v56  ;;  %v2943_v44 = vmax.f32 %v2770_v19, 0.0 }
 0x3b1   : > { %v2944_v30 = vmax.f32 %v2772_v18, 0.0 }
 0x3b2   : > { %v2945_v33 = vmax.f32 %v2774_v58, 0.0 }
 0x3b3   : > { %v3022_v42 = vpack.c.bf16 %v2944_v30, %v2942_v51 }
 0x3b4   : > { %v2777_v62 = vpop.f32.mrb[228].mxu1  ;;  %v3023_v10 = vpack.c.bf16 %v2945_v33, %v2943_v44 }
 0x3b5   : > { %v2778_v20 = vadd.f32 %v2777_v62, %v9248_v34  ;;  %v2779_v29 = vpop.f32.mrb[229].mxu1 }
 0x3b6   : > { %v2780_v49 = vadd.f32 %v2779_v29, %v9252_v56  ;;  %v2781_v52 = vpop.f32.mrb[230].mxu1  ;;  %3516 = vmatprep.mubr.bf16.mxu0 %v3023_v10 }
 0x3b7   : > { %v2782_v2 = vadd.f32 %v2781_v52, %v9248_v34  ;;  %v2783_v61 = vpop.f32.mrb[231].mxu1  ;;  %3517 = vmatmul.mubr.bf16.gmra.mrb[96].mxu0 %v3022_v42  ;;  %v2946_v7 = vmax.f32 %v2778_v20, 0.0 }
 0x3b8   : > { %v2784_v55 = vadd.f32 %v2783_v61, %v9252_v56  ;;  %v2947_v28 = vmax.f32 %v2780_v49, 0.0 }
 0x3b9   : > { %v2948_v5 = vmax.f32 %v2782_v2, 0.0 }
 0x3ba   : > { %v2949_v38 = vmax.f32 %v2784_v55, 0.0 }
 0x3bb   : > { %v3024_v3 = vpack.c.bf16 %v2948_v5, %v2946_v7 }
 0x3bc   : > { %v2787_v8 = vpop.f32.mrb[232].mxu1  ;;  %v3025_v15 = vpack.c.bf16 %v2949_v38, %v2947_v28 }
 0x3bd   : > { %v2788_v13 = vadd.f32 %v2787_v8, %v9248_v34  ;;  %v2789_v45 = vpop.f32.mrb[233].mxu1  ;;  %v8148_v8 = vld [vmem:[#allocation2 + $0x400] ss:$8 sps:$4 sm:$0xff]  }
 0x3be   : > { %v2790_v35 = vadd.f32 %v2789_v45, %v9252_v56  ;;  %v2791_v39 = vpop.f32.mrb[234].mxu1  ;;  %3526 = vmatprep.mubr.bf16.mxu0 %v3025_v15 }
 0x3bf   : > { %v2792_v46 = vadd.f32 %v2791_v39, %v9248_v34  ;;  %v2793_v21 = vpop.f32.mrb[235].mxu1  ;;  %3527 = vmatmul.mubr.bf16.gmra.mrb[100].mxu0 %v3024_v3  ;;  %v2950_v12 = vmax.f32 %v2788_v13, 0.0 }
 0x3c0   : > { %v2794_v43 = vadd.f32 %v2793_v21, %v9252_v56  ;;  %v2951_v47 = vmax.f32 %v2790_v35, 0.0  ;;  %v8153_v35 = vld [vmem:[#allocation2 + $0x414] ss:$8 sps:$4 sm:$0xff]  }
 0x3c1   : > { %v2952_v59 = vmax.f32 %v2792_v46, 0.0 }
 0x3c2   : > { %v2953_v57 = vmax.f32 %v2794_v43, 0.0 }
 0x3c3   : > { %v3026_v25 = vpack.c.bf16 %v2952_v59, %v2950_v12 }
 0x3c4   : > { %v2797_v53 = vpop.f32.mrb[236].mxu1  ;;  %v3027_v24 = vpack.c.bf16 %v2953_v57, %v2951_v47 }
 0x3c5   : > { %v2798_v40 = vadd.f32 %v2797_v53, %v9248_v34  ;;  %v2799_v41 = vpop.f32.mrb[237].mxu1 }
 0x3c6   : > { %v2800_v63 = vadd.f32 %v2799_v41, %v9252_v56  ;;  %v2801_v31 = vpop.f32.mrb[238].mxu1  ;;  %3536 = vmatprep.mubr.bf16.mxu0 %v3027_v24  ;;  %v8151_v24 = vld [vmem:[#allocation2 + $0x410] ss:$8 sps:$4 sm:$0xff]  }
 0x3c7   : > { %v2802_v16 = vadd.f32 %v2801_v31, %v9248_v34  ;;  %v2803_v0 = vpop.f32.mrb[239].mxu1  ;;  %3537 = vmatmul.mubr.bf16.gmra.mrb[104].mxu0 %v3026_v25  ;;  %v2954_v14 = vmax.f32 %v2798_v40, 0.0 }
 0x3c8   : > { %v2804_v32 = vadd.f32 %v2803_v0, %v9252_v56  ;;  %v2955_v60 = vmax.f32 %v2800_v63, 0.0 }
 0x3c9   : > { %v2956_v54 = vmax.f32 %v2802_v16, 0.0  ;;  %v8156_v16 = vld [vmem:[#allocation2 + $0x424] ss:$8 sps:$4 sm:$0xff]  }
 0x3ca   : > { %v2957_v50 = vmax.f32 %v2804_v32, 0.0  ;;  %v3278_v9 = vpop.f32.mrb[0].mxu0 }
 0x3cb   : > { %v3028_v37 = vpack.c.bf16 %v2956_v54, %v2954_v14  ;;  %v3279_v26 = vadd.f32 %v3278_v9, %v9385_v11  ;;  %v3280_v48 = vpop.f32.mrb[1].mxu0 }
 0x3cc   : > { %v3281_v17 = vadd.f32 %v3280_v48, %v9389_v22  ;;  %v2807_v19 = vpop.f32.mrb[240].mxu1  ;;  %v3282_v23 = vpop.f32.mrb[2].mxu0  ;;  %v3029_v18 = vpack.c.bf16 %v2957_v50, %v2955_v60 }
 0x3cd   : > { %v2808_v1 = vadd.f32 %v2807_v19, %v9248_v34  ;;  %v3283_v58 = vadd.f32 %v3282_v23, %v9385_v11  ;;  %v2809_v51 = vpop.f32.mrb[241].mxu1  ;;  %v3284_v30 = vpop.f32.mrb[3].mxu0  ;;  %v3597_v62 = vmax.f32 %v3279_v26, 0.0 }
 0x3ce   : > { %v2810_v44 = vadd.f32 %v2809_v51, %v9252_v56  ;;  %v3285_v33 = vadd.f32 %v3284_v30, %v9389_v22  ;;  %v2811_v42 = vpop.f32.mrb[242].mxu1  ;;  %3546 = vmatprep.mubr.bf16.mxu0 %v3029_v18  ;;  %v3598_v49 = vmax.f32 %v3281_v17, 0.0  ;;  %v8154_v17 = vld [vmem:[#allocation2 + $0x420] ss:$8 sps:$4 sm:$0xff]  }
 0x3cf   : > { %v3599_v10 = vmax.f32 %v3283_v58, 0.0  ;;  %v2812_v20 = vadd.f32 %v2811_v42, %v9248_v34  ;;  %v2813_v29 = vpop.f32.mrb[243].mxu1  ;;  %3547 = vmatmul.mubr.bf16.gmra.mrb[108].mxu0 %v3028_v37  ;;  %v2958_v61 = vmax.f32 %v2808_v1, 0.0  ;;  %v8159_v1 = vld [vmem:[#allocation2 + $0x434] ss:$8 sps:$4 sm:$0xff]  }
 0x3d0   : > { %v3600_v52 = vmax.f32 %v3285_v33, 0.0  ;;  %v2814_v2 = vadd.f32 %v2813_v29, %v9252_v56  ;;  %v2959_v5 = vmax.f32 %v2810_v44, 0.0 }
 0x3d1   : > { %v3725_v55 = vpack.c.bf16 %v3599_v10, %v3597_v62  ;;  %v2960_v7 = vmax.f32 %v2812_v20, 0.0 }
 0x3d2   : > { %v2961_v28 = vmax.f32 %v2814_v2, 0.0  ;;  %v3288_v38 = vpop.f32.mrb[4].mxu0  ;;  %v3726_v3 = vpack.c.bf16 %v3600_v52, %v3598_v49  ;;  %v8157_v52 = vld [vmem:[#allocation2 + $0x430] ss:$8 sps:$4 sm:$0xff]  }
 0x3d3   : > { %v3030_v15 = vpack.c.bf16 %v2960_v7, %v2958_v61  ;;  %v3289_v13 = vadd.f32 %v3288_v38, %v9385_v11  ;;  %v3290_v45 = vpop.f32.mrb[5].mxu0 }
 0x3d4   : > { %v3291_v39 = vadd.f32 %v3290_v45, %v9389_v22  ;;  %v2817_v46 = vpop.f32.mrb[244].mxu1  ;;  %v3292_v21 = vpop.f32.mrb[6].mxu0  ;;  %4027 = vmatprep.mubr.bf16.mxu1 %v3726_v3  ;;  %v3031_v43 = vpack.c.bf16 %v2961_v28, %v2959_v5  ;;  %v8162_v5 = vld [vmem:[#allocation2 + $0x444] ss:$8 sps:$4 sm:$0xff]  }
 0x3d5   : > { %v2818_v12 = vadd.f32 %v2817_v46, %v9248_v34  ;;  %v3293_v59 = vadd.f32 %v3292_v21, %v9385_v11  ;;  %v2819_v47 = vpop.f32.mrb[245].mxu1  ;;  %v3294_v57 = vpop.f32.mrb[7].mxu0  ;;  %4028 = vmatmul.mubr.bf16.vlgmr.msra.gmra.mrb[128].mxu1 %v3725_v55  ;;  %v3601_v40 = vmax.f32 %v3289_v13, 0.0  ;;  %v8160_v21 = vld [vmem:[#allocation2 + $0x440] ss:$8 sps:$4 sm:$0xff]  }
 0x3d6   : > { %v2820_v25 = vadd.f32 %v2819_v47, %v9252_v56  ;;  %v3295_v36 = vadd.f32 %v3294_v57, %v9389_v22  ;;  %v2821_v53 = vpop.f32.mrb[246].mxu1  ;;  %3556 = vmatprep.mubr.bf16.mxu0 %v3031_v43  ;;  %4734 = vmatpush1.bf16.msra.mxu1 %v8148_v8  ;;  %v3602_v0 = vmax.f32 %v3291_v39, 0.0  ;;  %v8165_v47 = vld [vmem:[#allocation2 + $0x454] ss:$8 sps:$4 sm:$0xff]  }
 0x3d7   : > { %v3603_v41 = vmax.f32 %v3293_v59, 0.0  ;;  %v2822_v63 = vadd.f32 %v2821_v53, %v9248_v34  ;;  %v2823_v31 = vpop.f32.mrb[247].mxu1  ;;  %3557 = vmatmul.mubr.bf16.gmra.mrb[112].mxu0 %v3030_v15  ;;  %4735 = vmatprep.subr.bf16.mxu1 %v8153_v35  ;;  %v2962_v54 = vmax.f32 %v2818_v12, 0.0 }
 0x3d8   : > { %v3604_v32 = vmax.f32 %v3295_v36, 0.0  ;;  %v2824_v14 = vadd.f32 %v2823_v31, %v9252_v56  ;;  %v2963_v9 = vmax.f32 %v2820_v25, 0.0 }
 0x3d9   : > { %v3727_v60 = vpack.c.bf16 %v3603_v41, %v3601_v40  ;;  %v2964_v50 = vmax.f32 %v2822_v63, 0.0 }
 0x3da   : > { %v2965_v37 = vmax.f32 %v2824_v14, 0.0  ;;  %v3298_v26 = vpop.f32.mrb[8].mxu0  ;;  %v3728_v48 = vpack.c.bf16 %v3604_v32, %v3602_v0  ;;  %4736 = vmatpush1.bf16.msra.mxu1 %v8151_v24  ;;  %v8163_v32 = vld [vmem:[#allocation2 + $0x450] ss:$8 sps:$4 sm:$0xff]  }
 0x3db   : > { %v3032_v19 = vpack.c.bf16 %v2964_v50, %v2962_v54  ;;  %v3299_v23 = vadd.f32 %v3298_v26, %v9385_v11  ;;  %v3300_v18 = vpop.f32.mrb[9].mxu0  ;;  %4737 = vmatprep.subr.bf16.mxu1 %v8156_v16 }
 0x3dc   : > { %v3301_v58 = vadd.f32 %v3300_v18, %v9389_v22  ;;  %v2827_v51 = vpop.f32.mrb[248].mxu1  ;;  %v3302_v30 = vpop.f32.mrb[10].mxu0  ;;  %4037 = vmatprep.mubr.bf16.mxu1 %v3728_v48  ;;  %v3033_v44 = vpack.c.bf16 %v2965_v37, %v2963_v9  ;;  %v8168_v9 = vld [vmem:[#allocation2 + $0x464] ss:$8 sps:$4 sm:$0xff]  }
 0x3dd   : > { %v2828_v33 = vadd.f32 %v2827_v51, %v9248_v34  ;;  %v3303_v42 = vadd.f32 %v3302_v30, %v9385_v11  ;;  %v2829_v62 = vpop.f32.mrb[249].mxu1  ;;  %v3304_v10 = vpop.f32.mrb[11].mxu0  ;;  %4038 = vmatmul.mubr.bf16.gmra.mrb[132].mxu1 %v3727_v60  ;;  %v3605_v2 = vmax.f32 %v3299_v23, 0.0  ;;  %v8166_v30 = vld [vmem:[#allocation2 + $0x460] ss:$8 sps:$4 sm:$0xff]  }
 0x3de   : > { %v2830_v20 = vadd.f32 %v2829_v62, %v9252_v56  ;;  %v3305_v29 = vadd.f32 %v3304_v10, %v9389_v22  ;;  %v2831_v49 = vpop.f32.mrb[250].mxu1  ;;  %3566 = vmatprep.mubr.bf16.mxu0 %v3033_v44  ;;  %4738 = vmatpush1.bf16.msra.mxu1 %v8154_v17  ;;  %v3606_v28 = vmax.f32 %v3301_v58, 0.0 }
 0x3df   : > { %v3607_v61 = vmax.f32 %v3303_v42, 0.0  ;;  %v2832_v55 = vadd.f32 %v2831_v49, %v9248_v34  ;;  %v2833_v7 = vpop.f32.mrb[251].mxu1  ;;  %3567 = vmatmul.mubr.bf16.gmra.mrb[116].mxu0 %v3032_v19  ;;  %4739 = vmatprep.subr.bf16.mxu1 %v8159_v1  ;;  %v2966_v8 = vmax.f32 %v2828_v33, 0.0  ;;  %v8171_v42 = vld [vmem:[#allocation2 + $0x474] ss:$8 sps:$4 sm:$0xff]  }
 0x3e0   : > { %v3608_v38 = vmax.f32 %v3305_v29, 0.0  ;;  %v2834_v3 = vadd.f32 %v2833_v7, %v9252_v56  ;;  %v2967_v45 = vmax.f32 %v2830_v20, 0.0 }
 0x3e1   : > { %v3729_v15 = vpack.c.bf16 %v3607_v61, %v3605_v2  ;;  %v2968_v13 = vmax.f32 %v2832_v55, 0.0  ;;  %v8174_v55 = vld [vmem:[#allocation2 + $0x484] ss:$8 sps:$4 sm:$0xff]  }
 0x3e2   : > { %v2969_v35 = vmax.f32 %v2834_v3, 0.0  ;;  %v3308_v39 = vpop.f32.mrb[12].mxu0  ;;  %v3730_v46 = vpack.c.bf16 %v3608_v38, %v3606_v28  ;;  %4740 = vmatpush1.bf16.msra.mxu1 %v8157_v52  ;;  %v8169_v52 = vld [vmem:[#allocation2 + $0x470] ss:$8 sps:$4 sm:$0xff]  }
 0x3e3   : > { %v3034_v43 = vpack.c.bf16 %v2968_v13, %v2966_v8  ;;  %v3309_v12 = vadd.f32 %v3308_v39, %v9385_v11  ;;  %v3310_v59 = vpop.f32.mrb[13].mxu0  ;;  %4741 = vmatprep.subr.bf16.mxu1 %v8162_v5  ;;  %v8172_v8 = vld [vmem:[#allocation2 + $0x480] ss:$8 sps:$4 sm:$0xff]  }
 0x3e4   : > { %v3311_v57 = vadd.f32 %v3310_v59, %v9389_v22  ;;  %v2837_v25 = vpop.f32.mrb[252].mxu1  ;;  %v3312_v36 = vpop.f32.mrb[14].mxu0  ;;  %4047 = vmatprep.mubr.bf16.mxu1 %v3730_v46  ;;  %v3035_v53 = vpack.c.bf16 %v2969_v35, %v2967_v45  ;;  %v8177_v45 = vld [vmem:[#allocation2 + $0x494] ss:$8 sps:$4 sm:$0xff]  }
 0x3e5   : > { %v2838_v24 = vadd.f32 %v2837_v25, %v9248_v34  ;;  %v3313_v40 = vadd.f32 %v3312_v36, %v9385_v11  ;;  %v2839_v41 = vpop.f32.mrb[253].mxu1  ;;  %v3314_v63 = vpop.f32.mrb[15].mxu0  ;;  %4048 = vmatmul.mubr.bf16.gmra.mrb[136].mxu1 %v3729_v15  ;;  %v3609_v14 = vmax.f32 %v3309_v12, 0.0  ;;  %v8175_v12 = vld [vmem:[#allocation2 + $0x490] ss:$8 sps:$4 sm:$0xff]  }
 0x3e6   : > { %v2840_v31 = vadd.f32 %v2839_v41, %v9252_v56  ;;  %v3315_v16 = vadd.f32 %v3314_v63, %v9389_v22  ;;  %v2841_v0 = vpop.f32.mrb[254].mxu1  ;;  %3576 = vmatprep.mubr.bf16.mxu0 %v3035_v53  ;;  %4742 = vmatpush1.bf16.msra.mxu1 %v8160_v21  ;;  %v3610_v37 = vmax.f32 %v3311_v57, 0.0  ;;  %v8180_v53 = vld [vmem:[#allocation2 + $0x4a4] ss:$8 sps:$4 sm:$0xff]   ;;  %v8178_v41 = vld [vmem:[#allocation2 + $0x4a0] ss:$8 sps:$4 sm:$0xff]  }
 0x3e7   : > { %v3611_v54 = vmax.f32 %v3313_v40, 0.0  ;;  %v2842_v60 = vadd.f32 %v2841_v0, %v9248_v34  ;;  %v2843_v50 = vpop.f32.mrb[255].mxu1  ;;  %3577 = vmatmul.mubr.bf16.gmra.mrb[120].mxu0 %v3034_v43  ;;  %4743 = vmatprep.subr.bf16.mxu1 %v8165_v47  ;;  %v2970_v17 = vmax.f32 %v2838_v24, 0.0 }
 0x3e8   : > { %v3612_v26 = vmax.f32 %v3315_v16, 0.0  ;;  %v2844_v48 = vadd.f32 %v2843_v50, %v9252_v56  ;;  %v2971_v18 = vmax.f32 %v2840_v31, 0.0 }
 0x3e9   : > { %v3731_v19 = vpack.c.bf16 %v3611_v54, %v3609_v14  ;;  %v2972_v23 = vmax.f32 %v2842_v60, 0.0 }
 0x3ea   : > { %v2973_v1 = vmax.f32 %v2844_v48, 0.0  ;;  %v3318_v58 = vpop.f32.mrb[16].mxu0  ;;  %v3732_v51 = vpack.c.bf16 %v3612_v26, %v3610_v37  ;;  %4744 = vmatpush1.bf16.msra.mxu1 %v8163_v32 }
 0x3eb   : > { %v3036_v44 = vpack.c.bf16 %v2972_v23, %v2970_v17  ;;  %v3319_v34 = vadd.f32 %v3318_v58, %v9385_v11  ;;  %v3320_v33 = vpop.f32.mrb[17].mxu0  ;;  %4745 = vmatprep.subr.bf16.mxu1 %v8168_v9 }
 0x3ec   : > { %v3321_v62 = vadd.f32 %v3320_v33, %v9389_v22  ;;  %v3322_v10 = vpop.f32.mrb[18].mxu0  ;;  %4057 = vmatprep.mubr.bf16.mxu1 %v3732_v51  ;;  %v3037_v56 = vpack.c.bf16 %v2973_v1, %v2971_v18 }
 0x3ed   : > { %v3323_v20 = vadd.f32 %v3322_v10, %v9385_v11  ;;  %v3324_v29 = vpop.f32.mrb[19].mxu0  ;;  %4058 = vmatmul.mubr.bf16.gmra.mrb[140].mxu1 %v3731_v19  ;;  %v3613_v2 = vmax.f32 %v3319_v34, 0.0  ;;  %v8181_v10 = vld [vmem:[#allocation2 + $0x4b0] ss:$8 sps:$4 sm:$0xff]  }
 0x3ee   : > { %v3325_v49 = vadd.f32 %v3324_v29, %v9389_v22  ;;  %3586 = vmatprep.mubr.bf16.mxu0 %v3037_v56  ;;  %4746 = vmatpush1.bf16.msra.mxu1 %v8166_v30  ;;  %v3614_v7 = vmax.f32 %v3321_v62, 0.0  ;;  %v8183_v56 = vld [vmem:[#allocation2 + $0x4b4] ss:$8 sps:$4 sm:$0xff]  }
 0x3ef   : > { %v3615_v61 = vmax.f32 %v3323_v20, 0.0  ;;  %3587 = vmatmul.mubr.bf16.gmra.mrb[124].mxu0 %v3036_v44  ;;  %4747 = vmatprep.subr.bf16.mxu1 %v8171_v42 }
 0x3f0   : > { %v3616_v5 = vmax.f32 %v3325_v49, 0.0 }
 0x3f1   : > { %v3733_v28 = vpack.c.bf16 %v3615_v61, %v3613_v2 }
 0x3f2   : > { %v3328_v38 = vpop.f32.mrb[20].mxu0  ;;  %v3734_v3 = vpack.c.bf16 %v3616_v5, %v3614_v7  ;;  %4748 = vmatpush1.bf16.msra.mxu1 %v8169_v52 }
 0x3f3   : > { %v3329_v15 = vadd.f32 %v3328_v38, %v9385_v11  ;;  %v3330_v13 = vpop.f32.mrb[21].mxu0  ;;  %4749 = vmatprep.subr.bf16.mxu1 %v8174_v55 }
 0x3f4   : > { %v3331_v35 = vadd.f32 %v3330_v13, %v9389_v22  ;;  %v3332_v39 = vpop.f32.mrb[22].mxu0  ;;  %4067 = vmatprep.mubr.bf16.mxu1 %v3734_v3 }
 0x3f5   : > { %v3333_v46 = vadd.f32 %v3332_v39, %v9385_v11  ;;  %v3334_v21 = vpop.f32.mrb[23].mxu0  ;;  %4068 = vmatmul.mubr.bf16.gmra.mrb[144].mxu1 %v3733_v28  ;;  %v3617_v59 = vmax.f32 %v3329_v15, 0.0 }
 0x3f6   : > { %v3335_v43 = vadd.f32 %v3334_v21, %v9389_v22  ;;  %4750 = vmatpush1.bf16.msra.mxu1 %v8172_v8  ;;  %v3618_v57 = vmax.f32 %v3331_v35, 0.0 }
 0x3f7   : > { %v3619_v47 = vmax.f32 %v3333_v46, 0.0  ;;  %4751 = vmatprep.subr.bf16.mxu1 %v8177_v45 }
 0x3f8   : > { %v3620_v25 = vmax.f32 %v3335_v43, 0.0 }
 0x3f9   : > { %v3735_v36 = vpack.c.bf16 %v3619_v47, %v3617_v59 }
 0x3fa   : > { %v3338_v24 = vpop.f32.mrb[24].mxu0  ;;  %v3736_v40 = vpack.c.bf16 %v3620_v25, %v3618_v57  ;;  %4752 = vmatpush1.bf16.msra.mxu1 %v8175_v12 }
 0x3fb   : > { %v3339_v63 = vadd.f32 %v3338_v24, %v9385_v11  ;;  %v3340_v31 = vpop.f32.mrb[25].mxu0  ;;  %4753 = vmatprep.subr.bf16.mxu1 %v8180_v53  ;;  %v8184_v24 = vld [vmem:[#allocation2 + $0x4c0] ss:$8 sps:$4 sm:$0xff]  }
 0x3fc   : > { %v3341_v16 = vadd.f32 %v3340_v31, %v9389_v22  ;;  %v3342_v0 = vpop.f32.mrb[26].mxu0  ;;  %4077 = vmatprep.mubr.bf16.mxu1 %v3736_v40  ;;  %v8186_v40 = vld [vmem:[#allocation2 + $0x4c4] ss:$8 sps:$4 sm:$0xff]  }
 0x3fd   : > { %v3343_v32 = vadd.f32 %v3342_v0, %v9385_v11  ;;  %v3344_v14 = vpop.f32.mrb[27].mxu0  ;;  %4078 = vmatmul.mubr.bf16.gmra.mrb[148].mxu1 %v3735_v36  ;;  %v3621_v60 = vmax.f32 %v3339_v63, 0.0 }
 0x3fe   : > { %v3345_v54 = vadd.f32 %v3344_v14, %v9389_v22  ;;  %4754 = vmatpush1.bf16.msra.mxu1 %v8178_v41  ;;  %v3622_v9 = vmax.f32 %v3341_v16, 0.0 }
 0x3ff   : > { %v3623_v50 = vmax.f32 %v3343_v32, 0.0  ;;  %4755 = vmatprep.subr.bf16.mxu1 %v8183_v56  ;;  %v8187_v56 = vld [vmem:[#allocation2 + $0x4d0] ss:$8 sps:$4 sm:$0xff]  }
 0x400   : > { %v3624_v37 = vmax.f32 %v3345_v54, 0.0 }
 0x401   : > { %v3737_v26 = vpack.c.bf16 %v3623_v50, %v3621_v60 }
 0x402   : > { %v3348_v48 = vpop.f32.mrb[28].mxu0  ;;  %v3738_v17 = vpack.c.bf16 %v3624_v37, %v3622_v9  ;;  %4756 = vmatpush1.bf16.msra.mxu1 %v8181_v10 }
 0x403   : > { %v3349_v19 = vadd.f32 %v3348_v48, %v9385_v11  ;;  %v3350_v23 = vpop.f32.mrb[29].mxu0  ;;  %4757 = vmatprep.subr.bf16.mxu1 %v8186_v40 }
 0x404   : > { %v3351_v18 = vadd.f32 %v3350_v23, %v9389_v22  ;;  %v3352_v1 = vpop.f32.mrb[30].mxu0  ;;  %4087 = vmatprep.mubr.bf16.mxu1 %v3738_v17 }
 0x405   : > { %v3353_v58 = vadd.f32 %v3352_v1, %v9385_v11  ;;  %v3354_v51 = vpop.f32.mrb[31].mxu0  ;;  %4088 = vmatmul.mubr.bf16.gmra.mrb[152].mxu1 %v3737_v26  ;;  %v3625_v44 = vmax.f32 %v3349_v19, 0.0 }
 0x406   : > { %v3355_v30 = vadd.f32 %v3354_v51, %v9389_v22  ;;  %v3626_v33 = vmax.f32 %v3351_v18, 0.0  ;;  %4758 = vmatpush1.bf16.msra.mxu1 %v8184_v24 }
 0x407   : > { %v3627_v34 = vmax.f32 %v3353_v58, 0.0 }
 0x408   : > { %v3628_v42 = vmax.f32 %v3355_v30, 0.0 }
 0x409   : > { %v3739_v62 = vpack.c.bf16 %v3627_v34, %v3625_v44 }
 0x40a   : > { %v3358_v20 = vpop.f32.mrb[32].mxu0  ;;  %v3740_v29 = vpack.c.bf16 %v3628_v42, %v3626_v33 }
 0x40b   : > { %v3359_v49 = vadd.f32 %v3358_v20, %v9385_v11  ;;  %v3360_v52 = vpop.f32.mrb[33].mxu0  ;;  %v8189_v20 = vld [vmem:[#allocation2 + $0x4d4] ss:$8 sps:$4 sm:$0xff]  }
 0x40c   : > { %v3361_v2 = vadd.f32 %v3360_v52, %v9389_v22  ;;  %v3362_v61 = vpop.f32.mrb[34].mxu0  ;;  %4097 = vmatprep.mubr.bf16.mxu1 %v3740_v29  ;;  %4759 = vmatprep.subr.bf16.mxu1 %v8189_v20 }
 0x40d   : > { %v3363_v55 = vadd.f32 %v3362_v61, %v9385_v11  ;;  %v3364_v7 = vpop.f32.mrb[35].mxu0  ;;  %4098 = vmatmul.mubr.bf16.gmra.mrb[156].mxu1 %v3739_v62  ;;  %v3629_v28 = vmax.f32 %v3359_v49, 0.0 }
 0x40e   : > { %v3365_v5 = vadd.f32 %v3364_v7, %v9389_v22  ;;  %v3630_v3 = vmax.f32 %v3361_v2, 0.0  ;;  %4760 = vmatpush1.bf16.msra.mxu1 %v8187_v56 }
 0x40f   : > { %v3631_v38 = vmax.f32 %v3363_v55, 0.0 }
 0x410   : > { %v3632_v8 = vmax.f32 %v3365_v5, 0.0 }
 0x411   : > { %v3741_v15 = vpack.c.bf16 %v3631_v38, %v3629_v28 }
 0x412   : > { %v3368_v13 = vpop.f32.mrb[36].mxu0  ;;  %v3742_v45 = vpack.c.bf16 %v3632_v8, %v3630_v3 }
 0x413   : > { %v3369_v35 = vadd.f32 %v3368_v13, %v9385_v11  ;;  %v3370_v39 = vpop.f32.mrb[37].mxu0 }
 0x414   : > { %v3371_v46 = vadd.f32 %v3370_v39, %v9389_v22  ;;  %v3372_v21 = vpop.f32.mrb[38].mxu0  ;;  %4107 = vmatprep.mubr.bf16.mxu1 %v3742_v45 }
 0x415   : > { %v3373_v43 = vadd.f32 %v3372_v21, %v9385_v11  ;;  %v3374_v12 = vpop.f32.mrb[39].mxu0  ;;  %4108 = vmatmul.mubr.bf16.gmra.mrb[160].mxu1 %v3741_v15  ;;  %v3633_v47 = vmax.f32 %v3369_v35, 0.0 }
 0x416   : > { %v3375_v59 = vadd.f32 %v3374_v12, %v9389_v22  ;;  %v3634_v25 = vmax.f32 %v3371_v46, 0.0 }
 0x417   : > { %v3635_v57 = vmax.f32 %v3373_v43, 0.0 }
 0x418   : > { %v3636_v36 = vmax.f32 %v3375_v59, 0.0 }
 0x419   : > { %v3743_v53 = vpack.c.bf16 %v3635_v57, %v3633_v47  ;;  %v8190_v57 = vld [vmem:[#allocation2 + $0x500] ss:$8 sps:$4 sm:$0xff]  }
 0x41a   : > { %v3378_v41 = vpop.f32.mrb[40].mxu0  ;;  %v3744_v63 = vpack.c.bf16 %v3636_v36, %v3634_v25  ;;  %v8192_v25 = vld [vmem:[#allocation2 + $0x504] ss:$8 sps:$4 sm:$0xff]  }
 0x41b   : > { %v3379_v31 = vadd.f32 %v3378_v41, %v9385_v11  ;;  %v3380_v16 = vpop.f32.mrb[41].mxu0  ;;  %5625 = vmatprep.subr.bf16.mxu0 %v8192_v25 }
 0x41c   : > { %v3381_v0 = vadd.f32 %v3380_v16, %v9389_v22  ;;  %v3382_v32 = vpop.f32.mrb[42].mxu0  ;;  %4117 = vmatprep.mubr.bf16.mxu1 %v3744_v63  ;;  %5626 = vmatpush1.bf16.msra.mxu0 %v8190_v57  ;;  %v8193_v63 = vld [vmem:[#allocation2 + $0x4e0] ss:$8 sps:$4 sm:$0xff]  }
 0x41d   : > { %v3383_v14 = vadd.f32 %v3382_v32, %v9385_v11  ;;  %v3384_v54 = vpop.f32.mrb[43].mxu0  ;;  %4118 = vmatmul.mubr.bf16.gmra.mrb[164].mxu1 %v3743_v53  ;;  %v3637_v50 = vmax.f32 %v3379_v31, 0.0  ;;  %v8195_v31 = vld [vmem:[#allocation2 + $0x4e4] ss:$8 sps:$4 sm:$0xff]  }
 0x41e   : > { %v3385_v60 = vadd.f32 %v3384_v54, %v9389_v22  ;;  %v3638_v37 = vmax.f32 %v3381_v0, 0.0  ;;  %4761 = vmatprep.subr.bf16.mxu1 %v8195_v31 }
 0x41f   : > { %v3639_v9 = vmax.f32 %v3383_v14, 0.0  ;;  %4762 = vmatpush1.bf16.msra.mxu1 %v8193_v63 }
 0x420   : > { %v3640_v26 = vmax.f32 %v3385_v60, 0.0 }
 0x421   : > { %v3745_v48 = vpack.c.bf16 %v3639_v9, %v3637_v50 }
 0x422   : > { %v3388_v17 = vpop.f32.mrb[44].mxu0  ;;  %v3746_v19 = vpack.c.bf16 %v3640_v26, %v3638_v37 }
 0x423   : > { %v3389_v23 = vadd.f32 %v3388_v17, %v9385_v11  ;;  %v3390_v18 = vpop.f32.mrb[45].mxu0 }
 0x424   : > { %v3391_v1 = vadd.f32 %v3390_v18, %v9389_v22  ;;  %v3392_v58 = vpop.f32.mrb[46].mxu0  ;;  %4127 = vmatprep.mubr.bf16.mxu1 %v3746_v19 }
 0x425   : > { %v3393_v51 = vadd.f32 %v3392_v58, %v9385_v11  ;;  %v3394_v30 = vpop.f32.mrb[47].mxu0  ;;  %4128 = vmatmul.mubr.bf16.gmra.mrb[168].mxu1 %v3745_v48  ;;  %v3641_v34 = vmax.f32 %v3389_v23, 0.0 }
 0x426   : > { %v3395_v44 = vadd.f32 %v3394_v30, %v9389_v22  ;;  %v3642_v42 = vmax.f32 %v3391_v1, 0.0 }
 0x427   : > { %v3643_v33 = vmax.f32 %v3393_v51, 0.0 }
 0x428   : > { %v3644_v62 = vmax.f32 %v3395_v44, 0.0 }
 0x429   : > { %v3747_v10 = vpack.c.bf16 %v3643_v33, %v3641_v34 }
 0x42a   : > { %v3398_v29 = vpop.f32.mrb[48].mxu0  ;;  %v3748_v49 = vpack.c.bf16 %v3644_v62, %v3642_v42  ;;  %v8196_v62 = vld [vmem:[#allocation2 + $0x510] ss:$8 sps:$4 sm:$0xff]  }
 0x42b   : > { %v3399_v52 = vadd.f32 %v3398_v29, %v9385_v11  ;;  %v3400_v2 = vpop.f32.mrb[49].mxu0 }
 0x42c   : > { %v3401_v61 = vadd.f32 %v3400_v2, %v9389_v22  ;;  %v3402_v55 = vpop.f32.mrb[50].mxu0  ;;  %4137 = vmatprep.mubr.bf16.mxu1 %v3748_v49  ;;  %v8199_v2 = vld [vmem:[#allocation2 + $0x4f0] ss:$8 sps:$4 sm:$0xff]  }
 0x42d   : > { %v3403_v7 = vadd.f32 %v3402_v55, %v9385_v11  ;;  %v3404_v5 = vpop.f32.mrb[51].mxu0  ;;  %4138 = vmatmul.mubr.bf16.gmra.mrb[172].mxu1 %v3747_v10  ;;  %v3645_v38 = vmax.f32 %v3399_v52, 0.0  ;;  %v8198_v10 = vld [vmem:[#allocation2 + $0x514] ss:$8 sps:$4 sm:$0xff]  }
 0x42e   : > { %v3405_v28 = vadd.f32 %v3404_v5, %v9389_v22  ;;  %v3646_v8 = vmax.f32 %v3401_v61, 0.0  ;;  %5627 = vmatprep.subr.bf16.mxu0 %v8198_v10  ;;  %v8201_v61 = vld [vmem:[#allocation2 + $0x4f4] ss:$8 sps:$4 sm:$0xff]  }
 0x42f   : > { %v3647_v3 = vmax.f32 %v3403_v7, 0.0  ;;  %5628 = vmatpush1.bf16.msra.mxu0 %v8196_v62  ;;  %4763 = vmatprep.subr.bf16.mxu1 %v8201_v61 }
 0x430   : > { %v3648_v15 = vmax.f32 %v3405_v28, 0.0  ;;  %4764 = vmatpush1.bf16.msra.mxu1 %v8199_v2 }
 0x431   : > { %v3749_v13 = vpack.c.bf16 %v3647_v3, %v3645_v38  ;;  %7056 = vmatprep.subr.bf16.mxu1 %v8352_v4 }
 0x432   : > { %v3408_v45 = vpop.f32.mrb[52].mxu0  ;;  %v3750_v35 = vpack.c.bf16 %v3648_v15, %v3646_v8 }
 0x433   : > { %v3409_v39 = vadd.f32 %v3408_v45, %v9385_v11  ;;  %v3410_v46 = vpop.f32.mrb[53].mxu0 }
 0x434   : > { %v3411_v21 = vadd.f32 %v3410_v46, %v9389_v22  ;;  %v3412_v43 = vpop.f32.mrb[54].mxu0  ;;  %4147 = vmatprep.mubr.bf16.mxu1 %v3750_v35 }
 0x435   : > { %v3413_v12 = vadd.f32 %v3412_v43, %v9385_v11  ;;  %v3414_v59 = vpop.f32.mrb[55].mxu0  ;;  %4148 = vmatmul.mubr.bf16.gmra.mrb[176].mxu1 %v3749_v13  ;;  %v3649_v36 = vmax.f32 %v3409_v39, 0.0 }
 0x436   : > { %v3415_v47 = vadd.f32 %v3414_v59, %v9389_v22  ;;  %v3650_v24 = vmax.f32 %v3411_v21, 0.0 }
 0x437   : > { %v3651_v53 = vmax.f32 %v3413_v12, 0.0 }
 0x438   : > { %v3652_v40 = vmax.f32 %v3415_v47, 0.0 }
 0x439   : > { %v3751_v41 = vpack.c.bf16 %v3651_v53, %v3649_v36 }
 0x43a   : > { %v3418_v16 = vpop.f32.mrb[56].mxu0  ;;  %v3752_v0 = vpack.c.bf16 %v3652_v40, %v3650_v24  ;;  %v8202_v40 = vld [vmem:[#allocation2 + $0x520] ss:$8 sps:$4 sm:$0xff]  }
 0x43b   : > { %v3419_v32 = vadd.f32 %v3418_v16, %v9385_v11  ;;  %v3420_v14 = vpop.f32.mrb[57].mxu0 }
 0x43c   : > { %v3421_v54 = vadd.f32 %v3420_v14, %v9389_v22  ;;  %v3422_v60 = vpop.f32.mrb[58].mxu0  ;;  %4157 = vmatprep.mubr.bf16.mxu1 %v3752_v0 }
 0x43d   : > { %v3423_v50 = vadd.f32 %v3422_v60, %v9385_v11  ;;  %v3424_v9 = vpop.f32.mrb[59].mxu0  ;;  %4158 = vmatmul.mubr.bf16.gmra.mrb[180].mxu1 %v3751_v41  ;;  %v3653_v26 = vmax.f32 %v3419_v32, 0.0  ;;  %v8204_v41 = vld [vmem:[#allocation2 + $0x524] ss:$8 sps:$4 sm:$0xff]  }
 0x43e   : > { %v3425_v37 = vadd.f32 %v3424_v9, %v9389_v22  ;;  %v3654_v17 = vmax.f32 %v3421_v54, 0.0  ;;  %5629 = vmatprep.subr.bf16.mxu0 %v8204_v41  ;;  %v8208_v41 = vld [vmem:[#allocation2 + $0x540] ss:$8 sps:$4 sm:$0xff]  }
 0x43f   : > { %v3655_v48 = vmax.f32 %v3423_v50, 0.0  ;;  %5630 = vmatpush1.bf16.msra.mxu0 %v8202_v40 }
 0x440   : > { %v3656_v19 = vmax.f32 %v3425_v37, 0.0 }
 0x441   : > { %v3753_v23 = vpack.c.bf16 %v3655_v48, %v3653_v26 }
 0x442   : > { %v3428_v18 = vpop.f32.mrb[60].mxu0  ;;  %v3754_v1 = vpack.c.bf16 %v3656_v19, %v3654_v17 }
 0x443   : > { %v3429_v58 = vadd.f32 %v3428_v18, %v9385_v11  ;;  %v3430_v51 = vpop.f32.mrb[61].mxu0 }
 0x444   : > { %v3431_v30 = vadd.f32 %v3430_v51, %v9389_v22  ;;  %v3432_v44 = vpop.f32.mrb[62].mxu0  ;;  %4167 = vmatprep.mubr.bf16.mxu1 %v3754_v1 }
 0x445   : > { %v3433_v34 = vadd.f32 %v3432_v44, %v9385_v11  ;;  %v3434_v33 = vpop.f32.mrb[63].mxu0  ;;  %4168 = vmatmul.mubr.bf16.gmra.mrb[184].mxu1 %v3753_v23  ;;  %v3657_v56 = vmax.f32 %v3429_v58, 0.0 }
 0x446   : > { %v3435_v42 = vadd.f32 %v3434_v33, %v9389_v22  ;;  %v3658_v29 = vmax.f32 %v3431_v30, 0.0 }
 0x447   : > { %v3659_v20 = vmax.f32 %v3433_v34, 0.0 }
 0x448   : > { %v3660_v49 = vmax.f32 %v3435_v42, 0.0 }
 0x449   : > { %v3755_v52 = vpack.c.bf16 %v3659_v20, %v3657_v56  ;;  %v8205_v20 = vld [vmem:[#allocation2 + $0x530] ss:$8 sps:$4 sm:$0xff]  }
 0x44a   : > { %v3438_v55 = vpop.f32.mrb[64].mxu0  ;;  %v3756_v7 = vpack.c.bf16 %v3660_v49, %v3658_v29  ;;  %v8207_v29 = vld [vmem:[#allocation2 + $0x534] ss:$8 sps:$4 sm:$0xff]  }
 0x44b   : > { %v3439_v5 = vadd.f32 %v3438_v55, %v9385_v11  ;;  %v3440_v28 = vpop.f32.mrb[65].mxu0  ;;  %5631 = vmatprep.subr.bf16.mxu0 %v8207_v29  ;;  %v8211_v29 = vld [vmem:[#allocation2 + $0x550] ss:$8 sps:$4 sm:$0xff]  }
 0x44c   : > { %v3441_v38 = vadd.f32 %v3440_v28, %v9389_v22  ;;  %v3442_v3 = vpop.f32.mrb[66].mxu0  ;;  %4177 = vmatprep.mubr.bf16.mxu1 %v3756_v7  ;;  %5632 = vmatpush1.bf16.msra.mxu0 %v8205_v20 }
 0x44d   : > { %v3443_v8 = vadd.f32 %v3442_v3, %v9385_v11  ;;  %v3444_v15 = vpop.f32.mrb[67].mxu0  ;;  %4178 = vmatmul.mubr.bf16.gmra.mrb[188].mxu1 %v3755_v52  ;;  %v3661_v45 = vmax.f32 %v3439_v5, 0.0 }
 0x44e   : > { %v3445_v13 = vadd.f32 %v3444_v15, %v9389_v22  ;;  %v3662_v39 = vmax.f32 %v3441_v38, 0.0 }
 0x44f   : > { %v3663_v35 = vmax.f32 %v3443_v8, 0.0 }
 0x450   : > { %v3664_v46 = vmax.f32 %v3445_v13, 0.0 }
 0x451   : > { %v3757_v21 = vpack.c.bf16 %v3663_v35, %v3661_v45 }
 0x452   : > { %v3448_v43 = vpop.f32.mrb[68].mxu0  ;;  %v3758_v12 = vpack.c.bf16 %v3664_v46, %v3662_v39 }
 0x453   : > { %v3449_v59 = vadd.f32 %v3448_v43, %v9385_v11  ;;  %v3450_v47 = vpop.f32.mrb[69].mxu0 }
 0x454   : > { %v3451_v57 = vadd.f32 %v3450_v47, %v9389_v22  ;;  %v3452_v25 = vpop.f32.mrb[70].mxu0  ;;  %4187 = vmatprep.mubr.bf16.mxu1 %v3758_v12 }
 0x455   : > { %v3453_v36 = vadd.f32 %v3452_v25, %v9385_v11  ;;  %v3454_v53 = vpop.f32.mrb[71].mxu0  ;;  %4188 = vmatmul.mubr.bf16.gmra.mrb[192].mxu1 %v3757_v21  ;;  %v3665_v63 = vmax.f32 %v3449_v59, 0.0 }
 0x456   : > { %v3455_v24 = vadd.f32 %v3454_v53, %v9389_v22  ;;  %v3666_v16 = vmax.f32 %v3451_v57, 0.0 }
 0x457   : > { %v3667_v31 = vmax.f32 %v3453_v36, 0.0 }
 0x458   : > { %v3668_v0 = vmax.f32 %v3455_v24, 0.0 }
 0x459   : > { %v3759_v32 = vpack.c.bf16 %v3667_v31, %v3665_v63  ;;  %v8210_v63 = vld [vmem:[#allocation2 + $0x544] ss:$8 sps:$4 sm:$0xff]  }
 0x45a   : > { %v3458_v14 = vpop.f32.mrb[72].mxu0  ;;  %v3760_v54 = vpack.c.bf16 %v3668_v0, %v3666_v16  ;;  %5633 = vmatprep.subr.bf16.mxu0 %v8210_v63  ;;  %v8214_v63 = vld [vmem:[#allocation2 + $0x560] ss:$8 sps:$4 sm:$0xff]  }
 0x45b   : > { %v3459_v60 = vadd.f32 %v3458_v14, %v9385_v11  ;;  %v3460_v50 = vpop.f32.mrb[73].mxu0  ;;  %5634 = vmatpush1.bf16.msra.mxu0 %v8208_v41 }
 0x45c   : > { %v3461_v9 = vadd.f32 %v3460_v50, %v9389_v22  ;;  %v3462_v37 = vpop.f32.mrb[74].mxu0  ;;  %4197 = vmatprep.mubr.bf16.mxu1 %v3760_v54 }
 0x45d   : > { %v3463_v26 = vadd.f32 %v3462_v37, %v9385_v11  ;;  %v3464_v48 = vpop.f32.mrb[75].mxu0  ;;  %4198 = vmatmul.mubr.bf16.gmra.mrb[196].mxu1 %v3759_v32  ;;  %v3669_v19 = vmax.f32 %v3459_v60, 0.0 }
 0x45e   : > { %v3465_v17 = vadd.f32 %v3464_v48, %v9389_v22  ;;  %v3670_v18 = vmax.f32 %v3461_v9, 0.0 }
 0x45f   : > { %v3671_v23 = vmax.f32 %v3463_v26, 0.0 }
 0x460   : > { %v3672_v1 = vmax.f32 %v3465_v17, 0.0 }
 0x461   : > { %v3761_v58 = vpack.c.bf16 %v3671_v23, %v3669_v19 }
 0x462   : > { %v3468_v51 = vpop.f32.mrb[76].mxu0  ;;  %v3762_v30 = vpack.c.bf16 %v3672_v1, %v3670_v18 }
 0x463   : > { %v3469_v44 = vadd.f32 %v3468_v51, %v9385_v11  ;;  %v3470_v34 = vpop.f32.mrb[77].mxu0 }
 0x464   : > { %v3471_v33 = vadd.f32 %v3470_v34, %v9389_v22  ;;  %v3472_v42 = vpop.f32.mrb[78].mxu0  ;;  %4207 = vmatprep.mubr.bf16.mxu1 %v3762_v30 }
 0x465   : > { %v3473_v62 = vadd.f32 %v3472_v42, %v9385_v11  ;;  %v3474_v10 = vpop.f32.mrb[79].mxu0  ;;  %4208 = vmatmul.mubr.bf16.gmra.mrb[200].mxu1 %v3761_v58  ;;  %v3673_v49 = vmax.f32 %v3469_v44, 0.0 }
 0x466   : > { %v3475_v56 = vadd.f32 %v3474_v10, %v9389_v22  ;;  %v3674_v2 = vmax.f32 %v3471_v33, 0.0 }
 0x467   : > { %v3675_v52 = vmax.f32 %v3473_v62, 0.0 }
 0x468   : > { %v3676_v61 = vmax.f32 %v3475_v56, 0.0 }
 0x469   : > { %v3763_v55 = vpack.c.bf16 %v3675_v52, %v3673_v49  ;;  %v8213_v49 = vld [vmem:[#allocation2 + $0x554] ss:$8 sps:$4 sm:$0xff]  }
 0x46a   : > { %v3478_v7 = vpop.f32.mrb[80].mxu0  ;;  %v3764_v5 = vpack.c.bf16 %v3676_v61, %v3674_v2  ;;  %5635 = vmatprep.subr.bf16.mxu0 %v8213_v49 }
 0x46b   : > { %v3479_v28 = vadd.f32 %v3478_v7, %v9385_v11  ;;  %v3480_v38 = vpop.f32.mrb[81].mxu0  ;;  %5636 = vmatpush1.bf16.msra.mxu0 %v8211_v29 }
 0x46c   : > { %v3481_v3 = vadd.f32 %v3480_v38, %v9389_v22  ;;  %v3482_v8 = vpop.f32.mrb[82].mxu0  ;;  %4217 = vmatprep.mubr.bf16.mxu1 %v3764_v5 }
 0x46d   : > { %v3483_v15 = vadd.f32 %v3482_v8, %v9385_v11  ;;  %v3484_v13 = vpop.f32.mrb[83].mxu0  ;;  %4218 = vmatmul.mubr.bf16.gmra.mrb[204].mxu1 %v3763_v55  ;;  %v3677_v35 = vmax.f32 %v3479_v28, 0.0 }
 0x46e   : > { %v3485_v45 = vadd.f32 %v3484_v13, %v9389_v22  ;;  %v3678_v46 = vmax.f32 %v3481_v3, 0.0 }
 0x46f   : > { %v3679_v39 = vmax.f32 %v3483_v15, 0.0 }
 0x470   : > { %v3680_v21 = vmax.f32 %v3485_v45, 0.0 }
 0x471   : > { %v3765_v43 = vpack.c.bf16 %v3679_v39, %v3677_v35 }
 0x472   : > { %v3488_v12 = vpop.f32.mrb[84].mxu0  ;;  %v3766_v59 = vpack.c.bf16 %v3680_v21, %v3678_v46 }
 0x473   : > { %v3489_v47 = vadd.f32 %v3488_v12, %v9385_v11  ;;  %v3490_v57 = vpop.f32.mrb[85].mxu0 }
 0x474   : > { %v3491_v25 = vadd.f32 %v3490_v57, %v9389_v22  ;;  %v3492_v36 = vpop.f32.mrb[86].mxu0  ;;  %4227 = vmatprep.mubr.bf16.mxu1 %v3766_v59 }
 0x475   : > { %v3493_v53 = vadd.f32 %v3492_v36, %v9385_v11  ;;  %v3494_v24 = vpop.f32.mrb[87].mxu0  ;;  %4228 = vmatmul.mubr.bf16.gmra.mrb[208].mxu1 %v3765_v43  ;;  %v3681_v31 = vmax.f32 %v3489_v47, 0.0 }
 0x476   : > { %v3495_v40 = vadd.f32 %v3494_v24, %v9389_v22  ;;  %v3682_v0 = vmax.f32 %v3491_v25, 0.0 }
 0x477   : > { %v3683_v16 = vmax.f32 %v3493_v53, 0.0 }
 0x478   : > { %v3684_v32 = vmax.f32 %v3495_v40, 0.0 }
 0x479   : > { %v3767_v14 = vpack.c.bf16 %v3683_v16, %v3681_v31  ;;  %v8216_v31 = vld [vmem:[#allocation2 + $0x564] ss:$8 sps:$4 sm:$0xff]  }
 0x47a   : > { %v3498_v54 = vpop.f32.mrb[88].mxu0  ;;  %v3768_v60 = vpack.c.bf16 %v3684_v32, %v3682_v0  ;;  %5637 = vmatprep.subr.bf16.mxu0 %v8216_v31 }
 0x47b   : > { %v3499_v50 = vadd.f32 %v3498_v54, %v9385_v11  ;;  %v3500_v9 = vpop.f32.mrb[89].mxu0  ;;  %5638 = vmatpush1.bf16.msra.mxu0 %v8214_v63 }
 0x47c   : > { %v3501_v37 = vadd.f32 %v3500_v9, %v9389_v22  ;;  %v3502_v26 = vpop.f32.mrb[90].mxu0  ;;  %4237 = vmatprep.mubr.bf16.mxu1 %v3768_v60 }
 0x47d   : > { %v3503_v48 = vadd.f32 %v3502_v26, %v9385_v11  ;;  %v3504_v17 = vpop.f32.mrb[91].mxu0  ;;  %4238 = vmatmul.mubr.bf16.gmra.mrb[212].mxu1 %v3767_v14  ;;  %v3685_v23 = vmax.f32 %v3499_v50, 0.0 }
 0x47e   : > { %v3505_v19 = vadd.f32 %v3504_v17, %v9389_v22  ;;  %v3686_v1 = vmax.f32 %v3501_v37, 0.0 }
 0x47f   : > { %v3687_v18 = vmax.f32 %v3503_v48, 0.0 }
 0x480   : > { %v3688_v58 = vmax.f32 %v3505_v19, 0.0 }
 0x481   : > { %v3769_v51 = vpack.c.bf16 %v3687_v18, %v3685_v23 }
 0x482   : > { %v3508_v30 = vpop.f32.mrb[92].mxu0  ;;  %v3770_v44 = vpack.c.bf16 %v3688_v58, %v3686_v1 }
 0x483   : > { %v3509_v34 = vadd.f32 %v3508_v30, %v9385_v11  ;;  %v3510_v33 = vpop.f32.mrb[93].mxu0 }
 0x484   : > { %v3511_v42 = vadd.f32 %v3510_v33, %v9389_v22  ;;  %v3512_v62 = vpop.f32.mrb[94].mxu0  ;;  %4247 = vmatprep.mubr.bf16.mxu1 %v3770_v44  ;;  %v7652_v44 = vld [vmem:[%s10676_s3 + $0x4] ss:$8 sm:$0x3] }
 0x485   : > { %v3513_v10 = vadd.f32 %v3512_v62, %v9385_v11  ;;  %v3514_v56 = vpop.f32.mrb[95].mxu0  ;;  %4248 = vmatmul.mubr.bf16.gmra.mrb[216].mxu1 %v3769_v51  ;;  %v3689_v52 = vmax.f32 %v3509_v34, 0.0 }
 0x486   : > { %v3515_v20 = vadd.f32 %v3514_v56, %v9389_v22  ;;  %v3690_v61 = vmax.f32 %v3511_v42, 0.0 }
 0x487   : > { %v3691_v2 = vmax.f32 %v3513_v10, 0.0 }
 0x488   : > { %v3692_v55 = vmax.f32 %v3515_v20, 0.0  ;;  %v9523_v20 = vrot.slane %v7652_v44, %v8699_v27 }
 0x489   : > { %v3771_v7 = vpack.c.bf16 %v3691_v2, %v3689_v52  ;;  %v9527_v52 = vrot.slane %v7652_v44, %v8707_v6 }
 0x48a   : > { %v3518_v5 = vpop.f32.mrb[96].mxu0  ;;  %v3772_v28 = vpack.c.bf16 %v3692_v55, %v3690_v61  ;;  %v8217_v61 = vld [vmem:[#allocation2 + $0x570] ss:$8 sps:$4 sm:$0xff]   ;;  %v8219_v55 = vld [vmem:[#allocation2 + $0x574] ss:$8 sps:$4 sm:$0xff]  }
 0x48b   : > { %v3519_v38 = vadd.f32 %v3518_v5, %v9385_v11  ;;  %v3520_v3 = vpop.f32.mrb[97].mxu0  ;;  %5639 = vmatprep.subr.bf16.mxu0 %v8219_v55 }
 0x48c   : > { %v3521_v8 = vadd.f32 %v3520_v3, %v9389_v22  ;;  %v3522_v15 = vpop.f32.mrb[98].mxu0  ;;  %4257 = vmatprep.mubr.bf16.mxu1 %v3772_v28  ;;  %5640 = vmatpush1.bf16.msra.mxu0 %v8217_v61  ;;  %v8222_v61 = vld [vmem:[#allocation2 + $0x584] ss:$8 sps:$4 sm:$0xff]  }
 0x48d   : > { %v3523_v13 = vadd.f32 %v3522_v15, %v9385_v11  ;;  %v3524_v45 = vpop.f32.mrb[99].mxu0  ;;  %4258 = vmatmul.mubr.bf16.gmra.mrb[220].mxu1 %v3771_v7  ;;  %v3693_v39 = vmax.f32 %v3519_v38, 0.0  ;;  %5641 = vmatprep.subr.bf16.mxu0 %v8222_v61 }
 0x48e   : > { %v3525_v35 = vadd.f32 %v3524_v45, %v9389_v22  ;;  %v3694_v21 = vmax.f32 %v3521_v8, 0.0 }
 0x48f   : > { %v3695_v46 = vmax.f32 %v3523_v13, 0.0 }
 0x490   : > { %v3696_v43 = vmax.f32 %v3525_v35, 0.0 }
 0x491   : > { %v3773_v12 = vpack.c.bf16 %v3695_v46, %v3693_v39 }
 0x492   : > { %v3528_v59 = vpop.f32.mrb[100].mxu0  ;;  %v3774_v47 = vpack.c.bf16 %v3696_v43, %v3694_v21 }
 0x493   : > { %v3529_v57 = vadd.f32 %v3528_v59, %v9385_v11  ;;  %v3530_v25 = vpop.f32.mrb[101].mxu0 }
 0x494   : > { %v3531_v36 = vadd.f32 %v3530_v25, %v9389_v22  ;;  %v3532_v53 = vpop.f32.mrb[102].mxu0  ;;  %4267 = vmatprep.mubr.bf16.mxu1 %v3774_v47 }
 0x495   : > { %v3533_v24 = vadd.f32 %v3532_v53, %v9385_v11  ;;  %v3534_v40 = vpop.f32.mrb[103].mxu0  ;;  %4268 = vmatmul.mubr.bf16.gmra.mrb[224].mxu1 %v3773_v12  ;;  %v3697_v16 = vmax.f32 %v3529_v57, 0.0 }
 0x496   : > { %v3535_v41 = vadd.f32 %v3534_v40, %v9389_v22  ;;  %v3698_v32 = vmax.f32 %v3531_v36, 0.0 }
 0x497   : > { %v3699_v0 = vmax.f32 %v3533_v24, 0.0 }
 0x498   : > { %v3700_v14 = vmax.f32 %v3535_v41, 0.0 }
 0x499   : > { %v3775_v54 = vpack.c.bf16 %v3699_v0, %v3697_v16 }
 0x49a   : > { %v3538_v60 = vpop.f32.mrb[104].mxu0  ;;  %v3776_v50 = vpack.c.bf16 %v3700_v14, %v3698_v32 }
 0x49b   : > { %v3539_v9 = vadd.f32 %v3538_v60, %v9385_v11  ;;  %v3540_v37 = vpop.f32.mrb[105].mxu0 }
 0x49c   : > { %v3541_v26 = vadd.f32 %v3540_v37, %v9389_v22  ;;  %v3542_v48 = vpop.f32.mrb[106].mxu0  ;;  %4277 = vmatprep.mubr.bf16.mxu1 %v3776_v50 }
 0x49d   : > { %v3543_v17 = vadd.f32 %v3542_v48, %v9385_v11  ;;  %v3544_v19 = vpop.f32.mrb[107].mxu0  ;;  %4278 = vmatmul.mubr.bf16.gmra.mrb[228].mxu1 %v3775_v54  ;;  %v3701_v18 = vmax.f32 %v3539_v9, 0.0 }
 0x49e   : > { %v3545_v23 = vadd.f32 %v3544_v19, %v9389_v22  ;;  %v3702_v58 = vmax.f32 %v3541_v26, 0.0 }
 0x49f   : > { %v3703_v1 = vmax.f32 %v3543_v17, 0.0 }
 0x4a0   : > { %v3704_v51 = vmax.f32 %v3545_v23, 0.0 }
 0x4a1   : > { %v3777_v30 = vpack.c.bf16 %v3703_v1, %v3701_v18 }
 0x4a2   : > { %v3548_v34 = vpop.f32.mrb[108].mxu0  ;;  %v3778_v33 = vpack.c.bf16 %v3704_v51, %v3702_v58 }
 0x4a3   : > { %v3549_v42 = vadd.f32 %v3548_v34, %v9385_v11  ;;  %v3550_v62 = vpop.f32.mrb[109].mxu0 }
 0x4a4   : > { %v3551_v10 = vadd.f32 %v3550_v62, %v9389_v22  ;;  %v3552_v56 = vpop.f32.mrb[110].mxu0  ;;  %4287 = vmatprep.mubr.bf16.mxu1 %v3778_v33 }
 0x4a5   : > { %v3553_v29 = vadd.f32 %v3552_v56, %v9385_v11  ;;  %v3554_v49 = vpop.f32.mrb[111].mxu0  ;;  %4288 = vmatmul.mubr.bf16.gmra.mrb[232].mxu1 %v3777_v30  ;;  %v3705_v7 = vmax.f32 %v3549_v42, 0.0 }
 0x4a6   : > { %v3555_v2 = vadd.f32 %v3554_v49, %v9389_v22  ;;  %v3706_v28 = vmax.f32 %v3551_v10, 0.0 }
 0x4a7   : > { %v3707_v5 = vmax.f32 %v3553_v29, 0.0 }
 0x4a8   : > { %v3708_v38 = vmax.f32 %v3555_v2, 0.0  ;;  %v4029_v3 = vpop.f32.mrb[128].mxu1  ;;  %v8220_v2 = vld [vmem:[#allocation2 + $0x580] ss:$8 sps:$4 sm:$0xff]  }
 0x4a9   : > { %v3779_v8 = vpack.c.bf16 %v3707_v5, %v3705_v7  ;;  %v4030_v15 = vadd.f32 %v4029_v3, %v9523_v20  ;;  %v4031_v13 = vpop.f32.mrb[129].mxu1  ;;  %5642 = vmatpush1.bf16.msra.mxu0 %v8220_v2 }
 0x4aa   : > { %v4032_v45 = vadd.f32 %v4031_v13, %v9527_v52  ;;  %v3558_v35 = vpop.f32.mrb[112].mxu0  ;;  %v4033_v39 = vpop.f32.mrb[130].mxu1  ;;  %v3780_v46 = vpack.c.bf16 %v3708_v38, %v3706_v28 }
 0x4ab   : > { %v3559_v21 = vadd.f32 %v3558_v35, %v9385_v11  ;;  %v4034_v43 = vadd.f32 %v4033_v39, %v9523_v20  ;;  %v3560_v12 = vpop.f32.mrb[113].mxu0  ;;  %v4035_v59 = vpop.f32.mrb[131].mxu1  ;;  %v4348_v36 = vmax.f32 %v4030_v15, 0.0 }
 0x4ac   : > { %v3561_v47 = vadd.f32 %v3560_v12, %v9389_v22  ;;  %v4036_v57 = vadd.f32 %v4035_v59, %v9527_v52  ;;  %v3562_v25 = vpop.f32.mrb[114].mxu0  ;;  %4297 = vmatprep.mubr.bf16.mxu1 %v3780_v46  ;;  %v4349_v41 = vmax.f32 %v4032_v45, 0.0 }
 0x4ad   : > { %v4350_v53 = vmax.f32 %v4034_v43, 0.0  ;;  %v3563_v24 = vadd.f32 %v3562_v25, %v9385_v11  ;;  %v3564_v40 = vpop.f32.mrb[115].mxu0  ;;  %4298 = vmatmul.mubr.bf16.gmra.mrb[236].mxu1 %v3779_v8  ;;  %v3709_v16 = vmax.f32 %v3559_v21, 0.0 }
 0x4ae   : > { %v4351_v63 = vmax.f32 %v4036_v57, 0.0  ;;  %v3565_v31 = vadd.f32 %v3564_v40, %v9389_v22  ;;  %v3710_v14 = vmax.f32 %v3561_v47, 0.0 }
 0x4af   : > { %v9538_v0 = vpack.c.bf16 %v4350_v53, %v4348_v36  ;;  %v3711_v32 = vmax.f32 %v3563_v24, 0.0 }
 0x4b0   : > { %v3712_v54 = vmax.f32 %v3565_v31, 0.0  ;;  %v4039_v60 = vpop.f32.mrb[132].mxu1  ;;  %v9540_v50 = vpack.c.bf16 %v4351_v63, %v4349_v41 }
 0x4b1   : > { %v3781_v9 = vpack.c.bf16 %v3711_v32, %v3709_v16  ;;  %v4040_v37 = vadd.f32 %v4039_v60, %v9523_v20  ;;  %v4041_v26 = vpop.f32.mrb[133].mxu1 }
 0x4b2   : > { %v4042_v48 = vadd.f32 %v4041_v26, %v9527_v52  ;;  %v3568_v17 = vpop.f32.mrb[116].mxu0  ;;  %v4043_v19 = vpop.f32.mrb[134].mxu1  ;;  %v3782_v23 = vpack.c.bf16 %v3712_v54, %v3710_v14 }
 0x4b3   : > { %v3569_v18 = vadd.f32 %v3568_v17, %v9385_v11  ;;  %v4044_v1 = vadd.f32 %v4043_v19, %v9523_v20  ;;  %v3570_v58 = vpop.f32.mrb[117].mxu0  ;;  %v4045_v51 = vpop.f32.mrb[135].mxu1  ;;  %v4352_v33 = vmax.f32 %v4040_v37, 0.0 }
 0x4b4   : > { %v3571_v30 = vadd.f32 %v3570_v58, %v9389_v22  ;;  %v4046_v44 = vadd.f32 %v4045_v51, %v9527_v52  ;;  %v3572_v34 = vpop.f32.mrb[118].mxu0  ;;  %4307 = vmatprep.mubr.bf16.mxu1 %v3782_v23  ;;  %v4353_v56 = vmax.f32 %v4042_v48, 0.0 }
 0x4b5   : > { %v4354_v42 = vmax.f32 %v4044_v1, 0.0  ;;  %v3573_v62 = vadd.f32 %v3572_v34, %v9385_v11  ;;  %v3574_v10 = vpop.f32.mrb[119].mxu0  ;;  %4308 = vmatmul.mubr.bf16.gmra.mrb[240].mxu1 %v3781_v9  ;;  %v3713_v55 = vmax.f32 %v3569_v18, 0.0 }
 0x4b6   : > { %v4355_v29 = vmax.f32 %v4046_v44, 0.0  ;;  %v3575_v49 = vadd.f32 %v3574_v10, %v9389_v22  ;;  %v3714_v28 = vmax.f32 %v3571_v30, 0.0 }
 0x4b7   : > { %v3715_v7 = vmax.f32 %v3573_v62, 0.0  ;;  %v9550_v5 = vpack.c.bf16 %v4354_v42, %v4352_v33 }
 0x4b8   : > { %v3716_v38 = vmax.f32 %v3575_v49, 0.0  ;;  %v4049_v3 = vpop.f32.mrb[136].mxu1  ;;  %v9552_v8 = vpack.c.bf16 %v4355_v29, %v4353_v56 }
 0x4b9   : > { %v3783_v15 = vpack.c.bf16 %v3715_v7, %v3713_v55  ;;  %v4050_v13 = vadd.f32 %v4049_v3, %v9523_v20  ;;  %v4051_v45 = vpop.f32.mrb[137].mxu1  ;;  %v8223_v7 = vld [vmem:[#allocation2 + $0x590] ss:$8 sps:$4 sm:$0xff]  }
 0x4ba   : > { %v4052_v35 = vadd.f32 %v4051_v45, %v9527_v52  ;;  %v3578_v39 = vpop.f32.mrb[120].mxu0  ;;  %v4053_v46 = vpop.f32.mrb[138].mxu1  ;;  %v3784_v21 = vpack.c.bf16 %v3716_v38, %v3714_v28  ;;  %v8225_v28 = vld [vmem:[#allocation2 + $0x594] ss:$8 sps:$4 sm:$0xff]  }
 0x4bb   : > { %v3579_v43 = vadd.f32 %v3578_v39, %v9385_v11  ;;  %v4054_v12 = vadd.f32 %v4053_v46, %v9523_v20  ;;  %v3580_v59 = vpop.f32.mrb[121].mxu0  ;;  %v4055_v47 = vpop.f32.mrb[139].mxu1  ;;  %v4356_v53 = vmax.f32 %v4050_v13, 0.0  ;;  %5643 = vmatprep.subr.bf16.mxu0 %v8225_v28 }
 0x4bc   : > { %v3581_v57 = vadd.f32 %v3580_v59, %v9389_v22  ;;  %v4056_v25 = vadd.f32 %v4055_v47, %v9527_v52  ;;  %v3582_v36 = vpop.f32.mrb[122].mxu0  ;;  %4317 = vmatprep.mubr.bf16.mxu1 %v3784_v21  ;;  %v4357_v63 = vmax.f32 %v4052_v35, 0.0  ;;  %5644 = vmatpush1.bf16.msra.mxu0 %v8223_v7 }
 0x4bd   : > { %v4358_v24 = vmax.f32 %v4054_v12, 0.0  ;;  %v3583_v40 = vadd.f32 %v3582_v36, %v9385_v11  ;;  %v3584_v41 = vpop.f32.mrb[123].mxu0  ;;  %4318 = vmatmul.mubr.bf16.gmra.mrb[244].mxu1 %v3783_v15  ;;  %v3717_v32 = vmax.f32 %v3579_v43, 0.0 }
 0x4be   : > { %v4359_v31 = vmax.f32 %v4056_v25, 0.0  ;;  %v3585_v16 = vadd.f32 %v3584_v41, %v9389_v22  ;;  %v3718_v60 = vmax.f32 %v3581_v57, 0.0 }
 0x4bf   : > { %v3719_v14 = vmax.f32 %v3583_v40, 0.0  ;;  %v9562_v54 = vpack.c.bf16 %v4358_v24, %v4356_v53 }
 0x4c0   : > { %v3720_v9 = vmax.f32 %v3585_v16, 0.0  ;;  %v4059_v37 = vpop.f32.mrb[140].mxu1  ;;  %v9564_v26 = vpack.c.bf16 %v4359_v31, %v4357_v63 }
 0x4c1   : > { %v3785_v48 = vpack.c.bf16 %v3719_v14, %v3717_v32  ;;  %v4060_v17 = vadd.f32 %v4059_v37, %v9523_v20  ;;  %v4061_v19 = vpop.f32.mrb[141].mxu1 }
 0x4c2   : > { %v4062_v23 = vadd.f32 %v4061_v19, %v9527_v52  ;;  %v3588_v18 = vpop.f32.mrb[124].mxu0  ;;  %v4063_v1 = vpop.f32.mrb[142].mxu1  ;;  %v3786_v58 = vpack.c.bf16 %v3720_v9, %v3718_v60 }
 0x4c3   : > { %v3589_v51 = vadd.f32 %v3588_v18, %v9385_v11  ;;  %v4064_v30 = vadd.f32 %v4063_v1, %v9523_v20  ;;  %v3590_v44 = vpop.f32.mrb[125].mxu0  ;;  %v4065_v34 = vpop.f32.mrb[143].mxu1  ;;  %v4360_v10 = vmax.f32 %v4060_v17, 0.0  ;;  %v8228_v18 = vld [vmem:[#allocation2 + $0x5a4] ss:$8 sps:$4 sm:$0xff]  }
 0x4c4   : > { %v3591_v33 = vadd.f32 %v3590_v44, %v9389_v22  ;;  %v4066_v42 = vadd.f32 %v4065_v34, %v9527_v52  ;;  %v3592_v62 = vpop.f32.mrb[126].mxu0  ;;  %4327 = vmatprep.mubr.bf16.mxu1 %v3786_v58  ;;  %v4361_v2 = vmax.f32 %v4062_v23, 0.0  ;;  %v8226_v23 = vld [vmem:[#allocation2 + $0x5a0] ss:$8 sps:$4 sm:$0xff]   ;;  %5645 = vmatprep.subr.bf16.mxu0 %v8228_v18 }
 0x4c5   : > { %v4362_v56 = vmax.f32 %v4064_v30, 0.0  ;;  %v3593_v29 = vadd.f32 %v3592_v62, %v9385_v11  ;;  %v3594_v49 = vpop.f32.mrb[127].mxu0  ;;  %4328 = vmatmul.mubr.bf16.gmra.mrb[248].mxu1 %v3785_v48  ;;  %v3721_v38 = vmax.f32 %v3589_v51, 0.0  ;;  %5646 = vmatpush1.bf16.msra.mxu0 %v8226_v23 }
 0x4c6   : > { %v4363_v61 = vmax.f32 %v4066_v42, 0.0  ;;  %v3595_v55 = vadd.f32 %v3594_v49, %v9389_v22  ;;  %v3722_v13 = vmax.f32 %v3591_v33, 0.0 }
 0x4c7   : > { %v3723_v3 = vmax.f32 %v3593_v29, 0.0  ;;  %v9574_v15 = vpack.c.bf16 %v4362_v56, %v4360_v10 }
 0x4c8   : > { %v3724_v45 = vmax.f32 %v3595_v55, 0.0  ;;  %v4069_v35 = vpop.f32.mrb[144].mxu1  ;;  %v9576_v39 = vpack.c.bf16 %v4363_v61, %v4361_v2 }
 0x4c9   : > { %v3787_v46 = vpack.c.bf16 %v3723_v3, %v3721_v38  ;;  %v4070_v11 = vadd.f32 %v4069_v35, %v9523_v20  ;;  %v4071_v21 = vpop.f32.mrb[145].mxu1 }
 0x4ca   : > { %v4072_v43 = vadd.f32 %v4071_v21, %v9527_v52  ;;  %v4073_v22 = vpop.f32.mrb[146].mxu1  ;;  %v3788_v12 = vpack.c.bf16 %v3724_v45, %v3722_v13  ;;  %v8231_v21 = vld [vmem:[#allocation2 + $0x5b4] ss:$8 sps:$4 sm:$0xff]  }
 0x4cb   : > { %v4074_v59 = vadd.f32 %v4073_v22, %v9523_v20  ;;  %v4075_v47 = vpop.f32.mrb[147].mxu1  ;;  %v4364_v25 = vmax.f32 %v4070_v11, 0.0  ;;  %v8229_v11 = vld [vmem:[#allocation2 + $0x5b0] ss:$8 sps:$4 sm:$0xff]   ;;  %5647 = vmatprep.subr.bf16.mxu0 %v8231_v21 }
 0x4cc   : > { %v4076_v57 = vadd.f32 %v4075_v47, %v9527_v52  ;;  %4337 = vmatprep.mubr.bf16.mxu1 %v3788_v12  ;;  %v4365_v53 = vmax.f32 %v4072_v43, 0.0  ;;  %5648 = vmatpush1.bf16.msra.mxu0 %v8229_v11 }
 0x4cd   : > { %v4366_v36 = vmax.f32 %v4074_v59, 0.0  ;;  %4338 = vmatmul.mubr.bf16.gmra.mrb[252].mxu1 %v3787_v46 }
 0x4ce   : > { %v4367_v24 = vmax.f32 %v4076_v57, 0.0  ;;  %4765 = vmatprep.mubr.bf16.mxu1 %v9540_v50 }
 0x4cf   : > { %v9583_v40 = vpack.c.bf16 %v4366_v36, %v4364_v25 }
 0x4d0   : > { %v4079_v41 = vpop.f32.mrb[148].mxu1  ;;  %v9585_v63 = vpack.c.bf16 %v4367_v24, %v4365_v53 }
 0x4d1   : > { %v4080_v31 = vadd.f32 %v4079_v41, %v9523_v20  ;;  %v4081_v16 = vpop.f32.mrb[149].mxu1 }
 0x4d2   : > { %v4082_v32 = vadd.f32 %v4081_v16, %v9527_v52  ;;  %v4083_v14 = vpop.f32.mrb[150].mxu1 }
 0x4d3   : > { %v4084_v60 = vadd.f32 %v4083_v14, %v9523_v20  ;;  %v4085_v9 = vpop.f32.mrb[151].mxu1  ;;  %v4368_v48 = vmax.f32 %v4080_v31, 0.0 }
 0x4d4   : > { %v4086_v37 = vadd.f32 %v4085_v9, %v9527_v52  ;;  %v4369_v50 = vmax.f32 %v4082_v32, 0.0 }
 0x4d5   : > { %v4370_v17 = vmax.f32 %v4084_v60, 0.0  ;;  %4766 = vmatmul.mubr.bf16.vlgmr.msra.gmra.mrb[0].mxu1 %v9538_v0 }
 0x4d6   : > { %v4371_v19 = vmax.f32 %v4086_v37, 0.0  ;;  %4775 = vmatprep.mubr.bf16.mxu1 %v9552_v8 }
 0x4d7   : > { %v9593_v1 = vpack.c.bf16 %v4370_v17, %v4368_v48 }
 0x4d8   : > { %v4089_v58 = vpop.f32.mrb[152].mxu1  ;;  %v9595_v51 = vpack.c.bf16 %v4371_v19, %v4369_v50 }
 0x4d9   : > { %v4090_v30 = vadd.f32 %v4089_v58, %v9523_v20  ;;  %v4091_v44 = vpop.f32.mrb[153].mxu1  ;;  %v8232_v58 = vld [vmem:[#allocation2 + $0x5c0] ss:$8 sps:$4 sm:$0xff]  }
 0x4da   : > { %v4092_v34 = vadd.f32 %v4091_v44, %v9527_v52  ;;  %v4093_v33 = vpop.f32.mrb[154].mxu1 }
 0x4db   : > { %v4094_v0 = vadd.f32 %v4093_v33, %v9523_v20  ;;  %v4095_v42 = vpop.f32.mrb[155].mxu1  ;;  %v4372_v62 = vmax.f32 %v4090_v30, 0.0  ;;  %v8234_v30 = vld [vmem:[#allocation2 + $0x5c4] ss:$8 sps:$4 sm:$0xff]  }
 0x4dc   : > { %v4096_v8 = vadd.f32 %v4095_v42, %v9527_v52  ;;  %v4373_v56 = vmax.f32 %v4092_v34, 0.0  ;;  %5649 = vmatprep.subr.bf16.mxu0 %v8234_v30 }
 0x4dd   : > { %v4374_v10 = vmax.f32 %v4094_v0, 0.0  ;;  %4776 = vmatmul.mubr.bf16.gmra.mrb[4].mxu1 %v9550_v5  ;;  %5650 = vmatpush1.bf16.msra.mxu0 %v8232_v58 }
 0x4de   : > { %v4375_v29 = vmax.f32 %v4096_v8, 0.0  ;;  %4785 = vmatprep.mubr.bf16.mxu1 %v9564_v26 }
 0x4df   : > { %v9603_v49 = vpack.c.bf16 %v4374_v10, %v4372_v62 }
 0x4e0   : > { %v4099_v2 = vpop.f32.mrb[156].mxu1  ;;  %v9605_v61 = vpack.c.bf16 %v4375_v29, %v4373_v56 }
 0x4e1   : > { %v4100_v55 = vadd.f32 %v4099_v2, %v9523_v20  ;;  %v4101_v7 = vpop.f32.mrb[157].mxu1 }
 0x4e2   : > { %v4102_v28 = vadd.f32 %v4101_v7, %v9527_v52  ;;  %v4103_v38 = vpop.f32.mrb[158].mxu1 }
 0x4e3   : > { %v4104_v3 = vadd.f32 %v4103_v38, %v9523_v20  ;;  %v4105_v13 = vpop.f32.mrb[159].mxu1  ;;  %v4376_v45 = vmax.f32 %v4100_v55, 0.0 }
 0x4e4   : > { %v4106_v5 = vadd.f32 %v4105_v13, %v9527_v52  ;;  %v4377_v26 = vmax.f32 %v4102_v28, 0.0 }
 0x4e5   : > { %v4378_v35 = vmax.f32 %v4104_v3, 0.0  ;;  %4786 = vmatmul.mubr.bf16.gmra.mrb[8].mxu1 %v9562_v54 }
 0x4e6   : > { %v4379_v46 = vmax.f32 %v4106_v5, 0.0  ;;  %4795 = vmatprep.mubr.bf16.mxu1 %v9576_v39 }
 0x4e7   : > { %v9613_v43 = vpack.c.bf16 %v4378_v35, %v4376_v45 }
 0x4e8   : > { %v4109_v22 = vpop.f32.mrb[160].mxu1  ;;  %v9615_v12 = vpack.c.bf16 %v4379_v46, %v4377_v26 }
 0x4e9   : > { %v4110_v59 = vadd.f32 %v4109_v22, %v9523_v20  ;;  %v4111_v47 = vpop.f32.mrb[161].mxu1  ;;  %v8235_v22 = vld [vmem:[#allocation2 + $0x5d0] ss:$8 sps:$4 sm:$0xff]  }
 0x4ea   : > { %v4112_v57 = vadd.f32 %v4111_v47, %v9527_v52  ;;  %v4113_v25 = vpop.f32.mrb[162].mxu1 }
 0x4eb   : > { %v4114_v54 = vadd.f32 %v4113_v25, %v9523_v20  ;;  %v4115_v36 = vpop.f32.mrb[163].mxu1  ;;  %v4380_v53 = vmax.f32 %v4110_v59, 0.0  ;;  %v8237_v59 = vld [vmem:[#allocation2 + $0x5d4] ss:$8 sps:$4 sm:$0xff]  }
 0x4ec   : > { %v4116_v39 = vadd.f32 %v4115_v36, %v9527_v52  ;;  %v4381_v41 = vmax.f32 %v4112_v57, 0.0  ;;  %5651 = vmatprep.subr.bf16.mxu0 %v8237_v59 }
 0x4ed   : > { %v4382_v24 = vmax.f32 %v4114_v54, 0.0  ;;  %4796 = vmatmul.mubr.bf16.gmra.mrb[12].mxu1 %v9574_v15  ;;  %5652 = vmatpush1.bf16.msra.mxu0 %v8235_v22 }
 0x4ee   : > { %v4383_v31 = vmax.f32 %v4116_v39, 0.0  ;;  %4805 = vmatprep.mubr.bf16.mxu1 %v9585_v63 }
 0x4ef   : > { %v9623_v16 = vpack.c.bf16 %v4382_v24, %v4380_v53 }
 0x4f0   : > { %v4119_v32 = vpop.f32.mrb[164].mxu1  ;;  %v9625_v14 = vpack.c.bf16 %v4383_v31, %v4381_v41 }
 0x4f1   : > { %v4120_v60 = vadd.f32 %v4119_v32, %v9523_v20  ;;  %v4121_v9 = vpop.f32.mrb[165].mxu1 }
 0x4f2   : > { %v4122_v37 = vadd.f32 %v4121_v9, %v9527_v52  ;;  %v4123_v48 = vpop.f32.mrb[166].mxu1 }
 0x4f3   : > { %v4124_v17 = vadd.f32 %v4123_v48, %v9523_v20  ;;  %v4125_v50 = vpop.f32.mrb[167].mxu1  ;;  %v4384_v19 = vmax.f32 %v4120_v60, 0.0 }
 0x4f4   : > { %v4126_v15 = vadd.f32 %v4125_v50, %v9527_v52  ;;  %v4385_v63 = vmax.f32 %v4122_v37, 0.0 }
 0x4f5   : > { %v4386_v23 = vmax.f32 %v4124_v17, 0.0  ;;  %4806 = vmatmul.mubr.bf16.gmra.mrb[16].mxu1 %v9583_v40 }
 0x4f6   : > { %v4387_v18 = vmax.f32 %v4126_v15, 0.0  ;;  %4815 = vmatprep.mubr.bf16.mxu1 %v9595_v51 }
 0x4f7   : > { %v9633_v44 = vpack.c.bf16 %v4386_v23, %v4384_v19 }
 0x4f8   : > { %v4129_v34 = vpop.f32.mrb[168].mxu1  ;;  %v9635_v33 = vpack.c.bf16 %v4387_v18, %v4385_v63 }
 0x4f9   : > { %v4130_v0 = vadd.f32 %v4129_v34, %v9523_v20  ;;  %v4131_v42 = vpop.f32.mrb[169].mxu1  ;;  %v8238_v34 = vld [vmem:[#allocation2 + $0x5e0] ss:$8 sps:$4 sm:$0xff]  }
 0x4fa   : > { %v4132_v8 = vadd.f32 %v4131_v42, %v9527_v52  ;;  %v4133_v62 = vpop.f32.mrb[170].mxu1 }
 0x4fb   : > { %v4134_v40 = vadd.f32 %v4133_v62, %v9523_v20  ;;  %v4135_v10 = vpop.f32.mrb[171].mxu1  ;;  %v4388_v56 = vmax.f32 %v4130_v0, 0.0  ;;  %v8240_v0 = vld [vmem:[#allocation2 + $0x5e4] ss:$8 sps:$4 sm:$0xff]  }
 0x4fc   : > { %v4136_v51 = vadd.f32 %v4135_v10, %v9527_v52  ;;  %v4389_v2 = vmax.f32 %v4132_v8, 0.0  ;;  %5653 = vmatprep.subr.bf16.mxu0 %v8240_v0 }
 0x4fd   : > { %v4390_v29 = vmax.f32 %v4134_v40, 0.0  ;;  %4816 = vmatmul.mubr.bf16.gmra.mrb[20].mxu1 %v9593_v1  ;;  %5654 = vmatpush1.bf16.msra.mxu0 %v8238_v34 }
 0x4fe   : > { %v4391_v55 = vmax.f32 %v4136_v51, 0.0  ;;  %4825 = vmatprep.mubr.bf16.mxu1 %v9605_v61 }
 0x4ff   : > { %v9643_v7 = vpack.c.bf16 %v4390_v29, %v4388_v56 }
 0x500   : > { %v4139_v28 = vpop.f32.mrb[172].mxu1  ;;  %v9645_v38 = vpack.c.bf16 %v4391_v55, %v4389_v2 }
 0x501   : > { %v4140_v3 = vadd.f32 %v4139_v28, %v9523_v20  ;;  %v4141_v13 = vpop.f32.mrb[173].mxu1 }
 0x502   : > { %v4142_v5 = vadd.f32 %v4141_v13, %v9527_v52  ;;  %v4143_v45 = vpop.f32.mrb[174].mxu1 }
 0x503   : > { %v4144_v35 = vadd.f32 %v4143_v45, %v9523_v20  ;;  %v4145_v26 = vpop.f32.mrb[175].mxu1  ;;  %v4392_v46 = vmax.f32 %v4140_v3, 0.0 }
 0x504   : > { %v4146_v1 = vadd.f32 %v4145_v26, %v9527_v52  ;;  %v4393_v61 = vmax.f32 %v4142_v5, 0.0 }
 0x505   : > { %v4394_v11 = vmax.f32 %v4144_v35, 0.0  ;;  %4826 = vmatmul.mubr.bf16.gmra.mrb[24].mxu1 %v9603_v49 }
 0x506   : > { %v4395_v21 = vmax.f32 %v4146_v1, 0.0  ;;  %4835 = vmatprep.mubr.bf16.mxu1 %v9615_v12 }
 0x507   : > { %v9653_v47 = vpack.c.bf16 %v4394_v11, %v4392_v46 }
 0x508   : > { %v4149_v57 = vpop.f32.mrb[176].mxu1  ;;  %v9655_v25 = vpack.c.bf16 %v4395_v21, %v4393_v61 }
 0x509   : > { %v4150_v54 = vadd.f32 %v4149_v57, %v9523_v20  ;;  %v4151_v36 = vpop.f32.mrb[177].mxu1  ;;  %v8241_v57 = vld [vmem:[#allocation2 + $0x5f0] ss:$8 sps:$4 sm:$0xff]  }
 0x50a   : > { %v4152_v39 = vadd.f32 %v4151_v36, %v9527_v52  ;;  %v4153_v53 = vpop.f32.mrb[178].mxu1 }
 0x50b   : > { %v4154_v49 = vadd.f32 %v4153_v53, %v9523_v20  ;;  %v4155_v24 = vpop.f32.mrb[179].mxu1  ;;  %v4396_v41 = vmax.f32 %v4150_v54, 0.0  ;;  %v8243_v54 = vld [vmem:[#allocation2 + $0x5f4] ss:$8 sps:$4 sm:$0xff]  }
 0x50c   : > { %v4156_v12 = vadd.f32 %v4155_v24, %v9527_v52  ;;  %v4397_v32 = vmax.f32 %v4152_v39, 0.0  ;;  %5655 = vmatprep.subr.bf16.mxu0 %v8243_v54 }
 0x50d   : > { %v4398_v31 = vmax.f32 %v4154_v49, 0.0  ;;  %4836 = vmatmul.mubr.bf16.gmra.mrb[28].mxu1 %v9613_v43  ;;  %5656 = vmatpush1.bf16.msra.mxu0 %v8241_v57 }
 0x50e   : > { %v4399_v60 = vmax.f32 %v4156_v12, 0.0  ;;  %4845 = vmatprep.mubr.bf16.mxu1 %v9625_v14 }
 0x50f   : > { %v9663_v9 = vpack.c.bf16 %v4398_v31, %v4396_v41 }
 0x510   : > { %v4159_v37 = vpop.f32.mrb[180].mxu1  ;;  %v9665_v48 = vpack.c.bf16 %v4399_v60, %v4397_v32 }
 0x511   : > { %v4160_v17 = vadd.f32 %v4159_v37, %v9523_v20  ;;  %v4161_v50 = vpop.f32.mrb[181].mxu1 }
 0x512   : > { %v4162_v15 = vadd.f32 %v4161_v50, %v9527_v52  ;;  %v4163_v19 = vpop.f32.mrb[182].mxu1 }
 0x513   : > { %v4164_v23 = vadd.f32 %v4163_v19, %v9523_v20  ;;  %v4165_v63 = vpop.f32.mrb[183].mxu1  ;;  %v4400_v18 = vmax.f32 %v4160_v17, 0.0 }
 0x514   : > { %v4166_v43 = vadd.f32 %v4165_v63, %v9527_v52  ;;  %v4401_v14 = vmax.f32 %v4162_v15, 0.0 }
 0x515   : > { %v4402_v58 = vmax.f32 %v4164_v23, 0.0  ;;  %4846 = vmatmul.mubr.bf16.gmra.mrb[32].mxu1 %v9623_v16 }
 0x516   : > { %v4403_v30 = vmax.f32 %v4166_v43, 0.0  ;;  %4855 = vmatprep.mubr.bf16.mxu1 %v9635_v33 }
 0x517   : > { %v9673_v42 = vpack.c.bf16 %v4402_v58, %v4400_v18 }
 0x518   : > { %v4169_v8 = vpop.f32.mrb[184].mxu1  ;;  %v9675_v62 = vpack.c.bf16 %v4403_v30, %v4401_v14 }
 0x519   : > { %v4170_v40 = vadd.f32 %v4169_v8, %v9523_v20  ;;  %v4171_v10 = vpop.f32.mrb[185].mxu1 }
 0x51a   : > { %v4172_v51 = vadd.f32 %v4171_v10, %v9527_v52  ;;  %v4173_v56 = vpop.f32.mrb[186].mxu1 }
 0x51b   : > { %v4174_v16 = vadd.f32 %v4173_v56, %v9523_v20  ;;  %v4175_v29 = vpop.f32.mrb[187].mxu1  ;;  %v4404_v2 = vmax.f32 %v4170_v40, 0.0 }
 0x51c   : > { %v4176_v33 = vadd.f32 %v4175_v29, %v9527_v52  ;;  %v4405_v28 = vmax.f32 %v4172_v51, 0.0  ;;  %v8246_v51 = vld [vmem:[#allocation2 + $0x604] ss:$8 sps:$4 sm:$0xff]  }
 0x51d   : > { %v4406_v55 = vmax.f32 %v4174_v16, 0.0  ;;  %4856 = vmatmul.mubr.bf16.gmra.mrb[36].mxu1 %v9633_v44  ;;  %6376 = vmatprep.subr.bf16.mxu0 %v8246_v51 }
 0x51e   : > { %v4407_v3 = vmax.f32 %v4176_v33, 0.0  ;;  %4865 = vmatprep.mubr.bf16.mxu1 %v9645_v38 }
 0x51f   : > { %v9683_v13 = vpack.c.bf16 %v4406_v55, %v4404_v2 }
 0x520   : > { %v4179_v5 = vpop.f32.mrb[188].mxu1  ;;  %v9685_v45 = vpack.c.bf16 %v4407_v3, %v4405_v28 }
 0x521   : > { %v4180_v35 = vadd.f32 %v4179_v5, %v9523_v20  ;;  %v4181_v26 = vpop.f32.mrb[189].mxu1 }
 0x522   : > { %v4182_v1 = vadd.f32 %v4181_v26, %v9527_v52  ;;  %v4183_v46 = vpop.f32.mrb[190].mxu1 }
 0x523   : > { %v4184_v11 = vadd.f32 %v4183_v46, %v9523_v20  ;;  %v4185_v61 = vpop.f32.mrb[191].mxu1  ;;  %v4408_v21 = vmax.f32 %v4180_v35, 0.0 }
 0x524   : > { %v4186_v44 = vadd.f32 %v4185_v61, %v9527_v52  ;;  %v4409_v38 = vmax.f32 %v4182_v1, 0.0 }
 0x525   : > { %v4410_v22 = vmax.f32 %v4184_v11, 0.0  ;;  %4866 = vmatmul.mubr.bf16.gmra.mrb[40].mxu1 %v9643_v7 }
 0x526   : > { %v4411_v59 = vmax.f32 %v4186_v44, 0.0  ;;  %4875 = vmatprep.mubr.bf16.mxu1 %v9655_v25 }
 0x527   : > { %v9693_v36 = vpack.c.bf16 %v4410_v22, %v4408_v21 }
 0x528   : > { %v4189_v39 = vpop.f32.mrb[192].mxu1  ;;  %v9695_v53 = vpack.c.bf16 %v4411_v59, %v4409_v38 }
 0x529   : > { %v4190_v49 = vadd.f32 %v4189_v39, %v9523_v20  ;;  %v4191_v24 = vpop.f32.mrb[193].mxu1 }
 0x52a   : > { %v4192_v12 = vadd.f32 %v4191_v24, %v9527_v52  ;;  %v4193_v41 = vpop.f32.mrb[194].mxu1 }
 0x52b   : > { %v4194_v7 = vadd.f32 %v4193_v41, %v9523_v20  ;;  %v4195_v31 = vpop.f32.mrb[195].mxu1  ;;  %v4412_v32 = vmax.f32 %v4190_v49, 0.0 }
 0x52c   : > { %v4196_v25 = vadd.f32 %v4195_v31, %v9527_v52  ;;  %v4413_v37 = vmax.f32 %v4192_v12, 0.0 }
 0x52d   : > { %v4414_v60 = vmax.f32 %v4194_v7, 0.0  ;;  %4876 = vmatmul.mubr.bf16.gmra.mrb[44].mxu1 %v9653_v47 }
 0x52e   : > { %v4415_v17 = vmax.f32 %v4196_v25, 0.0  ;;  %4885 = vmatprep.mubr.bf16.mxu1 %v9665_v48 }
 0x52f   : > { %v9703_v50 = vpack.c.bf16 %v4414_v60, %v4412_v32 }
 0x530   : > { %v4199_v15 = vpop.f32.mrb[196].mxu1  ;;  %v4509_v19 = vpack.c.bf16 %v4415_v17, %v4413_v37 }
 0x531   : > { %v4200_v23 = vadd.f32 %v4199_v15, %v9523_v20  ;;  %v4201_v63 = vpop.f32.mrb[197].mxu1 }
 0x532   : > { %v4202_v43 = vadd.f32 %v4201_v63, %v9527_v52  ;;  %v4203_v18 = vpop.f32.mrb[198].mxu1 }
 0x533   : > { %v4204_v58 = vadd.f32 %v4203_v18, %v9523_v20  ;;  %v4205_v14 = vpop.f32.mrb[199].mxu1  ;;  %v4416_v47 = vmax.f32 %v4200_v23, 0.0 }
 0x534   : > { %v4206_v30 = vadd.f32 %v4205_v14, %v9527_v52  ;;  %v4417_v48 = vmax.f32 %v4202_v43, 0.0 }
 0x535   : > { %v4418_v34 = vmax.f32 %v4204_v58, 0.0  ;;  %4886 = vmatmul.mubr.bf16.gmra.mrb[48].mxu1 %v9663_v9 }
 0x536   : > { %v4419_v0 = vmax.f32 %v4206_v30, 0.0  ;;  %4895 = vmatprep.mubr.bf16.mxu1 %v9675_v62 }
 0x537   : > { %v9711_v8 = vpack.c.bf16 %v4418_v34, %v4416_v47 }
 0x538   : > { %v4209_v40 = vpop.f32.mrb[200].mxu1  ;;  %v4511_v10 = vpack.c.bf16 %v4419_v0, %v4417_v48 }
 0x539   : > { %v4210_v56 = vadd.f32 %v4209_v40, %v9523_v20  ;;  %v4211_v16 = vpop.f32.mrb[201].mxu1 }
 0x53a   : > { %v4212_v29 = vadd.f32 %v4211_v16, %v9527_v52  ;;  %v4213_v33 = vpop.f32.mrb[202].mxu1 }
 0x53b   : > { %v4214_v2 = vadd.f32 %v4213_v33, %v9523_v20  ;;  %v4215_v55 = vpop.f32.mrb[203].mxu1  ;;  %v4420_v28 = vmax.f32 %v4210_v56, 0.0 }
 0x53c   : > { %v4216_v9 = vadd.f32 %v4215_v55, %v9527_v52  ;;  %v4421_v62 = vmax.f32 %v4212_v29, 0.0 }
 0x53d   : > { %v4422_v3 = vmax.f32 %v4214_v2, 0.0  ;;  %4896 = vmatmul.mubr.bf16.gmra.mrb[52].mxu1 %v9673_v42 }
 0x53e   : > { %v4423_v5 = vmax.f32 %v4216_v9, 0.0  ;;  %4905 = vmatprep.mubr.bf16.mxu1 %v9685_v45 }
 0x53f   : > { %v9719_v35 = vpack.c.bf16 %v4422_v3, %v4420_v28 }
 0x540   : > { %v4219_v26 = vpop.f32.mrb[204].mxu1  ;;  %v4513_v1 = vpack.c.bf16 %v4423_v5, %v4421_v62 }
 0x541   : > { %v4220_v46 = vadd.f32 %v4219_v26, %v9523_v20  ;;  %v4221_v11 = vpop.f32.mrb[205].mxu1 }
 0x542   : > { %v4222_v61 = vadd.f32 %v4221_v11, %v9527_v52  ;;  %v4223_v44 = vpop.f32.mrb[206].mxu1 }
 0x543   : > { %v4224_v21 = vadd.f32 %v4223_v44, %v9523_v20  ;;  %v4225_v22 = vpop.f32.mrb[207].mxu1  ;;  %v4424_v42 = vmax.f32 %v4220_v46, 0.0 }
 0x544   : > { %v4226_v38 = vadd.f32 %v4225_v22, %v9527_v52  ;;  %v4425_v45 = vmax.f32 %v4222_v61, 0.0 }
 0x545   : > { %v4426_v59 = vmax.f32 %v4224_v21, 0.0  ;;  %4906 = vmatmul.mubr.bf16.gmra.mrb[56].mxu1 %v9683_v13 }
 0x546   : > { %v4427_v57 = vmax.f32 %v4226_v38, 0.0  ;;  %4915 = vmatprep.mubr.bf16.mxu1 %v9695_v53 }
 0x547   : > { %v9727_v54 = vpack.c.bf16 %v4426_v59, %v4424_v42 }
 0x548   : > { %v4229_v39 = vpop.f32.mrb[208].mxu1  ;;  %v4515_v49 = vpack.c.bf16 %v4427_v57, %v4425_v45 }
 0x549   : > { %v4230_v24 = vadd.f32 %v4229_v39, %v9523_v20  ;;  %v4231_v12 = vpop.f32.mrb[209].mxu1 }
 0x54a   : > { %v4232_v41 = vadd.f32 %v4231_v12, %v9527_v52  ;;  %v4233_v7 = vpop.f32.mrb[210].mxu1 }
 0x54b   : > { %v4234_v31 = vadd.f32 %v4233_v7, %v9523_v20  ;;  %v4235_v25 = vpop.f32.mrb[211].mxu1  ;;  %v4428_v13 = vmax.f32 %v4230_v24, 0.0 }
 0x54c   : > { %v4236_v32 = vadd.f32 %v4235_v25, %v9527_v52  ;;  %v4429_v53 = vmax.f32 %v4232_v41, 0.0 }
 0x54d   : > { %v4430_v60 = vmax.f32 %v4234_v31, 0.0  ;;  %4916 = vmatmul.mubr.bf16.gmra.mrb[60].mxu1 %v9693_v36 }
 0x54e   : > { %v4431_v37 = vmax.f32 %v4236_v32, 0.0  ;;  %4925 = vmatprep.mubr.bf16.mxu1 %v4509_v19 }
 0x54f   : > { %v9734_v17 = vpack.c.bf16 %v4430_v60, %v4428_v13 }
 0x550   : > { %v4239_v15 = vpop.f32.mrb[212].mxu1  ;;  %v4517_v23 = vpack.c.bf16 %v4431_v37, %v4429_v53 }
 0x551   : > { %v4240_v63 = vadd.f32 %v4239_v15, %v9523_v20  ;;  %v4241_v43 = vpop.f32.mrb[213].mxu1 }
 0x552   : > { %v4242_v18 = vadd.f32 %v4241_v43, %v9527_v52  ;;  %v4243_v58 = vpop.f32.mrb[214].mxu1 }
 0x553   : > { %v4244_v14 = vadd.f32 %v4243_v58, %v9523_v20  ;;  %v4245_v30 = vpop.f32.mrb[215].mxu1  ;;  %v4432_v34 = vmax.f32 %v4240_v63, 0.0 }
 0x554   : > { %v4246_v47 = vadd.f32 %v4245_v30, %v9527_v52  ;;  %v4433_v19 = vmax.f32 %v4242_v18, 0.0 }
 0x555   : > { %v4434_v36 = vmax.f32 %v4244_v14, 0.0  ;;  %4926 = vmatmul.mubr.bf16.gmra.mrb[64].mxu1 %v9703_v50 }
 0x556   : > { %v4435_v48 = vmax.f32 %v4246_v47, 0.0  ;;  %4935 = vmatprep.mubr.bf16.mxu1 %v4511_v10 }
 0x557   : > { %v9741_v0 = vpack.c.bf16 %v4434_v36, %v4432_v34 }
 0x558   : > { %v4249_v40 = vpop.f32.mrb[216].mxu1  ;;  %v4519_v51 = vpack.c.bf16 %v4435_v48, %v4433_v19 }
 0x559   : > { %v4250_v56 = vadd.f32 %v4249_v40, %v9523_v20  ;;  %v4251_v16 = vpop.f32.mrb[217].mxu1 }
 0x55a   : > { %v4252_v29 = vadd.f32 %v4251_v16, %v9527_v52  ;;  %v4253_v33 = vpop.f32.mrb[218].mxu1 }
 0x55b   : > { %v4254_v2 = vadd.f32 %v4253_v33, %v9523_v20  ;;  %v4255_v55 = vpop.f32.mrb[219].mxu1  ;;  %v4436_v28 = vmax.f32 %v4250_v56, 0.0 }
 0x55c   : > { %v4256_v9 = vadd.f32 %v4255_v55, %v9527_v52  ;;  %v4437_v10 = vmax.f32 %v4252_v29, 0.0 }
 0x55d   : > { %v4438_v50 = vmax.f32 %v4254_v2, 0.0  ;;  %4936 = vmatmul.mubr.bf16.gmra.mrb[68].mxu1 %v9711_v8 }
 0x55e   : > { %v4439_v3 = vmax.f32 %v4256_v9, 0.0  ;;  %4945 = vmatprep.mubr.bf16.mxu1 %v4513_v1 }
 0x55f   : > { %v9748_v62 = vpack.c.bf16 %v4438_v50, %v4436_v28 }
 0x560   : > { %v4259_v5 = vpop.f32.mrb[220].mxu1  ;;  %v4521_v26 = vpack.c.bf16 %v4439_v3, %v4437_v10 }
 0x561   : > { %v4260_v46 = vadd.f32 %v4259_v5, %v9523_v20  ;;  %v4261_v11 = vpop.f32.mrb[221].mxu1 }
 0x562   : > { %v4262_v61 = vadd.f32 %v4261_v11, %v9527_v52  ;;  %v4263_v44 = vpop.f32.mrb[222].mxu1 }
 0x563   : > { %v4264_v21 = vadd.f32 %v4263_v44, %v9523_v20  ;;  %v4265_v22 = vpop.f32.mrb[223].mxu1  ;;  %v4440_v42 = vmax.f32 %v4260_v46, 0.0 }
 0x564   : > { %v4266_v38 = vadd.f32 %v4265_v22, %v9527_v52  ;;  %v4441_v1 = vmax.f32 %v4262_v61, 0.0 }
 0x565   : > { %v4442_v8 = vmax.f32 %v4264_v21, 0.0  ;;  %4946 = vmatmul.mubr.bf16.gmra.mrb[72].mxu1 %v9719_v35 }
 0x566   : > { %v4443_v59 = vmax.f32 %v4266_v38, 0.0  ;;  %4955 = vmatprep.mubr.bf16.mxu1 %v4515_v49 }
 0x567   : > { %v9755_v45 = vpack.c.bf16 %v4442_v8, %v4440_v42 }
 0x568   : > { %v4269_v57 = vpop.f32.mrb[224].mxu1  ;;  %v4523_v39 = vpack.c.bf16 %v4443_v59, %v4441_v1 }
 0x569   : > { %v4270_v24 = vadd.f32 %v4269_v57, %v9523_v20  ;;  %v4271_v12 = vpop.f32.mrb[225].mxu1 }
 0x56a   : > { %v4272_v41 = vadd.f32 %v4271_v12, %v9527_v52  ;;  %v4273_v7 = vpop.f32.mrb[226].mxu1 }
 0x56b   : > { %v4274_v31 = vadd.f32 %v4273_v7, %v9523_v20  ;;  %v4275_v25 = vpop.f32.mrb[227].mxu1  ;;  %v4444_v13 = vmax.f32 %v4270_v24, 0.0 }
 0x56c   : > { %v4276_v32 = vadd.f32 %v4275_v25, %v9527_v52  ;;  %v4445_v49 = vmax.f32 %v4272_v41, 0.0 }
 0x56d   : > { %v4446_v35 = vmax.f32 %v4274_v31, 0.0  ;;  %4956 = vmatmul.mubr.bf16.gmra.mrb[76].mxu1 %v9727_v54 }
 0x56e   : > { %v4447_v60 = vmax.f32 %v4276_v32, 0.0  ;;  %4965 = vmatprep.mubr.bf16.mxu1 %v4517_v23 }
 0x56f   : > { %v9762_v53 = vpack.c.bf16 %v4446_v35, %v4444_v13 }
 0x570   : > { %v4279_v37 = vpop.f32.mrb[228].mxu1  ;;  %v4525_v15 = vpack.c.bf16 %v4447_v60, %v4445_v49 }
 0x571   : > { %v4280_v63 = vadd.f32 %v4279_v37, %v9523_v20  ;;  %v4281_v43 = vpop.f32.mrb[229].mxu1 }
 0x572   : > { %v4282_v18 = vadd.f32 %v4281_v43, %v9527_v52  ;;  %v4283_v58 = vpop.f32.mrb[230].mxu1 }
 0x573   : > { %v4284_v14 = vadd.f32 %v4283_v58, %v9523_v20  ;;  %v4285_v30 = vpop.f32.mrb[231].mxu1  ;;  %v4448_v34 = vmax.f32 %v4280_v63, 0.0 }
 0x574   : > { %v4286_v47 = vadd.f32 %v4285_v30, %v9527_v52  ;;  %v4449_v23 = vmax.f32 %v4282_v18, 0.0 }
 0x575   : > { %v4450_v54 = vmax.f32 %v4284_v14, 0.0  ;;  %4966 = vmatmul.mubr.bf16.gmra.mrb[80].mxu1 %v9734_v17 }
 0x576   : > { %v4451_v36 = vmax.f32 %v4286_v47, 0.0  ;;  %4975 = vmatprep.mubr.bf16.mxu1 %v4519_v51 }
 0x577   : > { %v9769_v19 = vpack.c.bf16 %v4450_v54, %v4448_v34 }
 0x578   : > { %v4289_v48 = vpop.f32.mrb[232].mxu1  ;;  %v4527_v40 = vpack.c.bf16 %v4451_v36, %v4449_v23 }
 0x579   : > { %v4290_v56 = vadd.f32 %v4289_v48, %v9523_v20  ;;  %v4291_v16 = vpop.f32.mrb[233].mxu1 }
 0x57a   : > { %v4292_v29 = vadd.f32 %v4291_v16, %v9527_v52  ;;  %v4293_v33 = vpop.f32.mrb[234].mxu1 }
 0x57b   : > { %v4294_v2 = vadd.f32 %v4293_v33, %v9523_v20  ;;  %v4295_v55 = vpop.f32.mrb[235].mxu1  ;;  %v4452_v28 = vmax.f32 %v4290_v56, 0.0 }
 0x57c   : > { %v4296_v9 = vadd.f32 %v4295_v55, %v9527_v52  ;;  %v4453_v51 = vmax.f32 %v4292_v29, 0.0 }
 0x57d   : > { %v4454_v17 = vmax.f32 %v4294_v2, 0.0  ;;  %4976 = vmatmul.mubr.bf16.gmra.mrb[84].mxu1 %v9741_v0 }
 0x57e   : > { %v4455_v50 = vmax.f32 %v4296_v9, 0.0  ;;  %4985 = vmatprep.mubr.bf16.mxu1 %v4521_v26 }
 0x57f   : > { %v9776_v10 = vpack.c.bf16 %v4454_v17, %v4452_v28 }
 0x580   : > { %v4299_v3 = vpop.f32.mrb[236].mxu1  ;;  %v4529_v5 = vpack.c.bf16 %v4455_v50, %v4453_v51 }
 0x581   : > { %v4300_v46 = vadd.f32 %v4299_v3, %v9523_v20  ;;  %v4301_v11 = vpop.f32.mrb[237].mxu1 }
 0x582   : > { %v4302_v61 = vadd.f32 %v4301_v11, %v9527_v52  ;;  %v4303_v44 = vpop.f32.mrb[238].mxu1 }
 0x583   : > { %v4304_v21 = vadd.f32 %v4303_v44, %v9523_v20  ;;  %v4305_v22 = vpop.f32.mrb[239].mxu1  ;;  %v4456_v42 = vmax.f32 %v4300_v46, 0.0 }
 0x584   : > { %v4306_v38 = vadd.f32 %v4305_v22, %v9527_v52  ;;  %v4457_v26 = vmax.f32 %v4302_v61, 0.0  ;;  %v7717_v61 = vld [vmem:[%s10676_s3 + $0x5] ss:$8 sm:$0x3] }
 0x585   : > { %v4458_v0 = vmax.f32 %v4304_v21, 0.0  ;;  %4986 = vmatmul.mubr.bf16.gmra.mrb[88].mxu1 %v9748_v62 }
 0x586   : > { %v4459_v8 = vmax.f32 %v4306_v38, 0.0  ;;  %4995 = vmatprep.mubr.bf16.mxu1 %v4523_v39  ;;  %v9822_v38 = vrot.slane %v7717_v61, %v8699_v27 }
 0x587   : > { %v9783_v1 = vpack.c.bf16 %v4458_v0, %v4456_v42 }
 0x588   : > { %v4309_v59 = vpop.f32.mrb[240].mxu1  ;;  %v9785_v57 = vpack.c.bf16 %v4459_v8, %v4457_v26  ;;  %v9826_v26 = vrot.slane %v7717_v61, %v8707_v6 }
 0x589   : > { %v4310_v24 = vadd.f32 %v4309_v59, %v9523_v20  ;;  %v4311_v12 = vpop.f32.mrb[241].mxu1 }
 0x58a   : > { %v4312_v41 = vadd.f32 %v4311_v12, %v9527_v52  ;;  %v4313_v7 = vpop.f32.mrb[242].mxu1 }
 0x58b   : > { %v4314_v31 = vadd.f32 %v4313_v7, %v9523_v20  ;;  %v4315_v25 = vpop.f32.mrb[243].mxu1  ;;  %v4460_v62 = vmax.f32 %v4310_v24, 0.0 }
 0x58c   : > { %v4316_v32 = vadd.f32 %v4315_v25, %v9527_v52  ;;  %v4461_v39 = vmax.f32 %v4312_v41, 0.0 }
 0x58d   : > { %v4462_v13 = vmax.f32 %v4314_v31, 0.0  ;;  %4996 = vmatmul.mubr.bf16.gmra.mrb[92].mxu1 %v9755_v45 }
 0x58e   : > { %v4463_v35 = vmax.f32 %v4316_v32, 0.0  ;;  %5005 = vmatprep.mubr.bf16.mxu1 %v4525_v15 }
 0x58f   : > { %v9792_v49 = vpack.c.bf16 %v4462_v13, %v4460_v62 }
 0x590   : > { %v4319_v60 = vpop.f32.mrb[244].mxu1  ;;  %v9794_v37 = vpack.c.bf16 %v4463_v35, %v4461_v39 }
 0x591   : > { %v4320_v63 = vadd.f32 %v4319_v60, %v9523_v20  ;;  %v4321_v43 = vpop.f32.mrb[245].mxu1 }
 0x592   : > { %v4322_v18 = vadd.f32 %v4321_v43, %v9527_v52  ;;  %v4323_v58 = vpop.f32.mrb[246].mxu1  ;;  %v8244_v43 = vld [vmem:[#allocation2 + $0x600] ss:$8 sps:$4 sm:$0xff]  }
 0x593   : > { %v4324_v14 = vadd.f32 %v4323_v58, %v9523_v20  ;;  %v4325_v30 = vpop.f32.mrb[247].mxu1  ;;  %v4464_v45 = vmax.f32 %v4320_v63, 0.0 }
 0x594   : > { %v4326_v47 = vadd.f32 %v4325_v30, %v9527_v52  ;;  %v4465_v15 = vmax.f32 %v4322_v18, 0.0 }
 0x595   : > { %v4466_v34 = vmax.f32 %v4324_v14, 0.0  ;;  %5006 = vmatmul.mubr.bf16.gmra.mrb[96].mxu1 %v9762_v53  ;;  %v8249_v14 = vld [vmem:[#allocation2 + $0x614] ss:$8 sps:$4 sm:$0xff]  }
 0x596   : > { %v4467_v54 = vmax.f32 %v4326_v47, 0.0  ;;  %5015 = vmatprep.mubr.bf16.mxu1 %v4527_v40 }
 0x597   : > { %v9801_v23 = vpack.c.bf16 %v4466_v34, %v4464_v45 }
 0x598   : > { %v4329_v36 = vpop.f32.mrb[248].mxu1  ;;  %v9803_v48 = vpack.c.bf16 %v4467_v54, %v4465_v15 }
 0x599   : > { %v4330_v56 = vadd.f32 %v4329_v36, %v9523_v20  ;;  %v4331_v16 = vpop.f32.mrb[249].mxu1  ;;  %v8252_v36 = vld [vmem:[#allocation2 + $0x624] ss:$8 sps:$4 sm:$0xff]  }
 0x59a   : > { %v4332_v29 = vadd.f32 %v4331_v16, %v9527_v52  ;;  %v4333_v33 = vpop.f32.mrb[250].mxu1 }
 0x59b   : > { %v4334_v2 = vadd.f32 %v4333_v33, %v9523_v20  ;;  %v4335_v55 = vpop.f32.mrb[251].mxu1  ;;  %v4468_v53 = vmax.f32 %v4330_v56, 0.0 }
 0x59c   : > { %v4336_v9 = vadd.f32 %v4335_v55, %v9527_v52  ;;  %v4469_v40 = vmax.f32 %v4332_v29, 0.0  ;;  %v8250_v55 = vld [vmem:[#allocation2 + $0x620] ss:$8 sps:$4 sm:$0xff]  }
 0x59d   : > { %v4470_v28 = vmax.f32 %v4334_v2, 0.0  ;;  %5016 = vmatmul.mubr.bf16.gmra.mrb[100].mxu1 %v9769_v19 }
 0x59e   : > { %v4471_v17 = vmax.f32 %v4336_v9, 0.0  ;;  %5025 = vmatprep.mubr.bf16.mxu1 %v4529_v5 }
 0x59f   : > { %v9810_v51 = vpack.c.bf16 %v4470_v28, %v4468_v53  ;;  %v8255_v28 = vld [vmem:[#allocation2 + $0x634] ss:$8 sps:$4 sm:$0xff]  }
 0x5a0   : > { %v4339_v50 = vpop.f32.mrb[252].mxu1  ;;  %v9812_v3 = vpack.c.bf16 %v4471_v17, %v4469_v40 }
 0x5a1   : > { %v4340_v46 = vadd.f32 %v4339_v50, %v9523_v20  ;;  %v4341_v11 = vpop.f32.mrb[253].mxu1 }
 0x5a2   : > { %v4342_v44 = vadd.f32 %v4341_v11, %v9527_v52  ;;  %v4343_v21 = vpop.f32.mrb[254].mxu1 }
 0x5a3   : > { %v4344_v19 = vadd.f32 %v4343_v21, %v9523_v20  ;;  %v4345_v22 = vpop.f32.mrb[255].mxu1  ;;  %v4472_v42 = vmax.f32 %v4340_v46, 0.0  ;;  %v8253_v46 = vld [vmem:[#allocation2 + $0x630] ss:$8 sps:$4 sm:$0xff]  }
 0x5a4   : > { %v4346_v5 = vadd.f32 %v4345_v22, %v9527_v52  ;;  %v4473_v8 = vmax.f32 %v4342_v44, 0.0  ;;  %v8258_v44 = vld [vmem:[#allocation2 + $0x644] ss:$8 sps:$4 sm:$0xff]  }
 0x5a5   : > { %v4474_v0 = vmax.f32 %v4344_v19, 0.0  ;;  %5026 = vmatmul.mubr.bf16.gmra.mrb[104].mxu1 %v9776_v10 }
 0x5a6   : > { %v4475_v59 = vmax.f32 %v4346_v5, 0.0  ;;  %5035 = vmatprep.mubr.bf16.mxu1 %v9785_v57 }
 0x5a7   : > { %v9829_v24 = vpack.c.bf16 %v4474_v0, %v4472_v42  ;;  %v8256_v0 = vld [vmem:[#allocation2 + $0x640] ss:$8 sps:$4 sm:$0xff]  }
 0x5a8   : > { %v4767_v20 = vpop.f32.mrb[0].mxu1  ;;  %v9831_v12 = vpack.c.bf16 %v4475_v59, %v4473_v8 }
 0x5a9   : > { %v5099_v52 = vadd.f32 %v9822_v38, %v4767_v20  ;;  %v4769_v41 = vpop.f32.mrb[1].mxu1  ;;  %v8261_v20 = vld [vmem:[#allocation2 + $0x654] ss:$8 sps:$4 sm:$0xff]  }
 0x5aa   : > { %v5100_v7 = vadd.f32 %v9826_v26, %v4769_v41  ;;  %v4771_v31 = vpop.f32.mrb[2].mxu1 }
 0x5ab   : > { %v5101_v10 = vadd.f32 %v9822_v38, %v4771_v31  ;;  %v4773_v25 = vpop.f32.mrb[3].mxu1  ;;  %v5227_v62 = vmax.f32 %v5099_v52, 0.0  ;;  %v8259_v31 = vld [vmem:[#allocation2 + $0x650] ss:$8 sps:$4 sm:$0xff]  }
 0x5ac   : > { %v5102_v32 = vadd.f32 %v9826_v26, %v4773_v25  ;;  %v5228_v57 = vmax.f32 %v5100_v7, 0.0 }
 0x5ad   : > { %v5229_v13 = vmax.f32 %v5101_v10, 0.0  ;;  %5036 = vmatmul.mubr.bf16.gmra.mrb[108].mxu1 %v9783_v1 }
 0x5ae   : > { %v5230_v39 = vmax.f32 %v5102_v32, 0.0  ;;  %5045 = vmatprep.mubr.bf16.mxu1 %v9794_v37  ;;  %v8247_v37 = vld [vmem:[#allocation2 + $0x610] ss:$8 sps:$4 sm:$0xff]   ;;  %v8264_v32 = vld [vmem:[#allocation2 + $0x664] ss:$8 sps:$4 sm:$0xff]  }
 0x5af   : > { %v5355_v35 = vpack.c.bf16 %v5229_v13, %v5227_v62 }
 0x5b0   : > { %v5356_v60 = vpack.c.bf16 %v5230_v39, %v5228_v57  ;;  %v4777_v63 = vpop.f32.mrb[4].mxu1 }
 0x5b1   : > { %v5103_v18 = vadd.f32 %v9822_v38, %v4777_v63  ;;  %v4779_v58 = vpop.f32.mrb[5].mxu1 }
 0x5b2   : > { %v5104_v30 = vadd.f32 %v9826_v26, %v4779_v58  ;;  %v4781_v47 = vpop.f32.mrb[6].mxu1  ;;  %5657 = vmatprep.mubr.bf16.mxu0 %v5356_v60  ;;  %v8262_v60 = vld [vmem:[#allocation2 + $0x660] ss:$8 sps:$4 sm:$0xff]  }
 0x5b3   : > { %v5105_v45 = vadd.f32 %v9822_v38, %v4781_v47  ;;  %v4783_v34 = vpop.f32.mrb[7].mxu1  ;;  %5658 = vmatmul.mubr.bf16.vlgmr.msra.gmra.mrb[128].mxu0 %v5355_v35  ;;  %v5231_v15 = vmax.f32 %v5103_v18, 0.0  ;;  %v8267_v18 = vld [vmem:[#allocation2 + $0x674] ss:$8 sps:$4 sm:$0xff]   ;;  %v8265_v47 = vld [vmem:[#allocation2 + $0x670] ss:$8 sps:$4 sm:$0xff]  }
 0x5b4   : > { %v5106_v1 = vadd.f32 %v9826_v26, %v4783_v34  ;;  %6377 = vmatpush1.bf16.msra.mxu0 %v8244_v43  ;;  %v5232_v56 = vmax.f32 %v5104_v30, 0.0 }
 0x5b5   : > { %v5233_v54 = vmax.f32 %v5105_v45, 0.0  ;;  %5046 = vmatmul.mubr.bf16.gmra.mrb[112].mxu1 %v9792_v49  ;;  %6378 = vmatprep.subr.bf16.mxu0 %v8249_v14 }
 0x5b6   : > { %v5234_v16 = vmax.f32 %v5106_v1, 0.0  ;;  %5055 = vmatprep.mubr.bf16.mxu1 %v9803_v48  ;;  %v8270_v1 = vld [vmem:[#allocation2 + $0x684] ss:$8 sps:$4 sm:$0xff]  }
 0x5b7   : > { %v5357_v29 = vpack.c.bf16 %v5233_v54, %v5231_v15 }
 0x5b8   : > { %v5358_v33 = vpack.c.bf16 %v5234_v16, %v5232_v56  ;;  %v4787_v2 = vpop.f32.mrb[8].mxu1  ;;  %6379 = vmatpush1.bf16.msra.mxu0 %v8247_v37  ;;  %v8268_v16 = vld [vmem:[#allocation2 + $0x680] ss:$8 sps:$4 sm:$0xff]  }
 0x5b9   : > { %v5107_v9 = vadd.f32 %v9822_v38, %v4787_v2  ;;  %v4789_v53 = vpop.f32.mrb[9].mxu1  ;;  %6380 = vmatprep.subr.bf16.mxu0 %v8252_v36  ;;  %v8273_v2 = vld [vmem:[#allocation2 + $0x694] ss:$8 sps:$4 sm:$0xff]  }
 0x5ba   : > { %v5108_v40 = vadd.f32 %v9826_v26, %v4789_v53  ;;  %v4791_v17 = vpop.f32.mrb[10].mxu1  ;;  %5667 = vmatprep.mubr.bf16.mxu0 %v5358_v33 }
 0x5bb   : > { %v5109_v49 = vadd.f32 %v9822_v38, %v4791_v17  ;;  %v4793_v50 = vpop.f32.mrb[11].mxu1  ;;  %5668 = vmatmul.mubr.bf16.gmra.mrb[132].mxu0 %v5357_v29  ;;  %v5235_v11 = vmax.f32 %v5107_v9, 0.0 }
 0x5bc   : > { %v5110_v48 = vadd.f32 %v9826_v26, %v4793_v50  ;;  %6381 = vmatpush1.bf16.msra.mxu0 %v8250_v55  ;;  %v5236_v21 = vmax.f32 %v5108_v40, 0.0  ;;  %v8271_v40 = vld [vmem:[#allocation2 + $0x690] ss:$8 sps:$4 sm:$0xff]  }
 0x5bd   : > { %v5237_v61 = vmax.f32 %v5109_v49, 0.0  ;;  %5056 = vmatmul.mubr.bf16.gmra.mrb[116].mxu1 %v9801_v23  ;;  %6382 = vmatprep.subr.bf16.mxu0 %v8255_v28 }
 0x5be   : > { %v5238_v19 = vmax.f32 %v5110_v48, 0.0  ;;  %5065 = vmatprep.mubr.bf16.mxu1 %v9812_v3 }
 0x5bf   : > { %v5359_v22 = vpack.c.bf16 %v5237_v61, %v5235_v11 }
 0x5c0   : > { %v5360_v5 = vpack.c.bf16 %v5238_v19, %v5236_v21  ;;  %v4797_v42 = vpop.f32.mrb[12].mxu1  ;;  %6383 = vmatpush1.bf16.msra.mxu0 %v8253_v46  ;;  %v8276_v21 = vld [vmem:[#allocation2 + $0x6a4] ss:$8 sps:$4 sm:$0xff]  }
 0x5c1   : > { %v5111_v8 = vadd.f32 %v9822_v38, %v4797_v42  ;;  %v4799_v59 = vpop.f32.mrb[13].mxu1  ;;  %6384 = vmatprep.subr.bf16.mxu0 %v8258_v44  ;;  %v8274_v44 = vld [vmem:[#allocation2 + $0x6a0] ss:$8 sps:$4 sm:$0xff]  }
 0x5c2   : > { %v5112_v52 = vadd.f32 %v9826_v26, %v4799_v59  ;;  %v4801_v41 = vpop.f32.mrb[14].mxu1  ;;  %5677 = vmatprep.mubr.bf16.mxu0 %v5360_v5 }
 0x5c3   : > { %v5113_v23 = vadd.f32 %v9822_v38, %v4801_v41  ;;  %v4803_v7 = vpop.f32.mrb[15].mxu1  ;;  %5678 = vmatmul.mubr.bf16.gmra.mrb[136].mxu0 %v5359_v22  ;;  %v5239_v10 = vmax.f32 %v5111_v8, 0.0 }
 0x5c4   : > { %v5114_v3 = vadd.f32 %v9826_v26, %v4803_v7  ;;  %6385 = vmatpush1.bf16.msra.mxu0 %v8256_v0  ;;  %v5240_v62 = vmax.f32 %v5112_v52, 0.0 }
 0x5c5   : > { %v5241_v25 = vmax.f32 %v5113_v23, 0.0  ;;  %5066 = vmatmul.mubr.bf16.gmra.mrb[120].mxu1 %v9810_v51  ;;  %6386 = vmatprep.subr.bf16.mxu0 %v8261_v20 }
 0x5c6   : > { %v5242_v13 = vmax.f32 %v5114_v3, 0.0  ;;  %5075 = vmatprep.mubr.bf16.mxu1 %v9831_v12 }
 0x5c7   : > { %v5361_v57 = vpack.c.bf16 %v5241_v25, %v5239_v10 }
 0x5c8   : > { %v5362_v39 = vpack.c.bf16 %v5242_v13, %v5240_v62  ;;  %v4807_v35 = vpop.f32.mrb[16].mxu1  ;;  %6387 = vmatpush1.bf16.msra.mxu0 %v8259_v31 }
 0x5c9   : > { %v5115_v63 = vadd.f32 %v9822_v38, %v4807_v35  ;;  %v4809_v43 = vpop.f32.mrb[17].mxu1  ;;  %6388 = vmatprep.subr.bf16.mxu0 %v8264_v32 }
 0x5ca   : > { %v5116_v58 = vadd.f32 %v9826_v26, %v4809_v43  ;;  %v4811_v14 = vpop.f32.mrb[18].mxu1  ;;  %5687 = vmatprep.mubr.bf16.mxu0 %v5362_v39 }
 0x5cb   : > { %v5117_v51 = vadd.f32 %v9822_v38, %v4811_v14  ;;  %v4813_v30 = vpop.f32.mrb[19].mxu1  ;;  %5688 = vmatmul.mubr.bf16.gmra.mrb[140].mxu0 %v5361_v57  ;;  %v5243_v45 = vmax.f32 %v5115_v63, 0.0 }
 0x5cc   : > { %v5118_v12 = vadd.f32 %v9826_v26, %v4813_v30  ;;  %6389 = vmatpush1.bf16.msra.mxu0 %v8262_v60  ;;  %v5244_v37 = vmax.f32 %v5116_v58, 0.0  ;;  %v8279_v30 = vld [vmem:[#allocation2 + $0x6b4] ss:$8 sps:$4 sm:$0xff]  }
 0x5cd   : > { %v5245_v34 = vmax.f32 %v5117_v51, 0.0  ;;  %5076 = vmatmul.mubr.bf16.gmra.mrb[124].mxu1 %v9829_v24  ;;  %6390 = vmatprep.subr.bf16.mxu0 %v8267_v18  ;;  %v8277_v51 = vld [vmem:[#allocation2 + $0x6b0] ss:$8 sps:$4 sm:$0xff]  }
 0x5ce   : > { %v5246_v15 = vmax.f32 %v5118_v12, 0.0 }
 0x5cf   : > { %v5363_v54 = vpack.c.bf16 %v5245_v34, %v5243_v45 }
 0x5d0   : > { %v5364_v36 = vpack.c.bf16 %v5246_v15, %v5244_v37  ;;  %v4817_v56 = vpop.f32.mrb[20].mxu1  ;;  %6391 = vmatpush1.bf16.msra.mxu0 %v8265_v47 }
 0x5d1   : > { %v5119_v29 = vadd.f32 %v9822_v38, %v4817_v56  ;;  %v4819_v33 = vpop.f32.mrb[21].mxu1  ;;  %6392 = vmatprep.subr.bf16.mxu0 %v8270_v1 }
 0x5d2   : > { %v5120_v55 = vadd.f32 %v9826_v26, %v4819_v33  ;;  %v4821_v9 = vpop.f32.mrb[22].mxu1  ;;  %5697 = vmatprep.mubr.bf16.mxu0 %v5364_v36 }
 0x5d3   : > { %v5121_v24 = vadd.f32 %v9822_v38, %v4821_v9  ;;  %v4823_v53 = vpop.f32.mrb[23].mxu1  ;;  %5698 = vmatmul.mubr.bf16.gmra.mrb[144].mxu0 %v5363_v54  ;;  %v5247_v17 = vmax.f32 %v5119_v29, 0.0 }
 0x5d4   : > { %v5122_v28 = vadd.f32 %v9826_v26, %v4823_v53  ;;  %6393 = vmatpush1.bf16.msra.mxu0 %v8268_v16  ;;  %v5248_v50 = vmax.f32 %v5120_v55, 0.0 }
 0x5d5   : > { %v5249_v49 = vmax.f32 %v5121_v24, 0.0  ;;  %6394 = vmatprep.subr.bf16.mxu0 %v8273_v2 }
 0x5d6   : > { %v5250_v48 = vmax.f32 %v5122_v28, 0.0 }
 0x5d7   : > { %v5365_v46 = vpack.c.bf16 %v5249_v49, %v5247_v17 }
 0x5d8   : > { %v5366_v11 = vpack.c.bf16 %v5250_v48, %v5248_v50  ;;  %v4827_v61 = vpop.f32.mrb[24].mxu1  ;;  %6395 = vmatpush1.bf16.msra.mxu0 %v8271_v40 }
 0x5d9   : > { %v5123_v19 = vadd.f32 %v9822_v38, %v4827_v61  ;;  %v4829_v22 = vpop.f32.mrb[25].mxu1  ;;  %6396 = vmatprep.subr.bf16.mxu0 %v8276_v21  ;;  %v8280_v21 = vld [vmem:[#allocation2 + $0x6c0] ss:$8 sps:$4 sm:$0xff]  }
 0x5da   : > { %v5124_v5 = vadd.f32 %v9826_v26, %v4829_v22  ;;  %v4831_v42 = vpop.f32.mrb[26].mxu1  ;;  %5707 = vmatprep.mubr.bf16.mxu0 %v5366_v11 }
 0x5db   : > { %v5125_v0 = vadd.f32 %v9822_v38, %v4831_v42  ;;  %v4833_v8 = vpop.f32.mrb[27].mxu1  ;;  %5708 = vmatmul.mubr.bf16.gmra.mrb[148].mxu0 %v5365_v46  ;;  %v5251_v20 = vmax.f32 %v5123_v19, 0.0  ;;  %v8282_v19 = vld [vmem:[#allocation2 + $0x6c4] ss:$8 sps:$4 sm:$0xff]  }
 0x5dc   : > { %v5126_v59 = vadd.f32 %v9826_v26, %v4833_v8  ;;  %6397 = vmatpush1.bf16.msra.mxu0 %v8274_v44  ;;  %v5252_v41 = vmax.f32 %v5124_v5, 0.0 }
 0x5dd   : > { %v5253_v52 = vmax.f32 %v5125_v0, 0.0  ;;  %6398 = vmatprep.subr.bf16.mxu0 %v8279_v30  ;;  %v8283_v30 = vld [vmem:[#allocation2 + $0x6d0] ss:$8 sps:$4 sm:$0xff]  }
 0x5de   : > { %v5254_v23 = vmax.f32 %v5126_v59, 0.0 }
 0x5df   : > { %v5367_v7 = vpack.c.bf16 %v5253_v52, %v5251_v20 }
 0x5e0   : > { %v5368_v3 = vpack.c.bf16 %v5254_v23, %v5252_v41  ;;  %v4837_v31 = vpop.f32.mrb[28].mxu1  ;;  %6399 = vmatpush1.bf16.msra.mxu0 %v8277_v51 }
 0x5e1   : > { %v5127_v10 = vadd.f32 %v9822_v38, %v4837_v31  ;;  %v4839_v25 = vpop.f32.mrb[29].mxu1  ;;  %6400 = vmatprep.subr.bf16.mxu0 %v8282_v19 }
 0x5e2   : > { %v5128_v32 = vadd.f32 %v9826_v26, %v4839_v25  ;;  %v4841_v62 = vpop.f32.mrb[30].mxu1  ;;  %5717 = vmatprep.mubr.bf16.mxu0 %v5368_v3 }
 0x5e3   : > { %v5129_v13 = vadd.f32 %v9822_v38, %v4841_v62  ;;  %v4843_v57 = vpop.f32.mrb[31].mxu1  ;;  %5718 = vmatmul.mubr.bf16.gmra.mrb[152].mxu0 %v5367_v7  ;;  %v5255_v35 = vmax.f32 %v5127_v10, 0.0 }
 0x5e4   : > { %v5130_v39 = vadd.f32 %v9826_v26, %v4843_v57  ;;  %v5256_v63 = vmax.f32 %v5128_v32, 0.0  ;;  %6401 = vmatpush1.bf16.msra.mxu0 %v8280_v21 }
 0x5e5   : > { %v5257_v60 = vmax.f32 %v5129_v13, 0.0 }
 0x5e6   : > { %v5258_v43 = vmax.f32 %v5130_v39, 0.0 }
 0x5e7   : > { %v5369_v18 = vpack.c.bf16 %v5257_v60, %v5255_v35 }
 0x5e8   : > { %v5370_v58 = vpack.c.bf16 %v5258_v43, %v5256_v63  ;;  %v4847_v14 = vpop.f32.mrb[32].mxu1 }
 0x5e9   : > { %v5131_v12 = vadd.f32 %v9822_v38, %v4847_v14  ;;  %v4849_v47 = vpop.f32.mrb[33].mxu1 }
 0x5ea   : > { %v5132_v45 = vadd.f32 %v9826_v26, %v4849_v47  ;;  %v4851_v34 = vpop.f32.mrb[34].mxu1  ;;  %5727 = vmatprep.mubr.bf16.mxu0 %v5370_v58 }
 0x5eb   : > { %v5133_v1 = vadd.f32 %v9822_v38, %v4851_v34  ;;  %v4853_v37 = vpop.f32.mrb[35].mxu1  ;;  %5728 = vmatmul.mubr.bf16.gmra.mrb[156].mxu0 %v5369_v18  ;;  %v5259_v54 = vmax.f32 %v5131_v12, 0.0  ;;  %v8285_v12 = vld [vmem:[#allocation2 + $0x6d4] ss:$8 sps:$4 sm:$0xff]  }
 0x5ec   : > { %v5134_v15 = vadd.f32 %v9826_v26, %v4853_v37  ;;  %v5260_v56 = vmax.f32 %v5132_v45, 0.0  ;;  %6402 = vmatprep.subr.bf16.mxu0 %v8285_v12 }
 0x5ed   : > { %v5261_v36 = vmax.f32 %v5133_v1, 0.0  ;;  %6403 = vmatpush1.bf16.msra.mxu0 %v8283_v30  ;;  %v8290_v30 = vld [vmem:[%s10677_s4 + $0x8] sm:$0xff]  }
 0x5ee   : > { %v5262_v16 = vmax.f32 %v5134_v15, 0.0 }
 0x5ef   : > { %v5371_v29 = vpack.c.bf16 %v5261_v36, %v5259_v54 }
 0x5f0   : > { %v5372_v33 = vpack.c.bf16 %v5262_v16, %v5260_v56  ;;  %v4857_v2 = vpop.f32.mrb[36].mxu1 }
 0x5f1   : > { %v5135_v55 = vadd.f32 %v9822_v38, %v4857_v2  ;;  %v4859_v9 = vpop.f32.mrb[37].mxu1 }
 0x5f2   : > { %v5136_v24 = vadd.f32 %v9826_v26, %v4859_v9  ;;  %v4861_v53 = vpop.f32.mrb[38].mxu1  ;;  %5737 = vmatprep.mubr.bf16.mxu0 %v5372_v33 }
 0x5f3   : > { %v5137_v28 = vadd.f32 %v9822_v38, %v4861_v53  ;;  %v4863_v40 = vpop.f32.mrb[39].mxu1  ;;  %5738 = vmatmul.mubr.bf16.gmra.mrb[160].mxu0 %v5371_v29  ;;  %v5263_v49 = vmax.f32 %v5135_v55, 0.0 }
 0x5f4   : > { %v5138_v17 = vadd.f32 %v9826_v26, %v4863_v40  ;;  %v5264_v48 = vmax.f32 %v5136_v24, 0.0 }
 0x5f5   : > { %v5265_v50 = vmax.f32 %v5137_v28, 0.0 }
 0x5f6   : > { %v5266_v46 = vmax.f32 %v5138_v17, 0.0 }
 0x5f7   : > { %v5373_v11 = vpack.c.bf16 %v5265_v50, %v5263_v49 }
 0x5f8   : > { %v5374_v61 = vpack.c.bf16 %v5266_v46, %v5264_v48  ;;  %v4867_v44 = vpop.f32.mrb[40].mxu1 }
 0x5f9   : > { %v5139_v22 = vadd.f32 %v9822_v38, %v4867_v44  ;;  %v4869_v5 = vpop.f32.mrb[41].mxu1  ;;  %v8286_v44 = vld [vmem:[%s10677_s4] sm:$0xff]  }
 0x5fa   : > { %v5140_v42 = vadd.f32 %v9826_v26, %v4869_v5  ;;  %v4871_v0 = vpop.f32.mrb[42].mxu1  ;;  %5747 = vmatprep.mubr.bf16.mxu0 %v5374_v61  ;;  %v8289_v5 = vld [vmem:[#allocation2 + $0x6e4] ss:$8 sps:$4 sm:$0xff]   ;;  %7057 = vmatpush1.bf16.msra.mxu1 %v8286_v44 }
 0x5fb   : > { %v5141_v8 = vadd.f32 %v9822_v38, %v4871_v0  ;;  %v4873_v59 = vpop.f32.mrb[43].mxu1  ;;  %5748 = vmatmul.mubr.bf16.gmra.mrb[164].mxu0 %v5373_v11  ;;  %v5267_v52 = vmax.f32 %v5139_v22, 0.0  ;;  %v8287_v22 = vld [vmem:[#allocation2 + $0x6e0] ss:$8 sps:$4 sm:$0xff]   ;;  %6404 = vmatprep.subr.bf16.mxu0 %v8289_v5 }
 0x5fc   : > { %v5142_v20 = vadd.f32 %v9826_v26, %v4873_v59  ;;  %v5268_v23 = vmax.f32 %v5140_v42, 0.0  ;;  %7058 = vmatprep.subr.bf16.mxu1 %v8352_v4  ;;  %6405 = vmatpush1.bf16.msra.mxu0 %v8287_v22 }
 0x5fd   : > { %v5269_v41 = vmax.f32 %v5141_v8, 0.0 }
 0x5fe   : > { %v5270_v7 = vmax.f32 %v5142_v20, 0.0  ;;  %7059 = vmatpush1.bf16.msra.mxu1 %v8290_v30  ;;  %v8295_v30 = vld [vmem:[%s10677_s4 + $0x18] sm:$0xff]  }
 0x5ff   : > { %v5375_v3 = vpack.c.bf16 %v5269_v41, %v5267_v52  ;;  %7060 = vmatprep.subr.bf16.mxu1 %v8352_v4 }
 0x600   : > { %v5376_v31 = vpack.c.bf16 %v5270_v7, %v5268_v23  ;;  %v4877_v10 = vpop.f32.mrb[44].mxu1 }
 0x601   : > { %v5143_v25 = vadd.f32 %v9822_v38, %v4877_v10  ;;  %v4879_v32 = vpop.f32.mrb[45].mxu1 }
 0x602   : > { %v5144_v62 = vadd.f32 %v9826_v26, %v4879_v32  ;;  %v4881_v13 = vpop.f32.mrb[46].mxu1  ;;  %5757 = vmatprep.mubr.bf16.mxu0 %v5376_v31 }
 0x603   : > { %v5145_v57 = vadd.f32 %v9822_v38, %v4881_v13  ;;  %v4883_v39 = vpop.f32.mrb[47].mxu1  ;;  %5758 = vmatmul.mubr.bf16.gmra.mrb[168].mxu0 %v5375_v3  ;;  %v5271_v60 = vmax.f32 %v5143_v25, 0.0 }
 0x604   : > { %v5146_v35 = vadd.f32 %v9826_v26, %v4883_v39  ;;  %v5272_v43 = vmax.f32 %v5144_v62, 0.0 }
 0x605   : > { %v5273_v63 = vmax.f32 %v5145_v57, 0.0 }
 0x606   : > { %v5274_v18 = vmax.f32 %v5146_v35, 0.0 }
 0x607   : > { %v5377_v58 = vpack.c.bf16 %v5273_v63, %v5271_v60 }
 0x608   : > { %v5378_v14 = vpack.c.bf16 %v5274_v18, %v5272_v43  ;;  %v4887_v51 = vpop.f32.mrb[48].mxu1 }
 0x609   : > { %v5147_v47 = vadd.f32 %v9822_v38, %v4887_v51  ;;  %v4889_v45 = vpop.f32.mrb[49].mxu1 }
 0x60a   : > { %v5148_v34 = vadd.f32 %v9826_v26, %v4889_v45  ;;  %v4891_v1 = vpop.f32.mrb[50].mxu1  ;;  %5767 = vmatprep.mubr.bf16.mxu0 %v5378_v14  ;;  %v8291_v45 = vld [vmem:[#allocation2 + $0x6f0] ss:$8 sps:$4 sm:$0xff]  }
 0x60b   : > { %v5149_v37 = vadd.f32 %v9822_v38, %v4891_v1  ;;  %v4893_v15 = vpop.f32.mrb[51].mxu1  ;;  %5768 = vmatmul.mubr.bf16.gmra.mrb[172].mxu0 %v5377_v58  ;;  %v5275_v36 = vmax.f32 %v5147_v47, 0.0 }
 0x60c   : > { %v5150_v54 = vadd.f32 %v9826_v26, %v4893_v15  ;;  %v5276_v16 = vmax.f32 %v5148_v34, 0.0  ;;  %v8293_v34 = vld [vmem:[#allocation2 + $0x6f4] ss:$8 sps:$4 sm:$0xff]  }
 0x60d   : > { %v5277_v56 = vmax.f32 %v5149_v37, 0.0  ;;  %6406 = vmatprep.subr.bf16.mxu0 %v8293_v34 }
 0x60e   : > { %v5278_v29 = vmax.f32 %v5150_v54, 0.0  ;;  %6407 = vmatpush1.bf16.msra.mxu0 %v8291_v45 }
 0x60f   : > { %v5379_v33 = vpack.c.bf16 %v5277_v56, %v5275_v36 }
 0x610   : > { %v5380_v2 = vpack.c.bf16 %v5278_v29, %v5276_v16  ;;  %v4897_v55 = vpop.f32.mrb[52].mxu1 }
 0x611   : > { %v5151_v9 = vadd.f32 %v9822_v38, %v4897_v55  ;;  %v4899_v24 = vpop.f32.mrb[53].mxu1 }
 0x612   : > { %v5152_v53 = vadd.f32 %v9826_v26, %v4899_v24  ;;  %v4901_v28 = vpop.f32.mrb[54].mxu1  ;;  %5777 = vmatprep.mubr.bf16.mxu0 %v5380_v2 }
 0x613   : > { %v5153_v40 = vadd.f32 %v9822_v38, %v4901_v28  ;;  %v4903_v17 = vpop.f32.mrb[55].mxu1  ;;  %5778 = vmatmul.mubr.bf16.gmra.mrb[176].mxu0 %v5379_v33  ;;  %v5279_v50 = vmax.f32 %v5151_v9, 0.0 }
 0x614   : > { %v5154_v49 = vadd.f32 %v9826_v26, %v4903_v17  ;;  %v5280_v46 = vmax.f32 %v5152_v53, 0.0 }
 0x615   : > { %v5281_v48 = vmax.f32 %v5153_v40, 0.0 }
 0x616   : > { %v5282_v11 = vmax.f32 %v5154_v49, 0.0 }
 0x617   : > { %v5381_v61 = vpack.c.bf16 %v5281_v48, %v5279_v50 }
 0x618   : > { %v5382_v21 = vpack.c.bf16 %v5282_v11, %v5280_v46  ;;  %v4907_v19 = vpop.f32.mrb[56].mxu1 }
 0x619   : > { %v5155_v42 = vadd.f32 %v9822_v38, %v4907_v19  ;;  %v4909_v0 = vpop.f32.mrb[57].mxu1  ;;  %v8294_v19 = vld [vmem:[%s10677_s4 + $0x10] sm:$0xff]  }
 0x61a   : > { %v5156_v8 = vadd.f32 %v9826_v26, %v4909_v0  ;;  %v4911_v59 = vpop.f32.mrb[58].mxu1  ;;  %5787 = vmatprep.mubr.bf16.mxu0 %v5382_v21  ;;  %7061 = vmatpush1.bf16.msra.mxu1 %v8294_v19 }
 0x61b   : > { %v5157_v20 = vadd.f32 %v9822_v38, %v4911_v59  ;;  %v4913_v52 = vpop.f32.mrb[59].mxu1  ;;  %5788 = vmatmul.mubr.bf16.gmra.mrb[180].mxu0 %v5381_v61  ;;  %v5283_v23 = vmax.f32 %v5155_v42, 0.0  ;;  %7062 = vmatprep.subr.bf16.mxu1 %v8352_v4 }
 0x61c   : > { %v5158_v41 = vadd.f32 %v9826_v26, %v4913_v52  ;;  %v5284_v3 = vmax.f32 %v5156_v8, 0.0 }
 0x61d   : > { %v5285_v7 = vmax.f32 %v5157_v20, 0.0 }
 0x61e   : > { %v5286_v31 = vmax.f32 %v5158_v41, 0.0  ;;  %7063 = vmatpush1.bf16.msra.mxu1 %v8295_v30 }
 0x61f   : > { %v5383_v10 = vpack.c.bf16 %v5285_v7, %v5283_v23  ;;  %7064 = vmatprep.subr.bf16.mxu1 %v8352_v4 }
 0x620   : > { %v5384_v25 = vpack.c.bf16 %v5286_v31, %v5284_v3  ;;  %v4917_v32 = vpop.f32.mrb[60].mxu1 }
 0x621   : > { %v5159_v62 = vadd.f32 %v9822_v38, %v4917_v32  ;;  %v4919_v13 = vpop.f32.mrb[61].mxu1 }
 0x622   : > { %v5160_v57 = vadd.f32 %v9826_v26, %v4919_v13  ;;  %v4921_v39 = vpop.f32.mrb[62].mxu1  ;;  %5797 = vmatprep.mubr.bf16.mxu0 %v5384_v25 }
 0x623   : > { %v5161_v35 = vadd.f32 %v9822_v38, %v4921_v39  ;;  %v4923_v60 = vpop.f32.mrb[63].mxu1  ;;  %5798 = vmatmul.mubr.bf16.gmra.mrb[184].mxu0 %v5383_v10  ;;  %v5287_v43 = vmax.f32 %v5159_v62, 0.0 }
 0x624   : > { %v5162_v63 = vadd.f32 %v9826_v26, %v4923_v60  ;;  %v5288_v58 = vmax.f32 %v5160_v57, 0.0 }
 0x625   : > { %v5289_v18 = vmax.f32 %v5161_v35, 0.0 }
 0x626   : > { %v5290_v14 = vmax.f32 %v5162_v63, 0.0 }
 0x627   : > { %v5385_v51 = vpack.c.bf16 %v5289_v18, %v5287_v43 }
 0x628   : > { %v5386_v12 = vpack.c.bf16 %v5290_v14, %v5288_v58  ;;  %v4927_v47 = vpop.f32.mrb[64].mxu1 }
 0x629   : > { %v5163_v1 = vadd.f32 %v9822_v38, %v4927_v47  ;;  %v4929_v37 = vpop.f32.mrb[65].mxu1 }
 0x62a   : > { %v5164_v15 = vadd.f32 %v9826_v26, %v4929_v37  ;;  %v4931_v54 = vpop.f32.mrb[66].mxu1  ;;  %5807 = vmatprep.mubr.bf16.mxu0 %v5386_v12 }
 0x62b   : > { %v5165_v36 = vadd.f32 %v9822_v38, %v4931_v54  ;;  %v4933_v56 = vpop.f32.mrb[67].mxu1  ;;  %5808 = vmatmul.mubr.bf16.gmra.mrb[188].mxu0 %v5385_v51  ;;  %v5291_v29 = vmax.f32 %v5163_v1, 0.0 }
 0x62c   : > { %v5166_v16 = vadd.f32 %v9826_v26, %v4933_v56  ;;  %v5292_v2 = vmax.f32 %v5164_v15, 0.0 }
 0x62d   : > { %v5293_v33 = vmax.f32 %v5165_v36, 0.0 }
 0x62e   : > { %v5294_v55 = vmax.f32 %v5166_v16, 0.0 }
 0x62f   : > { %v5387_v9 = vpack.c.bf16 %v5293_v33, %v5291_v29 }
 0x630   : > { %v5388_v24 = vpack.c.bf16 %v5294_v55, %v5292_v2  ;;  %v4937_v53 = vpop.f32.mrb[68].mxu1 }
 0x631   : > { %v5167_v28 = vadd.f32 %v9822_v38, %v4937_v53  ;;  %v4939_v40 = vpop.f32.mrb[69].mxu1 }
 0x632   : > { %v5168_v17 = vadd.f32 %v9826_v26, %v4939_v40  ;;  %v4941_v49 = vpop.f32.mrb[70].mxu1  ;;  %5817 = vmatprep.mubr.bf16.mxu0 %v5388_v24 }
 0x633   : > { %v5169_v50 = vadd.f32 %v9822_v38, %v4941_v49  ;;  %v4943_v48 = vpop.f32.mrb[71].mxu1  ;;  %5818 = vmatmul.mubr.bf16.gmra.mrb[192].mxu0 %v5387_v9  ;;  %v5295_v11 = vmax.f32 %v5167_v28, 0.0 }
 0x634   : > { %v5170_v46 = vadd.f32 %v9826_v26, %v4943_v48  ;;  %v5296_v44 = vmax.f32 %v5168_v17, 0.0 }
 0x635   : > { %v5297_v61 = vmax.f32 %v5169_v50, 0.0 }
 0x636   : > { %v5298_v21 = vmax.f32 %v5170_v46, 0.0 }
 0x637   : > { %v5389_v22 = vpack.c.bf16 %v5297_v61, %v5295_v11 }
 0x638   : > { %v5390_v5 = vpack.c.bf16 %v5298_v21, %v5296_v44  ;;  %v4947_v42 = vpop.f32.mrb[72].mxu1  ;;  %v8296_v21 = vld [vmem:[%s10677_s4 + $0x20] sm:$0xff]  }
 0x639   : > { %v5171_v0 = vadd.f32 %v9822_v38, %v4947_v42  ;;  %v4949_v8 = vpop.f32.mrb[73].mxu1  ;;  %7065 = vmatpush1.bf16.msra.mxu1 %v8296_v21 }
 0x63a   : > { %v5172_v59 = vadd.f32 %v9826_v26, %v4949_v8  ;;  %v4951_v20 = vpop.f32.mrb[74].mxu1  ;;  %5827 = vmatprep.mubr.bf16.mxu0 %v5390_v5  ;;  %7066 = vmatprep.subr.bf16.mxu1 %v8352_v4 }
 0x63b   : > { %v5173_v52 = vadd.f32 %v9822_v38, %v4951_v20  ;;  %v4953_v41 = vpop.f32.mrb[75].mxu1  ;;  %5828 = vmatmul.mubr.bf16.gmra.mrb[196].mxu0 %v5389_v22  ;;  %v5299_v7 = vmax.f32 %v5171_v0, 0.0 }
 0x63c   : > { %v5174_v23 = vadd.f32 %v9826_v26, %v4953_v41  ;;  %v5300_v31 = vmax.f32 %v5172_v59, 0.0 }
 0x63d   : > { %v5301_v3 = vmax.f32 %v5173_v52, 0.0 }
 0x63e   : > { %v5302_v10 = vmax.f32 %v5174_v23, 0.0 }
 0x63f   : > { %v5391_v25 = vpack.c.bf16 %v5301_v3, %v5299_v7 }
 0x640   : > { %v5392_v32 = vpack.c.bf16 %v5302_v10, %v5300_v31  ;;  %v4957_v62 = vpop.f32.mrb[76].mxu1 }
 0x641   : > { %v5175_v13 = vadd.f32 %v9822_v38, %v4957_v62  ;;  %v4959_v57 = vpop.f32.mrb[77].mxu1 }
 0x642   : > { %v5176_v39 = vadd.f32 %v9826_v26, %v4959_v57  ;;  %v4961_v35 = vpop.f32.mrb[78].mxu1  ;;  %5837 = vmatprep.mubr.bf16.mxu0 %v5392_v32 }
 0x643   : > { %v5177_v60 = vadd.f32 %v9822_v38, %v4961_v35  ;;  %v4963_v63 = vpop.f32.mrb[79].mxu1  ;;  %5838 = vmatmul.mubr.bf16.gmra.mrb[200].mxu0 %v5391_v25  ;;  %v5303_v18 = vmax.f32 %v5175_v13, 0.0 }
 0x644   : > { %v5178_v43 = vadd.f32 %v9826_v26, %v4963_v63  ;;  %v5304_v14 = vmax.f32 %v5176_v39, 0.0 }
 0x645   : > { %v5305_v58 = vmax.f32 %v5177_v60, 0.0 }
 0x646   : > { %v5306_v51 = vmax.f32 %v5178_v43, 0.0 }
 0x647   : > { %v5393_v12 = vpack.c.bf16 %v5305_v58, %v5303_v18 }
 0x648   : > { %v5394_v47 = vpack.c.bf16 %v5306_v51, %v5304_v14  ;;  %v4967_v45 = vpop.f32.mrb[80].mxu1  ;;  %v8297_v51 = vld [vmem:[%s10677_s4 + $0x28] sm:$0xff]  }
 0x649   : > { %v5179_v34 = vadd.f32 %v9822_v38, %v4967_v45  ;;  %v4969_v1 = vpop.f32.mrb[81].mxu1  ;;  %7067 = vmatpush1.bf16.msra.mxu1 %v8297_v51 }
 0x64a   : > { %v5180_v37 = vadd.f32 %v9826_v26, %v4969_v1  ;;  %v4971_v15 = vpop.f32.mrb[82].mxu1  ;;  %5847 = vmatprep.mubr.bf16.mxu0 %v5394_v47  ;;  %7068 = vmatprep.subr.bf16.mxu1 %v8352_v4 }
 0x64b   : > { %v5181_v54 = vadd.f32 %v9822_v38, %v4971_v15  ;;  %v4973_v36 = vpop.f32.mrb[83].mxu1  ;;  %5848 = vmatmul.mubr.bf16.gmra.mrb[204].mxu0 %v5393_v12  ;;  %v5307_v16 = vmax.f32 %v5179_v34, 0.0 }
 0x64c   : > { %v5182_v56 = vadd.f32 %v9826_v26, %v4973_v36  ;;  %v5308_v33 = vmax.f32 %v5180_v37, 0.0 }
 0x64d   : > { %v5309_v29 = vmax.f32 %v5181_v54, 0.0 }
 0x64e   : > { %v5310_v2 = vmax.f32 %v5182_v56, 0.0 }
 0x64f   : > { %v5395_v55 = vpack.c.bf16 %v5309_v29, %v5307_v16 }
 0x650   : > { %v5396_v9 = vpack.c.bf16 %v5310_v2, %v5308_v33  ;;  %v4977_v24 = vpop.f32.mrb[84].mxu1 }
 0x651   : > { %v5183_v53 = vadd.f32 %v9822_v38, %v4977_v24  ;;  %v4979_v28 = vpop.f32.mrb[85].mxu1 }
 0x652   : > { %v5184_v40 = vadd.f32 %v9826_v26, %v4979_v28  ;;  %v4981_v17 = vpop.f32.mrb[86].mxu1  ;;  %5857 = vmatprep.mubr.bf16.mxu0 %v5396_v9 }
 0x653   : > { %v5185_v49 = vadd.f32 %v9822_v38, %v4981_v17  ;;  %v4983_v50 = vpop.f32.mrb[87].mxu1  ;;  %5858 = vmatmul.mubr.bf16.gmra.mrb[208].mxu0 %v5395_v55  ;;  %v5311_v46 = vmax.f32 %v5183_v53, 0.0 }
 0x654   : > { %v5186_v48 = vadd.f32 %v9826_v26, %v4983_v50  ;;  %v5312_v61 = vmax.f32 %v5184_v40, 0.0 }
 0x655   : > { %v5313_v11 = vmax.f32 %v5185_v49, 0.0 }
 0x656   : > { %v5314_v44 = vmax.f32 %v5186_v48, 0.0 }
 0x657   : > { %v5397_v19 = vpack.c.bf16 %v5313_v11, %v5311_v46 }
 0x658   : > { %v5398_v22 = vpack.c.bf16 %v5314_v44, %v5312_v61  ;;  %v4987_v5 = vpop.f32.mrb[88].mxu1  ;;  %v8298_v44 = vld [vmem:[%s10677_s4 + $0x30] sm:$0xff]  }
 0x659   : > { %v5187_v42 = vadd.f32 %v9822_v38, %v4987_v5  ;;  %v4989_v0 = vpop.f32.mrb[89].mxu1  ;;  %7069 = vmatpush1.bf16.msra.mxu1 %v8298_v44 }
 0x65a   : > { %v5188_v8 = vadd.f32 %v9826_v26, %v4989_v0  ;;  %v4991_v59 = vpop.f32.mrb[90].mxu1  ;;  %5867 = vmatprep.mubr.bf16.mxu0 %v5398_v22  ;;  %7070 = vmatprep.subr.bf16.mxu1 %v8352_v4 }
 0x65b   : > { %v5189_v20 = vadd.f32 %v9822_v38, %v4991_v59  ;;  %v4993_v52 = vpop.f32.mrb[91].mxu1  ;;  %5868 = vmatmul.mubr.bf16.gmra.mrb[212].mxu0 %v5397_v19  ;;  %v5315_v23 = vmax.f32 %v5187_v42, 0.0 }
 0x65c   : > { %v5190_v41 = vadd.f32 %v9826_v26, %v4993_v52  ;;  %v5316_v3 = vmax.f32 %v5188_v8, 0.0 }
 0x65d   : > { %v5317_v7 = vmax.f32 %v5189_v20, 0.0 }
 0x65e   : > { %v5318_v31 = vmax.f32 %v5190_v41, 0.0 }
 0x65f   : > { %v5399_v10 = vpack.c.bf16 %v5317_v7, %v5315_v23 }
 0x660   : > { %v5400_v25 = vpack.c.bf16 %v5318_v31, %v5316_v3  ;;  %v4997_v32 = vpop.f32.mrb[92].mxu1 }
 0x661   : > { %v5191_v62 = vadd.f32 %v9822_v38, %v4997_v32  ;;  %v4999_v13 = vpop.f32.mrb[93].mxu1 }
 0x662   : > { %v5192_v57 = vadd.f32 %v9826_v26, %v4999_v13  ;;  %v5001_v39 = vpop.f32.mrb[94].mxu1  ;;  %5877 = vmatprep.mubr.bf16.mxu0 %v5400_v25 }
 0x663   : > { %v5193_v35 = vadd.f32 %v9822_v38, %v5001_v39  ;;  %v5003_v60 = vpop.f32.mrb[95].mxu1  ;;  %5878 = vmatmul.mubr.bf16.gmra.mrb[216].mxu0 %v5399_v10  ;;  %v5319_v43 = vmax.f32 %v5191_v62, 0.0  ;;  %v7718_v10 = vld [vmem:[%s10676_s3 + $0x6] ss:$8 sm:$0x3] }
 0x664   : > { %v5194_v63 = vadd.f32 %v9826_v26, %v5003_v60  ;;  %v5320_v58 = vmax.f32 %v5192_v57, 0.0 }
 0x665   : > { %v5321_v18 = vmax.f32 %v5193_v35, 0.0  ;;  %v9984_v35 = vrot.slane %v7718_v10, %v8699_v27 }
 0x666   : > { %v5322_v14 = vmax.f32 %v5194_v63, 0.0 }
 0x667   : > { %v5401_v30 = vpack.c.bf16 %v5321_v18, %v5319_v43  ;;  %v9988_v43 = vrot.slane %v7718_v10, %v8707_v6 }
 0x668   : > { %v5402_v12 = vpack.c.bf16 %v5322_v14, %v5320_v58  ;;  %v5007_v47 = vpop.f32.mrb[96].mxu1 }
 0x669   : > { %v5195_v45 = vadd.f32 %v9822_v38, %v5007_v47  ;;  %v5009_v34 = vpop.f32.mrb[97].mxu1  ;;  %v8299_v47 = vld [vmem:[%s10677_s4 + $0x38] sm:$0xff]  }
 0x66a   : > { %v5196_v1 = vadd.f32 %v9826_v26, %v5009_v34  ;;  %v5011_v37 = vpop.f32.mrb[98].mxu1  ;;  %5887 = vmatprep.mubr.bf16.mxu0 %v5402_v12  ;;  %7071 = vmatpush1.bf16.msra.mxu1 %v8299_v47  ;;  %v8300_v47 = vld [vmem:[%s10677_s4 + $0x40] sm:$0xff]  }
 0x66b   : > { %v5197_v15 = vadd.f32 %v9822_v38, %v5011_v37  ;;  %v5013_v54 = vpop.f32.mrb[99].mxu1  ;;  %5888 = vmatmul.mubr.bf16.gmra.mrb[220].mxu0 %v5401_v30  ;;  %v5323_v56 = vmax.f32 %v5195_v45, 0.0  ;;  %7072 = vmatprep.subr.bf16.mxu1 %v8352_v4 }
 0x66c   : > { %v5198_v36 = vadd.f32 %v9826_v26, %v5013_v54  ;;  %v5324_v29 = vmax.f32 %v5196_v1, 0.0 }
 0x66d   : > { %v5325_v16 = vmax.f32 %v5197_v15, 0.0 }
 0x66e   : > { %v5326_v33 = vmax.f32 %v5198_v36, 0.0  ;;  %7073 = vmatpush1.bf16.msra.mxu1 %v8300_v47 }
 0x66f   : > { %v5403_v2 = vpack.c.bf16 %v5325_v16, %v5323_v56  ;;  %7074 = vmatprep.subr.bf16.mxu1 %v8352_v4 }
 0x670   : > { %v5404_v55 = vpack.c.bf16 %v5326_v33, %v5324_v29  ;;  %v5017_v9 = vpop.f32.mrb[100].mxu1 }
 0x671   : > { %v5199_v24 = vadd.f32 %v9822_v38, %v5017_v9  ;;  %v5019_v53 = vpop.f32.mrb[101].mxu1 }
 0x672   : > { %v5200_v28 = vadd.f32 %v9826_v26, %v5019_v53  ;;  %v5021_v40 = vpop.f32.mrb[102].mxu1  ;;  %5897 = vmatprep.mubr.bf16.mxu0 %v5404_v55 }
 0x673   : > { %v5201_v17 = vadd.f32 %v9822_v38, %v5021_v40  ;;  %v5023_v49 = vpop.f32.mrb[103].mxu1  ;;  %5898 = vmatmul.mubr.bf16.gmra.mrb[224].mxu0 %v5403_v2  ;;  %v5327_v48 = vmax.f32 %v5199_v24, 0.0 }
 0x674   : > { %v5202_v50 = vadd.f32 %v9826_v26, %v5023_v49  ;;  %v5328_v11 = vmax.f32 %v5200_v28, 0.0 }
 0x675   : > { %v5329_v46 = vmax.f32 %v5201_v17, 0.0 }
 0x676   : > { %v5330_v61 = vmax.f32 %v5202_v50, 0.0 }
 0x677   : > { %v5405_v21 = vpack.c.bf16 %v5329_v46, %v5327_v48 }
 0x678   : > { %v5406_v19 = vpack.c.bf16 %v5330_v61, %v5328_v11  ;;  %v5027_v22 = vpop.f32.mrb[104].mxu1 }
 0x679   : > { %v5203_v5 = vadd.f32 %v9822_v38, %v5027_v22  ;;  %v5029_v42 = vpop.f32.mrb[105].mxu1 }
 0x67a   : > { %v5204_v0 = vadd.f32 %v9826_v26, %v5029_v42  ;;  %v5031_v8 = vpop.f32.mrb[106].mxu1  ;;  %5907 = vmatprep.mubr.bf16.mxu0 %v5406_v19 }
 0x67b   : > { %v5205_v59 = vadd.f32 %v9822_v38, %v5031_v8  ;;  %v5033_v20 = vpop.f32.mrb[107].mxu1  ;;  %5908 = vmatmul.mubr.bf16.gmra.mrb[228].mxu0 %v5405_v21  ;;  %v5331_v41 = vmax.f32 %v5203_v5, 0.0 }
 0x67c   : > { %v5206_v52 = vadd.f32 %v9826_v26, %v5033_v20  ;;  %v5332_v7 = vmax.f32 %v5204_v0, 0.0 }
 0x67d   : > { %v5333_v23 = vmax.f32 %v5205_v59, 0.0 }
 0x67e   : > { %v5334_v3 = vmax.f32 %v5206_v52, 0.0 }
 0x67f   : > { %v5407_v31 = vpack.c.bf16 %v5333_v23, %v5331_v41 }
 0x680   : > { %v5408_v25 = vpack.c.bf16 %v5334_v3, %v5332_v7  ;;  %v5037_v32 = vpop.f32.mrb[108].mxu1 }
 0x681   : > { %v5207_v62 = vadd.f32 %v9822_v38, %v5037_v32  ;;  %v5039_v13 = vpop.f32.mrb[109].mxu1 }
 0x682   : > { %v5208_v57 = vadd.f32 %v9826_v26, %v5039_v13  ;;  %v5041_v39 = vpop.f32.mrb[110].mxu1  ;;  %5917 = vmatprep.mubr.bf16.mxu0 %v5408_v25 }
 0x683   : > { %v5209_v60 = vadd.f32 %v9822_v38, %v5041_v39  ;;  %v5043_v63 = vpop.f32.mrb[111].mxu1  ;;  %5918 = vmatmul.mubr.bf16.gmra.mrb[232].mxu0 %v5407_v31  ;;  %v5335_v58 = vmax.f32 %v5207_v62, 0.0 }
 0x684   : > { %v5210_v18 = vadd.f32 %v9826_v26, %v5043_v63  ;;  %v5336_v51 = vmax.f32 %v5208_v57, 0.0 }
 0x685   : > { %v5337_v14 = vmax.f32 %v5209_v60, 0.0 }
 0x686   : > { %v5338_v30 = vmax.f32 %v5210_v18, 0.0  ;;  %v5659_v12 = vpop.f32.mrb[128].mxu0 }
 0x687   : > { %v5409_v45 = vpack.c.bf16 %v5337_v14, %v5335_v58  ;;  %v5660_v34 = vadd.f32 %v5659_v12, %v9984_v35  ;;  %v5661_v1 = vpop.f32.mrb[129].mxu0 }
 0x688   : > { %v5410_v37 = vpack.c.bf16 %v5338_v30, %v5336_v51  ;;  %v5662_v15 = vadd.f32 %v5661_v1, %v9988_v43  ;;  %v5047_v54 = vpop.f32.mrb[112].mxu1  ;;  %v5663_v36 = vpop.f32.mrb[130].mxu0 }
 0x689   : > { %v5211_v56 = vadd.f32 %v9822_v38, %v5047_v54  ;;  %v5664_v16 = vadd.f32 %v5663_v36, %v9984_v35  ;;  %v5049_v29 = vpop.f32.mrb[113].mxu1  ;;  %v5665_v33 = vpop.f32.mrb[131].mxu0  ;;  %v5978_v24 = vmax.f32 %v5660_v34, 0.0 }
 0x68a   : > { %v5212_v2 = vadd.f32 %v9826_v26, %v5049_v29  ;;  %v5666_v55 = vadd.f32 %v5665_v33, %v9988_v43  ;;  %v5051_v9 = vpop.f32.mrb[114].mxu1  ;;  %5927 = vmatprep.mubr.bf16.mxu0 %v5410_v37  ;;  %v5979_v17 = vmax.f32 %v5662_v15, 0.0 }
 0x68b   : > { %v5980_v53 = vmax.f32 %v5664_v16, 0.0  ;;  %v5213_v28 = vadd.f32 %v9822_v38, %v5051_v9  ;;  %v5053_v40 = vpop.f32.mrb[115].mxu1  ;;  %5928 = vmatmul.mubr.bf16.gmra.mrb[236].mxu0 %v5409_v45  ;;  %v5339_v48 = vmax.f32 %v5211_v56, 0.0 }
 0x68c   : > { %v5981_v49 = vmax.f32 %v5666_v55, 0.0  ;;  %v5214_v50 = vadd.f32 %v9826_v26, %v5053_v40  ;;  %v5340_v61 = vmax.f32 %v5212_v2, 0.0 }
 0x68d   : > { %v10003_v46 = vpack.c.bf16 %v5980_v53, %v5978_v24  ;;  %v5341_v11 = vmax.f32 %v5213_v28, 0.0 }
 0x68e   : > { %v10005_v44 = vpack.c.bf16 %v5981_v49, %v5979_v17  ;;  %v5342_v21 = vmax.f32 %v5214_v50, 0.0  ;;  %v5669_v19 = vpop.f32.mrb[132].mxu0 }
 0x68f   : > { %v5411_v22 = vpack.c.bf16 %v5341_v11, %v5339_v48  ;;  %v5670_v5 = vadd.f32 %v5669_v19, %v9984_v35  ;;  %v5671_v42 = vpop.f32.mrb[133].mxu0 }
 0x690   : > { %v5412_v0 = vpack.c.bf16 %v5342_v21, %v5340_v61  ;;  %v5672_v8 = vadd.f32 %v5671_v42, %v9988_v43  ;;  %v5057_v59 = vpop.f32.mrb[116].mxu1  ;;  %v5673_v20 = vpop.f32.mrb[134].mxu0 }
 0x691   : > { %v5215_v52 = vadd.f32 %v9822_v38, %v5057_v59  ;;  %v5674_v41 = vadd.f32 %v5673_v20, %v9984_v35  ;;  %v5059_v23 = vpop.f32.mrb[117].mxu1  ;;  %v5675_v7 = vpop.f32.mrb[135].mxu0  ;;  %v5982_v25 = vmax.f32 %v5670_v5, 0.0 }
 0x692   : > { %v5216_v3 = vadd.f32 %v9826_v26, %v5059_v23  ;;  %v5676_v31 = vadd.f32 %v5675_v7, %v9988_v43  ;;  %v5061_v10 = vpop.f32.mrb[118].mxu1  ;;  %5937 = vmatprep.mubr.bf16.mxu0 %v5412_v0  ;;  %v5983_v57 = vmax.f32 %v5672_v8, 0.0 }
 0x693   : > { %v5984_v32 = vmax.f32 %v5674_v41, 0.0  ;;  %v5217_v62 = vadd.f32 %v9822_v38, %v5061_v10  ;;  %v5063_v13 = vpop.f32.mrb[119].mxu1  ;;  %5938 = vmatmul.mubr.bf16.gmra.mrb[240].mxu0 %v5411_v22  ;;  %v5343_v63 = vmax.f32 %v5215_v52, 0.0 }
 0x694   : > { %v5985_v39 = vmax.f32 %v5676_v31, 0.0  ;;  %v5218_v60 = vadd.f32 %v9826_v26, %v5063_v13  ;;  %v5344_v14 = vmax.f32 %v5216_v3, 0.0 }
 0x695   : > { %v10015_v18 = vpack.c.bf16 %v5984_v32, %v5982_v25  ;;  %v5345_v58 = vmax.f32 %v5217_v62, 0.0 }
 0x696   : > { %v10017_v51 = vpack.c.bf16 %v5985_v39, %v5983_v57  ;;  %v5346_v30 = vmax.f32 %v5218_v60, 0.0  ;;  %v5679_v12 = vpop.f32.mrb[136].mxu0 }
 0x697   : > { %v5413_v45 = vpack.c.bf16 %v5345_v58, %v5343_v63  ;;  %v5680_v34 = vadd.f32 %v5679_v12, %v9984_v35  ;;  %v5681_v1 = vpop.f32.mrb[137].mxu0 }
 0x698   : > { %v5414_v37 = vpack.c.bf16 %v5346_v30, %v5344_v14  ;;  %v5682_v15 = vadd.f32 %v5681_v1, %v9988_v43  ;;  %v5067_v54 = vpop.f32.mrb[120].mxu1  ;;  %v5683_v36 = vpop.f32.mrb[138].mxu0 }
 0x699   : > { %v5219_v56 = vadd.f32 %v9822_v38, %v5067_v54  ;;  %v5684_v16 = vadd.f32 %v5683_v36, %v9984_v35  ;;  %v5069_v29 = vpop.f32.mrb[121].mxu1  ;;  %v5685_v33 = vpop.f32.mrb[139].mxu0  ;;  %v5986_v24 = vmax.f32 %v5680_v34, 0.0 }
 0x69a   : > { %v5220_v2 = vadd.f32 %v9826_v26, %v5069_v29  ;;  %v5686_v55 = vadd.f32 %v5685_v33, %v9988_v43  ;;  %v5071_v9 = vpop.f32.mrb[122].mxu1  ;;  %5947 = vmatprep.mubr.bf16.mxu0 %v5414_v37  ;;  %v5987_v17 = vmax.f32 %v5682_v15, 0.0  ;;  %v8301_v37 = vld [vmem:[%s10677_s4 + $0x48] sm:$0xff]  }
 0x69b   : > { %v5988_v53 = vmax.f32 %v5684_v16, 0.0  ;;  %v5221_v28 = vadd.f32 %v9822_v38, %v5071_v9  ;;  %v5073_v40 = vpop.f32.mrb[123].mxu1  ;;  %5948 = vmatmul.mubr.bf16.gmra.mrb[244].mxu0 %v5413_v45  ;;  %v5347_v48 = vmax.f32 %v5219_v56, 0.0  ;;  %7075 = vmatpush1.bf16.msra.mxu1 %v8301_v37 }
 0x69c   : > { %v5989_v49 = vmax.f32 %v5686_v55, 0.0  ;;  %v5222_v50 = vadd.f32 %v9826_v26, %v5073_v40  ;;  %v5348_v21 = vmax.f32 %v5220_v2, 0.0  ;;  %7076 = vmatprep.subr.bf16.mxu1 %v8352_v4 }
 0x69d   : > { %v10031_v11 = vpack.c.bf16 %v5988_v53, %v5986_v24  ;;  %v5349_v61 = vmax.f32 %v5221_v28, 0.0 }
 0x69e   : > { %v10033_v19 = vpack.c.bf16 %v5989_v49, %v5987_v17  ;;  %v5350_v22 = vmax.f32 %v5222_v50, 0.0  ;;  %v5689_v5 = vpop.f32.mrb[140].mxu0 }
 0x69f   : > { %v5415_v42 = vpack.c.bf16 %v5349_v61, %v5347_v48  ;;  %v5690_v0 = vadd.f32 %v5689_v5, %v9984_v35  ;;  %v5691_v8 = vpop.f32.mrb[141].mxu0 }
 0x6a0   : > { %v5416_v59 = vpack.c.bf16 %v5350_v22, %v5348_v21  ;;  %v5692_v20 = vadd.f32 %v5691_v8, %v9988_v43  ;;  %v5077_v52 = vpop.f32.mrb[124].mxu1  ;;  %v5693_v41 = vpop.f32.mrb[142].mxu0 }
 0x6a1   : > { %v5223_v23 = vadd.f32 %v9822_v38, %v5077_v52  ;;  %v5694_v7 = vadd.f32 %v5693_v41, %v9984_v35  ;;  %v5079_v3 = vpop.f32.mrb[125].mxu1  ;;  %v5695_v31 = vpop.f32.mrb[143].mxu0  ;;  %v5990_v62 = vmax.f32 %v5690_v0, 0.0  ;;  %v8302_v52 = vld [vmem:[%s10677_s4 + $0x50] sm:$0xff]  }
 0x6a2   : > { %v5224_v10 = vadd.f32 %v9826_v26, %v5079_v3  ;;  %v5696_v25 = vadd.f32 %v5695_v31, %v9988_v43  ;;  %v5081_v32 = vpop.f32.mrb[126].mxu1  ;;  %5957 = vmatprep.mubr.bf16.mxu0 %v5416_v59  ;;  %v5991_v60 = vmax.f32 %v5692_v20, 0.0  ;;  %7077 = vmatpush1.bf16.msra.mxu1 %v8302_v52 }
 0x6a3   : > { %v5992_v13 = vmax.f32 %v5694_v7, 0.0  ;;  %v5225_v57 = vadd.f32 %v9822_v38, %v5081_v32  ;;  %v5083_v39 = vpop.f32.mrb[127].mxu1  ;;  %5958 = vmatmul.mubr.bf16.gmra.mrb[248].mxu0 %v5415_v42  ;;  %v5351_v14 = vmax.f32 %v5223_v23, 0.0  ;;  %7078 = vmatprep.subr.bf16.mxu1 %v8352_v4 }
 0x6a4   : > { %v5993_v63 = vmax.f32 %v5696_v25, 0.0  ;;  %v5226_v58 = vadd.f32 %v9826_v26, %v5083_v39  ;;  %v5352_v47 = vmax.f32 %v5224_v10, 0.0 }
 0x6a5   : > { %v10043_v30 = vpack.c.bf16 %v5992_v13, %v5990_v62  ;;  %v5353_v12 = vmax.f32 %v5225_v57, 0.0 }
 0x6a6   : > { %v10045_v45 = vpack.c.bf16 %v5993_v63, %v5991_v60  ;;  %v5354_v34 = vmax.f32 %v5226_v58, 0.0  ;;  %v5699_v1 = vpop.f32.mrb[144].mxu0 }
 0x6a7   : > { %v5417_v38 = vpack.c.bf16 %v5353_v12, %v5351_v14  ;;  %v5700_v15 = vadd.f32 %v5699_v1, %v9984_v35  ;;  %v5701_v54 = vpop.f32.mrb[145].mxu0 }
 0x6a8   : > { %v5418_v36 = vpack.c.bf16 %v5354_v34, %v5352_v47  ;;  %v5702_v26 = vadd.f32 %v5701_v54, %v9988_v43  ;;  %v5703_v56 = vpop.f32.mrb[146].mxu0 }
 0x6a9   : > { %v5704_v16 = vadd.f32 %v5703_v56, %v9984_v35  ;;  %v5705_v29 = vpop.f32.mrb[147].mxu0  ;;  %v5994_v2 = vmax.f32 %v5700_v15, 0.0 }
 0x6aa   : > { %v5706_v33 = vadd.f32 %v5705_v29, %v9988_v43  ;;  %5967 = vmatprep.mubr.bf16.mxu0 %v5418_v36  ;;  %v5995_v9 = vmax.f32 %v5702_v26, 0.0  ;;  %v8303_v36 = vld [vmem:[%s10677_s4 + $0x58] sm:$0xff]  }
 0x6ab   : > { %v5996_v55 = vmax.f32 %v5704_v16, 0.0  ;;  %5968 = vmatmul.mubr.bf16.gmra.mrb[252].mxu0 %v5417_v38  ;;  %7079 = vmatpush1.bf16.msra.mxu1 %v8303_v36 }
 0x6ac   : > { %v5997_v24 = vmax.f32 %v5706_v33, 0.0  ;;  %6408 = vmatprep.mubr.bf16.mxu0 %v10005_v44  ;;  %7080 = vmatprep.subr.bf16.mxu1 %v8352_v4 }
 0x6ad   : > { %v10056_v53 = vpack.c.bf16 %v5996_v55, %v5994_v2 }
 0x6ae   : > { %v10058_v28 = vpack.c.bf16 %v5997_v24, %v5995_v9  ;;  %v5709_v40 = vpop.f32.mrb[148].mxu0 }
 0x6af   : > { %v5710_v17 = vadd.f32 %v5709_v40, %v9984_v35  ;;  %v5711_v49 = vpop.f32.mrb[149].mxu0 }
 0x6b0   : > { %v5712_v50 = vadd.f32 %v5711_v49, %v9988_v43  ;;  %v5713_v48 = vpop.f32.mrb[150].mxu0 }
 0x6b1   : > { %v5714_v61 = vadd.f32 %v5713_v48, %v9984_v35  ;;  %v5715_v21 = vpop.f32.mrb[151].mxu0  ;;  %v5998_v5 = vmax.f32 %v5710_v17, 0.0 }
 0x6b2   : > { %v5716_v22 = vadd.f32 %v5715_v21, %v9988_v43  ;;  %v5999_v44 = vmax.f32 %v5712_v50, 0.0 }
 0x6b3   : > { %v6000_v42 = vmax.f32 %v5714_v61, 0.0  ;;  %6409 = vmatmul.mubr.bf16.vlgmr.msra.gmra.mrb[0].mxu0 %v10003_v46 }
 0x6b4   : > { %v6001_v0 = vmax.f32 %v5716_v22, 0.0  ;;  %6418 = vmatprep.mubr.bf16.mxu0 %v10017_v51 }
 0x6b5   : > { %v10066_v8 = vpack.c.bf16 %v6000_v42, %v5998_v5 }
 0x6b6   : > { %v10068_v59 = vpack.c.bf16 %v6001_v0, %v5999_v44  ;;  %v5719_v20 = vpop.f32.mrb[152].mxu0 }
 0x6b7   : > { %v5720_v41 = vadd.f32 %v5719_v20, %v9984_v35  ;;  %v5721_v23 = vpop.f32.mrb[153].mxu0 }
 0x6b8   : > { %v5722_v7 = vadd.f32 %v5721_v23, %v9988_v43  ;;  %v5723_v3 = vpop.f32.mrb[154].mxu0  ;;  %v8304_v23 = vld [vmem:[%s10677_s4 + $0x60] sm:$0xff]  }
 0x6b9   : > { %v5724_v46 = vadd.f32 %v5723_v3, %v9984_v35  ;;  %v5725_v31 = vpop.f32.mrb[155].mxu0  ;;  %v6002_v10 = vmax.f32 %v5720_v41, 0.0  ;;  %7081 = vmatpush1.bf16.msra.mxu1 %v8304_v23 }
 0x6ba   : > { %v5726_v51 = vadd.f32 %v5725_v31, %v9988_v43  ;;  %v6003_v32 = vmax.f32 %v5722_v7, 0.0  ;;  %7082 = vmatprep.subr.bf16.mxu1 %v8352_v4 }
 0x6bb   : > { %v6004_v25 = vmax.f32 %v5724_v46, 0.0  ;;  %6419 = vmatmul.mubr.bf16.gmra.mrb[4].mxu0 %v10015_v18 }
 0x6bc   : > { %v6005_v62 = vmax.f32 %v5726_v51, 0.0  ;;  %6428 = vmatprep.mubr.bf16.mxu0 %v10033_v19 }
 0x6bd   : > { %v10080_v13 = vpack.c.bf16 %v6004_v25, %v6002_v10 }
 0x6be   : > { %v10082_v57 = vpack.c.bf16 %v6005_v62, %v6003_v32  ;;  %v5729_v39 = vpop.f32.mrb[156].mxu0 }
 0x6bf   : > { %v5730_v60 = vadd.f32 %v5729_v39, %v9984_v35  ;;  %v5731_v63 = vpop.f32.mrb[157].mxu0 }
 0x6c0   : > { %v5732_v58 = vadd.f32 %v5731_v63, %v9988_v43  ;;  %v5733_v14 = vpop.f32.mrb[158].mxu0 }
 0x6c1   : > { %v5734_v12 = vadd.f32 %v5733_v14, %v9984_v35  ;;  %v5735_v47 = vpop.f32.mrb[159].mxu0  ;;  %v6006_v34 = vmax.f32 %v5730_v60, 0.0 }
 0x6c2   : > { %v5736_v18 = vadd.f32 %v5735_v47, %v9988_v43  ;;  %v6007_v19 = vmax.f32 %v5732_v58, 0.0 }
 0x6c3   : > { %v6008_v1 = vmax.f32 %v5734_v12, 0.0  ;;  %6429 = vmatmul.mubr.bf16.gmra.mrb[8].mxu0 %v10031_v11 }
 0x6c4   : > { %v6009_v37 = vmax.f32 %v5736_v18, 0.0  ;;  %6438 = vmatprep.mubr.bf16.mxu0 %v10045_v45 }
 0x6c5   : > { %v10090_v38 = vpack.c.bf16 %v6008_v1, %v6006_v34 }
 0x6c6   : > { %v10092_v15 = vpack.c.bf16 %v6009_v37, %v6007_v19  ;;  %v5739_v54 = vpop.f32.mrb[160].mxu0 }
 0x6c7   : > { %v5740_v26 = vadd.f32 %v5739_v54, %v9984_v35  ;;  %v5741_v56 = vpop.f32.mrb[161].mxu0 }
 0x6c8   : > { %v5742_v16 = vadd.f32 %v5741_v56, %v9988_v43  ;;  %v5743_v29 = vpop.f32.mrb[162].mxu0  ;;  %v8305_v56 = vld [vmem:[%s10677_s4 + $0x68] sm:$0xff]  }
 0x6c9   : > { %v5744_v11 = vadd.f32 %v5743_v29, %v9984_v35  ;;  %v5745_v33 = vpop.f32.mrb[163].mxu0  ;;  %v6010_v2 = vmax.f32 %v5740_v26, 0.0  ;;  %7083 = vmatpush1.bf16.msra.mxu1 %v8305_v56 }
 0x6ca   : > { %v5746_v45 = vadd.f32 %v5745_v33, %v9988_v43  ;;  %v6011_v9 = vmax.f32 %v5742_v16, 0.0  ;;  %7084 = vmatprep.subr.bf16.mxu1 %v8352_v4 }
 0x6cb   : > { %v6012_v55 = vmax.f32 %v5744_v11, 0.0  ;;  %6439 = vmatmul.mubr.bf16.gmra.mrb[12].mxu0 %v10043_v30 }
 0x6cc   : > { %v6013_v24 = vmax.f32 %v5746_v45, 0.0  ;;  %6448 = vmatprep.mubr.bf16.mxu0 %v10058_v28 }
 0x6cd   : > { %v10104_v40 = vpack.c.bf16 %v6012_v55, %v6010_v2 }
 0x6ce   : > { %v10106_v17 = vpack.c.bf16 %v6013_v24, %v6011_v9  ;;  %v5749_v49 = vpop.f32.mrb[164].mxu0 }
 0x6cf   : > { %v5750_v50 = vadd.f32 %v5749_v49, %v9984_v35  ;;  %v5751_v48 = vpop.f32.mrb[165].mxu0 }
 0x6d0   : > { %v5752_v61 = vadd.f32 %v5751_v48, %v9988_v43  ;;  %v5753_v21 = vpop.f32.mrb[166].mxu0 }
 0x6d1   : > { %v5754_v22 = vadd.f32 %v5753_v21, %v9984_v35  ;;  %v5755_v5 = vpop.f32.mrb[167].mxu0  ;;  %v6014_v42 = vmax.f32 %v5750_v50, 0.0 }
 0x6d2   : > { %v5756_v30 = vadd.f32 %v5755_v5, %v9988_v43  ;;  %v6015_v28 = vmax.f32 %v5752_v61, 0.0 }
 0x6d3   : > { %v6016_v44 = vmax.f32 %v5754_v22, 0.0  ;;  %6449 = vmatmul.mubr.bf16.gmra.mrb[16].mxu0 %v10056_v53 }
 0x6d4   : > { %v6017_v0 = vmax.f32 %v5756_v30, 0.0  ;;  %6458 = vmatprep.mubr.bf16.mxu0 %v10068_v59 }
 0x6d5   : > { %v10114_v20 = vpack.c.bf16 %v6016_v44, %v6014_v42 }
 0x6d6   : > { %v10116_v52 = vpack.c.bf16 %v6017_v0, %v6015_v28  ;;  %v5759_v41 = vpop.f32.mrb[168].mxu0 }
 0x6d7   : > { %v5760_v7 = vadd.f32 %v5759_v41, %v9984_v35  ;;  %v5761_v3 = vpop.f32.mrb[169].mxu0 }
 0x6d8   : > { %v5762_v46 = vadd.f32 %v5761_v3, %v9988_v43  ;;  %v5763_v31 = vpop.f32.mrb[170].mxu0  ;;  %v8306_v3 = vld [vmem:[%s10677_s4 + $0x70] sm:$0xff]  }
 0x6d9   : > { %v5764_v53 = vadd.f32 %v5763_v31, %v9984_v35  ;;  %v5765_v51 = vpop.f32.mrb[171].mxu0  ;;  %v6018_v10 = vmax.f32 %v5760_v7, 0.0  ;;  %7085 = vmatpush1.bf16.msra.mxu1 %v8306_v3 }
 0x6da   : > { %v5766_v59 = vadd.f32 %v5765_v51, %v9988_v43  ;;  %v6019_v32 = vmax.f32 %v5762_v46, 0.0  ;;  %7086 = vmatprep.subr.bf16.mxu1 %v8352_v4 }
 0x6db   : > { %v6020_v25 = vmax.f32 %v5764_v53, 0.0  ;;  %6459 = vmatmul.mubr.bf16.gmra.mrb[20].mxu0 %v10066_v8 }
 0x6dc   : > { %v6021_v62 = vmax.f32 %v5766_v59, 0.0  ;;  %6468 = vmatprep.mubr.bf16.mxu0 %v10082_v57 }
 0x6dd   : > { %v10128_v39 = vpack.c.bf16 %v6020_v25, %v6018_v10 }
 0x6de   : > { %v10130_v60 = vpack.c.bf16 %v6021_v62, %v6019_v32  ;;  %v5769_v63 = vpop.f32.mrb[172].mxu0 }
 0x6df   : > { %v5770_v58 = vadd.f32 %v5769_v63, %v9984_v35  ;;  %v5771_v14 = vpop.f32.mrb[173].mxu0 }
 0x6e0   : > { %v5772_v12 = vadd.f32 %v5771_v14, %v9988_v43  ;;  %v5773_v47 = vpop.f32.mrb[174].mxu0 }
 0x6e1   : > { %v5774_v18 = vadd.f32 %v5773_v47, %v9984_v35  ;;  %v5775_v34 = vpop.f32.mrb[175].mxu0  ;;  %v6022_v1 = vmax.f32 %v5770_v58, 0.0 }
 0x6e2   : > { %v5776_v8 = vadd.f32 %v5775_v34, %v9988_v43  ;;  %v6023_v57 = vmax.f32 %v5772_v12, 0.0 }
 0x6e3   : > { %v6024_v19 = vmax.f32 %v5774_v18, 0.0  ;;  %6469 = vmatmul.mubr.bf16.gmra.mrb[24].mxu0 %v10080_v13 }
 0x6e4   : > { %v6025_v37 = vmax.f32 %v5776_v8, 0.0  ;;  %6478 = vmatprep.mubr.bf16.mxu0 %v10092_v15 }
 0x6e5   : > { %v10138_v54 = vpack.c.bf16 %v6024_v19, %v6022_v1 }
 0x6e6   : > { %v10140_v36 = vpack.c.bf16 %v6025_v37, %v6023_v57  ;;  %v5779_v26 = vpop.f32.mrb[176].mxu0 }
 0x6e7   : > { %v5780_v16 = vadd.f32 %v5779_v26, %v9984_v35  ;;  %v5781_v29 = vpop.f32.mrb[177].mxu0 }
 0x6e8   : > { %v5782_v11 = vadd.f32 %v5781_v29, %v9988_v43  ;;  %v5783_v33 = vpop.f32.mrb[178].mxu0 }
 0x6e9   : > { %v5784_v13 = vadd.f32 %v5783_v33, %v9984_v35  ;;  %v5785_v45 = vpop.f32.mrb[179].mxu0  ;;  %v6026_v2 = vmax.f32 %v5780_v16, 0.0  ;;  %v8307_v16 = vld [vmem:[%s10677_s4 + $0x78] sm:$0xff]  }
 0x6ea   : > { %v5786_v15 = vadd.f32 %v5785_v45, %v9988_v43  ;;  %v6027_v9 = vmax.f32 %v5782_v11, 0.0  ;;  %7087 = vmatpush1.bf16.msra.mxu1 %v8307_v16 }
 0x6eb   : > { %v6028_v55 = vmax.f32 %v5784_v13, 0.0  ;;  %6479 = vmatmul.mubr.bf16.gmra.mrb[28].mxu0 %v10090_v38 }
 0x6ec   : > { %v6029_v24 = vmax.f32 %v5786_v15, 0.0  ;;  %6488 = vmatprep.mubr.bf16.mxu0 %v10106_v17 }
 0x6ed   : > { %v10152_v49 = vpack.c.bf16 %v6028_v55, %v6026_v2 }
 0x6ee   : > { %v10154_v50 = vpack.c.bf16 %v6029_v24, %v6027_v9  ;;  %v5789_v48 = vpop.f32.mrb[180].mxu0 }
 0x6ef   : > { %v5790_v61 = vadd.f32 %v5789_v48, %v9984_v35  ;;  %v5791_v21 = vpop.f32.mrb[181].mxu0 }
 0x6f0   : > { %v5792_v22 = vadd.f32 %v5791_v21, %v9988_v43  ;;  %v5793_v5 = vpop.f32.mrb[182].mxu0 }
 0x6f1   : > { %v5794_v30 = vadd.f32 %v5793_v5, %v9984_v35  ;;  %v5795_v42 = vpop.f32.mrb[183].mxu0  ;;  %v6030_v44 = vmax.f32 %v5790_v61, 0.0 }
 0x6f2   : > { %v5796_v38 = vadd.f32 %v5795_v42, %v9988_v43  ;;  %v6031_v17 = vmax.f32 %v5792_v22, 0.0 }
 0x6f3   : > { %v6032_v28 = vmax.f32 %v5794_v30, 0.0  ;;  %6489 = vmatmul.mubr.bf16.gmra.mrb[32].mxu0 %v10104_v40 }
 0x6f4   : > { %v6033_v0 = vmax.f32 %v5796_v38, 0.0  ;;  %6498 = vmatprep.mubr.bf16.mxu0 %v10116_v52 }
 0x6f5   : > { %v10162_v41 = vpack.c.bf16 %v6032_v28, %v6030_v44 }
 0x6f6   : > { %v10164_v23 = vpack.c.bf16 %v6033_v0, %v6031_v17  ;;  %v5799_v7 = vpop.f32.mrb[184].mxu0 }
 0x6f7   : > { %v5800_v46 = vadd.f32 %v5799_v7, %v9984_v35  ;;  %v5801_v31 = vpop.f32.mrb[185].mxu0 }
 0x6f8   : > { %v5802_v53 = vadd.f32 %v5801_v31, %v9988_v43  ;;  %v5803_v51 = vpop.f32.mrb[186].mxu0 }
 0x6f9   : > { %v5804_v40 = vadd.f32 %v5803_v51, %v9984_v35  ;;  %v5805_v59 = vpop.f32.mrb[187].mxu0  ;;  %v6034_v10 = vmax.f32 %v5800_v46, 0.0 }
 0x6fa   : > { %v5806_v52 = vadd.f32 %v5805_v59, %v9988_v43  ;;  %v6035_v32 = vmax.f32 %v5802_v53, 0.0 }
 0x6fb   : > { %v6036_v25 = vmax.f32 %v5804_v40, 0.0  ;;  %6499 = vmatmul.mubr.bf16.gmra.mrb[36].mxu0 %v10114_v20 }
 0x6fc   : > { %v6037_v62 = vmax.f32 %v5806_v52, 0.0  ;;  %6508 = vmatprep.mubr.bf16.mxu0 %v10130_v60 }
 0x6fd   : > { %v10176_v63 = vpack.c.bf16 %v6036_v25, %v6034_v10 }
 0x6fe   : > { %v10178_v58 = vpack.c.bf16 %v6037_v62, %v6035_v32  ;;  %v5809_v14 = vpop.f32.mrb[188].mxu0 }
 0x6ff   : > { %v5810_v12 = vadd.f32 %v5809_v14, %v9984_v35  ;;  %v5811_v47 = vpop.f32.mrb[189].mxu0 }
 0x700   : > { %v5812_v4 = vadd.f32 %v5811_v47, %v9988_v43  ;;  %v5813_v18 = vpop.f32.mrb[190].mxu0 }
 0x701   : > { %v5814_v34 = vadd.f32 %v5813_v18, %v9984_v35  ;;  %v5815_v8 = vpop.f32.mrb[191].mxu0  ;;  %v6038_v1 = vmax.f32 %v5810_v12, 0.0 }
 0x702   : > { %v5816_v20 = vadd.f32 %v5815_v8, %v9988_v43  ;;  %v6039_v60 = vmax.f32 %v5812_v4, 0.0 }
 0x703   : > { %v6040_v19 = vmax.f32 %v5814_v34, 0.0  ;;  %6509 = vmatmul.mubr.bf16.gmra.mrb[40].mxu0 %v10128_v39 }
 0x704   : > { %v6041_v57 = vmax.f32 %v5816_v20, 0.0  ;;  %6518 = vmatprep.mubr.bf16.mxu0 %v10140_v36 }
 0x705   : > { %v10186_v37 = vpack.c.bf16 %v6040_v19, %v6038_v1 }
 0x706   : > { %v10188_v26 = vpack.c.bf16 %v6041_v57, %v6039_v60  ;;  %v5819_v56 = vpop.f32.mrb[192].mxu0 }
 0x707   : > { %v5820_v29 = vadd.f32 %v5819_v56, %v9984_v35  ;;  %v5821_v11 = vpop.f32.mrb[193].mxu0 }
 0x708   : > { %v5822_v33 = vadd.f32 %v5821_v11, %v9988_v43  ;;  %v5823_v13 = vpop.f32.mrb[194].mxu0 }
 0x709   : > { %v5824_v39 = vadd.f32 %v5823_v13, %v9984_v35  ;;  %v5825_v45 = vpop.f32.mrb[195].mxu0  ;;  %v6042_v15 = vmax.f32 %v5820_v29, 0.0 }
 0x70a   : > { %v5826_v36 = vadd.f32 %v5825_v45, %v9988_v43  ;;  %v6043_v55 = vmax.f32 %v5822_v33, 0.0 }
 0x70b   : > { %v6044_v2 = vmax.f32 %v5824_v39, 0.0  ;;  %6519 = vmatmul.mubr.bf16.gmra.mrb[44].mxu0 %v10138_v54 }
 0x70c   : > { %v6045_v9 = vmax.f32 %v5826_v36, 0.0  ;;  %6528 = vmatprep.mubr.bf16.mxu0 %v10154_v50 }
 0x70d   : > { %v10199_v24 = vpack.c.bf16 %v6044_v2, %v6042_v15 }
 0x70e   : > { %v6139_v48 = vpack.c.bf16 %v6045_v9, %v6043_v55  ;;  %v5829_v61 = vpop.f32.mrb[196].mxu0 }
 0x70f   : > { %v5830_v21 = vadd.f32 %v5829_v61, %v9984_v35  ;;  %v5831_v22 = vpop.f32.mrb[197].mxu0 }
 0x710   : > { %v5832_v5 = vadd.f32 %v5831_v22, %v9988_v43  ;;  %v5833_v30 = vpop.f32.mrb[198].mxu0 }
 0x711   : > { %v5834_v42 = vadd.f32 %v5833_v30, %v9984_v35  ;;  %v5835_v38 = vpop.f32.mrb[199].mxu0  ;;  %v6046_v54 = vmax.f32 %v5830_v21, 0.0 }
 0x712   : > { %v5836_v44 = vadd.f32 %v5835_v38, %v9988_v43  ;;  %v6047_v50 = vmax.f32 %v5832_v5, 0.0 }
 0x713   : > { %v6048_v28 = vmax.f32 %v5834_v42, 0.0  ;;  %6529 = vmatmul.mubr.bf16.gmra.mrb[48].mxu0 %v10152_v49 }
 0x714   : > { %v6049_v17 = vmax.f32 %v5836_v44, 0.0  ;;  %6538 = vmatprep.mubr.bf16.mxu0 %v10164_v23 }
 0x715   : > { %v10207_v0 = vpack.c.bf16 %v6048_v28, %v6046_v54 }
 0x716   : > { %v6141_v7 = vpack.c.bf16 %v6049_v17, %v6047_v50  ;;  %v5839_v3 = vpop.f32.mrb[200].mxu0 }
 0x717   : > { %v5840_v46 = vadd.f32 %v5839_v3, %v9984_v35  ;;  %v5841_v31 = vpop.f32.mrb[201].mxu0 }
 0x718   : > { %v5842_v53 = vadd.f32 %v5841_v31, %v9988_v43  ;;  %v5843_v51 = vpop.f32.mrb[202].mxu0 }
 0x719   : > { %v5844_v40 = vadd.f32 %v5843_v51, %v9984_v35  ;;  %v5845_v59 = vpop.f32.mrb[203].mxu0  ;;  %v6050_v49 = vmax.f32 %v5840_v46, 0.0 }
 0x71a   : > { %v5846_v52 = vadd.f32 %v5845_v59, %v9988_v43  ;;  %v6051_v23 = vmax.f32 %v5842_v53, 0.0 }
 0x71b   : > { %v6052_v10 = vmax.f32 %v5844_v40, 0.0  ;;  %6539 = vmatmul.mubr.bf16.gmra.mrb[52].mxu0 %v10162_v41 }
 0x71c   : > { %v6053_v25 = vmax.f32 %v5846_v52, 0.0  ;;  %6548 = vmatprep.mubr.bf16.mxu0 %v10178_v58 }
 0x71d   : > { %v10215_v32 = vpack.c.bf16 %v6052_v10, %v6050_v49 }
 0x71e   : > { %v6143_v62 = vpack.c.bf16 %v6053_v25, %v6051_v23  ;;  %v5849_v14 = vpop.f32.mrb[204].mxu0 }
 0x71f   : > { %v5850_v12 = vadd.f32 %v5849_v14, %v9984_v35  ;;  %v5851_v47 = vpop.f32.mrb[205].mxu0 }
 0x720   : > { %v5852_v4 = vadd.f32 %v5851_v47, %v9988_v43  ;;  %v5853_v18 = vpop.f32.mrb[206].mxu0 }
 0x721   : > { %v5854_v34 = vadd.f32 %v5853_v18, %v9984_v35  ;;  %v5855_v8 = vpop.f32.mrb[207].mxu0  ;;  %v6054_v41 = vmax.f32 %v5850_v12, 0.0 }
 0x722   : > { %v5856_v20 = vadd.f32 %v5855_v8, %v9988_v43  ;;  %v6055_v58 = vmax.f32 %v5852_v4, 0.0 }
 0x723   : > { %v6056_v1 = vmax.f32 %v5854_v34, 0.0  ;;  %6549 = vmatmul.mubr.bf16.gmra.mrb[56].mxu0 %v10176_v63 }
 0x724   : > { %v6057_v19 = vmax.f32 %v5856_v20, 0.0  ;;  %6558 = vmatprep.mubr.bf16.mxu0 %v10188_v26 }
 0x725   : > { %v10223_v60 = vpack.c.bf16 %v6056_v1, %v6054_v41 }
 0x726   : > { %v6145_v57 = vpack.c.bf16 %v6057_v19, %v6055_v58  ;;  %v5859_v56 = vpop.f32.mrb[208].mxu0 }
 0x727   : > { %v5860_v16 = vadd.f32 %v5859_v56, %v9984_v35  ;;  %v5861_v29 = vpop.f32.mrb[209].mxu0 }
 0x728   : > { %v5862_v11 = vadd.f32 %v5861_v29, %v9988_v43  ;;  %v5863_v33 = vpop.f32.mrb[210].mxu0 }
 0x729   : > { %v5864_v13 = vadd.f32 %v5863_v33, %v9984_v35  ;;  %v5865_v39 = vpop.f32.mrb[211].mxu0  ;;  %v6058_v63 = vmax.f32 %v5860_v16, 0.0 }
 0x72a   : > { %v5866_v45 = vadd.f32 %v5865_v39, %v9988_v43  ;;  %v6059_v26 = vmax.f32 %v5862_v11, 0.0 }
 0x72b   : > { %v6060_v36 = vmax.f32 %v5864_v13, 0.0  ;;  %6559 = vmatmul.mubr.bf16.gmra.mrb[60].mxu0 %v10186_v37 }
 0x72c   : > { %v6061_v15 = vmax.f32 %v5866_v45, 0.0  ;;  %6568 = vmatprep.mubr.bf16.mxu0 %v6139_v48 }
 0x72d   : > { %v10230_v2 = vpack.c.bf16 %v6060_v36, %v6058_v63 }
 0x72e   : > { %v6147_v55 = vpack.c.bf16 %v6061_v15, %v6059_v26  ;;  %v5869_v9 = vpop.f32.mrb[212].mxu0 }
 0x72f   : > { %v5870_v61 = vadd.f32 %v5869_v9, %v9984_v35  ;;  %v5871_v21 = vpop.f32.mrb[213].mxu0 }
 0x730   : > { %v5872_v22 = vadd.f32 %v5871_v21, %v9988_v43  ;;  %v5873_v5 = vpop.f32.mrb[214].mxu0 }
 0x731   : > { %v5874_v30 = vadd.f32 %v5873_v5, %v9984_v35  ;;  %v5875_v42 = vpop.f32.mrb[215].mxu0  ;;  %v6062_v44 = vmax.f32 %v5870_v61, 0.0 }
 0x732   : > { %v5876_v38 = vadd.f32 %v5875_v42, %v9988_v43  ;;  %v6063_v48 = vmax.f32 %v5872_v22, 0.0 }
 0x733   : > { %v6064_v37 = vmax.f32 %v5874_v30, 0.0  ;;  %6569 = vmatmul.mubr.bf16.gmra.mrb[64].mxu0 %v10199_v24 }
 0x734   : > { %v6065_v54 = vmax.f32 %v5876_v38, 0.0  ;;  %6578 = vmatprep.mubr.bf16.mxu0 %v6141_v7 }
 0x735   : > { %v10237_v28 = vpack.c.bf16 %v6064_v37, %v6062_v44 }
 0x736   : > { %v6149_v50 = vpack.c.bf16 %v6065_v54, %v6063_v48  ;;  %v5879_v17 = vpop.f32.mrb[216].mxu0 }
 0x737   : > { %v5880_v3 = vadd.f32 %v5879_v17, %v9984_v35  ;;  %v5881_v46 = vpop.f32.mrb[217].mxu0 }
 0x738   : > { %v5882_v31 = vadd.f32 %v5881_v46, %v9988_v43  ;;  %v5883_v53 = vpop.f32.mrb[218].mxu0 }
 0x739   : > { %v5884_v51 = vadd.f32 %v5883_v53, %v9984_v35  ;;  %v5885_v40 = vpop.f32.mrb[219].mxu0  ;;  %v6066_v52 = vmax.f32 %v5880_v3, 0.0 }
 0x73a   : > { %v5886_v59 = vadd.f32 %v5885_v40, %v9988_v43  ;;  %v6067_v7 = vmax.f32 %v5882_v31, 0.0 }
 0x73b   : > { %v6068_v24 = vmax.f32 %v5884_v51, 0.0  ;;  %6579 = vmatmul.mubr.bf16.gmra.mrb[68].mxu0 %v10207_v0 }
 0x73c   : > { %v6069_v49 = vmax.f32 %v5886_v59, 0.0  ;;  %6588 = vmatprep.mubr.bf16.mxu0 %v6143_v62 }
 0x73d   : > { %v10244_v10 = vpack.c.bf16 %v6068_v24, %v6066_v52 }
 0x73e   : > { %v6151_v23 = vpack.c.bf16 %v6069_v49, %v6067_v7  ;;  %v5889_v25 = vpop.f32.mrb[220].mxu0 }
 0x73f   : > { %v5890_v14 = vadd.f32 %v5889_v25, %v9984_v35  ;;  %v5891_v12 = vpop.f32.mrb[221].mxu0 }
 0x740   : > { %v5892_v47 = vadd.f32 %v5891_v12, %v9988_v43  ;;  %v5893_v4 = vpop.f32.mrb[222].mxu0 }
 0x741   : > { %v5894_v18 = vadd.f32 %v5893_v4, %v9984_v35  ;;  %v5895_v34 = vpop.f32.mrb[223].mxu0  ;;  %v6070_v20 = vmax.f32 %v5890_v14, 0.0 }
 0x742   : > { %v5896_v8 = vadd.f32 %v5895_v34, %v9988_v43  ;;  %v6071_v62 = vmax.f32 %v5892_v47, 0.0 }
 0x743   : > { %v6072_v0 = vmax.f32 %v5894_v18, 0.0  ;;  %6589 = vmatmul.mubr.bf16.gmra.mrb[72].mxu0 %v10215_v32 }
 0x744   : > { %v6073_v41 = vmax.f32 %v5896_v8, 0.0  ;;  %6598 = vmatprep.mubr.bf16.mxu0 %v6145_v57 }
 0x745   : > { %v10251_v1 = vpack.c.bf16 %v6072_v0, %v6070_v20 }
 0x746   : > { %v6153_v58 = vpack.c.bf16 %v6073_v41, %v6071_v62  ;;  %v5899_v19 = vpop.f32.mrb[224].mxu0 }
 0x747   : > { %v5900_v56 = vadd.f32 %v5899_v19, %v9984_v35  ;;  %v5901_v16 = vpop.f32.mrb[225].mxu0 }
 0x748   : > { %v5902_v29 = vadd.f32 %v5901_v16, %v9988_v43  ;;  %v5903_v11 = vpop.f32.mrb[226].mxu0 }
 0x749   : > { %v5904_v33 = vadd.f32 %v5903_v11, %v9984_v35  ;;  %v5905_v13 = vpop.f32.mrb[227].mxu0  ;;  %v6074_v45 = vmax.f32 %v5900_v56, 0.0 }
 0x74a   : > { %v5906_v39 = vadd.f32 %v5905_v13, %v9988_v43  ;;  %v6075_v57 = vmax.f32 %v5902_v29, 0.0 }
 0x74b   : > { %v6076_v32 = vmax.f32 %v5904_v33, 0.0  ;;  %6599 = vmatmul.mubr.bf16.gmra.mrb[76].mxu0 %v10223_v60 }
 0x74c   : > { %v6077_v63 = vmax.f32 %v5906_v39, 0.0  ;;  %6608 = vmatprep.mubr.bf16.mxu0 %v6147_v55 }
 0x74d   : > { %v10258_v36 = vpack.c.bf16 %v6076_v32, %v6074_v45 }
 0x74e   : > { %v6155_v26 = vpack.c.bf16 %v6077_v63, %v6075_v57  ;;  %v5909_v15 = vpop.f32.mrb[228].mxu0 }
 0x74f   : > { %v5910_v9 = vadd.f32 %v5909_v15, %v9984_v35  ;;  %v5911_v61 = vpop.f32.mrb[229].mxu0 }
 0x750   : > { %v5912_v21 = vadd.f32 %v5911_v61, %v9988_v43  ;;  %v5913_v22 = vpop.f32.mrb[230].mxu0 }
 0x751   : > { %v5914_v5 = vadd.f32 %v5913_v22, %v9984_v35  ;;  %v5915_v30 = vpop.f32.mrb[231].mxu0  ;;  %v6078_v38 = vmax.f32 %v5910_v9, 0.0 }
 0x752   : > { %v5916_v42 = vadd.f32 %v5915_v30, %v9988_v43  ;;  %v6079_v55 = vmax.f32 %v5912_v21, 0.0 }
 0x753   : > { %v6080_v60 = vmax.f32 %v5914_v5, 0.0  ;;  %6609 = vmatmul.mubr.bf16.gmra.mrb[80].mxu0 %v10230_v2 }
 0x754   : > { %v6081_v44 = vmax.f32 %v5916_v42, 0.0  ;;  %6618 = vmatprep.mubr.bf16.mxu0 %v6149_v50 }
 0x755   : > { %v10265_v37 = vpack.c.bf16 %v6080_v60, %v6078_v38 }
 0x756   : > { %v6157_v48 = vpack.c.bf16 %v6081_v44, %v6079_v55  ;;  %v5919_v54 = vpop.f32.mrb[232].mxu0 }
 0x757   : > { %v5920_v17 = vadd.f32 %v5919_v54, %v9984_v35  ;;  %v5921_v3 = vpop.f32.mrb[233].mxu0 }
 0x758   : > { %v5922_v46 = vadd.f32 %v5921_v3, %v9988_v43  ;;  %v5923_v31 = vpop.f32.mrb[234].mxu0 }
 0x759   : > { %v5924_v53 = vadd.f32 %v5923_v31, %v9984_v35  ;;  %v5925_v51 = vpop.f32.mrb[235].mxu0  ;;  %v6082_v59 = vmax.f32 %v5920_v17, 0.0 }
 0x75a   : > { %v5926_v40 = vadd.f32 %v5925_v51, %v9988_v43  ;;  %v6083_v50 = vmax.f32 %v5922_v46, 0.0 }
 0x75b   : > { %v6084_v2 = vmax.f32 %v5924_v53, 0.0  ;;  %6619 = vmatmul.mubr.bf16.gmra.mrb[84].mxu0 %v10237_v28 }
 0x75c   : > { %v6085_v52 = vmax.f32 %v5926_v40, 0.0  ;;  %6628 = vmatprep.mubr.bf16.mxu0 %v6151_v23 }
 0x75d   : > { %v10272_v24 = vpack.c.bf16 %v6084_v2, %v6082_v59 }
 0x75e   : > { %v6159_v7 = vpack.c.bf16 %v6085_v52, %v6083_v50  ;;  %v5929_v49 = vpop.f32.mrb[236].mxu0 }
 0x75f   : > { %v5930_v25 = vadd.f32 %v5929_v49, %v9984_v35  ;;  %v5931_v14 = vpop.f32.mrb[237].mxu0 }
 0x760   : > { %v5932_v12 = vadd.f32 %v5931_v14, %v9988_v43  ;;  %v5933_v47 = vpop.f32.mrb[238].mxu0  ;;  %v7751_v14 = vld [vmem:[%s10676_s3 + $0x7] ss:$8 sm:$0x3] }
 0x761   : > { %v5934_v4 = vadd.f32 %v5933_v47, %v9984_v35  ;;  %v5935_v18 = vpop.f32.mrb[239].mxu0  ;;  %v6086_v8 = vmax.f32 %v5930_v25, 0.0 }
 0x762   : > { %v5936_v34 = vadd.f32 %v5935_v18, %v9988_v43  ;;  %v6087_v23 = vmax.f32 %v5932_v12, 0.0  ;;  %v10318_v18 = vrot.slane %v7751_v14, %v8699_v27 }
 0x763   : > { %v6088_v28 = vmax.f32 %v5934_v4, 0.0  ;;  %6629 = vmatmul.mubr.bf16.gmra.mrb[88].mxu0 %v10244_v10 }
 0x764   : > { %v6089_v20 = vmax.f32 %v5936_v34, 0.0  ;;  %6638 = vmatprep.mubr.bf16.mxu0 %v6153_v58 }
 0x765   : > { %v10279_v0 = vpack.c.bf16 %v6088_v28, %v6086_v8  ;;  %v10322_v28 = vrot.slane %v7751_v14, %v8707_v6 }
 0x766   : > { %v10281_v62 = vpack.c.bf16 %v6089_v20, %v6087_v23  ;;  %v5939_v41 = vpop.f32.mrb[240].mxu0 }
 0x767   : > { %v5940_v19 = vadd.f32 %v5939_v41, %v9984_v35  ;;  %v5941_v56 = vpop.f32.mrb[241].mxu0 }
 0x768   : > { %v5942_v16 = vadd.f32 %v5941_v56, %v9988_v43  ;;  %v5943_v29 = vpop.f32.mrb[242].mxu0 }
 0x769   : > { %v5944_v11 = vadd.f32 %v5943_v29, %v9984_v35  ;;  %v5945_v33 = vpop.f32.mrb[243].mxu0  ;;  %v6090_v10 = vmax.f32 %v5940_v19, 0.0 }
 0x76a   : > { %v5946_v13 = vadd.f32 %v5945_v33, %v9988_v43  ;;  %v6091_v58 = vmax.f32 %v5942_v16, 0.0 }
 0x76b   : > { %v6092_v39 = vmax.f32 %v5944_v11, 0.0  ;;  %6639 = vmatmul.mubr.bf16.gmra.mrb[92].mxu0 %v10251_v1 }
 0x76c   : > { %v6093_v45 = vmax.f32 %v5946_v13, 0.0  ;;  %6648 = vmatprep.mubr.bf16.mxu0 %v6155_v26 }
 0x76d   : > { %v10288_v32 = vpack.c.bf16 %v6092_v39, %v6090_v10 }
 0x76e   : > { %v10290_v57 = vpack.c.bf16 %v6093_v45, %v6091_v58  ;;  %v5949_v63 = vpop.f32.mrb[244].mxu0 }
 0x76f   : > { %v5950_v15 = vadd.f32 %v5949_v63, %v9984_v35  ;;  %v5951_v9 = vpop.f32.mrb[245].mxu0 }
 0x770   : > { %v5952_v61 = vadd.f32 %v5951_v9, %v9988_v43  ;;  %v5953_v21 = vpop.f32.mrb[246].mxu0 }
 0x771   : > { %v5954_v22 = vadd.f32 %v5953_v21, %v9984_v35  ;;  %v5955_v5 = vpop.f32.mrb[247].mxu0  ;;  %v6094_v1 = vmax.f32 %v5950_v15, 0.0 }
 0x772   : > { %v5956_v30 = vadd.f32 %v5955_v5, %v9988_v43  ;;  %v6095_v26 = vmax.f32 %v5952_v61, 0.0 }
 0x773   : > { %v6096_v42 = vmax.f32 %v5954_v22, 0.0  ;;  %6649 = vmatmul.mubr.bf16.gmra.mrb[96].mxu0 %v10258_v36 }
 0x774   : > { %v6097_v38 = vmax.f32 %v5956_v30, 0.0  ;;  %6658 = vmatprep.mubr.bf16.mxu0 %v6157_v48 }
 0x775   : > { %v10297_v60 = vpack.c.bf16 %v6096_v42, %v6094_v1 }
 0x776   : > { %v10299_v55 = vpack.c.bf16 %v6097_v38, %v6095_v26  ;;  %v5959_v44 = vpop.f32.mrb[248].mxu0 }
 0x777   : > { %v5960_v54 = vadd.f32 %v5959_v44, %v9984_v35  ;;  %v5961_v17 = vpop.f32.mrb[249].mxu0 }
 0x778   : > { %v5962_v3 = vadd.f32 %v5961_v17, %v9988_v43  ;;  %v5963_v46 = vpop.f32.mrb[250].mxu0 }
 0x779   : > { %v5964_v31 = vadd.f32 %v5963_v46, %v9984_v35  ;;  %v5965_v53 = vpop.f32.mrb[251].mxu0  ;;  %v6098_v36 = vmax.f32 %v5960_v54, 0.0 }
 0x77a   : > { %v5966_v51 = vadd.f32 %v5965_v53, %v9988_v43  ;;  %v6099_v48 = vmax.f32 %v5962_v3, 0.0 }
 0x77b   : > { %v6100_v40 = vmax.f32 %v5964_v31, 0.0  ;;  %6659 = vmatmul.mubr.bf16.gmra.mrb[100].mxu0 %v10265_v37 }
 0x77c   : > { %v6101_v59 = vmax.f32 %v5966_v51, 0.0  ;;  %6668 = vmatprep.mubr.bf16.mxu0 %v6159_v7 }
 0x77d   : > { %v10306_v2 = vpack.c.bf16 %v6100_v40, %v6098_v36 }
 0x77e   : > { %v10308_v50 = vpack.c.bf16 %v6101_v59, %v6099_v48  ;;  %v5969_v52 = vpop.f32.mrb[252].mxu0 }
 0x77f   : > { %v5970_v49 = vadd.f32 %v5969_v52, %v9984_v35  ;;  %v5971_v25 = vpop.f32.mrb[253].mxu0 }
 0x780   : > { %v5972_v12 = vadd.f32 %v5971_v25, %v9988_v43  ;;  %v5973_v47 = vpop.f32.mrb[254].mxu0 }
 0x781   : > { %v5974_v37 = vadd.f32 %v5973_v47, %v9984_v35  ;;  %v5975_v4 = vpop.f32.mrb[255].mxu0  ;;  %v6102_v34 = vmax.f32 %v5970_v49, 0.0 }
 0x782   : > { %v5976_v7 = vadd.f32 %v5975_v4, %v9988_v43  ;;  %v6103_v23 = vmax.f32 %v5972_v12, 0.0 }
 0x783   : > { %v6104_v8 = vmax.f32 %v5974_v37, 0.0  ;;  %6669 = vmatmul.mubr.bf16.gmra.mrb[104].mxu0 %v10272_v24 }
 0x784   : > { %v6105_v20 = vmax.f32 %v5976_v7, 0.0  ;;  %6678 = vmatprep.mubr.bf16.mxu0 %v10281_v62 }
 0x785   : > { %v10325_v41 = vpack.c.bf16 %v6104_v8, %v6102_v34 }
 0x786   : > { %v10327_v35 = vpack.c.bf16 %v6105_v20, %v6103_v23  ;;  %v6410_v19 = vpop.f32.mrb[0].mxu0 }
 0x787   : > { %v6411_v43 = vadd.f32 %v6410_v19, %v10318_v18  ;;  %v6412_v27 = vpop.f32.mrb[1].mxu0 }
 0x788   : > { %v6413_v56 = vadd.f32 %v6412_v27, %v10322_v28  ;;  %v6414_v16 = vpop.f32.mrb[2].mxu0 }
 0x789   : > { %v6415_v24 = vadd.f32 %v6414_v16, %v10318_v18  ;;  %v6416_v29 = vpop.f32.mrb[3].mxu0  ;;  %v6729_v11 = vmax.f32 %v6411_v43, 0.0 }
 0x78a   : > { %v6417_v6 = vadd.f32 %v6416_v29, %v10322_v28  ;;  %v6730_v62 = vmax.f32 %v6413_v56, 0.0 }
 0x78b   : > { %v6731_v33 = vmax.f32 %v6415_v24, 0.0  ;;  %6679 = vmatmul.mubr.bf16.gmra.mrb[108].mxu0 %v10279_v0 }
 0x78c   : > { %v6732_v13 = vmax.f32 %v6417_v6, 0.0  ;;  %6688 = vmatprep.mubr.bf16.mxu0 %v10290_v57 }
 0x78d   : > { %v6857_v10 = vpack.c.bf16 %v6731_v33, %v6729_v11 }
 0x78e   : > { %v6858_v39 = vpack.c.bf16 %v6732_v13, %v6730_v62  ;;  %v6420_v58 = vpop.f32.mrb[4].mxu0 }
 0x78f   : > { %v6421_v45 = vadd.f32 %v6420_v58, %v10318_v18  ;;  %v6422_v63 = vpop.f32.mrb[5].mxu0 }
 0x790   : > { %v6423_v15 = vadd.f32 %v6422_v63, %v10322_v28  ;;  %v6424_v9 = vpop.f32.mrb[6].mxu0  ;;  %7088 = vmatprep.mubr.bf16.mxu1 %v6858_v39 }
 0x791   : > { %v6425_v61 = vadd.f32 %v6424_v9, %v10318_v18  ;;  %v6426_v21 = vpop.f32.mrb[7].mxu0  ;;  %7089 = vmatmul.mubr.bf16.vlgmr.msra.gmra.mrb[128].mxu1 %v6857_v10  ;;  %v6733_v22 = vmax.f32 %v6421_v45, 0.0 }
 0x792   : > { %v6427_v0 = vadd.f32 %v6426_v21, %v10322_v28  ;;  %v6734_v57 = vmax.f32 %v6423_v15, 0.0 }
 0x793   : > { %v6735_v5 = vmax.f32 %v6425_v61, 0.0  ;;  %6689 = vmatmul.mubr.bf16.gmra.mrb[112].mxu0 %v10288_v32 }
 0x794   : > { %v6736_v30 = vmax.f32 %v6427_v0, 0.0  ;;  %6698 = vmatprep.mubr.bf16.mxu0 %v10299_v55 }
 0x795   : > { %v6859_v1 = vpack.c.bf16 %v6735_v5, %v6733_v22 }
 0x796   : > { %v6860_v42 = vpack.c.bf16 %v6736_v30, %v6734_v57  ;;  %v6430_v26 = vpop.f32.mrb[8].mxu0 }
 0x797   : > { %v6431_v38 = vadd.f32 %v6430_v26, %v10318_v18  ;;  %v6432_v44 = vpop.f32.mrb[9].mxu0 }
 0x798   : > { %v6433_v54 = vadd.f32 %v6432_v44, %v10322_v28  ;;  %v6434_v17 = vpop.f32.mrb[10].mxu0  ;;  %7096 = vmatprep.mubr.bf16.mxu1 %v6860_v42 }
 0x799   : > { %v6435_v3 = vadd.f32 %v6434_v17, %v10318_v18  ;;  %v6436_v46 = vpop.f32.mrb[11].mxu0  ;;  %7097 = vmatmul.mubr.bf16.gmra.mrb[132].mxu1 %v6859_v1  ;;  %v6737_v31 = vmax.f32 %v6431_v38, 0.0 }
 0x79a   : > { %v6437_v32 = vadd.f32 %v6436_v46, %v10322_v28  ;;  %v6738_v55 = vmax.f32 %v6433_v54, 0.0 }
 0x79b   : > { %v6739_v53 = vmax.f32 %v6435_v3, 0.0  ;;  %6699 = vmatmul.mubr.bf16.gmra.mrb[116].mxu0 %v10297_v60 }
 0x79c   : > { %v6740_v51 = vmax.f32 %v6437_v32, 0.0  ;;  %6708 = vmatprep.mubr.bf16.mxu0 %v10308_v50 }
 0x79d   : > { %v6861_v36 = vpack.c.bf16 %v6739_v53, %v6737_v31 }
 0x79e   : > { %v6862_v40 = vpack.c.bf16 %v6740_v51, %v6738_v55  ;;  %v6440_v48 = vpop.f32.mrb[12].mxu0 }
 0x79f   : > { %v6441_v59 = vadd.f32 %v6440_v48, %v10318_v18  ;;  %v6442_v52 = vpop.f32.mrb[13].mxu0 }
 0x7a0   : > { %v6443_v49 = vadd.f32 %v6442_v52, %v10322_v28  ;;  %v6444_v25 = vpop.f32.mrb[14].mxu0  ;;  %7104 = vmatprep.mubr.bf16.mxu1 %v6862_v40 }
 0x7a1   : > { %v6445_v14 = vadd.f32 %v6444_v25, %v10318_v18  ;;  %v6446_v12 = vpop.f32.mrb[15].mxu0  ;;  %7105 = vmatmul.mubr.bf16.gmra.mrb[136].mxu1 %v6861_v36  ;;  %v6741_v47 = vmax.f32 %v6441_v59, 0.0 }
 0x7a2   : > { %v6447_v60 = vadd.f32 %v6446_v12, %v10322_v28  ;;  %v6742_v50 = vmax.f32 %v6443_v49, 0.0 }
 0x7a3   : > { %v6743_v37 = vmax.f32 %v6445_v14, 0.0  ;;  %6709 = vmatmul.mubr.bf16.gmra.mrb[120].mxu0 %v10306_v2 }
 0x7a4   : > { %v6744_v4 = vmax.f32 %v6447_v60, 0.0  ;;  %6718 = vmatprep.mubr.bf16.mxu0 %v10327_v35 }
 0x7a5   : > { %v6863_v7 = vpack.c.bf16 %v6743_v37, %v6741_v47 }
 0x7a6   : > { %v6864_v34 = vpack.c.bf16 %v6744_v4, %v6742_v50  ;;  %v6450_v8 = vpop.f32.mrb[16].mxu0 }
 0x7a7   : > { %v6451_v23 = vadd.f32 %v6450_v8, %v10318_v18  ;;  %v6452_v20 = vpop.f32.mrb[17].mxu0 }
 0x7a8   : > { %v6453_v19 = vadd.f32 %v6452_v20, %v10322_v28  ;;  %v6454_v43 = vpop.f32.mrb[18].mxu0  ;;  %7112 = vmatprep.mubr.bf16.mxu1 %v6864_v34 }
 0x7a9   : > { %v6455_v27 = vadd.f32 %v6454_v43, %v10318_v18  ;;  %v6456_v56 = vpop.f32.mrb[19].mxu0  ;;  %7113 = vmatmul.mubr.bf16.gmra.mrb[140].mxu1 %v6863_v7  ;;  %v6745_v16 = vmax.f32 %v6451_v23, 0.0 }
 0x7aa   : > { %v6457_v2 = vadd.f32 %v6456_v56, %v10322_v28  ;;  %v6746_v35 = vmax.f32 %v6453_v19, 0.0 }
 0x7ab   : > { %v6747_v24 = vmax.f32 %v6455_v27, 0.0  ;;  %6719 = vmatmul.mubr.bf16.gmra.mrb[124].mxu0 %v10325_v41 }
 0x7ac   : > { %v6748_v29 = vmax.f32 %v6457_v2, 0.0 }
 0x7ad   : > { %v6865_v6 = vpack.c.bf16 %v6747_v24, %v6745_v16 }
 0x7ae   : > { %v6866_v11 = vpack.c.bf16 %v6748_v29, %v6746_v35  ;;  %v6460_v33 = vpop.f32.mrb[20].mxu0 }
 0x7af   : > { %v6461_v62 = vadd.f32 %v6460_v33, %v10318_v18  ;;  %v6462_v13 = vpop.f32.mrb[21].mxu0 }
 0x7b0   : > { %v6463_v10 = vadd.f32 %v6462_v13, %v10322_v28  ;;  %v6464_v39 = vpop.f32.mrb[22].mxu0  ;;  %7120 = vmatprep.mubr.bf16.mxu1 %v6866_v11 }
 0x7b1   : > { %v6465_v58 = vadd.f32 %v6464_v39, %v10318_v18  ;;  %v6466_v45 = vpop.f32.mrb[23].mxu0  ;;  %7121 = vmatmul.mubr.bf16.gmra.mrb[144].mxu1 %v6865_v6  ;;  %v6749_v15 = vmax.f32 %v6461_v62, 0.0 }
 0x7b2   : > { %v6467_v63 = vadd.f32 %v6466_v45, %v10322_v28  ;;  %v6750_v9 = vmax.f32 %v6463_v10, 0.0 }
 0x7b3   : > { %v6751_v41 = vmax.f32 %v6465_v58, 0.0 }
 0x7b4   : > { %v6752_v61 = vmax.f32 %v6467_v63, 0.0 }
 0x7b5   : > { %v6867_v21 = vpack.c.bf16 %v6751_v41, %v6749_v15 }
 0x7b6   : > { %v6868_v0 = vpack.c.bf16 %v6752_v61, %v6750_v9  ;;  %v6470_v22 = vpop.f32.mrb[24].mxu0 }
 0x7b7   : > { %v6471_v5 = vadd.f32 %v6470_v22, %v10318_v18  ;;  %v6472_v57 = vpop.f32.mrb[25].mxu0 }
 0x7b8   : > { %v6473_v30 = vadd.f32 %v6472_v57, %v10322_v28  ;;  %v6474_v1 = vpop.f32.mrb[26].mxu0  ;;  %7128 = vmatprep.mubr.bf16.mxu1 %v6868_v0 }
 0x7b9   : > { %v6475_v42 = vadd.f32 %v6474_v1, %v10318_v18  ;;  %v6476_v26 = vpop.f32.mrb[27].mxu0  ;;  %7129 = vmatmul.mubr.bf16.gmra.mrb[148].mxu1 %v6867_v21  ;;  %v6753_v44 = vmax.f32 %v6471_v5, 0.0 }
 0x7ba   : > { %v6477_v38 = vadd.f32 %v6476_v26, %v10322_v28  ;;  %v6754_v17 = vmax.f32 %v6473_v30, 0.0 }
 0x7bb   : > { %v6755_v54 = vmax.f32 %v6475_v42, 0.0 }
 0x7bc   : > { %v6756_v3 = vmax.f32 %v6477_v38, 0.0 }
 0x7bd   : > { %v6869_v46 = vpack.c.bf16 %v6755_v54, %v6753_v44 }
 0x7be   : > { %v6870_v32 = vpack.c.bf16 %v6756_v3, %v6754_v17  ;;  %v6480_v31 = vpop.f32.mrb[28].mxu0 }
 0x7bf   : > { %v6481_v53 = vadd.f32 %v6480_v31, %v10318_v18  ;;  %v6482_v55 = vpop.f32.mrb[29].mxu0 }
 0x7c0   : > { %v6483_v51 = vadd.f32 %v6482_v55, %v10322_v28  ;;  %v6484_v36 = vpop.f32.mrb[30].mxu0  ;;  %7136 = vmatprep.mubr.bf16.mxu1 %v6870_v32 }
 0x7c1   : > { %v6485_v40 = vadd.f32 %v6484_v36, %v10318_v18  ;;  %v6486_v48 = vpop.f32.mrb[31].mxu0  ;;  %7137 = vmatmul.mubr.bf16.gmra.mrb[152].mxu1 %v6869_v46  ;;  %v6757_v52 = vmax.f32 %v6481_v53, 0.0 }
 0x7c2   : > { %v6487_v59 = vadd.f32 %v6486_v48, %v10322_v28  ;;  %v6758_v25 = vmax.f32 %v6483_v51, 0.0 }
 0x7c3   : > { %v6759_v49 = vmax.f32 %v6485_v40, 0.0 }
 0x7c4   : > { %v6760_v14 = vmax.f32 %v6487_v59, 0.0 }
 0x7c5   : > { %v6871_v12 = vpack.c.bf16 %v6759_v49, %v6757_v52 }
 0x7c6   : > { %v6872_v60 = vpack.c.bf16 %v6760_v14, %v6758_v25  ;;  %v6490_v47 = vpop.f32.mrb[32].mxu0 }
 0x7c7   : > { %v6491_v37 = vadd.f32 %v6490_v47, %v10318_v18  ;;  %v6492_v50 = vpop.f32.mrb[33].mxu0 }
 0x7c8   : > { %v6493_v4 = vadd.f32 %v6492_v50, %v10322_v28  ;;  %v6494_v7 = vpop.f32.mrb[34].mxu0  ;;  %7144 = vmatprep.mubr.bf16.mxu1 %v6872_v60 }
 0x7c9   : > { %v6495_v34 = vadd.f32 %v6494_v7, %v10318_v18  ;;  %v6496_v8 = vpop.f32.mrb[35].mxu0  ;;  %7145 = vmatmul.mubr.bf16.gmra.mrb[156].mxu1 %v6871_v12  ;;  %v6761_v20 = vmax.f32 %v6491_v37, 0.0 }
 0x7ca   : > { %v6497_v23 = vadd.f32 %v6496_v8, %v10322_v28  ;;  %v6762_v43 = vmax.f32 %v6493_v4, 0.0 }
 0x7cb   : > { %v6763_v19 = vmax.f32 %v6495_v34, 0.0 }
 0x7cc   : > { %v6764_v27 = vmax.f32 %v6497_v23, 0.0 }
 0x7cd   : > { %v6873_v56 = vpack.c.bf16 %v6763_v19, %v6761_v20 }
 0x7ce   : > { %v6874_v2 = vpack.c.bf16 %v6764_v27, %v6762_v43  ;;  %v6500_v16 = vpop.f32.mrb[36].mxu0 }
 0x7cf   : > { %v6501_v24 = vadd.f32 %v6500_v16, %v10318_v18  ;;  %v6502_v35 = vpop.f32.mrb[37].mxu0 }
 0x7d0   : > { %v6503_v29 = vadd.f32 %v6502_v35, %v10322_v28  ;;  %v6504_v6 = vpop.f32.mrb[38].mxu0  ;;  %7152 = vmatprep.mubr.bf16.mxu1 %v6874_v2 }
 0x7d1   : > { %v6505_v11 = vadd.f32 %v6504_v6, %v10318_v18  ;;  %v6506_v33 = vpop.f32.mrb[39].mxu0  ;;  %7153 = vmatmul.mubr.bf16.gmra.mrb[160].mxu1 %v6873_v56  ;;  %v6765_v13 = vmax.f32 %v6501_v24, 0.0 }
 0x7d2   : > { %v6507_v62 = vadd.f32 %v6506_v33, %v10322_v28  ;;  %v6766_v39 = vmax.f32 %v6503_v29, 0.0 }
 0x7d3   : > { %v6767_v10 = vmax.f32 %v6505_v11, 0.0 }
 0x7d4   : > { %v6768_v58 = vmax.f32 %v6507_v62, 0.0 }
 0x7d5   : > { %v6875_v45 = vpack.c.bf16 %v6767_v10, %v6765_v13 }
 0x7d6   : > { %v6876_v63 = vpack.c.bf16 %v6768_v58, %v6766_v39  ;;  %v6510_v15 = vpop.f32.mrb[40].mxu0 }
 0x7d7   : > { %v6511_v41 = vadd.f32 %v6510_v15, %v10318_v18  ;;  %v6512_v9 = vpop.f32.mrb[41].mxu0 }
 0x7d8   : > { %v6513_v61 = vadd.f32 %v6512_v9, %v10322_v28  ;;  %v6514_v21 = vpop.f32.mrb[42].mxu0  ;;  %7160 = vmatprep.mubr.bf16.mxu1 %v6876_v63 }
 0x7d9   : > { %v6515_v0 = vadd.f32 %v6514_v21, %v10318_v18  ;;  %v6516_v22 = vpop.f32.mrb[43].mxu0  ;;  %7161 = vmatmul.mubr.bf16.gmra.mrb[164].mxu1 %v6875_v45  ;;  %v6769_v57 = vmax.f32 %v6511_v41, 0.0 }
 0x7da   : > { %v6517_v5 = vadd.f32 %v6516_v22, %v10322_v28  ;;  %v6770_v1 = vmax.f32 %v6513_v61, 0.0 }
 0x7db   : > { %v6771_v30 = vmax.f32 %v6515_v0, 0.0 }
 0x7dc   : > { %v6772_v42 = vmax.f32 %v6517_v5, 0.0 }
 0x7dd   : > { %v6877_v26 = vpack.c.bf16 %v6771_v30, %v6769_v57 }
 0x7de   : > { %v6878_v38 = vpack.c.bf16 %v6772_v42, %v6770_v1  ;;  %v6520_v44 = vpop.f32.mrb[44].mxu0 }
 0x7df   : > { %v6521_v54 = vadd.f32 %v6520_v44, %v10318_v18  ;;  %v6522_v17 = vpop.f32.mrb[45].mxu0 }
 0x7e0   : > { %v6523_v3 = vadd.f32 %v6522_v17, %v10322_v28  ;;  %v6524_v46 = vpop.f32.mrb[46].mxu0  ;;  %7168 = vmatprep.mubr.bf16.mxu1 %v6878_v38 }
 0x7e1   : > { %v6525_v32 = vadd.f32 %v6524_v46, %v10318_v18  ;;  %v6526_v31 = vpop.f32.mrb[47].mxu0  ;;  %7169 = vmatmul.mubr.bf16.gmra.mrb[168].mxu1 %v6877_v26  ;;  %v6773_v55 = vmax.f32 %v6521_v54, 0.0 }
 0x7e2   : > { %v6527_v53 = vadd.f32 %v6526_v31, %v10322_v28  ;;  %v6774_v36 = vmax.f32 %v6523_v3, 0.0 }
 0x7e3   : > { %v6775_v51 = vmax.f32 %v6525_v32, 0.0 }
 0x7e4   : > { %v6776_v40 = vmax.f32 %v6527_v53, 0.0 }
 0x7e5   : > { %v6879_v48 = vpack.c.bf16 %v6775_v51, %v6773_v55 }
 0x7e6   : > { %v6880_v59 = vpack.c.bf16 %v6776_v40, %v6774_v36  ;;  %v6530_v52 = vpop.f32.mrb[48].mxu0 }
 0x7e7   : > { %v6531_v49 = vadd.f32 %v6530_v52, %v10318_v18  ;;  %v6532_v25 = vpop.f32.mrb[49].mxu0 }
 0x7e8   : > { %v6533_v14 = vadd.f32 %v6532_v25, %v10322_v28  ;;  %v6534_v12 = vpop.f32.mrb[50].mxu0  ;;  %7176 = vmatprep.mubr.bf16.mxu1 %v6880_v59 }
 0x7e9   : > { %v6535_v60 = vadd.f32 %v6534_v12, %v10318_v18  ;;  %v6536_v47 = vpop.f32.mrb[51].mxu0  ;;  %7177 = vmatmul.mubr.bf16.gmra.mrb[172].mxu1 %v6879_v48  ;;  %v6777_v50 = vmax.f32 %v6531_v49, 0.0 }
 0x7ea   : > { %v6537_v37 = vadd.f32 %v6536_v47, %v10322_v28  ;;  %v6778_v7 = vmax.f32 %v6533_v14, 0.0 }
 0x7eb   : > { %v6779_v4 = vmax.f32 %v6535_v60, 0.0 }
 0x7ec   : > { %v6780_v34 = vmax.f32 %v6537_v37, 0.0 }
 0x7ed   : > { %v6881_v8 = vpack.c.bf16 %v6779_v4, %v6777_v50 }
 0x7ee   : > { %v6882_v23 = vpack.c.bf16 %v6780_v34, %v6778_v7  ;;  %v6540_v20 = vpop.f32.mrb[52].mxu0 }
 0x7ef   : > { %v6541_v19 = vadd.f32 %v6540_v20, %v10318_v18  ;;  %v6542_v43 = vpop.f32.mrb[53].mxu0 }
 0x7f0   : > { %v6543_v27 = vadd.f32 %v6542_v43, %v10322_v28  ;;  %v6544_v56 = vpop.f32.mrb[54].mxu0  ;;  %7184 = vmatprep.mubr.bf16.mxu1 %v6882_v23 }
 0x7f1   : > { %v6545_v2 = vadd.f32 %v6544_v56, %v10318_v18  ;;  %v6546_v16 = vpop.f32.mrb[55].mxu0  ;;  %7185 = vmatmul.mubr.bf16.gmra.mrb[176].mxu1 %v6881_v8  ;;  %v6781_v35 = vmax.f32 %v6541_v19, 0.0 }
 0x7f2   : > { %v6547_v24 = vadd.f32 %v6546_v16, %v10322_v28  ;;  %v6782_v6 = vmax.f32 %v6543_v27, 0.0 }
 0x7f3   : > { %v6783_v29 = vmax.f32 %v6545_v2, 0.0 }
 0x7f4   : > { %v6784_v11 = vmax.f32 %v6547_v24, 0.0 }
 0x7f5   : > { %v6883_v33 = vpack.c.bf16 %v6783_v29, %v6781_v35 }
 0x7f6   : > { %v6884_v62 = vpack.c.bf16 %v6784_v11, %v6782_v6  ;;  %v6550_v13 = vpop.f32.mrb[56].mxu0 }
 0x7f7   : > { %v6551_v10 = vadd.f32 %v6550_v13, %v10318_v18  ;;  %v6552_v39 = vpop.f32.mrb[57].mxu0 }
 0x7f8   : > { %v6553_v58 = vadd.f32 %v6552_v39, %v10322_v28  ;;  %v6554_v45 = vpop.f32.mrb[58].mxu0  ;;  %7192 = vmatprep.mubr.bf16.mxu1 %v6884_v62 }
 0x7f9   : > { %v6555_v63 = vadd.f32 %v6554_v45, %v10318_v18  ;;  %v6556_v15 = vpop.f32.mrb[59].mxu0  ;;  %7193 = vmatmul.mubr.bf16.gmra.mrb[180].mxu1 %v6883_v33  ;;  %v6785_v9 = vmax.f32 %v6551_v10, 0.0 }
 0x7fa   : > { %v6557_v41 = vadd.f32 %v6556_v15, %v10322_v28  ;;  %v6786_v21 = vmax.f32 %v6553_v58, 0.0 }
 0x7fb   : > { %v6787_v61 = vmax.f32 %v6555_v63, 0.0 }
 0x7fc   : > { %v6788_v0 = vmax.f32 %v6557_v41, 0.0 }
 0x7fd   : > { %v6885_v22 = vpack.c.bf16 %v6787_v61, %v6785_v9 }
 0x7fe   : > { %v6886_v5 = vpack.c.bf16 %v6788_v0, %v6786_v21  ;;  %v6560_v57 = vpop.f32.mrb[60].mxu0 }
 0x7ff   : > { %v6561_v30 = vadd.f32 %v6560_v57, %v10318_v18  ;;  %v6562_v1 = vpop.f32.mrb[61].mxu0 }
 0x800   : > { %v6563_v42 = vadd.f32 %v6562_v1, %v10322_v28  ;;  %v6564_v26 = vpop.f32.mrb[62].mxu0  ;;  %7200 = vmatprep.mubr.bf16.mxu1 %v6886_v5 }
 0x801   : > { %v6565_v38 = vadd.f32 %v6564_v26, %v10318_v18  ;;  %v6566_v44 = vpop.f32.mrb[63].mxu0  ;;  %7201 = vmatmul.mubr.bf16.gmra.mrb[184].mxu1 %v6885_v22  ;;  %v6789_v17 = vmax.f32 %v6561_v30, 0.0 }
 0x802   : > { %v6567_v54 = vadd.f32 %v6566_v44, %v10322_v28  ;;  %v6790_v46 = vmax.f32 %v6563_v42, 0.0 }
 0x803   : > { %v6791_v3 = vmax.f32 %v6565_v38, 0.0 }
 0x804   : > { %v6792_v32 = vmax.f32 %v6567_v54, 0.0 }
 0x805   : > { %v6887_v31 = vpack.c.bf16 %v6791_v3, %v6789_v17 }
 0x806   : > { %v6888_v53 = vpack.c.bf16 %v6792_v32, %v6790_v46  ;;  %v6570_v55 = vpop.f32.mrb[64].mxu0 }
 0x807   : > { %v6571_v51 = vadd.f32 %v6570_v55, %v10318_v18  ;;  %v6572_v36 = vpop.f32.mrb[65].mxu0 }
 0x808   : > { %v6573_v40 = vadd.f32 %v6572_v36, %v10322_v28  ;;  %v6574_v48 = vpop.f32.mrb[66].mxu0  ;;  %7208 = vmatprep.mubr.bf16.mxu1 %v6888_v53 }
 0x809   : > { %v6575_v59 = vadd.f32 %v6574_v48, %v10318_v18  ;;  %v6576_v52 = vpop.f32.mrb[67].mxu0  ;;  %7209 = vmatmul.mubr.bf16.gmra.mrb[188].mxu1 %v6887_v31  ;;  %v6793_v25 = vmax.f32 %v6571_v51, 0.0 }
 0x80a   : > { %v6577_v49 = vadd.f32 %v6576_v52, %v10322_v28  ;;  %v6794_v12 = vmax.f32 %v6573_v40, 0.0 }
 0x80b   : > { %v6795_v14 = vmax.f32 %v6575_v59, 0.0 }
 0x80c   : > { %v6796_v60 = vmax.f32 %v6577_v49, 0.0 }
 0x80d   : > { %v6889_v47 = vpack.c.bf16 %v6795_v14, %v6793_v25 }
 0x80e   : > { %v6890_v37 = vpack.c.bf16 %v6796_v60, %v6794_v12  ;;  %v6580_v50 = vpop.f32.mrb[68].mxu0 }
 0x80f   : > { %v6581_v4 = vadd.f32 %v6580_v50, %v10318_v18  ;;  %v6582_v7 = vpop.f32.mrb[69].mxu0 }
 0x810   : > { %v6583_v34 = vadd.f32 %v6582_v7, %v10322_v28  ;;  %v6584_v8 = vpop.f32.mrb[70].mxu0  ;;  %7216 = vmatprep.mubr.bf16.mxu1 %v6890_v37 }
 0x811   : > { %v6585_v23 = vadd.f32 %v6584_v8, %v10318_v18  ;;  %v6586_v20 = vpop.f32.mrb[71].mxu0  ;;  %7217 = vmatmul.mubr.bf16.gmra.mrb[192].mxu1 %v6889_v47  ;;  %v6797_v43 = vmax.f32 %v6581_v4, 0.0 }
 0x812   : > { %v6587_v19 = vadd.f32 %v6586_v20, %v10322_v28  ;;  %v6798_v56 = vmax.f32 %v6583_v34, 0.0 }
 0x813   : > { %v6799_v27 = vmax.f32 %v6585_v23, 0.0 }
 0x814   : > { %v6800_v2 = vmax.f32 %v6587_v19, 0.0 }
 0x815   : > { %v6891_v16 = vpack.c.bf16 %v6799_v27, %v6797_v43 }
 0x816   : > { %v6892_v24 = vpack.c.bf16 %v6800_v2, %v6798_v56  ;;  %v6590_v35 = vpop.f32.mrb[72].mxu0 }
 0x817   : > { %v6591_v29 = vadd.f32 %v6590_v35, %v10318_v18  ;;  %v6592_v6 = vpop.f32.mrb[73].mxu0 }
 0x818   : > { %v6593_v11 = vadd.f32 %v6592_v6, %v10322_v28  ;;  %v6594_v33 = vpop.f32.mrb[74].mxu0  ;;  %7224 = vmatprep.mubr.bf16.mxu1 %v6892_v24 }
 0x819   : > { %v6595_v62 = vadd.f32 %v6594_v33, %v10318_v18  ;;  %v6596_v13 = vpop.f32.mrb[75].mxu0  ;;  %7225 = vmatmul.mubr.bf16.gmra.mrb[196].mxu1 %v6891_v16  ;;  %v6801_v39 = vmax.f32 %v6591_v29, 0.0 }
 0x81a   : > { %v6597_v10 = vadd.f32 %v6596_v13, %v10322_v28  ;;  %v6802_v45 = vmax.f32 %v6593_v11, 0.0 }
 0x81b   : > { %v6803_v58 = vmax.f32 %v6595_v62, 0.0 }
 0x81c   : > { %v6804_v63 = vmax.f32 %v6597_v10, 0.0 }
 0x81d   : > { %v6893_v15 = vpack.c.bf16 %v6803_v58, %v6801_v39 }
 0x81e   : > { %v6894_v41 = vpack.c.bf16 %v6804_v63, %v6802_v45  ;;  %v6600_v9 = vpop.f32.mrb[76].mxu0 }
 0x81f   : > { %v6601_v61 = vadd.f32 %v6600_v9, %v10318_v18  ;;  %v6602_v21 = vpop.f32.mrb[77].mxu0 }
 0x820   : > { %v6603_v0 = vadd.f32 %v6602_v21, %v10322_v28  ;;  %v6604_v22 = vpop.f32.mrb[78].mxu0  ;;  %7232 = vmatprep.mubr.bf16.mxu1 %v6894_v41 }
 0x821   : > { %v6605_v5 = vadd.f32 %v6604_v22, %v10318_v18  ;;  %v6606_v57 = vpop.f32.mrb[79].mxu0  ;;  %7233 = vmatmul.mubr.bf16.gmra.mrb[200].mxu1 %v6893_v15  ;;  %v6805_v1 = vmax.f32 %v6601_v61, 0.0 }
 0x822   : > { %v6607_v30 = vadd.f32 %v6606_v57, %v10322_v28  ;;  %v6806_v26 = vmax.f32 %v6603_v0, 0.0 }
 0x823   : > { %v6807_v42 = vmax.f32 %v6605_v5, 0.0 }
 0x824   : > { %v6808_v38 = vmax.f32 %v6607_v30, 0.0 }
 0x825   : > { %v6895_v44 = vpack.c.bf16 %v6807_v42, %v6805_v1 }
 0x826   : > { %v6896_v54 = vpack.c.bf16 %v6808_v38, %v6806_v26  ;;  %v6610_v17 = vpop.f32.mrb[80].mxu0 }
 0x827   : > { %v6611_v3 = vadd.f32 %v6610_v17, %v10318_v18  ;;  %v6612_v46 = vpop.f32.mrb[81].mxu0 }
 0x828   : > { %v6613_v32 = vadd.f32 %v6612_v46, %v10322_v28  ;;  %v6614_v31 = vpop.f32.mrb[82].mxu0  ;;  %7240 = vmatprep.mubr.bf16.mxu1 %v6896_v54 }
 0x829   : > { %v6615_v53 = vadd.f32 %v6614_v31, %v10318_v18  ;;  %v6616_v55 = vpop.f32.mrb[83].mxu0  ;;  %7241 = vmatmul.mubr.bf16.gmra.mrb[204].mxu1 %v6895_v44  ;;  %v6809_v36 = vmax.f32 %v6611_v3, 0.0 }
 0x82a   : > { %v6617_v51 = vadd.f32 %v6616_v55, %v10322_v28  ;;  %v6810_v48 = vmax.f32 %v6613_v32, 0.0 }
 0x82b   : > { %v6811_v40 = vmax.f32 %v6615_v53, 0.0 }
 0x82c   : > { %v6812_v59 = vmax.f32 %v6617_v51, 0.0 }
 0x82d   : > { %v6897_v52 = vpack.c.bf16 %v6811_v40, %v6809_v36 }
 0x82e   : > { %v6898_v49 = vpack.c.bf16 %v6812_v59, %v6810_v48  ;;  %v6620_v25 = vpop.f32.mrb[84].mxu0 }
 0x82f   : > { %v6621_v14 = vadd.f32 %v6620_v25, %v10318_v18  ;;  %v6622_v12 = vpop.f32.mrb[85].mxu0 }
 0x830   : > { %v6623_v60 = vadd.f32 %v6622_v12, %v10322_v28  ;;  %v6624_v47 = vpop.f32.mrb[86].mxu0  ;;  %7248 = vmatprep.mubr.bf16.mxu1 %v6898_v49 }
 0x831   : > { %v6625_v37 = vadd.f32 %v6624_v47, %v10318_v18  ;;  %v6626_v50 = vpop.f32.mrb[87].mxu0  ;;  %7249 = vmatmul.mubr.bf16.gmra.mrb[208].mxu1 %v6897_v52  ;;  %v6813_v7 = vmax.f32 %v6621_v14, 0.0 }
 0x832   : > { %v6627_v4 = vadd.f32 %v6626_v50, %v10322_v28  ;;  %v6814_v8 = vmax.f32 %v6623_v60, 0.0 }
 0x833   : > { %v6815_v34 = vmax.f32 %v6625_v37, 0.0 }
 0x834   : > { %v6816_v23 = vmax.f32 %v6627_v4, 0.0 }
 0x835   : > { %v6899_v20 = vpack.c.bf16 %v6815_v34, %v6813_v7 }
 0x836   : > { %v6900_v19 = vpack.c.bf16 %v6816_v23, %v6814_v8  ;;  %v6630_v43 = vpop.f32.mrb[88].mxu0 }
 0x837   : > { %v6631_v27 = vadd.f32 %v6630_v43, %v10318_v18  ;;  %v6632_v56 = vpop.f32.mrb[89].mxu0 }
 0x838   : > { %v6633_v2 = vadd.f32 %v6632_v56, %v10322_v28  ;;  %v6634_v16 = vpop.f32.mrb[90].mxu0  ;;  %7256 = vmatprep.mubr.bf16.mxu1 %v6900_v19 }
 0x839   : > { %v6635_v24 = vadd.f32 %v6634_v16, %v10318_v18  ;;  %v6636_v35 = vpop.f32.mrb[91].mxu0  ;;  %7257 = vmatmul.mubr.bf16.gmra.mrb[212].mxu1 %v6899_v20  ;;  %v6817_v6 = vmax.f32 %v6631_v27, 0.0 }
 0x83a   : > { %v6637_v29 = vadd.f32 %v6636_v35, %v10322_v28  ;;  %v6818_v33 = vmax.f32 %v6633_v2, 0.0 }
 0x83b   : > { %v6819_v11 = vmax.f32 %v6635_v24, 0.0 }
 0x83c   : > { %v6820_v62 = vmax.f32 %v6637_v29, 0.0 }
 0x83d   : > { %v6901_v13 = vpack.c.bf16 %v6819_v11, %v6817_v6 }
 0x83e   : > { %v6902_v10 = vpack.c.bf16 %v6820_v62, %v6818_v33  ;;  %v6640_v39 = vpop.f32.mrb[92].mxu0 }
 0x83f   : > { %v6641_v58 = vadd.f32 %v6640_v39, %v10318_v18  ;;  %v6642_v45 = vpop.f32.mrb[93].mxu0 }
 0x840   : > { %v6643_v63 = vadd.f32 %v6642_v45, %v10322_v28  ;;  %v6644_v15 = vpop.f32.mrb[94].mxu0  ;;  %7264 = vmatprep.mubr.bf16.mxu1 %v6902_v10  ;;  %v10453_v45 = vld [vmem:[%s10678_s5] ss:$0 sm:$0xff] }
 0x841   : > { %v6645_v41 = vadd.f32 %v6644_v15, %v10318_v18  ;;  %v6646_v9 = vpop.f32.mrb[95].mxu0  ;;  %7265 = vmatmul.mubr.bf16.gmra.mrb[216].mxu1 %v6901_v13  ;;  %v6821_v21 = vmax.f32 %v6641_v58, 0.0 }
 0x842   : > { %v6647_v61 = vadd.f32 %v6646_v9, %v10322_v28  ;;  %v6822_v22 = vmax.f32 %v6643_v63, 0.0 }
 0x843   : > { %v6823_v0 = vmax.f32 %v6645_v41, 0.0 }
 0x844   : > { %v6824_v5 = vmax.f32 %v6647_v61, 0.0 }
 0x845   : > { %v6903_v57 = vpack.c.bf16 %v6823_v0, %v6821_v21 }
 0x846   : > { %v6904_v30 = vpack.c.bf16 %v6824_v5, %v6822_v22  ;;  %v6650_v1 = vpop.f32.mrb[96].mxu0 }
 0x847   : > { %v6651_v42 = vadd.f32 %v6650_v1, %v10318_v18  ;;  %v6652_v26 = vpop.f32.mrb[97].mxu0 }
 0x848   : > { %v6653_v38 = vadd.f32 %v6652_v26, %v10322_v28  ;;  %v6654_v44 = vpop.f32.mrb[98].mxu0  ;;  %7272 = vmatprep.mubr.bf16.mxu1 %v6904_v30 }
 0x849   : > { %v6655_v54 = vadd.f32 %v6654_v44, %v10318_v18  ;;  %v6656_v17 = vpop.f32.mrb[99].mxu0  ;;  %7273 = vmatmul.mubr.bf16.gmra.mrb[220].mxu1 %v6903_v57  ;;  %v6825_v46 = vmax.f32 %v6651_v42, 0.0 }
 0x84a   : > { %v6657_v3 = vadd.f32 %v6656_v17, %v10322_v28  ;;  %v6826_v31 = vmax.f32 %v6653_v38, 0.0 }
 0x84b   : > { %v6827_v32 = vmax.f32 %v6655_v54, 0.0 }
 0x84c   : > { %v6828_v53 = vmax.f32 %v6657_v3, 0.0 }
 0x84d   : > { %v6905_v55 = vpack.c.bf16 %v6827_v32, %v6825_v46 }
 0x84e   : > { %v6906_v51 = vpack.c.bf16 %v6828_v53, %v6826_v31  ;;  %v6660_v36 = vpop.f32.mrb[100].mxu0 }
 0x84f   : > { %v6661_v40 = vadd.f32 %v6660_v36, %v10318_v18  ;;  %v6662_v48 = vpop.f32.mrb[101].mxu0 }
 0x850   : > { %v6663_v59 = vadd.f32 %v6662_v48, %v10322_v28  ;;  %v6664_v52 = vpop.f32.mrb[102].mxu0  ;;  %7280 = vmatprep.mubr.bf16.mxu1 %v6906_v51 }
 0x851   : > { %v6665_v49 = vadd.f32 %v6664_v52, %v10318_v18  ;;  %v6666_v25 = vpop.f32.mrb[103].mxu0  ;;  %7281 = vmatmul.mubr.bf16.gmra.mrb[224].mxu1 %v6905_v55  ;;  %v6829_v12 = vmax.f32 %v6661_v40, 0.0 }
 0x852   : > { %v6667_v14 = vadd.f32 %v6666_v25, %v10322_v28  ;;  %v6830_v47 = vmax.f32 %v6663_v59, 0.0 }
 0x853   : > { %v6831_v60 = vmax.f32 %v6665_v49, 0.0 }
 0x854   : > { %v6832_v37 = vmax.f32 %v6667_v14, 0.0 }
 0x855   : > { %v6907_v50 = vpack.c.bf16 %v6831_v60, %v6829_v12 }
 0x856   : > { %v6908_v4 = vpack.c.bf16 %v6832_v37, %v6830_v47  ;;  %v6670_v7 = vpop.f32.mrb[104].mxu0 }
 0x857   : > { %v6671_v34 = vadd.f32 %v6670_v7, %v10318_v18  ;;  %v6672_v8 = vpop.f32.mrb[105].mxu0 }
 0x858   : > { %v6673_v23 = vadd.f32 %v6672_v8, %v10322_v28  ;;  %v6674_v20 = vpop.f32.mrb[106].mxu0  ;;  %7288 = vmatprep.mubr.bf16.mxu1 %v6908_v4 }
 0x859   : > { %v6675_v19 = vadd.f32 %v6674_v20, %v10318_v18  ;;  %v6676_v43 = vpop.f32.mrb[107].mxu0  ;;  %7289 = vmatmul.mubr.bf16.gmra.mrb[228].mxu1 %v6907_v50  ;;  %v6833_v56 = vmax.f32 %v6671_v34, 0.0 }
 0x85a   : > { %v6677_v27 = vadd.f32 %v6676_v43, %v10322_v28  ;;  %v6834_v16 = vmax.f32 %v6673_v23, 0.0 }
 0x85b   : > { %v6835_v2 = vmax.f32 %v6675_v19, 0.0 }
 0x85c   : > { %v6836_v24 = vmax.f32 %v6677_v27, 0.0 }
 0x85d   : > { %v6909_v35 = vpack.c.bf16 %v6835_v2, %v6833_v56 }
 0x85e   : > { %v6910_v29 = vpack.c.bf16 %v6836_v24, %v6834_v16  ;;  %v6680_v6 = vpop.f32.mrb[108].mxu0 }
 0x85f   : > { %v6681_v11 = vadd.f32 %v6680_v6, %v10318_v18  ;;  %v6682_v33 = vpop.f32.mrb[109].mxu0 }
 0x860   : > { %v6683_v62 = vadd.f32 %v6682_v33, %v10322_v28  ;;  %v6684_v13 = vpop.f32.mrb[110].mxu0  ;;  %7296 = vmatprep.mubr.bf16.mxu1 %v6910_v29 }
 0x861   : > { %v6685_v10 = vadd.f32 %v6684_v13, %v10318_v18  ;;  %v6686_v39 = vpop.f32.mrb[111].mxu0  ;;  %7297 = vmatmul.mubr.bf16.gmra.mrb[232].mxu1 %v6909_v35  ;;  %v6837_v63 = vmax.f32 %v6681_v11, 0.0 }
 0x862   : > { %v6687_v58 = vadd.f32 %v6686_v39, %v10322_v28  ;;  %v6838_v41 = vmax.f32 %v6683_v62, 0.0 }
 0x863   : > { %v6839_v15 = vmax.f32 %v6685_v10, 0.0 }
 0x864   : > { %v6840_v9 = vmax.f32 %v6687_v58, 0.0  ;;  %v7090_v61 = vpop.f32.mrb[128].mxu1 }
 0x865   : > { %v6911_v21 = vpack.c.bf16 %v6839_v15, %v6837_v63  ;;  %v7091_v0 = vadd.f32 %v10453_v45, %v7090_v61  ;;  %v7092_v22 = vpop.f32.mrb[129].mxu1 }
 0x866   : > { %v6912_v5 = vpack.c.bf16 %v6840_v9, %v6838_v41  ;;  %v6690_v57 = vpop.f32.mrb[112].mxu0  ;;  %v7093_v30 = vpop.f32.mrb[130].mxu1 }
 0x867   : > { %7346 = vst.msk [vmem:[%s10460_s10] sm:$0xff] %vm7345_vm3, %v7091_v0  ;;  %v6691_v1 = vadd.f32 %v6690_v57, %v10318_v18  ;;  %v7094_v42 = vadd.f32 %v10453_v45, %v7093_v30  ;;  %v6692_v26 = vpop.f32.mrb[113].mxu0  ;;  %v7095_v38 = vpop.f32.mrb[131].mxu1 }
 0x868   : > { %v6693_v44 = vadd.f32 %v6692_v26, %v10322_v28  ;;  %v6694_v54 = vpop.f32.mrb[114].mxu0  ;;  %7304 = vmatprep.mubr.bf16.mxu1 %v6912_v5 }
 0x869   : > { %7347 = vst.msk [vmem:[%s10460_s10 + $0x8] sm:$0xff] %vm7345_vm3, %v7094_v42  ;;  %v6695_v17 = vadd.f32 %v6694_v54, %v10318_v18  ;;  %v6696_v3 = vpop.f32.mrb[115].mxu0  ;;  %7305 = vmatmul.mubr.bf16.gmra.mrb[236].mxu1 %v6911_v21  ;;  %v6841_v32 = vmax.f32 %v6691_v1, 0.0 }
 0x86a   : > { %v6697_v46 = vadd.f32 %v6696_v3, %v10322_v28  ;;  %v6842_v53 = vmax.f32 %v6693_v44, 0.0 }
 0x86b   : > { %v6843_v31 = vmax.f32 %v6695_v17, 0.0 }
 0x86c   : > { %v6844_v55 = vmax.f32 %v6697_v46, 0.0  ;;  %v7098_v51 = vpop.f32.mrb[132].mxu1 }
 0x86d   : > { %v6913_v36 = vpack.c.bf16 %v6843_v31, %v6841_v32  ;;  %v7099_v40 = vadd.f32 %v10453_v45, %v7098_v51  ;;  %v7100_v48 = vpop.f32.mrb[133].mxu1 }
 0x86e   : > { %v6914_v59 = vpack.c.bf16 %v6844_v55, %v6842_v53  ;;  %v6700_v52 = vpop.f32.mrb[116].mxu0  ;;  %v7101_v49 = vpop.f32.mrb[134].mxu1 }
 0x86f   : > { %7348 = vst.msk [vmem:[%s10460_s10 + $0x10] sm:$0xff] %vm7345_vm3, %v7099_v40  ;;  %v6701_v25 = vadd.f32 %v6700_v52, %v10318_v18  ;;  %v7102_v14 = vadd.f32 %v10453_v45, %v7101_v49  ;;  %v6702_v12 = vpop.f32.mrb[117].mxu0  ;;  %v7103_v60 = vpop.f32.mrb[135].mxu1 }
 0x870   : > { %v6703_v47 = vadd.f32 %v6702_v12, %v10322_v28  ;;  %v6704_v37 = vpop.f32.mrb[118].mxu0  ;;  %7312 = vmatprep.mubr.bf16.mxu1 %v6914_v59 }
 0x871   : > { %7349 = vst.msk [vmem:[%s10460_s10 + $0x18] sm:$0xff] %vm7345_vm3, %v7102_v14  ;;  %v6705_v50 = vadd.f32 %v6704_v37, %v10318_v18  ;;  %v6706_v4 = vpop.f32.mrb[119].mxu0  ;;  %7313 = vmatmul.mubr.bf16.gmra.mrb[240].mxu1 %v6913_v36  ;;  %v6845_v34 = vmax.f32 %v6701_v25, 0.0 }
 0x872   : > { %v6707_v7 = vadd.f32 %v6706_v4, %v10322_v28  ;;  %v6846_v23 = vmax.f32 %v6703_v47, 0.0 }
 0x873   : > { %v6847_v8 = vmax.f32 %v6705_v50, 0.0 }
 0x874   : > { %v6848_v20 = vmax.f32 %v6707_v7, 0.0  ;;  %v7106_v19 = vpop.f32.mrb[136].mxu1 }
 0x875   : > { %v6915_v43 = vpack.c.bf16 %v6847_v8, %v6845_v34  ;;  %v7107_v27 = vadd.f32 %v10453_v45, %v7106_v19  ;;  %v7108_v56 = vpop.f32.mrb[137].mxu1 }
 0x876   : > { %v6916_v2 = vpack.c.bf16 %v6848_v20, %v6846_v23  ;;  %v6710_v16 = vpop.f32.mrb[120].mxu0  ;;  %v7109_v24 = vpop.f32.mrb[138].mxu1 }
 0x877   : > { %7350 = vst.msk [vmem:[%s10460_s10 + $0x20] sm:$0xff] %vm7345_vm3, %v7107_v27  ;;  %v6711_v35 = vadd.f32 %v6710_v16, %v10318_v18  ;;  %v7110_v29 = vadd.f32 %v10453_v45, %v7109_v24  ;;  %v6712_v6 = vpop.f32.mrb[121].mxu0  ;;  %v7111_v11 = vpop.f32.mrb[139].mxu1 }
 0x878   : > { %v6713_v33 = vadd.f32 %v6712_v6, %v10322_v28  ;;  %v6714_v62 = vpop.f32.mrb[122].mxu0  ;;  %7320 = vmatprep.mubr.bf16.mxu1 %v6916_v2 }
 0x879   : > { %7351 = vst.msk [vmem:[%s10460_s10 + $0x28] sm:$0xff] %vm7345_vm3, %v7110_v29  ;;  %v6715_v13 = vadd.f32 %v6714_v62, %v10318_v18  ;;  %v6716_v10 = vpop.f32.mrb[123].mxu0  ;;  %7321 = vmatmul.mubr.bf16.gmra.mrb[244].mxu1 %v6915_v43  ;;  %v6849_v58 = vmax.f32 %v6711_v35, 0.0 }
 0x87a   : > { %v6717_v39 = vadd.f32 %v6716_v10, %v10322_v28  ;;  %v6850_v15 = vmax.f32 %v6713_v33, 0.0 }
 0x87b   : > { %v6851_v63 = vmax.f32 %v6715_v13, 0.0 }
 0x87c   : > { %v6852_v41 = vmax.f32 %v6717_v39, 0.0  ;;  %v7114_v9 = vpop.f32.mrb[140].mxu1 }
 0x87d   : > { %v6917_v61 = vpack.c.bf16 %v6851_v63, %v6849_v58  ;;  %v7115_v21 = vadd.f32 %v10453_v45, %v7114_v9  ;;  %v7116_v0 = vpop.f32.mrb[141].mxu1 }
 0x87e   : > { %v6918_v22 = vpack.c.bf16 %v6852_v41, %v6850_v15  ;;  %v6720_v5 = vpop.f32.mrb[124].mxu0  ;;  %v7117_v57 = vpop.f32.mrb[142].mxu1 }
 0x87f   : > { %7352 = vst.msk [vmem:[%s10460_s10 + $0x30] sm:$0xff] %vm7345_vm3, %v7115_v21  ;;  %v6721_v30 = vadd.f32 %v6720_v5, %v10318_v18  ;;  %v7118_v1 = vadd.f32 %v10453_v45, %v7117_v57  ;;  %v6722_v42 = vpop.f32.mrb[125].mxu0  ;;  %v7119_v26 = vpop.f32.mrb[143].mxu1 }
 0x880   : > { %v6723_v38 = vadd.f32 %v6722_v42, %v10322_v28  ;;  %v6724_v44 = vpop.f32.mrb[126].mxu0  ;;  %7328 = vmatprep.mubr.bf16.mxu1 %v6918_v22 }
 0x881   : > { %7353 = vst.msk [vmem:[%s10460_s10 + $0x38] sm:$0xff] %vm7345_vm3, %v7118_v1  ;;  %v6725_v54 = vadd.f32 %v6724_v44, %v10318_v18  ;;  %v6726_v17 = vpop.f32.mrb[127].mxu0  ;;  %7329 = vmatmul.mubr.bf16.gmra.mrb[248].mxu1 %v6917_v61  ;;  %v6853_v46 = vmax.f32 %v6721_v30, 0.0 }
 0x882   : > { %v6727_v3 = vadd.f32 %v6726_v17, %v10322_v28  ;;  %v6854_v31 = vmax.f32 %v6723_v38, 0.0 }
 0x883   : > { %v6855_v32 = vmax.f32 %v6725_v54, 0.0 }
 0x884   : > { %v6856_v53 = vmax.f32 %v6727_v3, 0.0  ;;  %v7122_v55 = vpop.f32.mrb[144].mxu1 }
 0x885   : > { %v6919_v51 = vpack.c.bf16 %v6855_v32, %v6853_v46  ;;  %v7123_v36 = vadd.f32 %v10453_v45, %v7122_v55  ;;  %v7124_v40 = vpop.f32.mrb[145].mxu1 }
 0x886   : > { %v6920_v48 = vpack.c.bf16 %v6856_v53, %v6854_v31  ;;  %v7125_v59 = vpop.f32.mrb[146].mxu1 }
 0x887   : > { %7354 = vst.msk [vmem:[%s10460_s10 + $0x40] sm:$0xff] %vm7345_vm3, %v7123_v36  ;;  %v7126_v18 = vadd.f32 %v10453_v45, %v7125_v59  ;;  %v7127_v52 = vpop.f32.mrb[147].mxu1 }
 0x888   : > { %7336 = vmatprep.mubr.bf16.mxu1 %v6920_v48 }
 0x889   : > { %7355 = vst.msk [vmem:[%s10460_s10 + $0x48] sm:$0xff] %vm7345_vm3, %v7126_v18  ;;  %7337 = vmatmul.mubr.bf16.gmra.mrb[252].mxu1 %v6919_v51 }
 0x88c   : > { %v7130_v28 = vpop.f32.mrb[148].mxu1 }
 0x88d   : > { %v7131_v49 = vadd.f32 %v10453_v45, %v7130_v28  ;;  %v7132_v25 = vpop.f32.mrb[149].mxu1 }
 0x88e   : > { %v7133_v14 = vpop.f32.mrb[150].mxu1 }
 0x88f   : > { %7356 = vst.msk [vmem:[%s10460_s10 + $0x50] sm:$0xff] %vm7345_vm3, %v7131_v49  ;;  %v7134_v12 = vadd.f32 %v10453_v45, %v7133_v14  ;;  %v7135_v60 = vpop.f32.mrb[151].mxu1 }
 0x891   : > { %7357 = vst.msk [vmem:[%s10460_s10 + $0x58] sm:$0xff] %vm7345_vm3, %v7134_v12 }
 0x894   : > { %v7138_v47 = vpop.f32.mrb[152].mxu1 }
 0x895   : > { %v7139_v37 = vadd.f32 %v10453_v45, %v7138_v47  ;;  %v7140_v50 = vpop.f32.mrb[153].mxu1 }
 0x896   : > { %v7141_v4 = vpop.f32.mrb[154].mxu1 }
 0x897   : > { %7358 = vst.msk [vmem:[%s10460_s10 + $0x60] sm:$0xff] %vm7345_vm3, %v7139_v37  ;;  %v7142_v7 = vadd.f32 %v10453_v45, %v7141_v4  ;;  %v7143_v34 = vpop.f32.mrb[155].mxu1 }
 0x899   : > { %7359 = vst.msk [vmem:[%s10460_s10 + $0x68] sm:$0xff] %vm7345_vm3, %v7142_v7 }
 0x89c   : > { %v7146_v8 = vpop.f32.mrb[156].mxu1 }
 0x89d   : > { %v7147_v23 = vadd.f32 %v10453_v45, %v7146_v8  ;;  %v7148_v20 = vpop.f32.mrb[157].mxu1 }
 0x89e   : > { %v7149_v19 = vpop.f32.mrb[158].mxu1 }
 0x89f   : > { %7360 = vst.msk [vmem:[%s10460_s10 + $0x70] sm:$0xff] %vm7345_vm3, %v7147_v23  ;;  %v7150_v43 = vadd.f32 %v10453_v45, %v7149_v19  ;;  %v7151_v27 = vpop.f32.mrb[159].mxu1 }
 0x8a1   : > { %7361 = vst.msk [vmem:[%s10460_s10 + $0x78] sm:$0xff] %vm7345_vm3, %v7150_v43 }
 0x8a4   : > { %v7154_v56 = vpop.f32.mrb[160].mxu1 }
 0x8a5   : > { %v7155_v2 = vadd.f32 %v10453_v45, %v7154_v56  ;;  %v7156_v16 = vpop.f32.mrb[161].mxu1 }
 0x8a6   : > { %v7157_v24 = vpop.f32.mrb[162].mxu1 }
 0x8a7   : > { %7362 = vst.msk [vmem:[%s10460_s10 + $0x80] sm:$0xff] %vm7345_vm3, %v7155_v2  ;;  %v7158_v35 = vadd.f32 %v10453_v45, %v7157_v24  ;;  %v7159_v29 = vpop.f32.mrb[163].mxu1 }
 0x8a9   : > { %7363 = vst.msk [vmem:[%s10460_s10 + $0x88] sm:$0xff] %vm7345_vm3, %v7158_v35 }
 0x8ac   : > { %v7162_v6 = vpop.f32.mrb[164].mxu1 }
 0x8ad   : > { %v7163_v11 = vadd.f32 %v10453_v45, %v7162_v6  ;;  %v7164_v33 = vpop.f32.mrb[165].mxu1 }
 0x8ae   : > { %v7165_v62 = vpop.f32.mrb[166].mxu1 }
 0x8af   : > { %7364 = vst.msk [vmem:[%s10460_s10 + $0x90] sm:$0xff] %vm7345_vm3, %v7163_v11  ;;  %v7166_v13 = vadd.f32 %v10453_v45, %v7165_v62  ;;  %v7167_v10 = vpop.f32.mrb[167].mxu1 }
 0x8b1   : > { %7365 = vst.msk [vmem:[%s10460_s10 + $0x98] sm:$0xff] %vm7345_vm3, %v7166_v13 }
 0x8b4   : > { %v7170_v39 = vpop.f32.mrb[168].mxu1 }
 0x8b5   : > { %v7171_v58 = vadd.f32 %v10453_v45, %v7170_v39  ;;  %v7172_v63 = vpop.f32.mrb[169].mxu1 }
 0x8b6   : > { %v7173_v15 = vpop.f32.mrb[170].mxu1 }
 0x8b7   : > { %7366 = vst.msk [vmem:[%s10460_s10 + $0xa0] sm:$0xff] %vm7345_vm3, %v7171_v58  ;;  %v7174_v41 = vadd.f32 %v10453_v45, %v7173_v15  ;;  %v7175_v9 = vpop.f32.mrb[171].mxu1 }
 0x8b9   : > { %7367 = vst.msk [vmem:[%s10460_s10 + $0xa8] sm:$0xff] %vm7345_vm3, %v7174_v41 }
 0x8bc   : > { %v7178_v61 = vpop.f32.mrb[172].mxu1 }
 0x8bd   : > { %v7179_v21 = vadd.f32 %v10453_v45, %v7178_v61  ;;  %v7180_v0 = vpop.f32.mrb[173].mxu1 }
 0x8be   : > { %v7181_v22 = vpop.f32.mrb[174].mxu1 }
 0x8bf   : > { %7368 = vst.msk [vmem:[%s10460_s10 + $0xb0] sm:$0xff] %vm7345_vm3, %v7179_v21  ;;  %v7182_v5 = vadd.f32 %v10453_v45, %v7181_v22  ;;  %v7183_v57 = vpop.f32.mrb[175].mxu1 }
 0x8c1   : > { %7369 = vst.msk [vmem:[%s10460_s10 + $0xb8] sm:$0xff] %vm7345_vm3, %v7182_v5 }
 0x8c4   : > { %v7186_v30 = vpop.f32.mrb[176].mxu1 }
 0x8c5   : > { %v7187_v1 = vadd.f32 %v10453_v45, %v7186_v30  ;;  %v7188_v42 = vpop.f32.mrb[177].mxu1 }
 0x8c6   : > { %v7189_v26 = vpop.f32.mrb[178].mxu1 }
 0x8c7   : > { %7370 = vst.msk [vmem:[%s10460_s10 + $0xc0] sm:$0xff] %vm7345_vm3, %v7187_v1  ;;  %v7190_v38 = vadd.f32 %v10453_v45, %v7189_v26  ;;  %v7191_v44 = vpop.f32.mrb[179].mxu1 }
 0x8c9   : > { %7371 = vst.msk [vmem:[%s10460_s10 + $0xc8] sm:$0xff] %vm7345_vm3, %v7190_v38 }
 0x8cc   : > { %v7194_v54 = vpop.f32.mrb[180].mxu1 }
 0x8cd   : > { %v7195_v17 = vadd.f32 %v10453_v45, %v7194_v54  ;;  %v7196_v3 = vpop.f32.mrb[181].mxu1 }
 0x8ce   : > { %v7197_v46 = vpop.f32.mrb[182].mxu1 }
 0x8cf   : > { %7372 = vst.msk [vmem:[%s10460_s10 + $0xd0] sm:$0xff] %vm7345_vm3, %v7195_v17  ;;  %v7198_v32 = vadd.f32 %v10453_v45, %v7197_v46  ;;  %v7199_v31 = vpop.f32.mrb[183].mxu1 }
 0x8d1   : > { %7373 = vst.msk [vmem:[%s10460_s10 + $0xd8] sm:$0xff] %vm7345_vm3, %v7198_v32 }
 0x8d4   : > { %v7202_v53 = vpop.f32.mrb[184].mxu1 }
 0x8d5   : > { %v7203_v55 = vadd.f32 %v10453_v45, %v7202_v53  ;;  %v7204_v51 = vpop.f32.mrb[185].mxu1 }
 0x8d6   : > { %v7205_v36 = vpop.f32.mrb[186].mxu1 }
 0x8d7   : > { %7374 = vst.msk [vmem:[%s10460_s10 + $0xe0] sm:$0xff] %vm7345_vm3, %v7203_v55  ;;  %v7206_v40 = vadd.f32 %v10453_v45, %v7205_v36  ;;  %v7207_v48 = vpop.f32.mrb[187].mxu1 }
 0x8d9   : > { %7375 = vst.msk [vmem:[%s10460_s10 + $0xe8] sm:$0xff] %vm7345_vm3, %v7206_v40 }
 0x8dc   : > { %v7210_v59 = vpop.f32.mrb[188].mxu1 }
 0x8dd   : > { %v7211_v18 = vadd.f32 %v10453_v45, %v7210_v59  ;;  %v7212_v52 = vpop.f32.mrb[189].mxu1 }
 0x8de   : > { %v7213_v28 = vpop.f32.mrb[190].mxu1 }
 0x8df   : > { %7376 = vst.msk [vmem:[%s10460_s10 + $0xf0] sm:$0xff] %vm7345_vm3, %v7211_v18  ;;  %v7214_v49 = vadd.f32 %v10453_v45, %v7213_v28  ;;  %v7215_v25 = vpop.f32.mrb[191].mxu1 }
 0x8e1   : > { %7377 = vst.msk [vmem:[%s10460_s10 + $0xf8] sm:$0xff] %vm7345_vm3, %v7214_v49 }
 0x8e4   : > { %v7218_v14 = vpop.f32.mrb[192].mxu1 }
 0x8e5   : > { %v7219_v12 = vadd.f32 %v10453_v45, %v7218_v14  ;;  %v7220_v60 = vpop.f32.mrb[193].mxu1 }
 0x8e6   : > { %v7221_v47 = vpop.f32.mrb[194].mxu1 }
 0x8e7   : > { %7378 = vst.msk [vmem:[%s10460_s10 + $0x100] sm:$0xff] %vm7345_vm3, %v7219_v12  ;;  %v7222_v37 = vadd.f32 %v10453_v45, %v7221_v47  ;;  %v7223_v50 = vpop.f32.mrb[195].mxu1 }
 0x8e9   : > { %7379 = vst.msk [vmem:[%s10460_s10 + $0x108] sm:$0xff] %vm7345_vm3, %v7222_v37 }
 0x8ec   : > { %v7226_v4 = vpop.f32.mrb[196].mxu1 }
 0x8ed   : > { %v7227_v7 = vadd.f32 %v10453_v45, %v7226_v4  ;;  %v7228_v34 = vpop.f32.mrb[197].mxu1 }
 0x8ee   : > { %v7229_v8 = vpop.f32.mrb[198].mxu1 }
 0x8ef   : > { %7380 = vst.msk [vmem:[%s10460_s10 + $0x110] sm:$0xff] %vm7345_vm3, %v7227_v7  ;;  %v7230_v23 = vadd.f32 %v10453_v45, %v7229_v8  ;;  %v7231_v20 = vpop.f32.mrb[199].mxu1 }
 0x8f1   : > { %7381 = vst.msk [vmem:[%s10460_s10 + $0x118] sm:$0xff] %vm7345_vm3, %v7230_v23 }
 0x8f4   : > { %v7234_v19 = vpop.f32.mrb[200].mxu1 }
 0x8f5   : > { %v7235_v43 = vadd.f32 %v10453_v45, %v7234_v19  ;;  %v7236_v27 = vpop.f32.mrb[201].mxu1 }
 0x8f6   : > { %v7237_v56 = vpop.f32.mrb[202].mxu1 }
 0x8f7   : > { %7382 = vst.msk [vmem:[%s10460_s10 + $0x120] sm:$0xff] %vm7345_vm3, %v7235_v43  ;;  %v7238_v2 = vadd.f32 %v10453_v45, %v7237_v56  ;;  %v7239_v16 = vpop.f32.mrb[203].mxu1 }
 0x8f9   : > { %7383 = vst.msk [vmem:[%s10460_s10 + $0x128] sm:$0xff] %vm7345_vm3, %v7238_v2 }
 0x8fc   : > { %v7242_v24 = vpop.f32.mrb[204].mxu1 }
 0x8fd   : > { %v7243_v35 = vadd.f32 %v10453_v45, %v7242_v24  ;;  %v7244_v29 = vpop.f32.mrb[205].mxu1 }
 0x8fe   : > { %v7245_v6 = vpop.f32.mrb[206].mxu1 }
 0x8ff   : > { %7384 = vst.msk [vmem:[%s10460_s10 + $0x130] sm:$0xff] %vm7345_vm3, %v7243_v35  ;;  %v7246_v11 = vadd.f32 %v10453_v45, %v7245_v6  ;;  %v7247_v33 = vpop.f32.mrb[207].mxu1 }
 0x901   : > { %7385 = vst.msk [vmem:[%s10460_s10 + $0x138] sm:$0xff] %vm7345_vm3, %v7246_v11 }
 0x904   : > { %v7250_v62 = vpop.f32.mrb[208].mxu1 }
 0x905   : > { %v7251_v13 = vadd.f32 %v10453_v45, %v7250_v62  ;;  %v7252_v10 = vpop.f32.mrb[209].mxu1 }
 0x906   : > { %v7253_v39 = vpop.f32.mrb[210].mxu1 }
 0x907   : > { %7386 = vst.msk [vmem:[%s10460_s10 + $0x140] sm:$0xff] %vm7345_vm3, %v7251_v13  ;;  %v7254_v58 = vadd.f32 %v10453_v45, %v7253_v39  ;;  %v7255_v63 = vpop.f32.mrb[211].mxu1 }
 0x909   : > { %7387 = vst.msk [vmem:[%s10460_s10 + $0x148] sm:$0xff] %vm7345_vm3, %v7254_v58 }
 0x90c   : > { %v7258_v15 = vpop.f32.mrb[212].mxu1 }
 0x90d   : > { %v7259_v41 = vadd.f32 %v10453_v45, %v7258_v15  ;;  %v7260_v9 = vpop.f32.mrb[213].mxu1 }
 0x90e   : > { %v7261_v61 = vpop.f32.mrb[214].mxu1 }
 0x90f   : > { %7388 = vst.msk [vmem:[%s10460_s10 + $0x150] sm:$0xff] %vm7345_vm3, %v7259_v41  ;;  %v7262_v21 = vadd.f32 %v10453_v45, %v7261_v61  ;;  %v7263_v0 = vpop.f32.mrb[215].mxu1 }
 0x911   : > { %7389 = vst.msk [vmem:[%s10460_s10 + $0x158] sm:$0xff] %vm7345_vm3, %v7262_v21 }
 0x914   : > { %v7266_v22 = vpop.f32.mrb[216].mxu1 }
 0x915   : > { %v7267_v5 = vadd.f32 %v10453_v45, %v7266_v22  ;;  %v7268_v57 = vpop.f32.mrb[217].mxu1 }
 0x916   : > { %v7269_v30 = vpop.f32.mrb[218].mxu1 }
 0x917   : > { %7390 = vst.msk [vmem:[%s10460_s10 + $0x160] sm:$0xff] %vm7345_vm3, %v7267_v5  ;;  %v7270_v1 = vadd.f32 %v10453_v45, %v7269_v30  ;;  %v7271_v42 = vpop.f32.mrb[219].mxu1 }
 0x919   : > { %7391 = vst.msk [vmem:[%s10460_s10 + $0x168] sm:$0xff] %vm7345_vm3, %v7270_v1 }
 0x91c   : > { %v7274_v26 = vpop.f32.mrb[220].mxu1 }
 0x91d   : > { %v7275_v38 = vadd.f32 %v10453_v45, %v7274_v26  ;;  %v7276_v44 = vpop.f32.mrb[221].mxu1 }
 0x91e   : > { %v7277_v54 = vpop.f32.mrb[222].mxu1 }
 0x91f   : > { %7392 = vst.msk [vmem:[%s10460_s10 + $0x170] sm:$0xff] %vm7345_vm3, %v7275_v38  ;;  %v7278_v17 = vadd.f32 %v10453_v45, %v7277_v54  ;;  %v7279_v3 = vpop.f32.mrb[223].mxu1 }
 0x921   : > { %7393 = vst.msk [vmem:[%s10460_s10 + $0x178] sm:$0xff] %vm7345_vm3, %v7278_v17 }
 0x924   : > { %v7282_v46 = vpop.f32.mrb[224].mxu1 }
 0x925   : > { %v7283_v32 = vadd.f32 %v10453_v45, %v7282_v46  ;;  %v7284_v31 = vpop.f32.mrb[225].mxu1 }
 0x926   : > { %v7285_v53 = vpop.f32.mrb[226].mxu1 }
 0x927   : > { %7394 = vst.msk [vmem:[%s10460_s10 + $0x180] sm:$0xff] %vm7345_vm3, %v7283_v32  ;;  %v7286_v55 = vadd.f32 %v10453_v45, %v7285_v53  ;;  %v7287_v51 = vpop.f32.mrb[227].mxu1 }
 0x929   : > { %7395 = vst.msk [vmem:[%s10460_s10 + $0x188] sm:$0xff] %vm7345_vm3, %v7286_v55 }
 0x92c   : > { %v7290_v36 = vpop.f32.mrb[228].mxu1 }
 0x92d   : > { %v7291_v40 = vadd.f32 %v10453_v45, %v7290_v36  ;;  %v7292_v48 = vpop.f32.mrb[229].mxu1 }
 0x92e   : > { %v7293_v59 = vpop.f32.mrb[230].mxu1 }
 0x92f   : > { %7396 = vst.msk [vmem:[%s10460_s10 + $0x190] sm:$0xff] %vm7345_vm3, %v7291_v40  ;;  %v7294_v18 = vadd.f32 %v10453_v45, %v7293_v59  ;;  %v7295_v52 = vpop.f32.mrb[231].mxu1 }
 0x931   : > { %7397 = vst.msk [vmem:[%s10460_s10 + $0x198] sm:$0xff] %vm7345_vm3, %v7294_v18 }
 0x934   : > { %v7298_v28 = vpop.f32.mrb[232].mxu1 }
 0x935   : > { %v7299_v49 = vadd.f32 %v10453_v45, %v7298_v28  ;;  %v7300_v25 = vpop.f32.mrb[233].mxu1 }
 0x936   : > { %v7301_v14 = vpop.f32.mrb[234].mxu1 }
 0x937   : > { %7398 = vst.msk [vmem:[%s10460_s10 + $0x1a0] sm:$0xff] %vm7345_vm3, %v7299_v49  ;;  %v7302_v12 = vadd.f32 %v10453_v45, %v7301_v14  ;;  %v7303_v60 = vpop.f32.mrb[235].mxu1 }
 0x939   : > { %7399 = vst.msk [vmem:[%s10460_s10 + $0x1a8] sm:$0xff] %vm7345_vm3, %v7302_v12 }
 0x93c   : > { %v7306_v47 = vpop.f32.mrb[236].mxu1 }
 0x93d   : > { %v7307_v37 = vadd.f32 %v10453_v45, %v7306_v47  ;;  %v7308_v50 = vpop.f32.mrb[237].mxu1 }
 0x93e   : > { %v7309_v4 = vpop.f32.mrb[238].mxu1 }
 0x93f   : > { %7400 = vst.msk [vmem:[%s10460_s10 + $0x1b0] sm:$0xff] %vm7345_vm3, %v7307_v37  ;;  %v7310_v7 = vadd.f32 %v10453_v45, %v7309_v4  ;;  %v7311_v34 = vpop.f32.mrb[239].mxu1 }
 0x941   : > { %7401 = vst.msk [vmem:[%s10460_s10 + $0x1b8] sm:$0xff] %vm7345_vm3, %v7310_v7 }
 0x944   : > { %v7314_v8 = vpop.f32.mrb[240].mxu1 }
 0x945   : > { %v7315_v23 = vadd.f32 %v10453_v45, %v7314_v8  ;;  %v7316_v20 = vpop.f32.mrb[241].mxu1 }
 0x946   : > { %v7317_v19 = vpop.f32.mrb[242].mxu1 }
 0x947   : > { %7402 = vst.msk [vmem:[%s10460_s10 + $0x1c0] sm:$0xff] %vm7345_vm3, %v7315_v23  ;;  %v7318_v43 = vadd.f32 %v10453_v45, %v7317_v19  ;;  %v7319_v27 = vpop.f32.mrb[243].mxu1 }
 0x949   : > { %7403 = vst.msk [vmem:[%s10460_s10 + $0x1c8] sm:$0xff] %vm7345_vm3, %v7318_v43 }
 0x94c   : > { %v7322_v56 = vpop.f32.mrb[244].mxu1 }
 0x94d   : > { %v7323_v2 = vadd.f32 %v10453_v45, %v7322_v56  ;;  %v7324_v16 = vpop.f32.mrb[245].mxu1 }
 0x94e   : > { %v7325_v24 = vpop.f32.mrb[246].mxu1 }
 0x94f   : > { %7404 = vst.msk [vmem:[%s10460_s10 + $0x1d0] sm:$0xff] %vm7345_vm3, %v7323_v2  ;;  %v7326_v35 = vadd.f32 %v10453_v45, %v7325_v24  ;;  %v7327_v29 = vpop.f32.mrb[247].mxu1 }
 0x951   : > { %7405 = vst.msk [vmem:[%s10460_s10 + $0x1d8] sm:$0xff] %vm7345_vm3, %v7326_v35 }
 0x954   : > { %v7330_v6 = vpop.f32.mrb[248].mxu1 }
 0x955   : > { %v7331_v11 = vadd.f32 %v10453_v45, %v7330_v6  ;;  %v7332_v33 = vpop.f32.mrb[249].mxu1 }
 0x956   : > { %v7333_v62 = vpop.f32.mrb[250].mxu1 }
 0x957   : > { %7406 = vst.msk [vmem:[%s10460_s10 + $0x1e0] sm:$0xff] %vm7345_vm3, %v7331_v11  ;;  %v7334_v13 = vadd.f32 %v10453_v45, %v7333_v62  ;;  %v7335_v10 = vpop.f32.mrb[251].mxu1 }
 0x959   : > { %7407 = vst.msk [vmem:[%s10460_s10 + $0x1e8] sm:$0xff] %vm7345_vm3, %v7334_v13 }
 0x95c   : > { %v7338_v39 = vpop.f32.mrb[252].mxu1 }
 0x95d   : > { %v7339_v58 = vadd.f32 %v10453_v45, %v7338_v39  ;;  %v7340_v63 = vpop.f32.mrb[253].mxu1 }
 0x95e   : > { %v7341_v15 = vpop.f32.mrb[254].mxu1 }
 0x95f   : > { %7408 = vst.msk [vmem:[%s10460_s10 + $0x1f0] sm:$0xff] %vm7345_vm3, %v7339_v58  ;;  %v7342_v41 = vadd.f32 %v10453_v45, %v7341_v15  ;;  %v7343_v9 = vpop.f32.mrb[255].mxu1 }
 0x961   : > { %7409 = vst.msk [vmem:[%s10460_s10 + $0x1f8] sm:$0xff] %vm7345_vm3, %v7342_v41 }
 0x962 PF: > { %s17_s21 = sadd.s32 1, %s8346_s21  }
 0x963   : > { %p14_p3 = scmp.ge.s32.totalorder %s17_s21, 4  }
 0x965   :  { %16 = sbr.rel (!%p14_p3) target bundleno = 1 (0x1), region = 92 }
 0x96c   :  { %7432 = vsyncpa [#allocation3], 1 }
 0x96d   :  { %7434 = vsyncpa [#allocation3 + $0x1], 1 }

</bundles_post_ra>
